<compile_context>
chip_gen: v5e
topology: v5e:2x2
jax: 0.10.0
libtpu: 0.0.40
codegen_flags: <defaults>
</compile_context>

<pallas_src>
import functools

import jax
import jax.numpy as jnp
from jax.experimental import pallas as pl
from jax.experimental.pallas import tpu as pltpu


# ----------------------------------------------------------------------------
# In-kernel building blocks (all operate on (channels, H*W) f32 values).
# ----------------------------------------------------------------------------
def _make_tap_masks(H, W):
    """9 float border masks (one per 3x3 tap), each shape (1, H*W).

    Computed once per spatial resolution and reused by every conv at that
    resolution (VPU work hoisted out of the conv helper).
    """
    HW = H * W
    lane = jax.lax.broadcasted_iota(jnp.int32, (1, HW), 1).astype(jnp.float32)
    row = jnp.floor((lane + 0.5) / W)          # exact for small integer lanes
    col = lane - row * W
    masks = []
    for dy in range(3):
        for dx in range(3):
            oy, ox = dy - 1, dx - 1
            r = row + oy
            c = col + ox
            valid = ((r >= 0.0) & (r <= H - 1.0) &
                     (c >= 0.0) & (c <= W - 1.0)).astype(jnp.float32)
            masks.append(valid)
    return masks


def _conv3x3_relu(x2d, w_ref, b_ref, H, W, masks):
    """3x3 'same' conv + bias + ReLU.

    x2d:   (Cin, H*W) f32, spatial flattened on the lane axis.
    w_ref: (Cout, 9*Cin) bf16, rows ordered tap-major: (dy*3+dx)*Cin + cin.
    b_ref: (Cout, 1) f32.
    masks: list of 9 (1, H*W) f32 border masks from _make_tap_masks(H, W).
    Returns (Cout, H*W) f32.
    """
    Cin, HW = x2d.shape
    taps = []
    for dy in range(3):
        for dx in range(3):
            oy, ox = dy - 1, dx - 1
            d = oy * W + ox                    # flat source offset of this tap
            shifted = x2d if d == 0 else pltpu.roll(x2d, shift=(-d) % HW, axis=1)
            taps.append(shifted * masks[dy * 3 + dx])   # zero-pad halo by masking
    w = w_ref[...]                             # (Cout, 9*Cin) bf16
    if Cin % 8 == 0:
        # im2col: one MXU matmul with K = 9*Cin.  Concat in f32 (chunks stay
        # aligned to the (8,128) tile), then one cast to bf16.
        patches = jnp.concatenate(taps, axis=0).astype(jnp.bfloat16)
        acc = jnp.dot(w, patches, preferred_element_type=jnp.float32)
    else:
        # Tiny / sublane-unaligned Cin (only the very first conv): 9 small dots
        # instead of an unaligned sublane concat.
        acc = jnp.zeros((w.shape[0], HW), jnp.float32)
        for t, tap in enumerate(taps):
            acc = acc + jnp.dot(w[:, t * Cin:(t + 1) * Cin],
                                tap.astype(jnp.bfloat16),
                                preferred_element_type=jnp.float32)
    acc = acc + b_ref[...]
    return jnp.maximum(acc, 0.0)


def _maxpool2x2(x2d, H, W):
    """2x2 max pool: (C, H*W) -> (C, (H//2)*(W//2)) via 4 exact 0/1 selection matmuls."""
    HW = H * W
    h2, w2 = H // 2, W // 2
    hw = h2 * w2
    p = jax.lax.broadcasted_iota(jnp.int32, (HW, hw), 0).astype(jnp.float32)
    q = jax.lax.broadcasted_iota(jnp.int32, (HW, hw), 1).astype(jnp.float32)
    q_row = jnp.floor((q + 0.5) / w2)
    q_col = q - q_row * w2
    base = 2.0 * q_row * W + 2.0 * q_col       # top-left source of each 2x2 block
    out = None
    for s in range(2):
        for t in range(2):
            sel = (p == base + float(s * W + t)).astype(jnp.float32)
            v = jnp.dot(x2d, sel, preferred_element_type=jnp.float32)
            out = v if out is None else jnp.maximum(out, v)
    return out


def _upsample2x(x2d, h, w):
    """Nearest 2x upsample: (C, h*w) -> (C, 4*h*w) via an exact 0/1 selection matmul."""
    hw = h * w
    HW = 4 * hw
    W2 = 2 * w
    p = jax.lax.broadcasted_iota(jnp.int32, (hw, HW), 0).astype(jnp.float32)
    q = jax.lax.broadcasted_iota(jnp.int32, (hw, HW), 1).astype(jnp.float32)
    q_row = jnp.floor((q + 0.5) / W2)
    q_col = q - q_row * W2
    src = jnp.floor((q_row + 0.5) / 2.0) * w + jnp.floor((q_col + 0.5) / 2.0)
    sel = (p == src).astype(jnp.float32)
    return jnp.dot(x2d, sel, preferred_element_type=jnp.float32)


# ----------------------------------------------------------------------------
# The fused UNet kernel: one grid step = one full forward for one image.
# ----------------------------------------------------------------------------
def _unet_kernel(x_ref,
                 e1w1, e1b1, e1w2, e1b2,
                 e2w1, e2b1, e2w2, e2b2,
                 bnw1, bnb1, bnw2, bnb2,
                 d2w1, d2b1, d2w2, d2b2,
                 d1w1, d1b1, d1w2, d1b2,
                 fw, fb,
                 o_ref, *, H, W, final_sigmoid):
    H2, W2 = H // 2, W // 2
    H4, W4 = H2 // 2, W2 // 2

    # Border masks, built once per resolution and shared by all convs there.
    mk1 = _make_tap_masks(H, W)
    mk2 = _make_tap_masks(H2, W2)
    mk4 = _make_tap_masks(H4, W4)

    x = x_ref[0]                                                   # (Cin, H*W) f32

    # encoder
    e1 = _conv3x3_relu(x, e1w1, e1b1, H, W, mk1)
    e1 = _conv3x3_relu(e1, e1w2, e1b2, H, W, mk1)                  # (f,  H*W)
    e2 = _conv3x3_relu(_maxpool2x2(e1, H, W), e2w1, e2b1, H2, W2, mk2)
    e2 = _conv3x3_relu(e2, e2w2, e2b2, H2, W2, mk2)                # (2f, H*W/4)
    bt = _conv3x3_relu(_maxpool2x2(e2, H2, W2), bnw1, bnb1, H4, W4, mk4)
    bt = _conv3x3_relu(bt, bnw2, bnb2, H4, W4, mk4)                # (4f, H*W/16)

    # decoder: nearest upsample + skip concat along channels (sublanes)
    d2 = jnp.concatenate([_upsample2x(bt, H4, W4), e2], axis=0)    # (6f, H*W/4)
    d2 = _conv3x3_relu(d2, d2w1, d2b1, H2, W2, mk2)
    d2 = _conv3x3_relu(d2, d2w2, d2b2, H2, W2, mk2)                # (2f, H*W/4)
    d1 = jnp.concatenate([_upsample2x(d2, H2, W2), e1], axis=0)    # (3f, H*W)
    d1 = _conv3x3_relu(d1, d1w1, d1b1, H, W, mk1)
    d1 = _conv3x3_relu(d1, d1w2, d1b2, H, W, mk1)                  # (f,  H*W)

    # final 1x1 conv (+ sigmoid); output last dim H*W is lane-dense.
    y = jnp.dot(fw[...], d1.astype(jnp.bfloat16),
                preferred_element_type=jnp.float32) + fb[...]
    if final_sigmoid:
        y = 1.0 / (1.0 + jnp.exp(-y))
    o_ref[0] = y


# ----------------------------------------------------------------------------
# Parameter init (deterministic, He-style).  Conv weights are stored already
# in the kernel's (Cout, 9*Cin) bf16 im2col layout; biases as (Cout, 1) f32.
# ----------------------------------------------------------------------------
def _he_conv3x3(key, cin, cout):
    w = jax.random.normal(key, (3, 3, cin, cout), jnp.float32) * (2.0 / (9 * cin)) ** 0.5
    w2d = w.reshape(9 * cin, cout).T.astype(jnp.bfloat16)     # (cout, 9*cin), tap-major
    b = jnp.zeros((cout, 1), jnp.float32)
    return w2d, b


def init_unet_params(key, in_channels=1, out_channels=1, f_maps=8):
    # f_maps should be a multiple of 8 so channel concats stay sublane-aligned.
    f = f_maps
    plan = [
        ("enc1", [(in_channels, f), (f, f)]),
        ("enc2", [(f, 2 * f), (2 * f, 2 * f)]),
        ("bott", [(2 * f, 4 * f), (4 * f, 4 * f)]),
        ("dec2", [(4 * f + 2 * f, 2 * f), (2 * f, 2 * f)]),
        ("dec1", [(2 * f + f, f), (f, f)]),
    ]
    params = {}
    for name, convs in plan:
        ps = []
        for cin, cout in convs:
            key, sub = jax.random.split(key)
            ps.append(_he_conv3x3(sub, cin, cout))
        params[name] = tuple(ps)
    key, sub = jax.random.split(key)
    wf = (jax.random.normal(sub, (out_channels, f), jnp.float32)
          * (2.0 / f) ** 0.5).astype(jnp.bfloat16)
    bf = jnp.zeros((out_channels, 1), jnp.float32)
    params["final"] = (wf, bf)
    return params


def _flatten_params(params):
    flat = []
    for name in ("enc1", "enc2", "bott", "dec2", "dec1"):
        for w, b in params[name]:
            flat.extend([w, b])
    flat.extend(list(params["final"]))
    return flat


# ----------------------------------------------------------------------------
# Wrapper: one pallas_call for the whole network.
# ----------------------------------------------------------------------------
def network_3d_unet_forward(x_nchw, params, final_sigmoid=True):
    """Forward of Network_3D_Unet (UNet_type='UNet'): fake_x = Generator(x)."""
    N, Cin, H, W = x_nchw.shape
    assert H % 4 == 0 and W % 4 == 0, "two 2x2 pooling levels need H, W % 4 == 0"
    HW = H * W
    flat = _flatten_params(params)
    Cout = flat[-2].shape[0]

    x2 = x_nchw.reshape(N, Cin, HW)      # free reshape; no NCHW<->NHWC transpose

    kern = functools.partial(_unet_kernel, H=H, W=W, final_sigmoid=final_sigmoid)
    in_specs = [pl.BlockSpec((1, Cin, HW), lambda n: (n, 0, 0))]
    # Params: full-array blocks with a constant index map -> DMA'd once, kept
    # resident across the (sequential) grid iterations.
    in_specs += [pl.BlockSpec(p.shape, lambda n: (0, 0)) for p in flat]

    y2 = pl.pallas_call(
        kern,
        out_shape=jax.ShapeDtypeStruct((N, Cout, HW), jnp.float32),
        grid=(N,),
        in_specs=in_specs,
        out_specs=pl.BlockSpec((1, Cout, HW), lambda n: (n, 0, 0)),
        compiler_params=pltpu.CompilerParams(
            dimension_semantics=("parallel",)),
    )(x2, *flat)
    return y2.reshape(N, Cout, H, W)


if __name__ == "__main__":
    key = jax.random.PRNGKey(0)
    k_x, k_p = jax.random.split(key)

    # small shapes: batch=2, in_channels=1, 16x16 spatial, f_maps=8
    x = jax.random.normal(k_x, (2, 1, 16, 16), jnp.float32)      # NCHW like PyTorch
    params = init_unet_params(k_p, in_channels=1, out_channels=1, f_maps=8)

    y = network_3d_unet_forward(x, params, final_sigmoid=True)
    y = jax.block_until_ready(y)

    assert y.shape == (2, 1, 16, 16)
    assert bool(jnp.all(jnp.isfinite(y)))
    assert bool(jnp.all((y >= 0.0) & (y <= 1.0)))   # sigmoid output range
    print("KERNEL_OK")
</pallas_src>

<mosaic_0001>
module attributes {stable_mosaic.version = 11 : i64} {
  func.func @_unet_kernel(%arg0: i32, %arg1: memref<1x1x256xf32, #tpu.memory_space<vmem>>, %arg2: memref<8x9xbf16, #tpu.memory_space<vmem>>, %arg3: memref<8x1xf32, #tpu.memory_space<vmem>>, %arg4: memref<8x72xbf16, #tpu.memory_space<vmem>>, %arg5: memref<8x1xf32, #tpu.memory_space<vmem>>, %arg6: memref<16x72xbf16, #tpu.memory_space<vmem>>, %arg7: memref<16x1xf32, #tpu.memory_space<vmem>>, %arg8: memref<16x144xbf16, #tpu.memory_space<vmem>>, %arg9: memref<16x1xf32, #tpu.memory_space<vmem>>, %arg10: memref<32x144xbf16, #tpu.memory_space<vmem>>, %arg11: memref<32x1xf32, #tpu.memory_space<vmem>>, %arg12: memref<32x288xbf16, #tpu.memory_space<vmem>>, %arg13: memref<32x1xf32, #tpu.memory_space<vmem>>, %arg14: memref<16x432xbf16, #tpu.memory_space<vmem>>, %arg15: memref<16x1xf32, #tpu.memory_space<vmem>>, %arg16: memref<16x144xbf16, #tpu.memory_space<vmem>>, %arg17: memref<16x1xf32, #tpu.memory_space<vmem>>, %arg18: memref<8x216xbf16, #tpu.memory_space<vmem>>, %arg19: memref<8x1xf32, #tpu.memory_space<vmem>>, %arg20: memref<8x72xbf16, #tpu.memory_space<vmem>>, %arg21: memref<8x1xf32, #tpu.memory_space<vmem>>, %arg22: memref<1x8xbf16, #tpu.memory_space<vmem>>, %arg23: memref<1x1xf32, #tpu.memory_space<vmem>>, %arg24: memref<1x1x256xf32, #tpu.memory_space<vmem>>) attributes {dimension_semantics = [#tpu.dimension_semantics<parallel>], iteration_bounds = array<i64: 2>, scalar_prefetch = 0 : i64, scratch_operands = 0 : i64, tpu.core_type = #tpu.core_type<tc>, window_params = [{transform_indices = @transform_0, window_bounds = array<i64: 1, 1, 256>}, {pipeline_mode = #tpu.pipeline_mode<synchronous>, transform_indices = @transform_1, window_bounds = array<i64: 8, 9>}, {pipeline_mode = #tpu.pipeline_mode<synchronous>, transform_indices = @transform_2, window_bounds = array<i64: 8, 1>}, {pipeline_mode = #tpu.pipeline_mode<synchronous>, transform_indices = @transform_3, window_bounds = array<i64: 8, 72>}, {pipeline_mode = #tpu.pipeline_mode<synchronous>, transform_indices = @transform_4, window_bounds = array<i64: 8, 1>}, {pipeline_mode = #tpu.pipeline_mode<synchronous>, transform_indices = @transform_5, window_bounds = array<i64: 16, 72>}, {pipeline_mode = #tpu.pipeline_mode<synchronous>, transform_indices = @transform_6, window_bounds = array<i64: 16, 1>}, {pipeline_mode = #tpu.pipeline_mode<synchronous>, transform_indices = @transform_7, window_bounds = array<i64: 16, 144>}, {pipeline_mode = #tpu.pipeline_mode<synchronous>, transform_indices = @transform_8, window_bounds = array<i64: 16, 1>}, {pipeline_mode = #tpu.pipeline_mode<synchronous>, transform_indices = @transform_9, window_bounds = array<i64: 32, 144>}, {pipeline_mode = #tpu.pipeline_mode<synchronous>, transform_indices = @transform_10, window_bounds = array<i64: 32, 1>}, {pipeline_mode = #tpu.pipeline_mode<synchronous>, transform_indices = @transform_11, window_bounds = array<i64: 32, 288>}, {pipeline_mode = #tpu.pipeline_mode<synchronous>, transform_indices = @transform_12, window_bounds = array<i64: 32, 1>}, {pipeline_mode = #tpu.pipeline_mode<synchronous>, transform_indices = @transform_13, window_bounds = array<i64: 16, 432>}, {pipeline_mode = #tpu.pipeline_mode<synchronous>, transform_indices = @transform_14, window_bounds = array<i64: 16, 1>}, {pipeline_mode = #tpu.pipeline_mode<synchronous>, transform_indices = @transform_15, window_bounds = array<i64: 16, 144>}, {pipeline_mode = #tpu.pipeline_mode<synchronous>, transform_indices = @transform_16, window_bounds = array<i64: 16, 1>}, {pipeline_mode = #tpu.pipeline_mode<synchronous>, transform_indices = @transform_17, window_bounds = array<i64: 8, 216>}, {pipeline_mode = #tpu.pipeline_mode<synchronous>, transform_indices = @transform_18, window_bounds = array<i64: 8, 1>}, {pipeline_mode = #tpu.pipeline_mode<synchronous>, transform_indices = @transform_19, window_bounds = array<i64: 8, 72>}, {pipeline_mode = #tpu.pipeline_mode<synchronous>, transform_indices = @transform_20, window_bounds = array<i64: 8, 1>}, {pipeline_mode = #tpu.pipeline_mode<synchronous>, transform_indices = @transform_21, window_bounds = array<i64: 1, 8>}, {pipeline_mode = #tpu.pipeline_mode<synchronous>, transform_indices = @transform_22, window_bounds = array<i64: 1, 1>}, {transform_indices = @transform_23, window_bounds = array<i64: 1, 1, 256>}]} {
    %0 = tpu.iota {dimensions = array<i32: 1>} : vector<1x256xi32>
    %1 = arith.sitofp %0 : vector<1x256xi32> to vector<1x256xf32>
    %cst = arith.constant 5.000000e-01 : f32
    %2 = vector.broadcast %cst : f32 to vector<1x256xf32>
    %3 = arith.addf %1, %2 : vector<1x256xf32>
    %cst_0 = arith.constant 1.600000e+01 : f32
    %4 = vector.broadcast %cst_0 : f32 to vector<1x256xf32>
    %5 = arith.divf %3, %4 : vector<1x256xf32>
    %6 = math.floor %5 : vector<1x256xf32>
    %cst_1 = arith.constant 1.600000e+01 : f32
    %7 = vector.broadcast %cst_1 : f32 to vector<1x256xf32>
    %8 = arith.mulf %6, %7 : vector<1x256xf32>
    %9 = arith.subf %1, %8 : vector<1x256xf32>
    %cst_2 = arith.constant -1.000000e+00 : f32
    %10 = vector.broadcast %cst_2 : f32 to vector<1x256xf32>
    %11 = arith.addf %6, %10 : vector<1x256xf32>
    %cst_3 = arith.constant -1.000000e+00 : f32
    %12 = vector.broadcast %cst_3 : f32 to vector<1x256xf32>
    %13 = arith.addf %9, %12 : vector<1x256xf32>
    %cst_4 = arith.constant 0.000000e+00 : f32
    %14 = vector.broadcast %cst_4 : f32 to vector<1x256xf32>
    %15 = arith.cmpf oge, %11, %14 : vector<1x256xf32>
    %cst_5 = arith.constant 1.500000e+01 : f32
    %16 = vector.broadcast %cst_5 : f32 to vector<1x256xf32>
    %17 = arith.cmpf ole, %11, %16 : vector<1x256xf32>
    %18 = arith.andi %15, %17 : vector<1x256xi1>
    %cst_6 = arith.constant 0.000000e+00 : f32
    %19 = vector.broadcast %cst_6 : f32 to vector<1x256xf32>
    %20 = arith.cmpf oge, %13, %19 : vector<1x256xf32>
    %21 = arith.andi %18, %20 : vector<1x256xi1>
    %cst_7 = arith.constant 1.500000e+01 : f32
    %22 = vector.broadcast %cst_7 : f32 to vector<1x256xf32>
    %23 = arith.cmpf ole, %13, %22 : vector<1x256xf32>
    %24 = arith.andi %21, %23 : vector<1x256xi1>
    %25 = arith.extui %24 : vector<1x256xi1> to vector<1x256xi32>
    %26 = arith.sitofp %25 : vector<1x256xi32> to vector<1x256xf32>
    %cst_8 = arith.constant -1.000000e+00 : f32
    %27 = vector.broadcast %cst_8 : f32 to vector<1x256xf32>
    %28 = arith.addf %6, %27 : vector<1x256xf32>
    %cst_9 = arith.constant 0.000000e+00 : f32
    %29 = vector.broadcast %cst_9 : f32 to vector<1x256xf32>
    %30 = arith.addf %9, %29 : vector<1x256xf32>
    %cst_10 = arith.constant 0.000000e+00 : f32
    %31 = vector.broadcast %cst_10 : f32 to vector<1x256xf32>
    %32 = arith.cmpf oge, %28, %31 : vector<1x256xf32>
    %cst_11 = arith.constant 1.500000e+01 : f32
    %33 = vector.broadcast %cst_11 : f32 to vector<1x256xf32>
    %34 = arith.cmpf ole, %28, %33 : vector<1x256xf32>
    %35 = arith.andi %32, %34 : vector<1x256xi1>
    %cst_12 = arith.constant 0.000000e+00 : f32
    %36 = vector.broadcast %cst_12 : f32 to vector<1x256xf32>
    %37 = arith.cmpf oge, %30, %36 : vector<1x256xf32>
    %38 = arith.andi %35, %37 : vector<1x256xi1>
    %cst_13 = arith.constant 1.500000e+01 : f32
    %39 = vector.broadcast %cst_13 : f32 to vector<1x256xf32>
    %40 = arith.cmpf ole, %30, %39 : vector<1x256xf32>
    %41 = arith.andi %38, %40 : vector<1x256xi1>
    %42 = arith.extui %41 : vector<1x256xi1> to vector<1x256xi32>
    %43 = arith.sitofp %42 : vector<1x256xi32> to vector<1x256xf32>
    %cst_14 = arith.constant -1.000000e+00 : f32
    %44 = vector.broadcast %cst_14 : f32 to vector<1x256xf32>
    %45 = arith.addf %6, %44 : vector<1x256xf32>
    %cst_15 = arith.constant 1.000000e+00 : f32
    %46 = vector.broadcast %cst_15 : f32 to vector<1x256xf32>
    %47 = arith.addf %9, %46 : vector<1x256xf32>
    %cst_16 = arith.constant 0.000000e+00 : f32
    %48 = vector.broadcast %cst_16 : f32 to vector<1x256xf32>
    %49 = arith.cmpf oge, %45, %48 : vector<1x256xf32>
    %cst_17 = arith.constant 1.500000e+01 : f32
    %50 = vector.broadcast %cst_17 : f32 to vector<1x256xf32>
    %51 = arith.cmpf ole, %45, %50 : vector<1x256xf32>
    %52 = arith.andi %49, %51 : vector<1x256xi1>
    %cst_18 = arith.constant 0.000000e+00 : f32
    %53 = vector.broadcast %cst_18 : f32 to vector<1x256xf32>
    %54 = arith.cmpf oge, %47, %53 : vector<1x256xf32>
    %55 = arith.andi %52, %54 : vector<1x256xi1>
    %cst_19 = arith.constant 1.500000e+01 : f32
    %56 = vector.broadcast %cst_19 : f32 to vector<1x256xf32>
    %57 = arith.cmpf ole, %47, %56 : vector<1x256xf32>
    %58 = arith.andi %55, %57 : vector<1x256xi1>
    %59 = arith.extui %58 : vector<1x256xi1> to vector<1x256xi32>
    %60 = arith.sitofp %59 : vector<1x256xi32> to vector<1x256xf32>
    %cst_20 = arith.constant 0.000000e+00 : f32
    %61 = vector.broadcast %cst_20 : f32 to vector<1x256xf32>
    %62 = arith.addf %6, %61 : vector<1x256xf32>
    %cst_21 = arith.constant -1.000000e+00 : f32
    %63 = vector.broadcast %cst_21 : f32 to vector<1x256xf32>
    %64 = arith.addf %9, %63 : vector<1x256xf32>
    %cst_22 = arith.constant 0.000000e+00 : f32
    %65 = vector.broadcast %cst_22 : f32 to vector<1x256xf32>
    %66 = arith.cmpf oge, %62, %65 : vector<1x256xf32>
    %cst_23 = arith.constant 1.500000e+01 : f32
    %67 = vector.broadcast %cst_23 : f32 to vector<1x256xf32>
    %68 = arith.cmpf ole, %62, %67 : vector<1x256xf32>
    %69 = arith.andi %66, %68 : vector<1x256xi1>
    %cst_24 = arith.constant 0.000000e+00 : f32
    %70 = vector.broadcast %cst_24 : f32 to vector<1x256xf32>
    %71 = arith.cmpf oge, %64, %70 : vector<1x256xf32>
    %72 = arith.andi %69, %71 : vector<1x256xi1>
    %cst_25 = arith.constant 1.500000e+01 : f32
    %73 = vector.broadcast %cst_25 : f32 to vector<1x256xf32>
    %74 = arith.cmpf ole, %64, %73 : vector<1x256xf32>
    %75 = arith.andi %72, %74 : vector<1x256xi1>
    %76 = arith.extui %75 : vector<1x256xi1> to vector<1x256xi32>
    %77 = arith.sitofp %76 : vector<1x256xi32> to vector<1x256xf32>
    %cst_26 = arith.constant 0.000000e+00 : f32
    %78 = vector.broadcast %cst_26 : f32 to vector<1x256xf32>
    %79 = arith.addf %6, %78 : vector<1x256xf32>
    %cst_27 = arith.constant 0.000000e+00 : f32
    %80 = vector.broadcast %cst_27 : f32 to vector<1x256xf32>
    %81 = arith.addf %9, %80 : vector<1x256xf32>
    %cst_28 = arith.constant 0.000000e+00 : f32
    %82 = vector.broadcast %cst_28 : f32 to vector<1x256xf32>
    %83 = arith.cmpf oge, %79, %82 : vector<1x256xf32>
    %cst_29 = arith.constant 1.500000e+01 : f32
    %84 = vector.broadcast %cst_29 : f32 to vector<1x256xf32>
    %85 = arith.cmpf ole, %79, %84 : vector<1x256xf32>
    %86 = arith.andi %83, %85 : vector<1x256xi1>
    %cst_30 = arith.constant 0.000000e+00 : f32
    %87 = vector.broadcast %cst_30 : f32 to vector<1x256xf32>
    %88 = arith.cmpf oge, %81, %87 : vector<1x256xf32>
    %89 = arith.andi %86, %88 : vector<1x256xi1>
    %cst_31 = arith.constant 1.500000e+01 : f32
    %90 = vector.broadcast %cst_31 : f32 to vector<1x256xf32>
    %91 = arith.cmpf ole, %81, %90 : vector<1x256xf32>
    %92 = arith.andi %89, %91 : vector<1x256xi1>
    %93 = arith.extui %92 : vector<1x256xi1> to vector<1x256xi32>
    %94 = arith.sitofp %93 : vector<1x256xi32> to vector<1x256xf32>
    %cst_32 = arith.constant 0.000000e+00 : f32
    %95 = vector.broadcast %cst_32 : f32 to vector<1x256xf32>
    %96 = arith.addf %6, %95 : vector<1x256xf32>
    %cst_33 = arith.constant 1.000000e+00 : f32
    %97 = vector.broadcast %cst_33 : f32 to vector<1x256xf32>
    %98 = arith.addf %9, %97 : vector<1x256xf32>
    %cst_34 = arith.constant 0.000000e+00 : f32
    %99 = vector.broadcast %cst_34 : f32 to vector<1x256xf32>
    %100 = arith.cmpf oge, %96, %99 : vector<1x256xf32>
    %cst_35 = arith.constant 1.500000e+01 : f32
    %101 = vector.broadcast %cst_35 : f32 to vector<1x256xf32>
    %102 = arith.cmpf ole, %96, %101 : vector<1x256xf32>
    %103 = arith.andi %100, %102 : vector<1x256xi1>
    %cst_36 = arith.constant 0.000000e+00 : f32
    %104 = vector.broadcast %cst_36 : f32 to vector<1x256xf32>
    %105 = arith.cmpf oge, %98, %104 : vector<1x256xf32>
    %106 = arith.andi %103, %105 : vector<1x256xi1>
    %cst_37 = arith.constant 1.500000e+01 : f32
    %107 = vector.broadcast %cst_37 : f32 to vector<1x256xf32>
    %108 = arith.cmpf ole, %98, %107 : vector<1x256xf32>
    %109 = arith.andi %106, %108 : vector<1x256xi1>
    %110 = arith.extui %109 : vector<1x256xi1> to vector<1x256xi32>
    %111 = arith.sitofp %110 : vector<1x256xi32> to vector<1x256xf32>
    %cst_38 = arith.constant 1.000000e+00 : f32
    %112 = vector.broadcast %cst_38 : f32 to vector<1x256xf32>
    %113 = arith.addf %6, %112 : vector<1x256xf32>
    %cst_39 = arith.constant -1.000000e+00 : f32
    %114 = vector.broadcast %cst_39 : f32 to vector<1x256xf32>
    %115 = arith.addf %9, %114 : vector<1x256xf32>
    %cst_40 = arith.constant 0.000000e+00 : f32
    %116 = vector.broadcast %cst_40 : f32 to vector<1x256xf32>
    %117 = arith.cmpf oge, %113, %116 : vector<1x256xf32>
    %cst_41 = arith.constant 1.500000e+01 : f32
    %118 = vector.broadcast %cst_41 : f32 to vector<1x256xf32>
    %119 = arith.cmpf ole, %113, %118 : vector<1x256xf32>
    %120 = arith.andi %117, %119 : vector<1x256xi1>
    %cst_42 = arith.constant 0.000000e+00 : f32
    %121 = vector.broadcast %cst_42 : f32 to vector<1x256xf32>
    %122 = arith.cmpf oge, %115, %121 : vector<1x256xf32>
    %123 = arith.andi %120, %122 : vector<1x256xi1>
    %cst_43 = arith.constant 1.500000e+01 : f32
    %124 = vector.broadcast %cst_43 : f32 to vector<1x256xf32>
    %125 = arith.cmpf ole, %115, %124 : vector<1x256xf32>
    %126 = arith.andi %123, %125 : vector<1x256xi1>
    %127 = arith.extui %126 : vector<1x256xi1> to vector<1x256xi32>
    %128 = arith.sitofp %127 : vector<1x256xi32> to vector<1x256xf32>
    %cst_44 = arith.constant 1.000000e+00 : f32
    %129 = vector.broadcast %cst_44 : f32 to vector<1x256xf32>
    %130 = arith.addf %6, %129 : vector<1x256xf32>
    %cst_45 = arith.constant 0.000000e+00 : f32
    %131 = vector.broadcast %cst_45 : f32 to vector<1x256xf32>
    %132 = arith.addf %9, %131 : vector<1x256xf32>
    %cst_46 = arith.constant 0.000000e+00 : f32
    %133 = vector.broadcast %cst_46 : f32 to vector<1x256xf32>
    %134 = arith.cmpf oge, %130, %133 : vector<1x256xf32>
    %cst_47 = arith.constant 1.500000e+01 : f32
    %135 = vector.broadcast %cst_47 : f32 to vector<1x256xf32>
    %136 = arith.cmpf ole, %130, %135 : vector<1x256xf32>
    %137 = arith.andi %134, %136 : vector<1x256xi1>
    %cst_48 = arith.constant 0.000000e+00 : f32
    %138 = vector.broadcast %cst_48 : f32 to vector<1x256xf32>
    %139 = arith.cmpf oge, %132, %138 : vector<1x256xf32>
    %140 = arith.andi %137, %139 : vector<1x256xi1>
    %cst_49 = arith.constant 1.500000e+01 : f32
    %141 = vector.broadcast %cst_49 : f32 to vector<1x256xf32>
    %142 = arith.cmpf ole, %132, %141 : vector<1x256xf32>
    %143 = arith.andi %140, %142 : vector<1x256xi1>
    %144 = arith.extui %143 : vector<1x256xi1> to vector<1x256xi32>
    %145 = arith.sitofp %144 : vector<1x256xi32> to vector<1x256xf32>
    %cst_50 = arith.constant 1.000000e+00 : f32
    %146 = vector.broadcast %cst_50 : f32 to vector<1x256xf32>
    %147 = arith.addf %6, %146 : vector<1x256xf32>
    %cst_51 = arith.constant 1.000000e+00 : f32
    %148 = vector.broadcast %cst_51 : f32 to vector<1x256xf32>
    %149 = arith.addf %9, %148 : vector<1x256xf32>
    %cst_52 = arith.constant 0.000000e+00 : f32
    %150 = vector.broadcast %cst_52 : f32 to vector<1x256xf32>
    %151 = arith.cmpf oge, %147, %150 : vector<1x256xf32>
    %cst_53 = arith.constant 1.500000e+01 : f32
    %152 = vector.broadcast %cst_53 : f32 to vector<1x256xf32>
    %153 = arith.cmpf ole, %147, %152 : vector<1x256xf32>
    %154 = arith.andi %151, %153 : vector<1x256xi1>
    %cst_54 = arith.constant 0.000000e+00 : f32
    %155 = vector.broadcast %cst_54 : f32 to vector<1x256xf32>
    %156 = arith.cmpf oge, %149, %155 : vector<1x256xf32>
    %157 = arith.andi %154, %156 : vector<1x256xi1>
    %cst_55 = arith.constant 1.500000e+01 : f32
    %158 = vector.broadcast %cst_55 : f32 to vector<1x256xf32>
    %159 = arith.cmpf ole, %149, %158 : vector<1x256xf32>
    %160 = arith.andi %157, %159 : vector<1x256xi1>
    %161 = arith.extui %160 : vector<1x256xi1> to vector<1x256xi32>
    %162 = arith.sitofp %161 : vector<1x256xi32> to vector<1x256xf32>
    %163 = tpu.iota {dimensions = array<i32: 1>} : vector<1x64xi32>
    %164 = arith.sitofp %163 : vector<1x64xi32> to vector<1x64xf32>
    %cst_56 = arith.constant 5.000000e-01 : f32
    %165 = vector.broadcast %cst_56 : f32 to vector<1x64xf32>
    %166 = arith.addf %164, %165 : vector<1x64xf32>
    %cst_57 = arith.constant 8.000000e+00 : f32
    %167 = vector.broadcast %cst_57 : f32 to vector<1x64xf32>
    %168 = arith.divf %166, %167 : vector<1x64xf32>
    %169 = math.floor %168 : vector<1x64xf32>
    %cst_58 = arith.constant 8.000000e+00 : f32
    %170 = vector.broadcast %cst_58 : f32 to vector<1x64xf32>
    %171 = arith.mulf %169, %170 : vector<1x64xf32>
    %172 = arith.subf %164, %171 : vector<1x64xf32>
    %cst_59 = arith.constant -1.000000e+00 : f32
    %173 = vector.broadcast %cst_59 : f32 to vector<1x64xf32>
    %174 = arith.addf %169, %173 : vector<1x64xf32>
    %cst_60 = arith.constant -1.000000e+00 : f32
    %175 = vector.broadcast %cst_60 : f32 to vector<1x64xf32>
    %176 = arith.addf %172, %175 : vector<1x64xf32>
    %cst_61 = arith.constant 0.000000e+00 : f32
    %177 = vector.broadcast %cst_61 : f32 to vector<1x64xf32>
    %178 = arith.cmpf oge, %174, %177 : vector<1x64xf32>
    %cst_62 = arith.constant 7.000000e+00 : f32
    %179 = vector.broadcast %cst_62 : f32 to vector<1x64xf32>
    %180 = arith.cmpf ole, %174, %179 : vector<1x64xf32>
    %181 = arith.andi %178, %180 : vector<1x64xi1>
    %cst_63 = arith.constant 0.000000e+00 : f32
    %182 = vector.broadcast %cst_63 : f32 to vector<1x64xf32>
    %183 = arith.cmpf oge, %176, %182 : vector<1x64xf32>
    %184 = arith.andi %181, %183 : vector<1x64xi1>
    %cst_64 = arith.constant 7.000000e+00 : f32
    %185 = vector.broadcast %cst_64 : f32 to vector<1x64xf32>
    %186 = arith.cmpf ole, %176, %185 : vector<1x64xf32>
    %187 = arith.andi %184, %186 : vector<1x64xi1>
    %188 = arith.extui %187 : vector<1x64xi1> to vector<1x64xi32>
    %189 = arith.sitofp %188 : vector<1x64xi32> to vector<1x64xf32>
    %cst_65 = arith.constant -1.000000e+00 : f32
    %190 = vector.broadcast %cst_65 : f32 to vector<1x64xf32>
    %191 = arith.addf %169, %190 : vector<1x64xf32>
    %cst_66 = arith.constant 0.000000e+00 : f32
    %192 = vector.broadcast %cst_66 : f32 to vector<1x64xf32>
    %193 = arith.addf %172, %192 : vector<1x64xf32>
    %cst_67 = arith.constant 0.000000e+00 : f32
    %194 = vector.broadcast %cst_67 : f32 to vector<1x64xf32>
    %195 = arith.cmpf oge, %191, %194 : vector<1x64xf32>
    %cst_68 = arith.constant 7.000000e+00 : f32
    %196 = vector.broadcast %cst_68 : f32 to vector<1x64xf32>
    %197 = arith.cmpf ole, %191, %196 : vector<1x64xf32>
    %198 = arith.andi %195, %197 : vector<1x64xi1>
    %cst_69 = arith.constant 0.000000e+00 : f32
    %199 = vector.broadcast %cst_69 : f32 to vector<1x64xf32>
    %200 = arith.cmpf oge, %193, %199 : vector<1x64xf32>
    %201 = arith.andi %198, %200 : vector<1x64xi1>
    %cst_70 = arith.constant 7.000000e+00 : f32
    %202 = vector.broadcast %cst_70 : f32 to vector<1x64xf32>
    %203 = arith.cmpf ole, %193, %202 : vector<1x64xf32>
    %204 = arith.andi %201, %203 : vector<1x64xi1>
    %205 = arith.extui %204 : vector<1x64xi1> to vector<1x64xi32>
    %206 = arith.sitofp %205 : vector<1x64xi32> to vector<1x64xf32>
    %cst_71 = arith.constant -1.000000e+00 : f32
    %207 = vector.broadcast %cst_71 : f32 to vector<1x64xf32>
    %208 = arith.addf %169, %207 : vector<1x64xf32>
    %cst_72 = arith.constant 1.000000e+00 : f32
    %209 = vector.broadcast %cst_72 : f32 to vector<1x64xf32>
    %210 = arith.addf %172, %209 : vector<1x64xf32>
    %cst_73 = arith.constant 0.000000e+00 : f32
    %211 = vector.broadcast %cst_73 : f32 to vector<1x64xf32>
    %212 = arith.cmpf oge, %208, %211 : vector<1x64xf32>
    %cst_74 = arith.constant 7.000000e+00 : f32
    %213 = vector.broadcast %cst_74 : f32 to vector<1x64xf32>
    %214 = arith.cmpf ole, %208, %213 : vector<1x64xf32>
    %215 = arith.andi %212, %214 : vector<1x64xi1>
    %cst_75 = arith.constant 0.000000e+00 : f32
    %216 = vector.broadcast %cst_75 : f32 to vector<1x64xf32>
    %217 = arith.cmpf oge, %210, %216 : vector<1x64xf32>
    %218 = arith.andi %215, %217 : vector<1x64xi1>
    %cst_76 = arith.constant 7.000000e+00 : f32
    %219 = vector.broadcast %cst_76 : f32 to vector<1x64xf32>
    %220 = arith.cmpf ole, %210, %219 : vector<1x64xf32>
    %221 = arith.andi %218, %220 : vector<1x64xi1>
    %222 = arith.extui %221 : vector<1x64xi1> to vector<1x64xi32>
    %223 = arith.sitofp %222 : vector<1x64xi32> to vector<1x64xf32>
    %cst_77 = arith.constant 0.000000e+00 : f32
    %224 = vector.broadcast %cst_77 : f32 to vector<1x64xf32>
    %225 = arith.addf %169, %224 : vector<1x64xf32>
    %cst_78 = arith.constant -1.000000e+00 : f32
    %226 = vector.broadcast %cst_78 : f32 to vector<1x64xf32>
    %227 = arith.addf %172, %226 : vector<1x64xf32>
    %cst_79 = arith.constant 0.000000e+00 : f32
    %228 = vector.broadcast %cst_79 : f32 to vector<1x64xf32>
    %229 = arith.cmpf oge, %225, %228 : vector<1x64xf32>
    %cst_80 = arith.constant 7.000000e+00 : f32
    %230 = vector.broadcast %cst_80 : f32 to vector<1x64xf32>
    %231 = arith.cmpf ole, %225, %230 : vector<1x64xf32>
    %232 = arith.andi %229, %231 : vector<1x64xi1>
    %cst_81 = arith.constant 0.000000e+00 : f32
    %233 = vector.broadcast %cst_81 : f32 to vector<1x64xf32>
    %234 = arith.cmpf oge, %227, %233 : vector<1x64xf32>
    %235 = arith.andi %232, %234 : vector<1x64xi1>
    %cst_82 = arith.constant 7.000000e+00 : f32
    %236 = vector.broadcast %cst_82 : f32 to vector<1x64xf32>
    %237 = arith.cmpf ole, %227, %236 : vector<1x64xf32>
    %238 = arith.andi %235, %237 : vector<1x64xi1>
    %239 = arith.extui %238 : vector<1x64xi1> to vector<1x64xi32>
    %240 = arith.sitofp %239 : vector<1x64xi32> to vector<1x64xf32>
    %cst_83 = arith.constant 0.000000e+00 : f32
    %241 = vector.broadcast %cst_83 : f32 to vector<1x64xf32>
    %242 = arith.addf %169, %241 : vector<1x64xf32>
    %cst_84 = arith.constant 0.000000e+00 : f32
    %243 = vector.broadcast %cst_84 : f32 to vector<1x64xf32>
    %244 = arith.addf %172, %243 : vector<1x64xf32>
    %cst_85 = arith.constant 0.000000e+00 : f32
    %245 = vector.broadcast %cst_85 : f32 to vector<1x64xf32>
    %246 = arith.cmpf oge, %242, %245 : vector<1x64xf32>
    %cst_86 = arith.constant 7.000000e+00 : f32
    %247 = vector.broadcast %cst_86 : f32 to vector<1x64xf32>
    %248 = arith.cmpf ole, %242, %247 : vector<1x64xf32>
    %249 = arith.andi %246, %248 : vector<1x64xi1>
    %cst_87 = arith.constant 0.000000e+00 : f32
    %250 = vector.broadcast %cst_87 : f32 to vector<1x64xf32>
    %251 = arith.cmpf oge, %244, %250 : vector<1x64xf32>
    %252 = arith.andi %249, %251 : vector<1x64xi1>
    %cst_88 = arith.constant 7.000000e+00 : f32
    %253 = vector.broadcast %cst_88 : f32 to vector<1x64xf32>
    %254 = arith.cmpf ole, %244, %253 : vector<1x64xf32>
    %255 = arith.andi %252, %254 : vector<1x64xi1>
    %256 = arith.extui %255 : vector<1x64xi1> to vector<1x64xi32>
    %257 = arith.sitofp %256 : vector<1x64xi32> to vector<1x64xf32>
    %cst_89 = arith.constant 0.000000e+00 : f32
    %258 = vector.broadcast %cst_89 : f32 to vector<1x64xf32>
    %259 = arith.addf %169, %258 : vector<1x64xf32>
    %cst_90 = arith.constant 1.000000e+00 : f32
    %260 = vector.broadcast %cst_90 : f32 to vector<1x64xf32>
    %261 = arith.addf %172, %260 : vector<1x64xf32>
    %cst_91 = arith.constant 0.000000e+00 : f32
    %262 = vector.broadcast %cst_91 : f32 to vector<1x64xf32>
    %263 = arith.cmpf oge, %259, %262 : vector<1x64xf32>
    %cst_92 = arith.constant 7.000000e+00 : f32
    %264 = vector.broadcast %cst_92 : f32 to vector<1x64xf32>
    %265 = arith.cmpf ole, %259, %264 : vector<1x64xf32>
    %266 = arith.andi %263, %265 : vector<1x64xi1>
    %cst_93 = arith.constant 0.000000e+00 : f32
    %267 = vector.broadcast %cst_93 : f32 to vector<1x64xf32>
    %268 = arith.cmpf oge, %261, %267 : vector<1x64xf32>
    %269 = arith.andi %266, %268 : vector<1x64xi1>
    %cst_94 = arith.constant 7.000000e+00 : f32
    %270 = vector.broadcast %cst_94 : f32 to vector<1x64xf32>
    %271 = arith.cmpf ole, %261, %270 : vector<1x64xf32>
    %272 = arith.andi %269, %271 : vector<1x64xi1>
    %273 = arith.extui %272 : vector<1x64xi1> to vector<1x64xi32>
    %274 = arith.sitofp %273 : vector<1x64xi32> to vector<1x64xf32>
    %cst_95 = arith.constant 1.000000e+00 : f32
    %275 = vector.broadcast %cst_95 : f32 to vector<1x64xf32>
    %276 = arith.addf %169, %275 : vector<1x64xf32>
    %cst_96 = arith.constant -1.000000e+00 : f32
    %277 = vector.broadcast %cst_96 : f32 to vector<1x64xf32>
    %278 = arith.addf %172, %277 : vector<1x64xf32>
    %cst_97 = arith.constant 0.000000e+00 : f32
    %279 = vector.broadcast %cst_97 : f32 to vector<1x64xf32>
    %280 = arith.cmpf oge, %276, %279 : vector<1x64xf32>
    %cst_98 = arith.constant 7.000000e+00 : f32
    %281 = vector.broadcast %cst_98 : f32 to vector<1x64xf32>
    %282 = arith.cmpf ole, %276, %281 : vector<1x64xf32>
    %283 = arith.andi %280, %282 : vector<1x64xi1>
    %cst_99 = arith.constant 0.000000e+00 : f32
    %284 = vector.broadcast %cst_99 : f32 to vector<1x64xf32>
    %285 = arith.cmpf oge, %278, %284 : vector<1x64xf32>
    %286 = arith.andi %283, %285 : vector<1x64xi1>
    %cst_100 = arith.constant 7.000000e+00 : f32
    %287 = vector.broadcast %cst_100 : f32 to vector<1x64xf32>
    %288 = arith.cmpf ole, %278, %287 : vector<1x64xf32>
    %289 = arith.andi %286, %288 : vector<1x64xi1>
    %290 = arith.extui %289 : vector<1x64xi1> to vector<1x64xi32>
    %291 = arith.sitofp %290 : vector<1x64xi32> to vector<1x64xf32>
    %cst_101 = arith.constant 1.000000e+00 : f32
    %292 = vector.broadcast %cst_101 : f32 to vector<1x64xf32>
    %293 = arith.addf %169, %292 : vector<1x64xf32>
    %cst_102 = arith.constant 0.000000e+00 : f32
    %294 = vector.broadcast %cst_102 : f32 to vector<1x64xf32>
    %295 = arith.addf %172, %294 : vector<1x64xf32>
    %cst_103 = arith.constant 0.000000e+00 : f32
    %296 = vector.broadcast %cst_103 : f32 to vector<1x64xf32>
    %297 = arith.cmpf oge, %293, %296 : vector<1x64xf32>
    %cst_104 = arith.constant 7.000000e+00 : f32
    %298 = vector.broadcast %cst_104 : f32 to vector<1x64xf32>
    %299 = arith.cmpf ole, %293, %298 : vector<1x64xf32>
    %300 = arith.andi %297, %299 : vector<1x64xi1>
    %cst_105 = arith.constant 0.000000e+00 : f32
    %301 = vector.broadcast %cst_105 : f32 to vector<1x64xf32>
    %302 = arith.cmpf oge, %295, %301 : vector<1x64xf32>
    %303 = arith.andi %300, %302 : vector<1x64xi1>
    %cst_106 = arith.constant 7.000000e+00 : f32
    %304 = vector.broadcast %cst_106 : f32 to vector<1x64xf32>
    %305 = arith.cmpf ole, %295, %304 : vector<1x64xf32>
    %306 = arith.andi %303, %305 : vector<1x64xi1>
    %307 = arith.extui %306 : vector<1x64xi1> to vector<1x64xi32>
    %308 = arith.sitofp %307 : vector<1x64xi32> to vector<1x64xf32>
    %cst_107 = arith.constant 1.000000e+00 : f32
    %309 = vector.broadcast %cst_107 : f32 to vector<1x64xf32>
    %310 = arith.addf %169, %309 : vector<1x64xf32>
    %cst_108 = arith.constant 1.000000e+00 : f32
    %311 = vector.broadcast %cst_108 : f32 to vector<1x64xf32>
    %312 = arith.addf %172, %311 : vector<1x64xf32>
    %cst_109 = arith.constant 0.000000e+00 : f32
    %313 = vector.broadcast %cst_109 : f32 to vector<1x64xf32>
    %314 = arith.cmpf oge, %310, %313 : vector<1x64xf32>
    %cst_110 = arith.constant 7.000000e+00 : f32
    %315 = vector.broadcast %cst_110 : f32 to vector<1x64xf32>
    %316 = arith.cmpf ole, %310, %315 : vector<1x64xf32>
    %317 = arith.andi %314, %316 : vector<1x64xi1>
    %cst_111 = arith.constant 0.000000e+00 : f32
    %318 = vector.broadcast %cst_111 : f32 to vector<1x64xf32>
    %319 = arith.cmpf oge, %312, %318 : vector<1x64xf32>
    %320 = arith.andi %317, %319 : vector<1x64xi1>
    %cst_112 = arith.constant 7.000000e+00 : f32
    %321 = vector.broadcast %cst_112 : f32 to vector<1x64xf32>
    %322 = arith.cmpf ole, %312, %321 : vector<1x64xf32>
    %323 = arith.andi %320, %322 : vector<1x64xi1>
    %324 = arith.extui %323 : vector<1x64xi1> to vector<1x64xi32>
    %325 = arith.sitofp %324 : vector<1x64xi32> to vector<1x64xf32>
    %326 = tpu.iota {dimensions = array<i32: 1>} : vector<1x16xi32>
    %327 = arith.sitofp %326 : vector<1x16xi32> to vector<1x16xf32>
    %cst_113 = arith.constant 5.000000e-01 : f32
    %328 = vector.broadcast %cst_113 : f32 to vector<1x16xf32>
    %329 = arith.addf %327, %328 : vector<1x16xf32>
    %cst_114 = arith.constant 4.000000e+00 : f32
    %330 = vector.broadcast %cst_114 : f32 to vector<1x16xf32>
    %331 = arith.divf %329, %330 : vector<1x16xf32>
    %332 = math.floor %331 : vector<1x16xf32>
    %cst_115 = arith.constant 4.000000e+00 : f32
    %333 = vector.broadcast %cst_115 : f32 to vector<1x16xf32>
    %334 = arith.mulf %332, %333 : vector<1x16xf32>
    %335 = arith.subf %327, %334 : vector<1x16xf32>
    %cst_116 = arith.constant -1.000000e+00 : f32
    %336 = vector.broadcast %cst_116 : f32 to vector<1x16xf32>
    %337 = arith.addf %332, %336 : vector<1x16xf32>
    %cst_117 = arith.constant -1.000000e+00 : f32
    %338 = vector.broadcast %cst_117 : f32 to vector<1x16xf32>
    %339 = arith.addf %335, %338 : vector<1x16xf32>
    %cst_118 = arith.constant 0.000000e+00 : f32
    %340 = vector.broadcast %cst_118 : f32 to vector<1x16xf32>
    %341 = arith.cmpf oge, %337, %340 : vector<1x16xf32>
    %cst_119 = arith.constant 3.000000e+00 : f32
    %342 = vector.broadcast %cst_119 : f32 to vector<1x16xf32>
    %343 = arith.cmpf ole, %337, %342 : vector<1x16xf32>
    %344 = arith.andi %341, %343 : vector<1x16xi1>
    %cst_120 = arith.constant 0.000000e+00 : f32
    %345 = vector.broadcast %cst_120 : f32 to vector<1x16xf32>
    %346 = arith.cmpf oge, %339, %345 : vector<1x16xf32>
    %347 = arith.andi %344, %346 : vector<1x16xi1>
    %cst_121 = arith.constant 3.000000e+00 : f32
    %348 = vector.broadcast %cst_121 : f32 to vector<1x16xf32>
    %349 = arith.cmpf ole, %339, %348 : vector<1x16xf32>
    %350 = arith.andi %347, %349 : vector<1x16xi1>
    %351 = arith.extui %350 : vector<1x16xi1> to vector<1x16xi32>
    %352 = arith.sitofp %351 : vector<1x16xi32> to vector<1x16xf32>
    %cst_122 = arith.constant -1.000000e+00 : f32
    %353 = vector.broadcast %cst_122 : f32 to vector<1x16xf32>
    %354 = arith.addf %332, %353 : vector<1x16xf32>
    %cst_123 = arith.constant 0.000000e+00 : f32
    %355 = vector.broadcast %cst_123 : f32 to vector<1x16xf32>
    %356 = arith.addf %335, %355 : vector<1x16xf32>
    %cst_124 = arith.constant 0.000000e+00 : f32
    %357 = vector.broadcast %cst_124 : f32 to vector<1x16xf32>
    %358 = arith.cmpf oge, %354, %357 : vector<1x16xf32>
    %cst_125 = arith.constant 3.000000e+00 : f32
    %359 = vector.broadcast %cst_125 : f32 to vector<1x16xf32>
    %360 = arith.cmpf ole, %354, %359 : vector<1x16xf32>
    %361 = arith.andi %358, %360 : vector<1x16xi1>
    %cst_126 = arith.constant 0.000000e+00 : f32
    %362 = vector.broadcast %cst_126 : f32 to vector<1x16xf32>
    %363 = arith.cmpf oge, %356, %362 : vector<1x16xf32>
    %364 = arith.andi %361, %363 : vector<1x16xi1>
    %cst_127 = arith.constant 3.000000e+00 : f32
    %365 = vector.broadcast %cst_127 : f32 to vector<1x16xf32>
    %366 = arith.cmpf ole, %356, %365 : vector<1x16xf32>
    %367 = arith.andi %364, %366 : vector<1x16xi1>
    %368 = arith.extui %367 : vector<1x16xi1> to vector<1x16xi32>
    %369 = arith.sitofp %368 : vector<1x16xi32> to vector<1x16xf32>
    %cst_128 = arith.constant -1.000000e+00 : f32
    %370 = vector.broadcast %cst_128 : f32 to vector<1x16xf32>
    %371 = arith.addf %332, %370 : vector<1x16xf32>
    %cst_129 = arith.constant 1.000000e+00 : f32
    %372 = vector.broadcast %cst_129 : f32 to vector<1x16xf32>
    %373 = arith.addf %335, %372 : vector<1x16xf32>
    %cst_130 = arith.constant 0.000000e+00 : f32
    %374 = vector.broadcast %cst_130 : f32 to vector<1x16xf32>
    %375 = arith.cmpf oge, %371, %374 : vector<1x16xf32>
    %cst_131 = arith.constant 3.000000e+00 : f32
    %376 = vector.broadcast %cst_131 : f32 to vector<1x16xf32>
    %377 = arith.cmpf ole, %371, %376 : vector<1x16xf32>
    %378 = arith.andi %375, %377 : vector<1x16xi1>
    %cst_132 = arith.constant 0.000000e+00 : f32
    %379 = vector.broadcast %cst_132 : f32 to vector<1x16xf32>
    %380 = arith.cmpf oge, %373, %379 : vector<1x16xf32>
    %381 = arith.andi %378, %380 : vector<1x16xi1>
    %cst_133 = arith.constant 3.000000e+00 : f32
    %382 = vector.broadcast %cst_133 : f32 to vector<1x16xf32>
    %383 = arith.cmpf ole, %373, %382 : vector<1x16xf32>
    %384 = arith.andi %381, %383 : vector<1x16xi1>
    %385 = arith.extui %384 : vector<1x16xi1> to vector<1x16xi32>
    %386 = arith.sitofp %385 : vector<1x16xi32> to vector<1x16xf32>
    %cst_134 = arith.constant 0.000000e+00 : f32
    %387 = vector.broadcast %cst_134 : f32 to vector<1x16xf32>
    %388 = arith.addf %332, %387 : vector<1x16xf32>
    %cst_135 = arith.constant -1.000000e+00 : f32
    %389 = vector.broadcast %cst_135 : f32 to vector<1x16xf32>
    %390 = arith.addf %335, %389 : vector<1x16xf32>
    %cst_136 = arith.constant 0.000000e+00 : f32
    %391 = vector.broadcast %cst_136 : f32 to vector<1x16xf32>
    %392 = arith.cmpf oge, %388, %391 : vector<1x16xf32>
    %cst_137 = arith.constant 3.000000e+00 : f32
    %393 = vector.broadcast %cst_137 : f32 to vector<1x16xf32>
    %394 = arith.cmpf ole, %388, %393 : vector<1x16xf32>
    %395 = arith.andi %392, %394 : vector<1x16xi1>
    %cst_138 = arith.constant 0.000000e+00 : f32
    %396 = vector.broadcast %cst_138 : f32 to vector<1x16xf32>
    %397 = arith.cmpf oge, %390, %396 : vector<1x16xf32>
    %398 = arith.andi %395, %397 : vector<1x16xi1>
    %cst_139 = arith.constant 3.000000e+00 : f32
    %399 = vector.broadcast %cst_139 : f32 to vector<1x16xf32>
    %400 = arith.cmpf ole, %390, %399 : vector<1x16xf32>
    %401 = arith.andi %398, %400 : vector<1x16xi1>
    %402 = arith.extui %401 : vector<1x16xi1> to vector<1x16xi32>
    %403 = arith.sitofp %402 : vector<1x16xi32> to vector<1x16xf32>
    %cst_140 = arith.constant 0.000000e+00 : f32
    %404 = vector.broadcast %cst_140 : f32 to vector<1x16xf32>
    %405 = arith.addf %332, %404 : vector<1x16xf32>
    %cst_141 = arith.constant 0.000000e+00 : f32
    %406 = vector.broadcast %cst_141 : f32 to vector<1x16xf32>
    %407 = arith.addf %335, %406 : vector<1x16xf32>
    %cst_142 = arith.constant 0.000000e+00 : f32
    %408 = vector.broadcast %cst_142 : f32 to vector<1x16xf32>
    %409 = arith.cmpf oge, %405, %408 : vector<1x16xf32>
    %cst_143 = arith.constant 3.000000e+00 : f32
    %410 = vector.broadcast %cst_143 : f32 to vector<1x16xf32>
    %411 = arith.cmpf ole, %405, %410 : vector<1x16xf32>
    %412 = arith.andi %409, %411 : vector<1x16xi1>
    %cst_144 = arith.constant 0.000000e+00 : f32
    %413 = vector.broadcast %cst_144 : f32 to vector<1x16xf32>
    %414 = arith.cmpf oge, %407, %413 : vector<1x16xf32>
    %415 = arith.andi %412, %414 : vector<1x16xi1>
    %cst_145 = arith.constant 3.000000e+00 : f32
    %416 = vector.broadcast %cst_145 : f32 to vector<1x16xf32>
    %417 = arith.cmpf ole, %407, %416 : vector<1x16xf32>
    %418 = arith.andi %415, %417 : vector<1x16xi1>
    %419 = arith.extui %418 : vector<1x16xi1> to vector<1x16xi32>
    %420 = arith.sitofp %419 : vector<1x16xi32> to vector<1x16xf32>
    %cst_146 = arith.constant 0.000000e+00 : f32
    %421 = vector.broadcast %cst_146 : f32 to vector<1x16xf32>
    %422 = arith.addf %332, %421 : vector<1x16xf32>
    %cst_147 = arith.constant 1.000000e+00 : f32
    %423 = vector.broadcast %cst_147 : f32 to vector<1x16xf32>
    %424 = arith.addf %335, %423 : vector<1x16xf32>
    %cst_148 = arith.constant 0.000000e+00 : f32
    %425 = vector.broadcast %cst_148 : f32 to vector<1x16xf32>
    %426 = arith.cmpf oge, %422, %425 : vector<1x16xf32>
    %cst_149 = arith.constant 3.000000e+00 : f32
    %427 = vector.broadcast %cst_149 : f32 to vector<1x16xf32>
    %428 = arith.cmpf ole, %422, %427 : vector<1x16xf32>
    %429 = arith.andi %426, %428 : vector<1x16xi1>
    %cst_150 = arith.constant 0.000000e+00 : f32
    %430 = vector.broadcast %cst_150 : f32 to vector<1x16xf32>
    %431 = arith.cmpf oge, %424, %430 : vector<1x16xf32>
    %432 = arith.andi %429, %431 : vector<1x16xi1>
    %cst_151 = arith.constant 3.000000e+00 : f32
    %433 = vector.broadcast %cst_151 : f32 to vector<1x16xf32>
    %434 = arith.cmpf ole, %424, %433 : vector<1x16xf32>
    %435 = arith.andi %432, %434 : vector<1x16xi1>
    %436 = arith.extui %435 : vector<1x16xi1> to vector<1x16xi32>
    %437 = arith.sitofp %436 : vector<1x16xi32> to vector<1x16xf32>
    %cst_152 = arith.constant 1.000000e+00 : f32
    %438 = vector.broadcast %cst_152 : f32 to vector<1x16xf32>
    %439 = arith.addf %332, %438 : vector<1x16xf32>
    %cst_153 = arith.constant -1.000000e+00 : f32
    %440 = vector.broadcast %cst_153 : f32 to vector<1x16xf32>
    %441 = arith.addf %335, %440 : vector<1x16xf32>
    %cst_154 = arith.constant 0.000000e+00 : f32
    %442 = vector.broadcast %cst_154 : f32 to vector<1x16xf32>
    %443 = arith.cmpf oge, %439, %442 : vector<1x16xf32>
    %cst_155 = arith.constant 3.000000e+00 : f32
    %444 = vector.broadcast %cst_155 : f32 to vector<1x16xf32>
    %445 = arith.cmpf ole, %439, %444 : vector<1x16xf32>
    %446 = arith.andi %443, %445 : vector<1x16xi1>
    %cst_156 = arith.constant 0.000000e+00 : f32
    %447 = vector.broadcast %cst_156 : f32 to vector<1x16xf32>
    %448 = arith.cmpf oge, %441, %447 : vector<1x16xf32>
    %449 = arith.andi %446, %448 : vector<1x16xi1>
    %cst_157 = arith.constant 3.000000e+00 : f32
    %450 = vector.broadcast %cst_157 : f32 to vector<1x16xf32>
    %451 = arith.cmpf ole, %441, %450 : vector<1x16xf32>
    %452 = arith.andi %449, %451 : vector<1x16xi1>
    %453 = arith.extui %452 : vector<1x16xi1> to vector<1x16xi32>
    %454 = arith.sitofp %453 : vector<1x16xi32> to vector<1x16xf32>
    %cst_158 = arith.constant 1.000000e+00 : f32
    %455 = vector.broadcast %cst_158 : f32 to vector<1x16xf32>
    %456 = arith.addf %332, %455 : vector<1x16xf32>
    %cst_159 = arith.constant 0.000000e+00 : f32
    %457 = vector.broadcast %cst_159 : f32 to vector<1x16xf32>
    %458 = arith.addf %335, %457 : vector<1x16xf32>
    %cst_160 = arith.constant 0.000000e+00 : f32
    %459 = vector.broadcast %cst_160 : f32 to vector<1x16xf32>
    %460 = arith.cmpf oge, %456, %459 : vector<1x16xf32>
    %cst_161 = arith.constant 3.000000e+00 : f32
    %461 = vector.broadcast %cst_161 : f32 to vector<1x16xf32>
    %462 = arith.cmpf ole, %456, %461 : vector<1x16xf32>
    %463 = arith.andi %460, %462 : vector<1x16xi1>
    %cst_162 = arith.constant 0.000000e+00 : f32
    %464 = vector.broadcast %cst_162 : f32 to vector<1x16xf32>
    %465 = arith.cmpf oge, %458, %464 : vector<1x16xf32>
    %466 = arith.andi %463, %465 : vector<1x16xi1>
    %cst_163 = arith.constant 3.000000e+00 : f32
    %467 = vector.broadcast %cst_163 : f32 to vector<1x16xf32>
    %468 = arith.cmpf ole, %458, %467 : vector<1x16xf32>
    %469 = arith.andi %466, %468 : vector<1x16xi1>
    %470 = arith.extui %469 : vector<1x16xi1> to vector<1x16xi32>
    %471 = arith.sitofp %470 : vector<1x16xi32> to vector<1x16xf32>
    %cst_164 = arith.constant 1.000000e+00 : f32
    %472 = vector.broadcast %cst_164 : f32 to vector<1x16xf32>
    %473 = arith.addf %332, %472 : vector<1x16xf32>
    %cst_165 = arith.constant 1.000000e+00 : f32
    %474 = vector.broadcast %cst_165 : f32 to vector<1x16xf32>
    %475 = arith.addf %335, %474 : vector<1x16xf32>
    %cst_166 = arith.constant 0.000000e+00 : f32
    %476 = vector.broadcast %cst_166 : f32 to vector<1x16xf32>
    %477 = arith.cmpf oge, %473, %476 : vector<1x16xf32>
    %cst_167 = arith.constant 3.000000e+00 : f32
    %478 = vector.broadcast %cst_167 : f32 to vector<1x16xf32>
    %479 = arith.cmpf ole, %473, %478 : vector<1x16xf32>
    %480 = arith.andi %477, %479 : vector<1x16xi1>
    %cst_168 = arith.constant 0.000000e+00 : f32
    %481 = vector.broadcast %cst_168 : f32 to vector<1x16xf32>
    %482 = arith.cmpf oge, %475, %481 : vector<1x16xf32>
    %483 = arith.andi %480, %482 : vector<1x16xi1>
    %cst_169 = arith.constant 3.000000e+00 : f32
    %484 = vector.broadcast %cst_169 : f32 to vector<1x16xf32>
    %485 = arith.cmpf ole, %475, %484 : vector<1x16xf32>
    %486 = arith.andi %483, %485 : vector<1x16xi1>
    %487 = arith.extui %486 : vector<1x16xi1> to vector<1x16xi32>
    %488 = arith.sitofp %487 : vector<1x16xi32> to vector<1x16xf32>
    %c0 = arith.constant 0 : index
    %c0_170 = arith.constant 0 : index
    %c0_171 = arith.constant 0 : index
    %489 = vector.load %arg1[%c0, %c0_170, %c0_171] : memref<1x1x256xf32, #tpu.memory_space<vmem>>, vector<1x1x256xf32>
    %490 = vector.shape_cast %489 : vector<1x1x256xf32> to vector<1x256xf32>
    %c17_i32 = arith.constant 17 : i32
    %491 = tpu.dynamic_rotate %490 by %c17_i32 dim 1 : vector<1x256xf32>, i32 -> vector<1x256xf32>
    %492 = arith.mulf %491, %26 : vector<1x256xf32>
    %c16_i32 = arith.constant 16 : i32
    %493 = tpu.dynamic_rotate %490 by %c16_i32 dim 1 : vector<1x256xf32>, i32 -> vector<1x256xf32>
    %494 = arith.mulf %493, %43 : vector<1x256xf32>
    %c15_i32 = arith.constant 15 : i32
    %495 = tpu.dynamic_rotate %490 by %c15_i32 dim 1 : vector<1x256xf32>, i32 -> vector<1x256xf32>
    %496 = arith.mulf %495, %60 : vector<1x256xf32>
    %c1_i32 = arith.constant 1 : i32
    %497 = tpu.dynamic_rotate %490 by %c1_i32 dim 1 : vector<1x256xf32>, i32 -> vector<1x256xf32>
    %498 = arith.mulf %497, %77 : vector<1x256xf32>
    %499 = arith.mulf %490, %94 : vector<1x256xf32>
    %c255_i32 = arith.constant 255 : i32
    %500 = tpu.dynamic_rotate %490 by %c255_i32 dim 1 : vector<1x256xf32>, i32 -> vector<1x256xf32>
    %501 = arith.mulf %500, %111 : vector<1x256xf32>
    %c241_i32 = arith.constant 241 : i32
    %502 = tpu.dynamic_rotate %490 by %c241_i32 dim 1 : vector<1x256xf32>, i32 -> vector<1x256xf32>
    %503 = arith.mulf %502, %128 : vector<1x256xf32>
    %c240_i32 = arith.constant 240 : i32
    %504 = tpu.dynamic_rotate %490 by %c240_i32 dim 1 : vector<1x256xf32>, i32 -> vector<1x256xf32>
    %505 = arith.mulf %504, %145 : vector<1x256xf32>
    %c239_i32 = arith.constant 239 : i32
    %506 = tpu.dynamic_rotate %490 by %c239_i32 dim 1 : vector<1x256xf32>, i32 -> vector<1x256xf32>
    %507 = arith.mulf %506, %162 : vector<1x256xf32>
    %c0_172 = arith.constant 0 : index
    %c0_173 = arith.constant 0 : index
    %508 = vector.load %arg2[%c0_172, %c0_173] : memref<8x9xbf16, #tpu.memory_space<vmem>>, vector<8x9xbf16>
    %cst_174 = arith.constant 0.000000e+00 : f32
    %509 = vector.broadcast %cst_174 : f32 to vector<8x256xf32>
    %510 = vector.extract_strided_slice %508 {offsets = [0, 0], sizes = [8, 1], strides = [1, 1]} : vector<8x9xbf16> to vector<8x1xbf16>
    %511 = arith.truncf %492 : vector<1x256xf32> to vector<1x256xbf16>
    %cst_175 = arith.constant dense<0.000000e+00> : vector<8x256xf32>
    %512 = tpu.matmul %510, %511, %cst_175 {dimension_numbers = #tpu.dot_dimension_numbers<[1], [0], [0], [1], [0, 0, 1, 1], [], []>} : vector<8x1xbf16>, vector<1x256xbf16>, vector<8x256xf32> -> vector<8x256xf32>
    %513 = arith.addf %509, %512 : vector<8x256xf32>
    %514 = vector.extract_strided_slice %508 {offsets = [0, 1], sizes = [8, 1], strides = [1, 1]} : vector<8x9xbf16> to vector<8x1xbf16>
    %515 = arith.truncf %494 : vector<1x256xf32> to vector<1x256xbf16>
    %cst_176 = arith.constant dense<0.000000e+00> : vector<8x256xf32>
    %516 = tpu.matmul %514, %515, %cst_176 {dimension_numbers = #tpu.dot_dimension_numbers<[1], [0], [0], [1], [0, 0, 1, 1], [], []>} : vector<8x1xbf16>, vector<1x256xbf16>, vector<8x256xf32> -> vector<8x256xf32>
    %517 = arith.addf %513, %516 : vector<8x256xf32>
    %518 = vector.extract_strided_slice %508 {offsets = [0, 2], sizes = [8, 1], strides = [1, 1]} : vector<8x9xbf16> to vector<8x1xbf16>
    %519 = arith.truncf %496 : vector<1x256xf32> to vector<1x256xbf16>
    %cst_177 = arith.constant dense<0.000000e+00> : vector<8x256xf32>
    %520 = tpu.matmul %518, %519, %cst_177 {dimension_numbers = #tpu.dot_dimension_numbers<[1], [0], [0], [1], [0, 0, 1, 1], [], []>} : vector<8x1xbf16>, vector<1x256xbf16>, vector<8x256xf32> -> vector<8x256xf32>
    %521 = arith.addf %517, %520 : vector<8x256xf32>
    %522 = vector.extract_strided_slice %508 {offsets = [0, 3], sizes = [8, 1], strides = [1, 1]} : vector<8x9xbf16> to vector<8x1xbf16>
    %523 = arith.truncf %498 : vector<1x256xf32> to vector<1x256xbf16>
    %cst_178 = arith.constant dense<0.000000e+00> : vector<8x256xf32>
    %524 = tpu.matmul %522, %523, %cst_178 {dimension_numbers = #tpu.dot_dimension_numbers<[1], [0], [0], [1], [0, 0, 1, 1], [], []>} : vector<8x1xbf16>, vector<1x256xbf16>, vector<8x256xf32> -> vector<8x256xf32>
    %525 = arith.addf %521, %524 : vector<8x256xf32>
    %526 = vector.extract_strided_slice %508 {offsets = [0, 4], sizes = [8, 1], strides = [1, 1]} : vector<8x9xbf16> to vector<8x1xbf16>
    %527 = arith.truncf %499 : vector<1x256xf32> to vector<1x256xbf16>
    %cst_179 = arith.constant dense<0.000000e+00> : vector<8x256xf32>
    %528 = tpu.matmul %526, %527, %cst_179 {dimension_numbers = #tpu.dot_dimension_numbers<[1], [0], [0], [1], [0, 0, 1, 1], [], []>} : vector<8x1xbf16>, vector<1x256xbf16>, vector<8x256xf32> -> vector<8x256xf32>
    %529 = arith.addf %525, %528 : vector<8x256xf32>
    %530 = vector.extract_strided_slice %508 {offsets = [0, 5], sizes = [8, 1], strides = [1, 1]} : vector<8x9xbf16> to vector<8x1xbf16>
    %531 = arith.truncf %501 : vector<1x256xf32> to vector<1x256xbf16>
    %cst_180 = arith.constant dense<0.000000e+00> : vector<8x256xf32>
    %532 = tpu.matmul %530, %531, %cst_180 {dimension_numbers = #tpu.dot_dimension_numbers<[1], [0], [0], [1], [0, 0, 1, 1], [], []>} : vector<8x1xbf16>, vector<1x256xbf16>, vector<8x256xf32> -> vector<8x256xf32>
    %533 = arith.addf %529, %532 : vector<8x256xf32>
    %534 = vector.extract_strided_slice %508 {offsets = [0, 6], sizes = [8, 1], strides = [1, 1]} : vector<8x9xbf16> to vector<8x1xbf16>
    %535 = arith.truncf %503 : vector<1x256xf32> to vector<1x256xbf16>
    %cst_181 = arith.constant dense<0.000000e+00> : vector<8x256xf32>
    %536 = tpu.matmul %534, %535, %cst_181 {dimension_numbers = #tpu.dot_dimension_numbers<[1], [0], [0], [1], [0, 0, 1, 1], [], []>} : vector<8x1xbf16>, vector<1x256xbf16>, vector<8x256xf32> -> vector<8x256xf32>
    %537 = arith.addf %533, %536 : vector<8x256xf32>
    %538 = vector.extract_strided_slice %508 {offsets = [0, 7], sizes = [8, 1], strides = [1, 1]} : vector<8x9xbf16> to vector<8x1xbf16>
    %539 = arith.truncf %505 : vector<1x256xf32> to vector<1x256xbf16>
    %cst_182 = arith.constant dense<0.000000e+00> : vector<8x256xf32>
    %540 = tpu.matmul %538, %539, %cst_182 {dimension_numbers = #tpu.dot_dimension_numbers<[1], [0], [0], [1], [0, 0, 1, 1], [], []>} : vector<8x1xbf16>, vector<1x256xbf16>, vector<8x256xf32> -> vector<8x256xf32>
    %541 = arith.addf %537, %540 : vector<8x256xf32>
    %542 = vector.extract_strided_slice %508 {offsets = [0, 8], sizes = [8, 1], strides = [1, 1]} : vector<8x9xbf16> to vector<8x1xbf16>
    %543 = arith.truncf %507 : vector<1x256xf32> to vector<1x256xbf16>
    %cst_183 = arith.constant dense<0.000000e+00> : vector<8x256xf32>
    %544 = tpu.matmul %542, %543, %cst_183 {dimension_numbers = #tpu.dot_dimension_numbers<[1], [0], [0], [1], [0, 0, 1, 1], [], []>} : vector<8x1xbf16>, vector<1x256xbf16>, vector<8x256xf32> -> vector<8x256xf32>
    %545 = arith.addf %541, %544 : vector<8x256xf32>
    %c0_184 = arith.constant 0 : index
    %c0_185 = arith.constant 0 : index
    %546 = vector.load %arg3[%c0_184, %c0_185] : memref<8x1xf32, #tpu.memory_space<vmem>>, vector<8x1xf32>
    %547 = vector.broadcast %546 : vector<8x1xf32> to vector<8x256xf32>
    %548 = arith.addf %545, %547 : vector<8x256xf32>
    %cst_186 = arith.constant 0.000000e+00 : f32
    %549 = vector.broadcast %cst_186 : f32 to vector<8x256xf32>
    %550 = arith.maximumf %548, %549 : vector<8x256xf32>
    %c17_i32_187 = arith.constant 17 : i32
    %551 = tpu.dynamic_rotate %550 by %c17_i32_187 dim 1 : vector<8x256xf32>, i32 -> vector<8x256xf32>
    %552 = vector.broadcast %26 : vector<1x256xf32> to vector<8x256xf32>
    %553 = arith.mulf %551, %552 : vector<8x256xf32>
    %c16_i32_188 = arith.constant 16 : i32
    %554 = tpu.dynamic_rotate %550 by %c16_i32_188 dim 1 : vector<8x256xf32>, i32 -> vector<8x256xf32>
    %555 = vector.broadcast %43 : vector<1x256xf32> to vector<8x256xf32>
    %556 = arith.mulf %554, %555 : vector<8x256xf32>
    %c15_i32_189 = arith.constant 15 : i32
    %557 = tpu.dynamic_rotate %550 by %c15_i32_189 dim 1 : vector<8x256xf32>, i32 -> vector<8x256xf32>
    %558 = vector.broadcast %60 : vector<1x256xf32> to vector<8x256xf32>
    %559 = arith.mulf %557, %558 : vector<8x256xf32>
    %c1_i32_190 = arith.constant 1 : i32
    %560 = tpu.dynamic_rotate %550 by %c1_i32_190 dim 1 : vector<8x256xf32>, i32 -> vector<8x256xf32>
    %561 = vector.broadcast %77 : vector<1x256xf32> to vector<8x256xf32>
    %562 = arith.mulf %560, %561 : vector<8x256xf32>
    %563 = vector.broadcast %94 : vector<1x256xf32> to vector<8x256xf32>
    %564 = arith.mulf %550, %563 : vector<8x256xf32>
    %c255_i32_191 = arith.constant 255 : i32
    %565 = tpu.dynamic_rotate %550 by %c255_i32_191 dim 1 : vector<8x256xf32>, i32 -> vector<8x256xf32>
    %566 = vector.broadcast %111 : vector<1x256xf32> to vector<8x256xf32>
    %567 = arith.mulf %565, %566 : vector<8x256xf32>
    %c241_i32_192 = arith.constant 241 : i32
    %568 = tpu.dynamic_rotate %550 by %c241_i32_192 dim 1 : vector<8x256xf32>, i32 -> vector<8x256xf32>
    %569 = vector.broadcast %128 : vector<1x256xf32> to vector<8x256xf32>
    %570 = arith.mulf %568, %569 : vector<8x256xf32>
    %c240_i32_193 = arith.constant 240 : i32
    %571 = tpu.dynamic_rotate %550 by %c240_i32_193 dim 1 : vector<8x256xf32>, i32 -> vector<8x256xf32>
    %572 = vector.broadcast %145 : vector<1x256xf32> to vector<8x256xf32>
    %573 = arith.mulf %571, %572 : vector<8x256xf32>
    %c239_i32_194 = arith.constant 239 : i32
    %574 = tpu.dynamic_rotate %550 by %c239_i32_194 dim 1 : vector<8x256xf32>, i32 -> vector<8x256xf32>
    %575 = vector.broadcast %162 : vector<1x256xf32> to vector<8x256xf32>
    %576 = arith.mulf %574, %575 : vector<8x256xf32>
    %c0_195 = arith.constant 0 : index
    %c0_196 = arith.constant 0 : index
    %577 = vector.load %arg4[%c0_195, %c0_196] : memref<8x72xbf16, #tpu.memory_space<vmem>>, vector<8x72xbf16>
    %578 = tpu.concatenate %553, %556, %559, %562, %564, %567, %570, %573, %576 in 0 : vector<8x256xf32>, vector<8x256xf32>, vector<8x256xf32>, vector<8x256xf32>, vector<8x256xf32>, vector<8x256xf32>, vector<8x256xf32>, vector<8x256xf32>, vector<8x256xf32> -> vector<72x256xf32>
    %579 = arith.truncf %578 : vector<72x256xf32> to vector<72x256xbf16>
    %cst_197 = arith.constant dense<0.000000e+00> : vector<8x256xf32>
    %580 = tpu.matmul %577, %579, %cst_197 {dimension_numbers = #tpu.dot_dimension_numbers<[1], [0], [0], [1], [0, 0, 1, 1], [], []>} : vector<8x72xbf16>, vector<72x256xbf16>, vector<8x256xf32> -> vector<8x256xf32>
    %c0_198 = arith.constant 0 : index
    %c0_199 = arith.constant 0 : index
    %581 = vector.load %arg5[%c0_198, %c0_199] : memref<8x1xf32, #tpu.memory_space<vmem>>, vector<8x1xf32>
    %582 = vector.broadcast %581 : vector<8x1xf32> to vector<8x256xf32>
    %583 = arith.addf %580, %582 : vector<8x256xf32>
    %cst_200 = arith.constant 0.000000e+00 : f32
    %584 = vector.broadcast %cst_200 : f32 to vector<8x256xf32>
    %585 = arith.maximumf %583, %584 : vector<8x256xf32>
    %586 = tpu.iota {dimensions = array<i32: 0>} : vector<256x64xi32>
    %587 = arith.sitofp %586 : vector<256x64xi32> to vector<256x64xf32>
    %588 = tpu.iota {dimensions = array<i32: 1>} : vector<256x64xi32>
    %589 = arith.sitofp %588 : vector<256x64xi32> to vector<256x64xf32>
    %cst_201 = arith.constant 5.000000e-01 : f32
    %590 = vector.broadcast %cst_201 : f32 to vector<256x64xf32>
    %591 = arith.addf %589, %590 : vector<256x64xf32>
    %cst_202 = arith.constant 8.000000e+00 : f32
    %592 = vector.broadcast %cst_202 : f32 to vector<256x64xf32>
    %593 = arith.divf %591, %592 : vector<256x64xf32>
    %594 = math.floor %593 : vector<256x64xf32>
    %cst_203 = arith.constant 8.000000e+00 : f32
    %595 = vector.broadcast %cst_203 : f32 to vector<256x64xf32>
    %596 = arith.mulf %594, %595 : vector<256x64xf32>
    %597 = arith.subf %589, %596 : vector<256x64xf32>
    %cst_204 = arith.constant 2.000000e+00 : f32
    %598 = vector.broadcast %cst_204 : f32 to vector<256x64xf32>
    %599 = arith.mulf %598, %594 : vector<256x64xf32>
    %cst_205 = arith.constant 1.600000e+01 : f32
    %600 = vector.broadcast %cst_205 : f32 to vector<256x64xf32>
    %601 = arith.mulf %599, %600 : vector<256x64xf32>
    %cst_206 = arith.constant 2.000000e+00 : f32
    %602 = vector.broadcast %cst_206 : f32 to vector<256x64xf32>
    %603 = arith.mulf %602, %597 : vector<256x64xf32>
    %604 = arith.addf %601, %603 : vector<256x64xf32>
    %cst_207 = arith.constant 0.000000e+00 : f32
    %605 = vector.broadcast %cst_207 : f32 to vector<256x64xf32>
    %606 = arith.addf %604, %605 : vector<256x64xf32>
    %607 = arith.cmpf oeq, %587, %606 : vector<256x64xf32>
    %608 = arith.extui %607 : vector<256x64xi1> to vector<256x64xi32>
    %609 = arith.sitofp %608 : vector<256x64xi32> to vector<256x64xf32>
    %cst_208 = arith.constant dense<0.000000e+00> : vector<8x64xf32>
    %610 = tpu.matmul %585, %609, %cst_208 {dimension_numbers = #tpu.dot_dimension_numbers<[1], [0], [0], [1], [0, 0, 1, 1], [], []>} : vector<8x256xf32>, vector<256x64xf32>, vector<8x64xf32> -> vector<8x64xf32>
    %cst_209 = arith.constant 1.000000e+00 : f32
    %611 = vector.broadcast %cst_209 : f32 to vector<256x64xf32>
    %612 = arith.addf %604, %611 : vector<256x64xf32>
    %613 = arith.cmpf oeq, %587, %612 : vector<256x64xf32>
    %614 = arith.extui %613 : vector<256x64xi1> to vector<256x64xi32>
    %615 = arith.sitofp %614 : vector<256x64xi32> to vector<256x64xf32>
    %cst_210 = arith.constant dense<0.000000e+00> : vector<8x64xf32>
    %616 = tpu.matmul %585, %615, %cst_210 {dimension_numbers = #tpu.dot_dimension_numbers<[1], [0], [0], [1], [0, 0, 1, 1], [], []>} : vector<8x256xf32>, vector<256x64xf32>, vector<8x64xf32> -> vector<8x64xf32>
    %617 = arith.maximumf %610, %616 : vector<8x64xf32>
    %cst_211 = arith.constant 1.600000e+01 : f32
    %618 = vector.broadcast %cst_211 : f32 to vector<256x64xf32>
    %619 = arith.addf %604, %618 : vector<256x64xf32>
    %620 = arith.cmpf oeq, %587, %619 : vector<256x64xf32>
    %621 = arith.extui %620 : vector<256x64xi1> to vector<256x64xi32>
    %622 = arith.sitofp %621 : vector<256x64xi32> to vector<256x64xf32>
    %cst_212 = arith.constant dense<0.000000e+00> : vector<8x64xf32>
    %623 = tpu.matmul %585, %622, %cst_212 {dimension_numbers = #tpu.dot_dimension_numbers<[1], [0], [0], [1], [0, 0, 1, 1], [], []>} : vector<8x256xf32>, vector<256x64xf32>, vector<8x64xf32> -> vector<8x64xf32>
    %624 = arith.maximumf %617, %623 : vector<8x64xf32>
    %cst_213 = arith.constant 1.700000e+01 : f32
    %625 = vector.broadcast %cst_213 : f32 to vector<256x64xf32>
    %626 = arith.addf %604, %625 : vector<256x64xf32>
    %627 = arith.cmpf oeq, %587, %626 : vector<256x64xf32>
    %628 = arith.extui %627 : vector<256x64xi1> to vector<256x64xi32>
    %629 = arith.sitofp %628 : vector<256x64xi32> to vector<256x64xf32>
    %cst_214 = arith.constant dense<0.000000e+00> : vector<8x64xf32>
    %630 = tpu.matmul %585, %629, %cst_214 {dimension_numbers = #tpu.dot_dimension_numbers<[1], [0], [0], [1], [0, 0, 1, 1], [], []>} : vector<8x256xf32>, vector<256x64xf32>, vector<8x64xf32> -> vector<8x64xf32>
    %631 = arith.maximumf %624, %630 : vector<8x64xf32>
    %c9_i32 = arith.constant 9 : i32
    %632 = tpu.dynamic_rotate %631 by %c9_i32 dim 1 : vector<8x64xf32>, i32 -> vector<8x64xf32>
    %633 = vector.broadcast %189 : vector<1x64xf32> to vector<8x64xf32>
    %634 = arith.mulf %632, %633 : vector<8x64xf32>
    %c8_i32 = arith.constant 8 : i32
    %635 = tpu.dynamic_rotate %631 by %c8_i32 dim 1 : vector<8x64xf32>, i32 -> vector<8x64xf32>
    %636 = vector.broadcast %206 : vector<1x64xf32> to vector<8x64xf32>
    %637 = arith.mulf %635, %636 : vector<8x64xf32>
    %c7_i32 = arith.constant 7 : i32
    %638 = tpu.dynamic_rotate %631 by %c7_i32 dim 1 : vector<8x64xf32>, i32 -> vector<8x64xf32>
    %639 = vector.broadcast %223 : vector<1x64xf32> to vector<8x64xf32>
    %640 = arith.mulf %638, %639 : vector<8x64xf32>
    %c1_i32_215 = arith.constant 1 : i32
    %641 = tpu.dynamic_rotate %631 by %c1_i32_215 dim 1 : vector<8x64xf32>, i32 -> vector<8x64xf32>
    %642 = vector.broadcast %240 : vector<1x64xf32> to vector<8x64xf32>
    %643 = arith.mulf %641, %642 : vector<8x64xf32>
    %644 = vector.broadcast %257 : vector<1x64xf32> to vector<8x64xf32>
    %645 = arith.mulf %631, %644 : vector<8x64xf32>
    %c63_i32 = arith.constant 63 : i32
    %646 = tpu.dynamic_rotate %631 by %c63_i32 dim 1 : vector<8x64xf32>, i32 -> vector<8x64xf32>
    %647 = vector.broadcast %274 : vector<1x64xf32> to vector<8x64xf32>
    %648 = arith.mulf %646, %647 : vector<8x64xf32>
    %c57_i32 = arith.constant 57 : i32
    %649 = tpu.dynamic_rotate %631 by %c57_i32 dim 1 : vector<8x64xf32>, i32 -> vector<8x64xf32>
    %650 = vector.broadcast %291 : vector<1x64xf32> to vector<8x64xf32>
    %651 = arith.mulf %649, %650 : vector<8x64xf32>
    %c56_i32 = arith.constant 56 : i32
    %652 = tpu.dynamic_rotate %631 by %c56_i32 dim 1 : vector<8x64xf32>, i32 -> vector<8x64xf32>
    %653 = vector.broadcast %308 : vector<1x64xf32> to vector<8x64xf32>
    %654 = arith.mulf %652, %653 : vector<8x64xf32>
    %c55_i32 = arith.constant 55 : i32
    %655 = tpu.dynamic_rotate %631 by %c55_i32 dim 1 : vector<8x64xf32>, i32 -> vector<8x64xf32>
    %656 = vector.broadcast %325 : vector<1x64xf32> to vector<8x64xf32>
    %657 = arith.mulf %655, %656 : vector<8x64xf32>
    %c0_216 = arith.constant 0 : index
    %c0_217 = arith.constant 0 : index
    %658 = vector.load %arg6[%c0_216, %c0_217] : memref<16x72xbf16, #tpu.memory_space<vmem>>, vector<16x72xbf16>
    %659 = tpu.concatenate %634, %637, %640, %643, %645, %648, %651, %654, %657 in 0 : vector<8x64xf32>, vector<8x64xf32>, vector<8x64xf32>, vector<8x64xf32>, vector<8x64xf32>, vector<8x64xf32>, vector<8x64xf32>, vector<8x64xf32>, vector<8x64xf32> -> vector<72x64xf32>
    %660 = arith.truncf %659 : vector<72x64xf32> to vector<72x64xbf16>
    %cst_218 = arith.constant dense<0.000000e+00> : vector<16x64xf32>
    %661 = tpu.matmul %658, %660, %cst_218 {dimension_numbers = #tpu.dot_dimension_numbers<[1], [0], [0], [1], [0, 0, 1, 1], [], []>} : vector<16x72xbf16>, vector<72x64xbf16>, vector<16x64xf32> -> vector<16x64xf32>
    %c0_219 = arith.constant 0 : index
    %c0_220 = arith.constant 0 : index
    %662 = vector.load %arg7[%c0_219, %c0_220] : memref<16x1xf32, #tpu.memory_space<vmem>>, vector<16x1xf32>
    %663 = vector.broadcast %662 : vector<16x1xf32> to vector<16x64xf32>
    %664 = arith.addf %661, %663 : vector<16x64xf32>
    %cst_221 = arith.constant 0.000000e+00 : f32
    %665 = vector.broadcast %cst_221 : f32 to vector<16x64xf32>
    %666 = arith.maximumf %664, %665 : vector<16x64xf32>
    %c9_i32_222 = arith.constant 9 : i32
    %667 = tpu.dynamic_rotate %666 by %c9_i32_222 dim 1 : vector<16x64xf32>, i32 -> vector<16x64xf32>
    %668 = vector.broadcast %189 : vector<1x64xf32> to vector<16x64xf32>
    %669 = arith.mulf %667, %668 : vector<16x64xf32>
    %c8_i32_223 = arith.constant 8 : i32
    %670 = tpu.dynamic_rotate %666 by %c8_i32_223 dim 1 : vector<16x64xf32>, i32 -> vector<16x64xf32>
    %671 = vector.broadcast %206 : vector<1x64xf32> to vector<16x64xf32>
    %672 = arith.mulf %670, %671 : vector<16x64xf32>
    %c7_i32_224 = arith.constant 7 : i32
    %673 = tpu.dynamic_rotate %666 by %c7_i32_224 dim 1 : vector<16x64xf32>, i32 -> vector<16x64xf32>
    %674 = vector.broadcast %223 : vector<1x64xf32> to vector<16x64xf32>
    %675 = arith.mulf %673, %674 : vector<16x64xf32>
    %c1_i32_225 = arith.constant 1 : i32
    %676 = tpu.dynamic_rotate %666 by %c1_i32_225 dim 1 : vector<16x64xf32>, i32 -> vector<16x64xf32>
    %677 = vector.broadcast %240 : vector<1x64xf32> to vector<16x64xf32>
    %678 = arith.mulf %676, %677 : vector<16x64xf32>
    %679 = vector.broadcast %257 : vector<1x64xf32> to vector<16x64xf32>
    %680 = arith.mulf %666, %679 : vector<16x64xf32>
    %c63_i32_226 = arith.constant 63 : i32
    %681 = tpu.dynamic_rotate %666 by %c63_i32_226 dim 1 : vector<16x64xf32>, i32 -> vector<16x64xf32>
    %682 = vector.broadcast %274 : vector<1x64xf32> to vector<16x64xf32>
    %683 = arith.mulf %681, %682 : vector<16x64xf32>
    %c57_i32_227 = arith.constant 57 : i32
    %684 = tpu.dynamic_rotate %666 by %c57_i32_227 dim 1 : vector<16x64xf32>, i32 -> vector<16x64xf32>
    %685 = vector.broadcast %291 : vector<1x64xf32> to vector<16x64xf32>
    %686 = arith.mulf %684, %685 : vector<16x64xf32>
    %c56_i32_228 = arith.constant 56 : i32
    %687 = tpu.dynamic_rotate %666 by %c56_i32_228 dim 1 : vector<16x64xf32>, i32 -> vector<16x64xf32>
    %688 = vector.broadcast %308 : vector<1x64xf32> to vector<16x64xf32>
    %689 = arith.mulf %687, %688 : vector<16x64xf32>
    %c55_i32_229 = arith.constant 55 : i32
    %690 = tpu.dynamic_rotate %666 by %c55_i32_229 dim 1 : vector<16x64xf32>, i32 -> vector<16x64xf32>
    %691 = vector.broadcast %325 : vector<1x64xf32> to vector<16x64xf32>
    %692 = arith.mulf %690, %691 : vector<16x64xf32>
    %c0_230 = arith.constant 0 : index
    %c0_231 = arith.constant 0 : index
    %693 = vector.load %arg8[%c0_230, %c0_231] : memref<16x144xbf16, #tpu.memory_space<vmem>>, vector<16x144xbf16>
    %694 = tpu.concatenate %669, %672, %675, %678, %680, %683, %686, %689, %692 in 0 : vector<16x64xf32>, vector<16x64xf32>, vector<16x64xf32>, vector<16x64xf32>, vector<16x64xf32>, vector<16x64xf32>, vector<16x64xf32>, vector<16x64xf32>, vector<16x64xf32> -> vector<144x64xf32>
    %695 = arith.truncf %694 : vector<144x64xf32> to vector<144x64xbf16>
    %cst_232 = arith.constant dense<0.000000e+00> : vector<16x64xf32>
    %696 = tpu.matmul %693, %695, %cst_232 {dimension_numbers = #tpu.dot_dimension_numbers<[1], [0], [0], [1], [0, 0, 1, 1], [], []>} : vector<16x144xbf16>, vector<144x64xbf16>, vector<16x64xf32> -> vector<16x64xf32>
    %c0_233 = arith.constant 0 : index
    %c0_234 = arith.constant 0 : index
    %697 = vector.load %arg9[%c0_233, %c0_234] : memref<16x1xf32, #tpu.memory_space<vmem>>, vector<16x1xf32>
    %698 = vector.broadcast %697 : vector<16x1xf32> to vector<16x64xf32>
    %699 = arith.addf %696, %698 : vector<16x64xf32>
    %cst_235 = arith.constant 0.000000e+00 : f32
    %700 = vector.broadcast %cst_235 : f32 to vector<16x64xf32>
    %701 = arith.maximumf %699, %700 : vector<16x64xf32>
    %702 = tpu.iota {dimensions = array<i32: 0>} : vector<64x16xi32>
    %703 = arith.sitofp %702 : vector<64x16xi32> to vector<64x16xf32>
    %704 = tpu.iota {dimensions = array<i32: 1>} : vector<64x16xi32>
    %705 = arith.sitofp %704 : vector<64x16xi32> to vector<64x16xf32>
    %cst_236 = arith.constant 5.000000e-01 : f32
    %706 = vector.broadcast %cst_236 : f32 to vector<64x16xf32>
    %707 = arith.addf %705, %706 : vector<64x16xf32>
    %cst_237 = arith.constant 4.000000e+00 : f32
    %708 = vector.broadcast %cst_237 : f32 to vector<64x16xf32>
    %709 = arith.divf %707, %708 : vector<64x16xf32>
    %710 = math.floor %709 : vector<64x16xf32>
    %cst_238 = arith.constant 4.000000e+00 : f32
    %711 = vector.broadcast %cst_238 : f32 to vector<64x16xf32>
    %712 = arith.mulf %710, %711 : vector<64x16xf32>
    %713 = arith.subf %705, %712 : vector<64x16xf32>
    %cst_239 = arith.constant 2.000000e+00 : f32
    %714 = vector.broadcast %cst_239 : f32 to vector<64x16xf32>
    %715 = arith.mulf %714, %710 : vector<64x16xf32>
    %cst_240 = arith.constant 8.000000e+00 : f32
    %716 = vector.broadcast %cst_240 : f32 to vector<64x16xf32>
    %717 = arith.mulf %715, %716 : vector<64x16xf32>
    %cst_241 = arith.constant 2.000000e+00 : f32
    %718 = vector.broadcast %cst_241 : f32 to vector<64x16xf32>
    %719 = arith.mulf %718, %713 : vector<64x16xf32>
    %720 = arith.addf %717, %719 : vector<64x16xf32>
    %cst_242 = arith.constant 0.000000e+00 : f32
    %721 = vector.broadcast %cst_242 : f32 to vector<64x16xf32>
    %722 = arith.addf %720, %721 : vector<64x16xf32>
    %723 = arith.cmpf oeq, %703, %722 : vector<64x16xf32>
    %724 = arith.extui %723 : vector<64x16xi1> to vector<64x16xi32>
    %725 = arith.sitofp %724 : vector<64x16xi32> to vector<64x16xf32>
    %cst_243 = arith.constant dense<0.000000e+00> : vector<16x16xf32>
    %726 = tpu.matmul %701, %725, %cst_243 {dimension_numbers = #tpu.dot_dimension_numbers<[1], [0], [0], [1], [0, 0, 1, 1], [], []>} : vector<16x64xf32>, vector<64x16xf32>, vector<16x16xf32> -> vector<16x16xf32>
    %cst_244 = arith.constant 1.000000e+00 : f32
    %727 = vector.broadcast %cst_244 : f32 to vector<64x16xf32>
    %728 = arith.addf %720, %727 : vector<64x16xf32>
    %729 = arith.cmpf oeq, %703, %728 : vector<64x16xf32>
    %730 = arith.extui %729 : vector<64x16xi1> to vector<64x16xi32>
    %731 = arith.sitofp %730 : vector<64x16xi32> to vector<64x16xf32>
    %cst_245 = arith.constant dense<0.000000e+00> : vector<16x16xf32>
    %732 = tpu.matmul %701, %731, %cst_245 {dimension_numbers = #tpu.dot_dimension_numbers<[1], [0], [0], [1], [0, 0, 1, 1], [], []>} : vector<16x64xf32>, vector<64x16xf32>, vector<16x16xf32> -> vector<16x16xf32>
    %733 = arith.maximumf %726, %732 : vector<16x16xf32>
    %cst_246 = arith.constant 8.000000e+00 : f32
    %734 = vector.broadcast %cst_246 : f32 to vector<64x16xf32>
    %735 = arith.addf %720, %734 : vector<64x16xf32>
    %736 = arith.cmpf oeq, %703, %735 : vector<64x16xf32>
    %737 = arith.extui %736 : vector<64x16xi1> to vector<64x16xi32>
    %738 = arith.sitofp %737 : vector<64x16xi32> to vector<64x16xf32>
    %cst_247 = arith.constant dense<0.000000e+00> : vector<16x16xf32>
    %739 = tpu.matmul %701, %738, %cst_247 {dimension_numbers = #tpu.dot_dimension_numbers<[1], [0], [0], [1], [0, 0, 1, 1], [], []>} : vector<16x64xf32>, vector<64x16xf32>, vector<16x16xf32> -> vector<16x16xf32>
    %740 = arith.maximumf %733, %739 : vector<16x16xf32>
    %cst_248 = arith.constant 9.000000e+00 : f32
    %741 = vector.broadcast %cst_248 : f32 to vector<64x16xf32>
    %742 = arith.addf %720, %741 : vector<64x16xf32>
    %743 = arith.cmpf oeq, %703, %742 : vector<64x16xf32>
    %744 = arith.extui %743 : vector<64x16xi1> to vector<64x16xi32>
    %745 = arith.sitofp %744 : vector<64x16xi32> to vector<64x16xf32>
    %cst_249 = arith.constant dense<0.000000e+00> : vector<16x16xf32>
    %746 = tpu.matmul %701, %745, %cst_249 {dimension_numbers = #tpu.dot_dimension_numbers<[1], [0], [0], [1], [0, 0, 1, 1], [], []>} : vector<16x64xf32>, vector<64x16xf32>, vector<16x16xf32> -> vector<16x16xf32>
    %747 = arith.maximumf %740, %746 : vector<16x16xf32>
    %c5_i32 = arith.constant 5 : i32
    %748 = tpu.dynamic_rotate %747 by %c5_i32 dim 1 : vector<16x16xf32>, i32 -> vector<16x16xf32>
    %749 = vector.broadcast %352 : vector<1x16xf32> to vector<16x16xf32>
    %750 = arith.mulf %748, %749 : vector<16x16xf32>
    %c4_i32 = arith.constant 4 : i32
    %751 = tpu.dynamic_rotate %747 by %c4_i32 dim 1 : vector<16x16xf32>, i32 -> vector<16x16xf32>
    %752 = vector.broadcast %369 : vector<1x16xf32> to vector<16x16xf32>
    %753 = arith.mulf %751, %752 : vector<16x16xf32>
    %c3_i32 = arith.constant 3 : i32
    %754 = tpu.dynamic_rotate %747 by %c3_i32 dim 1 : vector<16x16xf32>, i32 -> vector<16x16xf32>
    %755 = vector.broadcast %386 : vector<1x16xf32> to vector<16x16xf32>
    %756 = arith.mulf %754, %755 : vector<16x16xf32>
    %c1_i32_250 = arith.constant 1 : i32
    %757 = tpu.dynamic_rotate %747 by %c1_i32_250 dim 1 : vector<16x16xf32>, i32 -> vector<16x16xf32>
    %758 = vector.broadcast %403 : vector<1x16xf32> to vector<16x16xf32>
    %759 = arith.mulf %757, %758 : vector<16x16xf32>
    %760 = vector.broadcast %420 : vector<1x16xf32> to vector<16x16xf32>
    %761 = arith.mulf %747, %760 : vector<16x16xf32>
    %c15_i32_251 = arith.constant 15 : i32
    %762 = tpu.dynamic_rotate %747 by %c15_i32_251 dim 1 : vector<16x16xf32>, i32 -> vector<16x16xf32>
    %763 = vector.broadcast %437 : vector<1x16xf32> to vector<16x16xf32>
    %764 = arith.mulf %762, %763 : vector<16x16xf32>
    %c13_i32 = arith.constant 13 : i32
    %765 = tpu.dynamic_rotate %747 by %c13_i32 dim 1 : vector<16x16xf32>, i32 -> vector<16x16xf32>
    %766 = vector.broadcast %454 : vector<1x16xf32> to vector<16x16xf32>
    %767 = arith.mulf %765, %766 : vector<16x16xf32>
    %c12_i32 = arith.constant 12 : i32
    %768 = tpu.dynamic_rotate %747 by %c12_i32 dim 1 : vector<16x16xf32>, i32 -> vector<16x16xf32>
    %769 = vector.broadcast %471 : vector<1x16xf32> to vector<16x16xf32>
    %770 = arith.mulf %768, %769 : vector<16x16xf32>
    %c11_i32 = arith.constant 11 : i32
    %771 = tpu.dynamic_rotate %747 by %c11_i32 dim 1 : vector<16x16xf32>, i32 -> vector<16x16xf32>
    %772 = vector.broadcast %488 : vector<1x16xf32> to vector<16x16xf32>
    %773 = arith.mulf %771, %772 : vector<16x16xf32>
    %c0_252 = arith.constant 0 : index
    %c0_253 = arith.constant 0 : index
    %774 = vector.load %arg10[%c0_252, %c0_253] : memref<32x144xbf16, #tpu.memory_space<vmem>>, vector<32x144xbf16>
    %775 = tpu.concatenate %750, %753, %756, %759, %761, %764, %767, %770, %773 in 0 : vector<16x16xf32>, vector<16x16xf32>, vector<16x16xf32>, vector<16x16xf32>, vector<16x16xf32>, vector<16x16xf32>, vector<16x16xf32>, vector<16x16xf32>, vector<16x16xf32> -> vector<144x16xf32>
    %776 = arith.truncf %775 : vector<144x16xf32> to vector<144x16xbf16>
    %cst_254 = arith.constant dense<0.000000e+00> : vector<32x16xf32>
    %777 = tpu.matmul %774, %776, %cst_254 {dimension_numbers = #tpu.dot_dimension_numbers<[1], [0], [0], [1], [0, 0, 1, 1], [], []>} : vector<32x144xbf16>, vector<144x16xbf16>, vector<32x16xf32> -> vector<32x16xf32>
    %c0_255 = arith.constant 0 : index
    %c0_256 = arith.constant 0 : index
    %778 = vector.load %arg11[%c0_255, %c0_256] : memref<32x1xf32, #tpu.memory_space<vmem>>, vector<32x1xf32>
    %779 = vector.broadcast %778 : vector<32x1xf32> to vector<32x16xf32>
    %780 = arith.addf %777, %779 : vector<32x16xf32>
    %cst_257 = arith.constant 0.000000e+00 : f32
    %781 = vector.broadcast %cst_257 : f32 to vector<32x16xf32>
    %782 = arith.maximumf %780, %781 : vector<32x16xf32>
    %c5_i32_258 = arith.constant 5 : i32
    %783 = tpu.dynamic_rotate %782 by %c5_i32_258 dim 1 : vector<32x16xf32>, i32 -> vector<32x16xf32>
    %784 = vector.broadcast %352 : vector<1x16xf32> to vector<32x16xf32>
    %785 = arith.mulf %783, %784 : vector<32x16xf32>
    %c4_i32_259 = arith.constant 4 : i32
    %786 = tpu.dynamic_rotate %782 by %c4_i32_259 dim 1 : vector<32x16xf32>, i32 -> vector<32x16xf32>
    %787 = vector.broadcast %369 : vector<1x16xf32> to vector<32x16xf32>
    %788 = arith.mulf %786, %787 : vector<32x16xf32>
    %c3_i32_260 = arith.constant 3 : i32
    %789 = tpu.dynamic_rotate %782 by %c3_i32_260 dim 1 : vector<32x16xf32>, i32 -> vector<32x16xf32>
    %790 = vector.broadcast %386 : vector<1x16xf32> to vector<32x16xf32>
    %791 = arith.mulf %789, %790 : vector<32x16xf32>
    %c1_i32_261 = arith.constant 1 : i32
    %792 = tpu.dynamic_rotate %782 by %c1_i32_261 dim 1 : vector<32x16xf32>, i32 -> vector<32x16xf32>
    %793 = vector.broadcast %403 : vector<1x16xf32> to vector<32x16xf32>
    %794 = arith.mulf %792, %793 : vector<32x16xf32>
    %795 = vector.broadcast %420 : vector<1x16xf32> to vector<32x16xf32>
    %796 = arith.mulf %782, %795 : vector<32x16xf32>
    %c15_i32_262 = arith.constant 15 : i32
    %797 = tpu.dynamic_rotate %782 by %c15_i32_262 dim 1 : vector<32x16xf32>, i32 -> vector<32x16xf32>
    %798 = vector.broadcast %437 : vector<1x16xf32> to vector<32x16xf32>
    %799 = arith.mulf %797, %798 : vector<32x16xf32>
    %c13_i32_263 = arith.constant 13 : i32
    %800 = tpu.dynamic_rotate %782 by %c13_i32_263 dim 1 : vector<32x16xf32>, i32 -> vector<32x16xf32>
    %801 = vector.broadcast %454 : vector<1x16xf32> to vector<32x16xf32>
    %802 = arith.mulf %800, %801 : vector<32x16xf32>
    %c12_i32_264 = arith.constant 12 : i32
    %803 = tpu.dynamic_rotate %782 by %c12_i32_264 dim 1 : vector<32x16xf32>, i32 -> vector<32x16xf32>
    %804 = vector.broadcast %471 : vector<1x16xf32> to vector<32x16xf32>
    %805 = arith.mulf %803, %804 : vector<32x16xf32>
    %c11_i32_265 = arith.constant 11 : i32
    %806 = tpu.dynamic_rotate %782 by %c11_i32_265 dim 1 : vector<32x16xf32>, i32 -> vector<32x16xf32>
    %807 = vector.broadcast %488 : vector<1x16xf32> to vector<32x16xf32>
    %808 = arith.mulf %806, %807 : vector<32x16xf32>
    %c0_266 = arith.constant 0 : index
    %c0_267 = arith.constant 0 : index
    %809 = vector.load %arg12[%c0_266, %c0_267] : memref<32x288xbf16, #tpu.memory_space<vmem>>, vector<32x288xbf16>
    %810 = tpu.concatenate %785, %788, %791, %794, %796, %799, %802, %805, %808 in 0 : vector<32x16xf32>, vector<32x16xf32>, vector<32x16xf32>, vector<32x16xf32>, vector<32x16xf32>, vector<32x16xf32>, vector<32x16xf32>, vector<32x16xf32>, vector<32x16xf32> -> vector<288x16xf32>
    %811 = arith.truncf %810 : vector<288x16xf32> to vector<288x16xbf16>
    %cst_268 = arith.constant dense<0.000000e+00> : vector<32x16xf32>
    %812 = tpu.matmul %809, %811, %cst_268 {dimension_numbers = #tpu.dot_dimension_numbers<[1], [0], [0], [1], [0, 0, 1, 1], [], []>} : vector<32x288xbf16>, vector<288x16xbf16>, vector<32x16xf32> -> vector<32x16xf32>
    %c0_269 = arith.constant 0 : index
    %c0_270 = arith.constant 0 : index
    %813 = vector.load %arg13[%c0_269, %c0_270] : memref<32x1xf32, #tpu.memory_space<vmem>>, vector<32x1xf32>
    %814 = vector.broadcast %813 : vector<32x1xf32> to vector<32x16xf32>
    %815 = arith.addf %812, %814 : vector<32x16xf32>
    %cst_271 = arith.constant 0.000000e+00 : f32
    %816 = vector.broadcast %cst_271 : f32 to vector<32x16xf32>
    %817 = arith.maximumf %815, %816 : vector<32x16xf32>
    %818 = tpu.iota {dimensions = array<i32: 0>} : vector<16x64xi32>
    %819 = arith.sitofp %818 : vector<16x64xi32> to vector<16x64xf32>
    %820 = tpu.iota {dimensions = array<i32: 1>} : vector<16x64xi32>
    %821 = arith.sitofp %820 : vector<16x64xi32> to vector<16x64xf32>
    %cst_272 = arith.constant 5.000000e-01 : f32
    %822 = vector.broadcast %cst_272 : f32 to vector<16x64xf32>
    %823 = arith.addf %821, %822 : vector<16x64xf32>
    %cst_273 = arith.constant 8.000000e+00 : f32
    %824 = vector.broadcast %cst_273 : f32 to vector<16x64xf32>
    %825 = arith.divf %823, %824 : vector<16x64xf32>
    %826 = math.floor %825 : vector<16x64xf32>
    %cst_274 = arith.constant 8.000000e+00 : f32
    %827 = vector.broadcast %cst_274 : f32 to vector<16x64xf32>
    %828 = arith.mulf %826, %827 : vector<16x64xf32>
    %829 = arith.subf %821, %828 : vector<16x64xf32>
    %cst_275 = arith.constant 5.000000e-01 : f32
    %830 = vector.broadcast %cst_275 : f32 to vector<16x64xf32>
    %831 = arith.addf %826, %830 : vector<16x64xf32>
    %cst_276 = arith.constant 2.000000e+00 : f32
    %832 = vector.broadcast %cst_276 : f32 to vector<16x64xf32>
    %833 = arith.divf %831, %832 : vector<16x64xf32>
    %834 = math.floor %833 : vector<16x64xf32>
    %cst_277 = arith.constant 4.000000e+00 : f32
    %835 = vector.broadcast %cst_277 : f32 to vector<16x64xf32>
    %836 = arith.mulf %834, %835 : vector<16x64xf32>
    %cst_278 = arith.constant 5.000000e-01 : f32
    %837 = vector.broadcast %cst_278 : f32 to vector<16x64xf32>
    %838 = arith.addf %829, %837 : vector<16x64xf32>
    %cst_279 = arith.constant 2.000000e+00 : f32
    %839 = vector.broadcast %cst_279 : f32 to vector<16x64xf32>
    %840 = arith.divf %838, %839 : vector<16x64xf32>
    %841 = math.floor %840 : vector<16x64xf32>
    %842 = arith.addf %836, %841 : vector<16x64xf32>
    %843 = arith.cmpf oeq, %819, %842 : vector<16x64xf32>
    %844 = arith.extui %843 : vector<16x64xi1> to vector<16x64xi32>
    %845 = arith.sitofp %844 : vector<16x64xi32> to vector<16x64xf32>
    %cst_280 = arith.constant dense<0.000000e+00> : vector<32x64xf32>
    %846 = tpu.matmul %817, %845, %cst_280 {dimension_numbers = #tpu.dot_dimension_numbers<[1], [0], [0], [1], [0, 0, 1, 1], [], []>} : vector<32x16xf32>, vector<16x64xf32>, vector<32x64xf32> -> vector<32x64xf32>
    %847 = tpu.concatenate %846, %701 in 0 : vector<32x64xf32>, vector<16x64xf32> -> vector<48x64xf32>
    %c9_i32_281 = arith.constant 9 : i32
    %848 = tpu.dynamic_rotate %847 by %c9_i32_281 dim 1 : vector<48x64xf32>, i32 -> vector<48x64xf32>
    %849 = vector.broadcast %189 : vector<1x64xf32> to vector<48x64xf32>
    %850 = arith.mulf %848, %849 : vector<48x64xf32>
    %c8_i32_282 = arith.constant 8 : i32
    %851 = tpu.dynamic_rotate %847 by %c8_i32_282 dim 1 : vector<48x64xf32>, i32 -> vector<48x64xf32>
    %852 = vector.broadcast %206 : vector<1x64xf32> to vector<48x64xf32>
    %853 = arith.mulf %851, %852 : vector<48x64xf32>
    %c7_i32_283 = arith.constant 7 : i32
    %854 = tpu.dynamic_rotate %847 by %c7_i32_283 dim 1 : vector<48x64xf32>, i32 -> vector<48x64xf32>
    %855 = vector.broadcast %223 : vector<1x64xf32> to vector<48x64xf32>
    %856 = arith.mulf %854, %855 : vector<48x64xf32>
    %c1_i32_284 = arith.constant 1 : i32
    %857 = tpu.dynamic_rotate %847 by %c1_i32_284 dim 1 : vector<48x64xf32>, i32 -> vector<48x64xf32>
    %858 = vector.broadcast %240 : vector<1x64xf32> to vector<48x64xf32>
    %859 = arith.mulf %857, %858 : vector<48x64xf32>
    %860 = vector.broadcast %257 : vector<1x64xf32> to vector<48x64xf32>
    %861 = arith.mulf %847, %860 : vector<48x64xf32>
    %c63_i32_285 = arith.constant 63 : i32
    %862 = tpu.dynamic_rotate %847 by %c63_i32_285 dim 1 : vector<48x64xf32>, i32 -> vector<48x64xf32>
    %863 = vector.broadcast %274 : vector<1x64xf32> to vector<48x64xf32>
    %864 = arith.mulf %862, %863 : vector<48x64xf32>
    %c57_i32_286 = arith.constant 57 : i32
    %865 = tpu.dynamic_rotate %847 by %c57_i32_286 dim 1 : vector<48x64xf32>, i32 -> vector<48x64xf32>
    %866 = vector.broadcast %291 : vector<1x64xf32> to vector<48x64xf32>
    %867 = arith.mulf %865, %866 : vector<48x64xf32>
    %c56_i32_287 = arith.constant 56 : i32
    %868 = tpu.dynamic_rotate %847 by %c56_i32_287 dim 1 : vector<48x64xf32>, i32 -> vector<48x64xf32>
    %869 = vector.broadcast %308 : vector<1x64xf32> to vector<48x64xf32>
    %870 = arith.mulf %868, %869 : vector<48x64xf32>
    %c55_i32_288 = arith.constant 55 : i32
    %871 = tpu.dynamic_rotate %847 by %c55_i32_288 dim 1 : vector<48x64xf32>, i32 -> vector<48x64xf32>
    %872 = vector.broadcast %325 : vector<1x64xf32> to vector<48x64xf32>
    %873 = arith.mulf %871, %872 : vector<48x64xf32>
    %c0_289 = arith.constant 0 : index
    %c0_290 = arith.constant 0 : index
    %874 = vector.load %arg14[%c0_289, %c0_290] : memref<16x432xbf16, #tpu.memory_space<vmem>>, vector<16x432xbf16>
    %875 = tpu.concatenate %850, %853, %856, %859, %861, %864, %867, %870, %873 in 0 : vector<48x64xf32>, vector<48x64xf32>, vector<48x64xf32>, vector<48x64xf32>, vector<48x64xf32>, vector<48x64xf32>, vector<48x64xf32>, vector<48x64xf32>, vector<48x64xf32> -> vector<432x64xf32>
    %876 = arith.truncf %875 : vector<432x64xf32> to vector<432x64xbf16>
    %cst_291 = arith.constant dense<0.000000e+00> : vector<16x64xf32>
    %877 = tpu.matmul %874, %876, %cst_291 {dimension_numbers = #tpu.dot_dimension_numbers<[1], [0], [0], [1], [0, 0, 1, 1], [], []>} : vector<16x432xbf16>, vector<432x64xbf16>, vector<16x64xf32> -> vector<16x64xf32>
    %c0_292 = arith.constant 0 : index
    %c0_293 = arith.constant 0 : index
    %878 = vector.load %arg15[%c0_292, %c0_293] : memref<16x1xf32, #tpu.memory_space<vmem>>, vector<16x1xf32>
    %879 = vector.broadcast %878 : vector<16x1xf32> to vector<16x64xf32>
    %880 = arith.addf %877, %879 : vector<16x64xf32>
    %cst_294 = arith.constant 0.000000e+00 : f32
    %881 = vector.broadcast %cst_294 : f32 to vector<16x64xf32>
    %882 = arith.maximumf %880, %881 : vector<16x64xf32>
    %c9_i32_295 = arith.constant 9 : i32
    %883 = tpu.dynamic_rotate %882 by %c9_i32_295 dim 1 : vector<16x64xf32>, i32 -> vector<16x64xf32>
    %884 = vector.broadcast %189 : vector<1x64xf32> to vector<16x64xf32>
    %885 = arith.mulf %883, %884 : vector<16x64xf32>
    %c8_i32_296 = arith.constant 8 : i32
    %886 = tpu.dynamic_rotate %882 by %c8_i32_296 dim 1 : vector<16x64xf32>, i32 -> vector<16x64xf32>
    %887 = vector.broadcast %206 : vector<1x64xf32> to vector<16x64xf32>
    %888 = arith.mulf %886, %887 : vector<16x64xf32>
    %c7_i32_297 = arith.constant 7 : i32
    %889 = tpu.dynamic_rotate %882 by %c7_i32_297 dim 1 : vector<16x64xf32>, i32 -> vector<16x64xf32>
    %890 = vector.broadcast %223 : vector<1x64xf32> to vector<16x64xf32>
    %891 = arith.mulf %889, %890 : vector<16x64xf32>
    %c1_i32_298 = arith.constant 1 : i32
    %892 = tpu.dynamic_rotate %882 by %c1_i32_298 dim 1 : vector<16x64xf32>, i32 -> vector<16x64xf32>
    %893 = vector.broadcast %240 : vector<1x64xf32> to vector<16x64xf32>
    %894 = arith.mulf %892, %893 : vector<16x64xf32>
    %895 = vector.broadcast %257 : vector<1x64xf32> to vector<16x64xf32>
    %896 = arith.mulf %882, %895 : vector<16x64xf32>
    %c63_i32_299 = arith.constant 63 : i32
    %897 = tpu.dynamic_rotate %882 by %c63_i32_299 dim 1 : vector<16x64xf32>, i32 -> vector<16x64xf32>
    %898 = vector.broadcast %274 : vector<1x64xf32> to vector<16x64xf32>
    %899 = arith.mulf %897, %898 : vector<16x64xf32>
    %c57_i32_300 = arith.constant 57 : i32
    %900 = tpu.dynamic_rotate %882 by %c57_i32_300 dim 1 : vector<16x64xf32>, i32 -> vector<16x64xf32>
    %901 = vector.broadcast %291 : vector<1x64xf32> to vector<16x64xf32>
    %902 = arith.mulf %900, %901 : vector<16x64xf32>
    %c56_i32_301 = arith.constant 56 : i32
    %903 = tpu.dynamic_rotate %882 by %c56_i32_301 dim 1 : vector<16x64xf32>, i32 -> vector<16x64xf32>
    %904 = vector.broadcast %308 : vector<1x64xf32> to vector<16x64xf32>
    %905 = arith.mulf %903, %904 : vector<16x64xf32>
    %c55_i32_302 = arith.constant 55 : i32
    %906 = tpu.dynamic_rotate %882 by %c55_i32_302 dim 1 : vector<16x64xf32>, i32 -> vector<16x64xf32>
    %907 = vector.broadcast %325 : vector<1x64xf32> to vector<16x64xf32>
    %908 = arith.mulf %906, %907 : vector<16x64xf32>
    %c0_303 = arith.constant 0 : index
    %c0_304 = arith.constant 0 : index
    %909 = vector.load %arg16[%c0_303, %c0_304] : memref<16x144xbf16, #tpu.memory_space<vmem>>, vector<16x144xbf16>
    %910 = tpu.concatenate %885, %888, %891, %894, %896, %899, %902, %905, %908 in 0 : vector<16x64xf32>, vector<16x64xf32>, vector<16x64xf32>, vector<16x64xf32>, vector<16x64xf32>, vector<16x64xf32>, vector<16x64xf32>, vector<16x64xf32>, vector<16x64xf32> -> vector<144x64xf32>
    %911 = arith.truncf %910 : vector<144x64xf32> to vector<144x64xbf16>
    %cst_305 = arith.constant dense<0.000000e+00> : vector<16x64xf32>
    %912 = tpu.matmul %909, %911, %cst_305 {dimension_numbers = #tpu.dot_dimension_numbers<[1], [0], [0], [1], [0, 0, 1, 1], [], []>} : vector<16x144xbf16>, vector<144x64xbf16>, vector<16x64xf32> -> vector<16x64xf32>
    %c0_306 = arith.constant 0 : index
    %c0_307 = arith.constant 0 : index
    %913 = vector.load %arg17[%c0_306, %c0_307] : memref<16x1xf32, #tpu.memory_space<vmem>>, vector<16x1xf32>
    %914 = vector.broadcast %913 : vector<16x1xf32> to vector<16x64xf32>
    %915 = arith.addf %912, %914 : vector<16x64xf32>
    %cst_308 = arith.constant 0.000000e+00 : f32
    %916 = vector.broadcast %cst_308 : f32 to vector<16x64xf32>
    %917 = arith.maximumf %915, %916 : vector<16x64xf32>
    %918 = tpu.iota {dimensions = array<i32: 0>} : vector<64x256xi32>
    %919 = arith.sitofp %918 : vector<64x256xi32> to vector<64x256xf32>
    %920 = tpu.iota {dimensions = array<i32: 1>} : vector<64x256xi32>
    %921 = arith.sitofp %920 : vector<64x256xi32> to vector<64x256xf32>
    %cst_309 = arith.constant 5.000000e-01 : f32
    %922 = vector.broadcast %cst_309 : f32 to vector<64x256xf32>
    %923 = arith.addf %921, %922 : vector<64x256xf32>
    %cst_310 = arith.constant 1.600000e+01 : f32
    %924 = vector.broadcast %cst_310 : f32 to vector<64x256xf32>
    %925 = arith.divf %923, %924 : vector<64x256xf32>
    %926 = math.floor %925 : vector<64x256xf32>
    %cst_311 = arith.constant 1.600000e+01 : f32
    %927 = vector.broadcast %cst_311 : f32 to vector<64x256xf32>
    %928 = arith.mulf %926, %927 : vector<64x256xf32>
    %929 = arith.subf %921, %928 : vector<64x256xf32>
    %cst_312 = arith.constant 5.000000e-01 : f32
    %930 = vector.broadcast %cst_312 : f32 to vector<64x256xf32>
    %931 = arith.addf %926, %930 : vector<64x256xf32>
    %cst_313 = arith.constant 2.000000e+00 : f32
    %932 = vector.broadcast %cst_313 : f32 to vector<64x256xf32>
    %933 = arith.divf %931, %932 : vector<64x256xf32>
    %934 = math.floor %933 : vector<64x256xf32>
    %cst_314 = arith.constant 8.000000e+00 : f32
    %935 = vector.broadcast %cst_314 : f32 to vector<64x256xf32>
    %936 = arith.mulf %934, %935 : vector<64x256xf32>
    %cst_315 = arith.constant 5.000000e-01 : f32
    %937 = vector.broadcast %cst_315 : f32 to vector<64x256xf32>
    %938 = arith.addf %929, %937 : vector<64x256xf32>
    %cst_316 = arith.constant 2.000000e+00 : f32
    %939 = vector.broadcast %cst_316 : f32 to vector<64x256xf32>
    %940 = arith.divf %938, %939 : vector<64x256xf32>
    %941 = math.floor %940 : vector<64x256xf32>
    %942 = arith.addf %936, %941 : vector<64x256xf32>
    %943 = arith.cmpf oeq, %919, %942 : vector<64x256xf32>
    %944 = arith.extui %943 : vector<64x256xi1> to vector<64x256xi32>
    %945 = arith.sitofp %944 : vector<64x256xi32> to vector<64x256xf32>
    %cst_317 = arith.constant dense<0.000000e+00> : vector<16x256xf32>
    %946 = tpu.matmul %917, %945, %cst_317 {dimension_numbers = #tpu.dot_dimension_numbers<[1], [0], [0], [1], [0, 0, 1, 1], [], []>} : vector<16x64xf32>, vector<64x256xf32>, vector<16x256xf32> -> vector<16x256xf32>
    %947 = tpu.concatenate %946, %585 in 0 : vector<16x256xf32>, vector<8x256xf32> -> vector<24x256xf32>
    %c17_i32_318 = arith.constant 17 : i32
    %948 = tpu.dynamic_rotate %947 by %c17_i32_318 dim 1 : vector<24x256xf32>, i32 -> vector<24x256xf32>
    %949 = vector.broadcast %26 : vector<1x256xf32> to vector<24x256xf32>
    %950 = arith.mulf %948, %949 : vector<24x256xf32>
    %c16_i32_319 = arith.constant 16 : i32
    %951 = tpu.dynamic_rotate %947 by %c16_i32_319 dim 1 : vector<24x256xf32>, i32 -> vector<24x256xf32>
    %952 = vector.broadcast %43 : vector<1x256xf32> to vector<24x256xf32>
    %953 = arith.mulf %951, %952 : vector<24x256xf32>
    %c15_i32_320 = arith.constant 15 : i32
    %954 = tpu.dynamic_rotate %947 by %c15_i32_320 dim 1 : vector<24x256xf32>, i32 -> vector<24x256xf32>
    %955 = vector.broadcast %60 : vector<1x256xf32> to vector<24x256xf32>
    %956 = arith.mulf %954, %955 : vector<24x256xf32>
    %c1_i32_321 = arith.constant 1 : i32
    %957 = tpu.dynamic_rotate %947 by %c1_i32_321 dim 1 : vector<24x256xf32>, i32 -> vector<24x256xf32>
    %958 = vector.broadcast %77 : vector<1x256xf32> to vector<24x256xf32>
    %959 = arith.mulf %957, %958 : vector<24x256xf32>
    %960 = vector.broadcast %94 : vector<1x256xf32> to vector<24x256xf32>
    %961 = arith.mulf %947, %960 : vector<24x256xf32>
    %c255_i32_322 = arith.constant 255 : i32
    %962 = tpu.dynamic_rotate %947 by %c255_i32_322 dim 1 : vector<24x256xf32>, i32 -> vector<24x256xf32>
    %963 = vector.broadcast %111 : vector<1x256xf32> to vector<24x256xf32>
    %964 = arith.mulf %962, %963 : vector<24x256xf32>
    %c241_i32_323 = arith.constant 241 : i32
    %965 = tpu.dynamic_rotate %947 by %c241_i32_323 dim 1 : vector<24x256xf32>, i32 -> vector<24x256xf32>
    %966 = vector.broadcast %128 : vector<1x256xf32> to vector<24x256xf32>
    %967 = arith.mulf %965, %966 : vector<24x256xf32>
    %c240_i32_324 = arith.constant 240 : i32
    %968 = tpu.dynamic_rotate %947 by %c240_i32_324 dim 1 : vector<24x256xf32>, i32 -> vector<24x256xf32>
    %969 = vector.broadcast %145 : vector<1x256xf32> to vector<24x256xf32>
    %970 = arith.mulf %968, %969 : vector<24x256xf32>
    %c239_i32_325 = arith.constant 239 : i32
    %971 = tpu.dynamic_rotate %947 by %c239_i32_325 dim 1 : vector<24x256xf32>, i32 -> vector<24x256xf32>
    %972 = vector.broadcast %162 : vector<1x256xf32> to vector<24x256xf32>
    %973 = arith.mulf %971, %972 : vector<24x256xf32>
    %c0_326 = arith.constant 0 : index
    %c0_327 = arith.constant 0 : index
    %974 = vector.load %arg18[%c0_326, %c0_327] : memref<8x216xbf16, #tpu.memory_space<vmem>>, vector<8x216xbf16>
    %975 = tpu.concatenate %950, %953, %956, %959, %961, %964, %967, %970, %973 in 0 : vector<24x256xf32>, vector<24x256xf32>, vector<24x256xf32>, vector<24x256xf32>, vector<24x256xf32>, vector<24x256xf32>, vector<24x256xf32>, vector<24x256xf32>, vector<24x256xf32> -> vector<216x256xf32>
    %976 = arith.truncf %975 : vector<216x256xf32> to vector<216x256xbf16>
    %cst_328 = arith.constant dense<0.000000e+00> : vector<8x256xf32>
    %977 = tpu.matmul %974, %976, %cst_328 {dimension_numbers = #tpu.dot_dimension_numbers<[1], [0], [0], [1], [0, 0, 1, 1], [], []>} : vector<8x216xbf16>, vector<216x256xbf16>, vector<8x256xf32> -> vector<8x256xf32>
    %c0_329 = arith.constant 0 : index
    %c0_330 = arith.constant 0 : index
    %978 = vector.load %arg19[%c0_329, %c0_330] : memref<8x1xf32, #tpu.memory_space<vmem>>, vector<8x1xf32>
    %979 = vector.broadcast %978 : vector<8x1xf32> to vector<8x256xf32>
    %980 = arith.addf %977, %979 : vector<8x256xf32>
    %cst_331 = arith.constant 0.000000e+00 : f32
    %981 = vector.broadcast %cst_331 : f32 to vector<8x256xf32>
    %982 = arith.maximumf %980, %981 : vector<8x256xf32>
    %c17_i32_332 = arith.constant 17 : i32
    %983 = tpu.dynamic_rotate %982 by %c17_i32_332 dim 1 : vector<8x256xf32>, i32 -> vector<8x256xf32>
    %984 = vector.broadcast %26 : vector<1x256xf32> to vector<8x256xf32>
    %985 = arith.mulf %983, %984 : vector<8x256xf32>
    %c16_i32_333 = arith.constant 16 : i32
    %986 = tpu.dynamic_rotate %982 by %c16_i32_333 dim 1 : vector<8x256xf32>, i32 -> vector<8x256xf32>
    %987 = vector.broadcast %43 : vector<1x256xf32> to vector<8x256xf32>
    %988 = arith.mulf %986, %987 : vector<8x256xf32>
    %c15_i32_334 = arith.constant 15 : i32
    %989 = tpu.dynamic_rotate %982 by %c15_i32_334 dim 1 : vector<8x256xf32>, i32 -> vector<8x256xf32>
    %990 = vector.broadcast %60 : vector<1x256xf32> to vector<8x256xf32>
    %991 = arith.mulf %989, %990 : vector<8x256xf32>
    %c1_i32_335 = arith.constant 1 : i32
    %992 = tpu.dynamic_rotate %982 by %c1_i32_335 dim 1 : vector<8x256xf32>, i32 -> vector<8x256xf32>
    %993 = vector.broadcast %77 : vector<1x256xf32> to vector<8x256xf32>
    %994 = arith.mulf %992, %993 : vector<8x256xf32>
    %995 = vector.broadcast %94 : vector<1x256xf32> to vector<8x256xf32>
    %996 = arith.mulf %982, %995 : vector<8x256xf32>
    %c255_i32_336 = arith.constant 255 : i32
    %997 = tpu.dynamic_rotate %982 by %c255_i32_336 dim 1 : vector<8x256xf32>, i32 -> vector<8x256xf32>
    %998 = vector.broadcast %111 : vector<1x256xf32> to vector<8x256xf32>
    %999 = arith.mulf %997, %998 : vector<8x256xf32>
    %c241_i32_337 = arith.constant 241 : i32
    %1000 = tpu.dynamic_rotate %982 by %c241_i32_337 dim 1 : vector<8x256xf32>, i32 -> vector<8x256xf32>
    %1001 = vector.broadcast %128 : vector<1x256xf32> to vector<8x256xf32>
    %1002 = arith.mulf %1000, %1001 : vector<8x256xf32>
    %c240_i32_338 = arith.constant 240 : i32
    %1003 = tpu.dynamic_rotate %982 by %c240_i32_338 dim 1 : vector<8x256xf32>, i32 -> vector<8x256xf32>
    %1004 = vector.broadcast %145 : vector<1x256xf32> to vector<8x256xf32>
    %1005 = arith.mulf %1003, %1004 : vector<8x256xf32>
    %c239_i32_339 = arith.constant 239 : i32
    %1006 = tpu.dynamic_rotate %982 by %c239_i32_339 dim 1 : vector<8x256xf32>, i32 -> vector<8x256xf32>
    %1007 = vector.broadcast %162 : vector<1x256xf32> to vector<8x256xf32>
    %1008 = arith.mulf %1006, %1007 : vector<8x256xf32>
    %c0_340 = arith.constant 0 : index
    %c0_341 = arith.constant 0 : index
    %1009 = vector.load %arg20[%c0_340, %c0_341] : memref<8x72xbf16, #tpu.memory_space<vmem>>, vector<8x72xbf16>
    %1010 = tpu.concatenate %985, %988, %991, %994, %996, %999, %1002, %1005, %1008 in 0 : vector<8x256xf32>, vector<8x256xf32>, vector<8x256xf32>, vector<8x256xf32>, vector<8x256xf32>, vector<8x256xf32>, vector<8x256xf32>, vector<8x256xf32>, vector<8x256xf32> -> vector<72x256xf32>
    %1011 = arith.truncf %1010 : vector<72x256xf32> to vector<72x256xbf16>
    %cst_342 = arith.constant dense<0.000000e+00> : vector<8x256xf32>
    %1012 = tpu.matmul %1009, %1011, %cst_342 {dimension_numbers = #tpu.dot_dimension_numbers<[1], [0], [0], [1], [0, 0, 1, 1], [], []>} : vector<8x72xbf16>, vector<72x256xbf16>, vector<8x256xf32> -> vector<8x256xf32>
    %c0_343 = arith.constant 0 : index
    %c0_344 = arith.constant 0 : index
    %1013 = vector.load %arg21[%c0_343, %c0_344] : memref<8x1xf32, #tpu.memory_space<vmem>>, vector<8x1xf32>
    %1014 = vector.broadcast %1013 : vector<8x1xf32> to vector<8x256xf32>
    %1015 = arith.addf %1012, %1014 : vector<8x256xf32>
    %cst_345 = arith.constant 0.000000e+00 : f32
    %1016 = vector.broadcast %cst_345 : f32 to vector<8x256xf32>
    %1017 = arith.maximumf %1015, %1016 : vector<8x256xf32>
    %c0_346 = arith.constant 0 : index
    %c0_347 = arith.constant 0 : index
    %1018 = vector.load %arg22[%c0_346, %c0_347] : memref<1x8xbf16, #tpu.memory_space<vmem>>, vector<1x8xbf16>
    %1019 = arith.truncf %1017 : vector<8x256xf32> to vector<8x256xbf16>
    %cst_348 = arith.constant dense<0.000000e+00> : vector<1x256xf32>
    %1020 = tpu.matmul %1018, %1019, %cst_348 {dimension_numbers = #tpu.dot_dimension_numbers<[1], [0], [0], [1], [0, 0, 1, 1], [], []>} : vector<1x8xbf16>, vector<8x256xbf16>, vector<1x256xf32> -> vector<1x256xf32>
    %c0_349 = arith.constant 0 : index
    %c0_350 = arith.constant 0 : index
    %1021 = vector.load %arg23[%c0_349, %c0_350] : memref<1x1xf32, #tpu.memory_space<vmem>>, vector<1x1xf32>
    %1022 = vector.broadcast %1021 : vector<1x1xf32> to vector<1x256xf32>
    %1023 = arith.addf %1020, %1022 : vector<1x256xf32>
    %cst_351 = arith.constant 0.000000e+00 : f32
    %1024 = vector.broadcast %cst_351 : f32 to vector<1x256xf32>
    %1025 = arith.subf %1024, %1023 : vector<1x256xf32>
    %1026 = math.exp %1025 : vector<1x256xf32>
    %cst_352 = arith.constant 1.000000e+00 : f32
    %1027 = vector.broadcast %cst_352 : f32 to vector<1x256xf32>
    %1028 = arith.addf %1027, %1026 : vector<1x256xf32>
    %cst_353 = arith.constant 1.000000e+00 : f32
    %1029 = vector.broadcast %cst_353 : f32 to vector<1x256xf32>
    %1030 = arith.divf %1029, %1028 : vector<1x256xf32>
    %c0_354 = arith.constant 0 : index
    %c0_355 = arith.constant 0 : index
    %c0_356 = arith.constant 0 : index
    %1031 = vector.load %arg24[%c0_354, %c0_355, %c0_356] : memref<1x1x256xf32, #tpu.memory_space<vmem>>, vector<1x1x256xf32>
    %1032 = vector.shape_cast %1031 : vector<1x1x256xf32> to vector<1x256xf32>
    %1033 = vector.shape_cast %1030 : vector<1x256xf32> to vector<1x1x256xf32>
    tpu.vector_store %arg24[%c0_354, %c0_355, %c0_356], %1033 {strides = array<i32>} : memref<1x1x256xf32, #tpu.memory_space<vmem>>, vector<1x1x256xf32>,
    return
  }
  func.func @transform_0(%arg0: i32) -> (i32, i32, i32) {
    %c0_i32 = arith.constant 0 : i32
    %c0_i32_0 = arith.constant 0 : i32
    %c0_i32_1 = arith.constant 0 : i32
    return %arg0, %c0_i32, %c0_i32_0 : i32, i32, i32
  }
  func.func @transform_1(%arg0: i32) -> (i32, i32) {
    %c0_i32 = arith.constant 0 : i32
    %c0_i32_0 = arith.constant 0 : i32
    %c0_i32_1 = arith.constant 0 : i32
    return %c0_i32, %c0_i32_0 : i32, i32
  }
  func.func @transform_2(%arg0: i32) -> (i32, i32) {
    %c0_i32 = arith.constant 0 : i32
    %c0_i32_0 = arith.constant 0 : i32
    %c0_i32_1 = arith.constant 0 : i32
    return %c0_i32, %c0_i32_0 : i32, i32
  }
  func.func @transform_3(%arg0: i32) -> (i32, i32) {
    %c0_i32 = arith.constant 0 : i32
    %c0_i32_0 = arith.constant 0 : i32
    %c0_i32_1 = arith.constant 0 : i32
    return %c0_i32, %c0_i32_0 : i32, i32
  }
  func.func @transform_4(%arg0: i32) -> (i32, i32) {
    %c0_i32 = arith.constant 0 : i32
    %c0_i32_0 = arith.constant 0 : i32
    %c0_i32_1 = arith.constant 0 : i32
    return %c0_i32, %c0_i32_0 : i32, i32
  }
  func.func @transform_5(%arg0: i32) -> (i32, i32) {
    %c0_i32 = arith.constant 0 : i32
    %c0_i32_0 = arith.constant 0 : i32
    %c0_i32_1 = arith.constant 0 : i32
    return %c0_i32, %c0_i32_0 : i32, i32
  }
  func.func @transform_6(%arg0: i32) -> (i32, i32) {
    %c0_i32 = arith.constant 0 : i32
    %c0_i32_0 = arith.constant 0 : i32
    %c0_i32_1 = arith.constant 0 : i32
    return %c0_i32, %c0_i32_0 : i32, i32
  }
  func.func @transform_7(%arg0: i32) -> (i32, i32) {
    %c0_i32 = arith.constant 0 : i32
    %c0_i32_0 = arith.constant 0 : i32
    %c0_i32_1 = arith.constant 0 : i32
    return %c0_i32, %c0_i32_0 : i32, i32
  }
  func.func @transform_8(%arg0: i32) -> (i32, i32) {
    %c0_i32 = arith.constant 0 : i32
    %c0_i32_0 = arith.constant 0 : i32
    %c0_i32_1 = arith.constant 0 : i32
    return %c0_i32, %c0_i32_0 : i32, i32
  }
  func.func @transform_9(%arg0: i32) -> (i32, i32) {
    %c0_i32 = arith.constant 0 : i32
    %c0_i32_0 = arith.constant 0 : i32
    %c0_i32_1 = arith.constant 0 : i32
    return %c0_i32, %c0_i32_0 : i32, i32
  }
  func.func @transform_10(%arg0: i32) -> (i32, i32) {
    %c0_i32 = arith.constant 0 : i32
    %c0_i32_0 = arith.constant 0 : i32
    %c0_i32_1 = arith.constant 0 : i32
    return %c0_i32, %c0_i32_0 : i32, i32
  }
  func.func @transform_11(%arg0: i32) -> (i32, i32) {
    %c0_i32 = arith.constant 0 : i32
    %c0_i32_0 = arith.constant 0 : i32
    %c0_i32_1 = arith.constant 0 : i32
    return %c0_i32, %c0_i32_0 : i32, i32
  }
  func.func @transform_12(%arg0: i32) -> (i32, i32) {
    %c0_i32 = arith.constant 0 : i32
    %c0_i32_0 = arith.constant 0 : i32
    %c0_i32_1 = arith.constant 0 : i32
    return %c0_i32, %c0_i32_0 : i32, i32
  }
  func.func @transform_13(%arg0: i32) -> (i32, i32) {
    %c0_i32 = arith.constant 0 : i32
    %c0_i32_0 = arith.constant 0 : i32
    %c0_i32_1 = arith.constant 0 : i32
    return %c0_i32, %c0_i32_0 : i32, i32
  }
  func.func @transform_14(%arg0: i32) -> (i32, i32) {
    %c0_i32 = arith.constant 0 : i32
    %c0_i32_0 = arith.constant 0 : i32
    %c0_i32_1 = arith.constant 0 : i32
    return %c0_i32, %c0_i32_0 : i32, i32
  }
  func.func @transform_15(%arg0: i32) -> (i32, i32) {
    %c0_i32 = arith.constant 0 : i32
    %c0_i32_0 = arith.constant 0 : i32
    %c0_i32_1 = arith.constant 0 : i32
    return %c0_i32, %c0_i32_0 : i32, i32
  }
  func.func @transform_16(%arg0: i32) -> (i32, i32) {
    %c0_i32 = arith.constant 0 : i32
    %c0_i32_0 = arith.constant 0 : i32
    %c0_i32_1 = arith.constant 0 : i32
    return %c0_i32, %c0_i32_0 : i32, i32
  }
  func.func @transform_17(%arg0: i32) -> (i32, i32) {
    %c0_i32 = arith.constant 0 : i32
    %c0_i32_0 = arith.constant 0 : i32
    %c0_i32_1 = arith.constant 0 : i32
    return %c0_i32, %c0_i32_0 : i32, i32
  }
  func.func @transform_18(%arg0: i32) -> (i32, i32) {
    %c0_i32 = arith.constant 0 : i32
    %c0_i32_0 = arith.constant 0 : i32
    %c0_i32_1 = arith.constant 0 : i32
    return %c0_i32, %c0_i32_0 : i32, i32
  }
  func.func @transform_19(%arg0: i32) -> (i32, i32) {
    %c0_i32 = arith.constant 0 : i32
    %c0_i32_0 = arith.constant 0 : i32
    %c0_i32_1 = arith.constant 0 : i32
    return %c0_i32, %c0_i32_0 : i32, i32
  }
  func.func @transform_20(%arg0: i32) -> (i32, i32) {
    %c0_i32 = arith.constant 0 : i32
    %c0_i32_0 = arith.constant 0 : i32
    %c0_i32_1 = arith.constant 0 : i32
    return %c0_i32, %c0_i32_0 : i32, i32
  }
  func.func @transform_21(%arg0: i32) -> (i32, i32) {
    %c0_i32 = arith.constant 0 : i32
    %c0_i32_0 = arith.constant 0 : i32
    %c0_i32_1 = arith.constant 0 : i32
    return %c0_i32, %c0_i32_0 : i32, i32
  }
  func.func @transform_22(%arg0: i32) -> (i32, i32) {
    %c0_i32 = arith.constant 0 : i32
    %c0_i32_0 = arith.constant 0 : i32
    %c0_i32_1 = arith.constant 0 : i32
    return %c0_i32, %c0_i32_0 : i32, i32
  }
  func.func @transform_23(%arg0: i32) -> (i32, i32, i32) {
    %c0_i32 = arith.constant 0 : i32
    %c0_i32_0 = arith.constant 0 : i32
    %c0_i32_1 = arith.constant 0 : i32
    return %arg0, %c0_i32, %c0_i32_0 : i32, i32, i32
  }
}

</mosaic_0001>

<bundles_post_ra>
// kernel: tpu_custom_call.1
= control target key start
LH: loop header
LB: loop body
LE: loop exit
PB: predicated region body
PF: predicated region fallthrough
CT: control target
= control target key end

     0   :  { %s9041_s0 = inlined_call_operand.hbm [shape: f32[2,1,256], index: 0, kind: input, shape index: {}]   ;;  %s9042_s1 = inlined_call_operand.hbm [shape: bf16[8,9], index: 1, kind: input, shape index: {}]   ;;  %s9043_s2 = inlined_call_operand.vmem [shape: f32[8,1], index: 2, kind: input, shape index: {}]   ;;  %s9044_s3 = inlined_call_operand.hbm [shape: bf16[8,72], index: 3, kind: input, shape index: {}]   ;;  %s9045_s4 = inlined_call_operand.vmem [shape: f32[8,1], index: 4, kind: input, shape index: {}]   ;;  %s9046_s5 = inlined_call_operand.vmem [shape: bf16[16,72], index: 5, kind: input, shape index: {}]   ;;  %s9047_s6 = inlined_call_operand.vmem [shape: f32[16,1], index: 6, kind: input, shape index: {}]   ;;  %s9048_s7 = inlined_call_operand.vmem [shape: bf16[16,144], index: 7, kind: input, shape index: {}]   ;;  %s9049_s8 = inlined_call_operand.vmem [shape: f32[16,1], index: 8, kind: input, shape index: {}]   ;;  %s9050_s9 = inlined_call_operand.vmem [shape: bf16[32,144], index: 9, kind: input, shape index: {}]   ;;  %s9051_s10 = inlined_call_operand.vmem [shape: f32[32,1], index: 10, kind: input, shape index: {}]   ;;  %s9052_s11 = inlined_call_operand.vmem [shape: bf16[32,288], index: 11, kind: input, shape index: {}]   ;;  %s9053_s12 = inlined_call_operand.vmem [shape: f32[32,1], index: 12, kind: input, shape index: {}]   ;;  %s9054_s13 = inlined_call_operand.vmem [shape: bf16[16,432], index: 13, kind: input, shape index: {}]   ;;  %s9055_s14 = inlined_call_operand.vmem [shape: f32[16,1], index: 14, kind: input, shape index: {}]   ;;  %s9056_s15 = inlined_call_operand.vmem [shape: bf16[16,144], index: 15, kind: input, shape index: {}]   ;;  %s9057_s16 = inlined_call_operand.vmem [shape: f32[16,1], index: 16, kind: input, shape index: {}]   ;;  %s9058_s17 = inlined_call_operand.vmem [shape: bf16[8,216], index: 17, kind: input, shape index: {}]   ;;  %s9059_s18 = inlined_call_operand.vmem [shape: f32[8,1], index: 18, kind: input, shape index: {}]   ;;  %s9060_s19 = inlined_call_operand.vmem [shape: bf16[8,72], index: 19, kind: input, shape index: {}]   ;;  %s9061_s20 = inlined_call_operand.vmem [shape: f32[8,1], index: 20, kind: input, shape index: {}]   ;;  %s9062_s21 = inlined_call_operand.vmem [shape: bf16[1,8], index: 21, kind: input, shape index: {}]   ;;  %s9063_s22 = inlined_call_operand.<no memory space> [shape: f32[1,1], index: 22, kind: input, shape index: {}]   ;;  %s9064_s23 = inlined_call_operand.hbm [shape: f32[2,1,256], index: 23, kind: output, shape index: {}]  }
   0x1   :  { %9185 = sst [smem:[#allocation32_spill]] %s9041_s0  ;;  %v28_v0 = vstv %s9063_s22 }
   0x2   :  { %9186 = sst [smem:[#allocation33_spill]] %s9042_s1  ;;  %29 = vst [vmem:[#allocation2] sm:$0x1] %v28_v0 }
   0x3   :  { %9187 = sst [smem:[#allocation34_spill]] %s9043_s2 }
   0x4   :  { %9188 = sst [smem:[#allocation35_spill]] %s9044_s3 }
   0x5   :  { %9189 = sst [smem:[#allocation36_spill]] %s9045_s4 }
   0x6   :  { %9190 = sst [smem:[#allocation37_spill]] %s9046_s5 }
   0x7   :  { %9191 = sst [smem:[#allocation38_spill]] %s9047_s6 }
   0x8   :  { %9192 = sst [smem:[#allocation39_spill]] %s9048_s7 }
   0x9   :  { %9193 = sst [smem:[#allocation40_spill]] %s9049_s8 }
   0xa   :  { %9194 = sst [smem:[#allocation41_spill]] %s9050_s9 }
   0xb   :  { %9195 = sst [smem:[#allocation42_spill]] %s9051_s10 }
   0xc   :  { %9196 = sst [smem:[#allocation43_spill]] %s9052_s11 }
   0xd   :  { %9197 = sst [smem:[#allocation44_spill]] %s9053_s12 }
   0xe   :  { %9198 = sst [smem:[#allocation45_spill]] %s9055_s14 }
   0xf   :  { %9199 = sst [smem:[#allocation46_spill]] %s9060_s19 }
  0x10   :  { %9200 = sst [smem:[#allocation47_spill]] %s9061_s20 }
  0x11   :  { %9201 = sst [smem:[#allocation48_spill]] %s9062_s21 }
  0x12   :  { %9202 = sst [smem:[#allocation49_spill]] %s9064_s23 }
  0x13   :  { %30 = vsyncpa [#allocation4], 0 }
  0x14   :  { %32 = vsyncpa [#allocation4 + $0x1], 0 }
  0x15   :  { %33 = vsyncpa [#allocation7], 0 }
  0x16   :  { %34 = vsyncpa [#allocation5], 0 }
  0x17   :  { %36 = vsyncpa [#allocation5 + $0x1], 0  ;;  %s6311_s24 = smov 0   ;;  %s6313_s25 = smov 0  }
  0x18   :  { %s6315_s5 = smov 0   ;;  %s6317_s1 = smov 0  }
  0x19 LB: > { %9203 = sst [smem:[#allocation13_spill]] %s6128_s24  ;;  %s6332_s22 = sadd.s32 4294967295, %s6140_s1   ;;  %s6140_s1 = sphi %s6317_s1, %s9449_s1   ;;  %s6136_s5 = sphi %s6315_s5, %s9451_s5   ;;  %s6132_s25 = sphi %s6313_s25, %s9453_s25   ;;  %s6128_s24 = sphi %s6311_s24, %s9452_s24  }
  0x1a   : > { %9204 = sst [smem:[#allocation14_spill]] %s6136_s5  ;;  %s4977_s26 = sadd.s32 4294967294, %s6140_s1  }
  0x1b   : > { %p62_p0 = scmp.ne.s32.totalorder %s6132_s25, %s6128_s24  ;;  %p63_p1 = scmp.eq.s32.totalorder %s6332_s22, 0 }
  0x1c   : > { %p548_p2 = scmp.eq.s32.totalorder %s6332_s22, 1  ;;  %p554_p3 = scmp.eq.s32.totalorder %s4977_s26, 1 }
  0x1d   : > { %p6341_p4 = por %p63_p1, %p62_p0  ;;  %p4978_p5 = scmp.ge.s32.totalorder %s6140_s1, 1 }
  0x1e   : > { %p6346_p6 = por %p554_p3, %p62_p0  ;;  %p561_p7 = scmp.lt.s32.totalorder %s6140_s1, 3 }
  0x1f   : > { %s9208_s28 = sld [smem:[#allocation33_spill]]  ;;  %s6142_s0 = smov [#allocation6]  }
  0x20   : > { %s9206_s6 = scalar_select %p6346_p6, 1, 0 }
  0x21   : > { %p6354_p8 = pnand %p4978_p5, %p561_p7  ;;  %s575_s4 = sshll.u32 %s6142_s0, 4  ;;  %s576_s4 = int_to_ptr.vmem [resolvable:$true] %s575_s4 }
  0x22   : > { %9207 = sst [smem:[#allocation15_spill]] %s9206_s6  ;;  %s6367_s24 = sadd.s32 1, %s6140_s1  }
  0x23   : > { %p5542_p10 = pneg %p6354_p8  ;;  %s9210_s27 = sld [smem:[#allocation35_spill]] }
  0x24   : > { %9211 = sst [smem:[#allocation16_spill]] %s6367_s24  ;;  %s49_s0 = sadd.s32 1, %s6136_s5 }
  0x25   : > { %s573_s29 = sshll.u32 %s9208_s28, 4  ;;  %p5543_p11 = pnand %p5542_p10, %p63_p1  ;;  %s574_s29 = int_to_ptr.hbm [resolvable:$true] %s573_s29 }
  0x26   : > { %s6143_s28 = smov [#allocation8]   ;;  %s46_s23 = ssub.s32 %s6140_s1, %s6367_s24 }
  0x27   : > { %s590_s6 = sshll.u32 %s6143_s28, 4  ;;  %p56_p12 = scmp.ne.s32.totalorder %s6136_s5, %s6132_s25  ;;  %s591_s6 = int_to_ptr.vmem [resolvable:$true] %s590_s6 }
  0x28   : > { %5545 = dma.hbm_to_vmem [thread:$0]  (!%p5543_p11), %s574_s29, 64, %s576_s4, [#allocation7]  }
  0x29   : > { %s588_s7 = sshll.u32 %s9210_s27, 4  ;;  %p47_p13 = scmp.eq.s32.totalorder %s46_s23, 0  ;;  %s589_s7 = int_to_ptr.hbm [resolvable:$true] %s588_s7 }
  0x2a   : > { %5548 = dma.hbm_to_vmem [thread:$0]  (!%p5543_p11), %s589_s7, 64, %s591_s6, [#allocation7]  }
  0x2b   : > { %p57_p0 = scmp.eq.s32.totalorder %s6140_s1, 0  ;;  %p6377_p3 = por %p548_p2, %p56_p12 }
  0x2c   : > { %p5559_p5 = scmp.lt.s32.totalorder %s6140_s1, 2  ;;  %s658_s29 = sand.u32 1, %s6136_s5  }
  0x2d   : > { %s6383_s26 = scalar_select %p47_p13, %s6136_s5, %s49_s0  }
  0x2e   : > { %p58_p7 = por %p57_p0, %p56_p12  ;;  %s4982_s4 = sshll.u32 %s658_s29, 1 }
  0x2f   : > { %9213 = sst [smem:[#allocation17_spill]] %s6383_s26  ;;  %s4983_s6 = sshll.u32 %s6140_s1, 1 }
  0x30   : > { %s9214_s28 = sld [smem:[#allocation32_spill]]  ;;  %s662_s24 = scalar_lea.vmem [#allocation3], %s4982_s4 }
  0x31   : > { %s670_s19 = sshll.u32 %s662_s24, 4  ;;  %p6390_p2 = pnand %p5559_p5, %p58_p7  ;;  %s671_s19 = int_to_ptr.vmem [resolvable:$true] %s670_s19 }
  0x32   : > { %s659_s0 = scalar_lea.sflag [#allocation4], %s658_s29 }
  0x33   : > { %p6044_p11 = pneg %p6390_p2 }
  0x36   : > { %s666_s21 = scalar_lea.hbm %s9214_s28, %s4983_s6 }
  0x37   : > { %s668_s23 = sshll.u32 %s666_s21, 4  ;;  %s6047_s21 = scalar_lea.hbm %s9214_s28, 4  ;;  %s669_s23 = int_to_ptr.hbm [resolvable:$true] %s668_s23 }
  0x38   : > { %s6040_s26 = sshra.s32 %s669_s23, 4  ;;  %s6041_s26 = int_to_ptr.hbm [resolvable:$true] %s6040_s26 }
  0x39   : > { %s6042_s5 = scalar_lea.hbm %s6041_s26, 2  ;;  %p6048_p0 = scmp.lt.s32.totalorder %s6041_s26, %s9214_s28 }
  0x3a   : > { %p6043_p10 = scmp.ne.s32.totalorder %s6041_s26, %s6042_s5  ;;  %p6049_p5 = scmp.lt.s32.totalorder %s6047_s21, %s6042_s5 }
  0x3c   : > { %p6045_p12 = pnand %p6044_p11, %p6043_p10  ;;  %p6050_p7 = por %p6049_p5, %p6048_p0 }
  0x3e   : > { %p6046_p13 = pneg %p6045_p12 }
  0x40   : > { %p6051_p9 = pnand %p6050_p7, %p6046_p13 }
  0x42   : > { %6054 = shalt.err (!%p6051_p9)
}
  0x43   : > { %5552 = dma.hbm_to_vmem [thread:$0]  (!%p6390_p2), %s669_s23, 32, %s671_s19, %s659_s0  }
  0x44   : > { %679 = sbr.rel (%p6354_p8) target bundleno = 6021 (0x1785), region = 112 }
  0x49   : > { %s6407_s29 = sand.u32 1, %s6132_s25  }
  0x4a   : > { %s9074_s7 = sshll.u32 %s6407_s29, 1  ;;  %s682_s6 = scalar_lea.sflag [#allocation4], %s6407_s29 }
  0x4b   : > { %s685_s5 = scalar_lea.vmem [#allocation3], %s9074_s7 }
  0x4c   : > { %6115 = dma.done.wait (%p6341_p4), %s682_s6, 32  }
  0x4d   : > { %6117 = vsyncadd (%p6341_p4), %s682_s6, 4294967264 }
  0x4e   : > { %6119 = dma.done.wait (%p63_p1), [#allocation7], 128  }
  0x4f   : > { %6121 = vsyncadd (%p63_p1), [#allocation7], 4294967168  ;;  %v6421_v1 = vld [vmem:[%s685_s5] sm:$0x3]  ;;  %v6423_v2 = vld [vmem:[#allocation6] sm:$0xf]  ;;  %v9092_v11 = vlaneseq }
  0x50   : > { %v1034_v3 = vperm.slane %v6421_v1, 0  ;;  %v1123_v4 = vunpack.c.l.b16 %v6423_v2  ;;  %s9103_s19 = smov 17   ;;  %s9121_s20 = smov 16   ;;  %v1035_v6 = vperm.slane %v6421_v1, 1  ;;  %v6159_v7 = vmov 16.0  }
  0x51   : > { %s9123_s2 = smov 127   ;;  %s9119_s3 = smov 15   ;;  %5964 = vrcp.f32 %v6159_v7  ;;  %v6449_v13 = vand.u32 127, %v9092_v11  ;;  %v6160_v26 = vmov 0   ;;  %v9218_v32 = vmov 0 }
  0x52   : > { %1038 = vrot.lane.b32.xlu1 %v1034_v3, %s9103_s19  ;;  %1047 = vrot.lane.b32.xlu0 %v1034_v3, %s9121_s20  ;;  %v1124_v5 = vpack.c.b16 %v1123_v4, %v1123_v4  ;;  %s9117_s26 = smov 1   ;;  %s9168_s23 = smov 126   ;;  %v9226_v40 = vmov 0  ;;  %v9093_v45 = vmov 0.0  }
  0x53   : > { %s6150_s0 = smov 125   ;;  %s9111_s4 = smov 124   ;;  %v6452_v14 = vcvt.s32.f32 %v6449_v13  ;;  %v762_v16 = vadd.s32 128, %v6449_v13  ;;  %5641 = vset.pattern.permute.xlu0 %v6160_v26  ;;  %5642 = vset.pattern.permute.xlu1 %v6160_v26 }
  0x54   : > { %1125 = vrot.lane.b32.xlu2 %v1124_v5, %s9123_s2  ;;  %s9107_s21 = smov 113   ;;  %s6153_s24 = smov 123  }
  0x55   : > { %s9105_s27 = smov 112   ;;  %s6155_s6 = smov 122   ;;  %v6456_v17 = vadd.f32 0.5, %v6452_v14  ;;  %v764_v19 = vcvt.s32.f32 %v762_v16  ;;  %5683 = vset.pattern.permute.xlu2 %v6160_v26 }
  0x56   : > { %s9109_s5 = smov 111   ;;  %s9146_s7 = smov 120  }
  0x57   : > { %v5965_v8 = vpop.eup %5964  ;;  %v766_v21 = vadd.f32 0.5, %v764_v19  ;;  %s9290_s8 = sld [smem:[#allocation40_spill]]  ;;  %s9311_s28 = smov 11  }
  0x58   : > { %v768_v9 = vmul.f32 16.0, %v5965_v8  ;;  %vm772_vm0 = vweird.f32 %v5965_v8  ;;  %s9304_s10 = sld [smem:[#allocation42_spill]] }
  0x59   : > { %s9305_s9 = sld [smem:[#allocation41_spill]] }
  0x5a   : > { %1040 = vrot.lane.b32.xlu1 %v1035_v6, %s9103_s19  ;;  %1049 = vrot.lane.b32.xlu0 %v1035_v6, %s9121_s20  ;;  %v769_v10 = vsub.f32 1.0, %v768_v9  ;;  %s9313_s12 = sld [smem:[#allocation44_spill]] }
  0x5b   : > { %s9314_s11 = sld [smem:[#allocation43_spill]] }
  0x5c   : > { %1056 = vrot.lane.b32.xlu2 %v1034_v3, %s9119_s3  ;;  %v770_v12 = vmul.f32 %v5965_v8, %v769_v10  ;;  %s9338_s14 = sld [smem:[#allocation45_spill]] }
  0x5e   : > { %v771_v15 = vadd.f32 %v5965_v8, %v770_v12 }
  0x60   : > { %v773_v18 = vsel %vm772_vm0, %v5965_v8, %v771_v15 }
  0x61   : > { %v774_v20 = vmul.f32 %v773_v18, %v6456_v17  ;;  %v775_v23 = vmul.f32 %v773_v18, %v766_v21 }
  0x62   : > { %1065 = vrot.lane.b32.xlu1 %v1034_v3, %s9117_s26  ;;  %1058 = vrot.lane.b32.xlu0 %v1035_v6, %s9119_s3 }
  0x63   : > { %v6459_v22 = vfloor.f32 %v774_v20  ;;  %v6465_v27 = vfloor.f32 %v775_v23 }
  0x64   : > { %1067 = vrot.lane.b32.xlu2 %v1035_v6, %s9117_s26 }
  0x65   : > { %v782_v24 = vadd.f32 -1.0, %v6459_v22  ;;  %v778_v25 = vmul.f32 16.0, %v6459_v22  ;;  %v779_v30 = vmul.f32 16.0, %v6465_v27  ;;  %vm834_vm5 = vcmp.ge.f32.partialorder %v6459_v22, 0.0 }
  0x66   : > { %vm836_vm6 = vcmp.le.f32.partialorder %v6459_v22, 15.0  ;;  %v783_v31 = vadd.f32 -1.0, %v6465_v27  ;;  %vm835_vm13 = vcmp.ge.f32.partialorder %v6465_v27, 0.0  ;;  %vm837_vm14 = vcmp.le.f32.partialorder %v6465_v27, 15.0 }
  0x67   : > { %vm786_vm1 = vcmp.ge.f32.partialorder %v782_v24, 0.0  ;;  %vm788_vm2 = vcmp.le.f32.partialorder %v782_v24, 15.0  ;;  %v6469_v28 = vsub.f32 %v6452_v14, %v778_v25  ;;  %vm6484_vm8 = vmand %vm834_vm5, %vm836_vm6  ;;  %v6488_v33 = vsub.f32 %v764_v19, %v779_v30 }
  0x68   : > { %vm6471_vm3 = vmand %vm786_vm1, %vm788_vm2  ;;  %v9219_v32 = vsel %vm6484_vm8, 4294967295, %v9218_v32  ;;  %vm787_vm11 = vcmp.ge.f32.partialorder %v783_v31, 0.0  ;;  %vm789_vm12 = vcmp.le.f32.partialorder %v783_v31, 15.0 }
  0x69   : > { %vm9077_vm4 = vcmp.ge.f32.partialorder %v6469_v28, 0.0  ;;  %vm9075_vm9 = vcmp.le.f32.partialorder %v6469_v28, 15.0  ;;  %v6496_v34 = vadd.f32 -1.0, %v6469_v28  ;;  %v6515_v38 = vadd.f32 -1.0, %v6488_v33  ;;  %vm6517_vm1 = vmand %vm787_vm11, %vm789_vm12 }
  0x6a   : > { %1202 = vrot.lane.b32.xlu0 %v1124_v5, %s9168_s23  ;;  %1243 = vrot.lane.b32.xlu1 %v1124_v5, %s6150_s0  ;;  %s6157_s0 = smov 121   ;;  %vm808_vm7 = vmand %vm6471_vm3, %vm9077_vm4  ;;  %vm9076_vm2 = vcmp.ge.f32.partialorder %v6488_v33, 0.0  ;;  %vm9084_vm12 = vcmp.le.f32.partialorder %v6488_v33, 15.0  ;;  %v6542_v41 = vadd.f32 1.0, %v6469_v28  ;;  %v6548_v44 = vadd.f32 1.0, %v6488_v33 }
  0x6b   : > { %vm848_vm10 = vmand %vm6484_vm8, %vm9077_vm4  ;;  %vm9078_vm6 = vcmp.ge.f32.partialorder %v6496_v34, 0.0  ;;  %vm9083_vm11 = vcmp.ge.f32.partialorder %v6515_v38, 0.0  ;;  %vm9091_vm4 = vcmp.le.f32.partialorder %v6515_v38, 15.0 }
  0x6c   : > { %1081 = vrot.lane.b32.xlu2 %v1034_v3, %s9123_s2  ;;  %vm6504_vm15 = vmand %vm808_vm7, %vm9075_vm9 }
  0x6d   : > { %vm6510_vm0 = vmand %vm848_vm10, %vm9075_vm9  ;;  %vm796_vm9 = vcmp.le.f32.partialorder %v6496_v34, 15.0  ;;  %v6571_v48 = vsel %vm6504_vm15, 1.0, %v9093_v45 }
  0x6e   : > { %vm6522_vm5 = vmand %vm835_vm13, %vm837_vm14  ;;  %9228 = vst [vmem:[#allocation18_spill] sm:$0xff] %v6571_v48  ;;  %v6576_v49 = vsel %vm6510_vm0, 1.0, %v9093_v45  ;;  %vm824_vm0 = vcmp.le.f32.partialorder %v6542_v41, 15.0 }
  0x6f   : > { %v9227_v40 = vsel %vm6522_vm5, 4294967295, %v9226_v40  ;;  %vm849_vm7 = vmand %vm6522_vm5, %vm9076_vm2  ;;  %vm9090_vm5 = vcmp.ge.f32.partialorder %v6542_v41, 0.0 }
  0x70   : > { %vm809_vm10 = vmand %vm6517_vm1, %vm9076_vm2 }
  0x71   : > { %vm794_vm13 = vmand %vm6471_vm3, %vm9078_vm6 }
  0x72   : > { %1083 = vrot.lane.b32.xlu0 %v1035_v6, %s9123_s2  ;;  %1289 = vrot.lane.b32.xlu1 %v1124_v5, %s9111_s4  ;;  %vm851_vm14 = vmand %vm849_vm7, %vm9084_vm12  ;;  %s9150_s4 = smov 55  }
  0x73   : > { %vm795_vm2 = vmand %vm6517_vm1, %vm9083_vm11  ;;  %v6558_v46 = vsel %vm851_vm14, 1.0, %v9093_v45  ;;  %vm821_vm11 = vcmp.ge.f32.partialorder %v6548_v44, 0.0  ;;  %vm9086_vm14 = vcmp.lt.s32.totalorder %v6449_v13, 17 }
  0x74   : > { %1090 = vrot.lane.b32.xlu2 %v1034_v3, %s9107_s21  ;;  %vm813_vm6 = vmand %vm809_vm10, %vm9084_vm12  ;;  %vm9085_vm10 = vcmp.lt.s32.totalorder %v6449_v13, 16  ;;  %v1076_v51 = vrot.slane %v6558_v46, 7  ;;  %vm9239_vm12 = vnez %v9227_v40 }
  0x75   : > { %vm798_vm7 = vmand %vm794_vm13, %vm796_vm9  ;;  %vm9087_vm13 = vcmask 1040384   ;;  %v6590_v52 = vsel %vm813_vm6, 1.0, %v9093_v45  ;;  %vm9236_vm6 = vcmp.ge.f32.partialorder %v6496_v34, 0.0 }
  0x76   : > { %vm799_vm8 = vmand %vm795_vm2, %vm9091_vm4  ;;  %9231 = vst [vmem:[#allocation19_spill] sm:$0xff] %v6590_v52  ;;  %v6593_v53 = vsel %vm798_vm7, 1.0, %v9093_v45  ;;  %vm9237_vm7 = vnez %v9219_v32  ;;  %v1078_v58 = vsel %vm9087_vm13, %v6576_v49, %v1076_v51 }
  0x77   : > { %vm6584_vm2 = vmand %vm6471_vm3, %vm9090_vm5  ;;  %9232 = vst [vmem:[#allocation20_spill] sm:$0xff] %v6593_v53  ;;  %v6596_v54 = vsel %vm799_vm8, 1.0, %v9093_v45  ;;  %vm825_vm3 = vcmp.le.f32.partialorder %v6548_v44, 15.0  ;;  %v1080_v8 = vmul.f32 %v1078_v58, %v6421_v1 }
  0x78   : > { %9233 = vst [vmem:[#allocation21_spill] sm:$0xff] %v6596_v54  ;;  %vm6602_vm15 = vmand %vm6517_vm1, %vm821_vm11  ;;  %vm9238_vm1 = vcmp.ge.f32.partialorder %v6515_v38, 0.0 }
  0x79   : > { %vm840_vm8 = vmand %vm9237_vm7, %vm9236_vm6  ;;  %v1283_v1 = vperm.slane %v1080_v8, 0  ;;  %v1284_v18 = vperm.slane %v1080_v8, 1 }
  0x7a   : > { %1092 = vrot.lane.b32.xlu0 %v1035_v6, %s9107_s21  ;;  %1330 = vrot.lane.b32.xlu1 %v1124_v5, %s6153_s24  ;;  %vm841_vm6 = vmand %vm9239_vm12, %vm9238_vm1  ;;  %s6164_s24 = smov 9  }
  0x7b   : > { %vm6644_vm1 = vmand %vm840_vm8, %vm796_vm9  ;;  %v1287_v37 = vpack.c.bf16 %v1283_v1, %v1283_v1  ;;  %v1288_v39 = vpack.c.bf16 %v1284_v18, %v1284_v18 }
  0x7c   : > { %1099 = vrot.lane.b32.xlu2 %v1034_v3, %s9105_s27  ;;  %vm6657_vm8 = vmand %vm6584_vm2, %vm824_vm0  ;;  %vm1127_vm2 = vcmask 7168  }
  0x7d   : > { %v6681_v36 = vsel %vm6657_vm8, 1.0, %v9093_v45 }
  0x7e   : > { %9249 = vst [vmem:[#allocation25_spill] sm:$0xff] %v6681_v36 }
  0x82   : > { %1101 = vrot.lane.b32.xlu0 %v1035_v6, %s9105_s27  ;;  %1371 = vrot.lane.b32.xlu1 %v1124_v5, %s6155_s6  ;;  %s6165_s6 = smov 56  }
  0x84   : > { %1108 = vrot.lane.b32.xlu2 %v1034_v3, %s9109_s5 }
  0x8a   : > { %1412 = vrot.lane.b32.xlu1 %v1124_v5, %s6157_s0  ;;  %1110 = vrot.lane.b32.xlu0 %v1035_v6, %s9109_s5  ;;  %v6640_v6 = vsel %vm9087_vm13, 65535, %v6160_v26  ;;  %vm9089_vm13 = vcmp.lt.s32.totalorder %v6449_v13, 15  ;;  %v6673_v26 = vsel %vm6644_vm1, 1.0, %v9093_v45  ;;  %s9268_s0 = sld [smem:[#allocation34_spill]] }
  0x8b   : > { %9247 = vst [vmem:[#allocation23_spill] sm:$0xff] %v6673_v26 }
  0x8c   : > { %1453 = vrot.lane.b32.xlu2 %v1124_v5, %s9146_s7 }
  0xae   : > { %v6500_v35 = vpop.permute.xlu2 %1125 }
  0xb6   : > { %v6563_v47 = vpop.permute.xlu2 %1056 }
  0xbe   : > { %v1068_v24 = vpop.permute.xlu2 %1067 }
  0xc4   : > { %v1039_v42 = vpop.permute.xlu1 %1038  ;;  %v1048_v43 = vpop.permute.xlu0 %1047 }
  0xcc   : > { %v1041_v56 = vpop.permute.xlu1 %1040  ;;  %v1050_v57 = vpop.permute.xlu0 %1049 }
  0xcd   : > { %v1053_v59 = vsel %vm9085_vm10, %v1050_v57, %v1048_v43  ;;  %v1052_v60 = vsel %vm9085_vm10, %v1048_v43, %v1050_v57  ;;  %v1044_v61 = vsel %vm9086_vm14, %v1041_v56, %v1039_v42  ;;  %v1043_v62 = vsel %vm9086_vm14, %v1039_v42, %v1041_v56  ;;  %vm6634_vm10 = vmand %vm6602_vm15, %vm825_vm3 }
  0xce   : > { %v1054_v63 = vmul.f32 %v6571_v48, %v1053_v59  ;;  %v1055_v0 = vmul.f32 %v6590_v52, %v1052_v60  ;;  %v1045_v3 = vmul.f32 %v6593_v53, %v1044_v61  ;;  %v1046_v4 = vmul.f32 %v6596_v54, %v1043_v62  ;;  %vm843_vm15 = vmand %vm841_vm6, %vm9091_vm4 }
  0xcf   : > { %vm9088_vm14 = vcmp.lt.s32.totalorder %v6449_v13, 1  ;;  %v6668_v25 = vsel %vm6634_vm10, 1.0, %v9093_v45  ;;  %v6676_v29 = vsel %vm843_vm15, 1.0, %v9093_v45  ;;  %v1295_v62 = vand.u32 %v1287_v37, %v6640_v6  ;;  %vm856_vm10 = vmand %vm9237_vm7, %vm9090_vm5 }
  0xd0   : > { %v1120_v9 = vpack.c.bf16 %v1054_v63, %v1054_v63  ;;  %v1121_v10 = vpack.c.bf16 %v1055_v0, %v1055_v0  ;;  %v1118_v12 = vpack.c.bf16 %v1045_v3, %v1045_v3  ;;  %v1119_v15 = vpack.c.bf16 %v1046_v4, %v1046_v4  ;;  %9246 = vst [vmem:[#allocation22_spill] sm:$0xff] %v6668_v25  ;;  %vm857_vm6 = vmand %vm9239_vm12, %vm821_vm11 }
  0xd1   : > { %9248 = vst [vmem:[#allocation24_spill] sm:$0xff] %v6676_v29  ;;  %v864_v63 = vadd.f32 1.0, %v6459_v22  ;;  %v1298_v4 = vand.u32 %v1288_v39, %v6640_v6  ;;  %vm858_vm8 = vmand %vm856_vm10, %vm824_vm0  ;;  %vm9100_vm4 = vcmp.lt.s32.totalorder %v6449_v13, 127  ;;  %vm9256_vm10 = vcmp.ge.f32.partialorder %v6496_v34, 0.0 }
  0xd2   : > { %v1134_v19 = vand.u32 %v6640_v6, %v1120_v9  ;;  %v1137_v20 = vand.u32 %v6640_v6, %v1121_v10  ;;  %v1169_v21 = vand.u32 %v6640_v6, %v1118_v12  ;;  %v1172_v23 = vand.u32 %v6640_v6, %v1119_v15  ;;  %v1082_v9 = vpop.permute.xlu2 %1081  ;;  %vm859_vm7 = vmand %vm857_vm6, %vm825_vm3 }
  0xd3   : > { %vm866_vm1 = vcmp.ge.f32.partialorder %v864_v63, 0.0  ;;  %vm868_vm15 = vcmp.le.f32.partialorder %v864_v63, 15.0  ;;  %v6735_v10 = vsel %vm858_vm8, 1.0, %v9093_v45  ;;  %v6738_v12 = vsel %vm859_vm7, 1.0, %v9093_v45 }
  0xd4   : > { %1146 = vmatpush.bf16.msra.mxu0 %v1134_v19  ;;  %1159 = vmatpush.bf16.msra.mxu1 %v1137_v20  ;;  %v1066_v30 = vpop.permute.xlu1 %1065  ;;  %v1059_v31 = vpop.permute.xlu0 %1058  ;;  %vm6725_vm5 = vmand %vm866_vm1, %vm868_vm15  ;;  %9254 = vst [vmem:[#allocation26_spill] sm:$0xff] %v6735_v10  ;;  %vm9258_vm15 = vcmp.le.f32.partialorder %v6515_v38, 15.0  ;;  %vm9099_vm7 = vcmp.lt.s32.totalorder %v6449_v13, 113 }
  0xd5   : > { %1181 = vmatpush.bf16.msra.mxu2 %v1169_v21  ;;  %1194 = vmatpush.bf16.msra.mxu3 %v1172_v23  ;;  %v1070_v42 = vsel %vm9088_vm14, %v1066_v30, %v1068_v24  ;;  %v1071_v43 = vsel %vm9088_vm14, %v1068_v24, %v1066_v30  ;;  %v1061_v50 = vsel %vm9089_vm13, %v6563_v47, %v1059_v31  ;;  %vm872_vm6 = vmand %vm6725_vm5, %vm9256_vm10 }
  0xd6   : > { %v1062_v51 = vsel %vm9089_vm13, %v1059_v31, %v6563_v47  ;;  %v1064_v55 = vmul.f32 %v6668_v25, %v1061_v50  ;;  %v1072_v56 = vmul.f32 %v6673_v26, %v1071_v43  ;;  %v1073_v57 = vmul.f32 %v6676_v29, %v1070_v42  ;;  %9255 = vst [vmem:[#allocation27_spill] sm:$0xff] %v6738_v12  ;;  %vm874_vm1 = vmand %vm872_vm6, %vm796_vm9 }
  0xd7   : > { %5025 = vmatmul.msk.bf16.vlgmr.msra.gmra.mxu0 %vm1127_vm2, %v6500_v35  ;;  %5026 = vmatmul.msk.bf16.vlgmr.msra.gmra.mxu1 %vm1127_vm2, %v6500_v35  ;;  %v1063_v58 = vmul.f32 %v6681_v36, %v1062_v51  ;;  %v6766_v37 = vsel %vm874_vm1, 1.0, %v9093_v45  ;;  %vm9261_vm9 = vcmp.ge.f32.partialorder %v6469_v28, 0.0  ;;  %vm9262_vm6 = vcmp.ge.f32.partialorder %v6488_v33, 0.0 }
  0xd8   : > { %5027 = vmatmul.msk.bf16.vlgmr.msra.gmra.mxu2 %vm1127_vm2, %v6423_v2  ;;  %5028 = vmatmul.msk.bf16.vlgmr.msra.gmra.mxu3 %vm1127_vm2, %v6423_v2  ;;  %v1201_v47 = vpack.c.bf16 %v1064_v55, %v1064_v55  ;;  %v1241_v59 = vpack.c.bf16 %v1072_v56, %v1072_v56  ;;  %v1242_v60 = vpack.c.bf16 %v1073_v57, %v1073_v57  ;;  %v865_v2 = vadd.f32 1.0, %v6465_v27  ;;  %vm880_vm10 = vmand %vm6725_vm5, %vm9261_vm9 }
  0xd9   : > { %v1200_v61 = vpack.c.bf16 %v1063_v58, %v1063_v58  ;;  %9259 = vst [vmem:[#allocation28_spill] sm:$0xff] %v6766_v37  ;;  %vm9101_vm9 = vcmp.lt.s32.totalorder %v6449_v13, 112 }
  0xda   : > { %v1211_v0 = vand.u32 %v1201_v47, %v6640_v6  ;;  %v1249_v35 = vand.u32 %v1241_v59, %v6640_v6  ;;  %v1252_v3 = vand.u32 %v1242_v60, %v6640_v6  ;;  %vm867_vm14 = vcmp.ge.f32.partialorder %v865_v2, 0.0  ;;  %v1091_v24 = vpop.permute.xlu2 %1090 }
  0xdb   : > { %v1208_v5 = vand.u32 %v1200_v61, %v6640_v6  ;;  %vm869_vm13 = vcmp.le.f32.partialorder %v865_v2, 15.0 }
  0xdc   : > { %1233 = vmatpush.bf16.msrb.mxu1 %v1211_v0  ;;  %1261 = vmatpush.bf16.msrb.mxu2 %v1249_v35  ;;  %v1203_v7 = vpop.permute.xlu0 %1202  ;;  %v1244_v8 = vpop.permute.xlu1 %1243  ;;  %vm6730_vm12 = vmand %vm867_vm14, %vm869_vm13  ;;  %vm9257_vm13 = vcmp.ge.f32.partialorder %v6515_v38, 0.0 }
  0xdd   : > { %1220 = vmatpush.bf16.msrb.mxu0 %v1208_v5  ;;  %1274 = vmatpush.bf16.msrb.mxu3 %v1252_v3  ;;  %vm873_vm14 = vmand %vm6730_vm12, %vm9257_vm13  ;;  %v1492_v3 = vld [vmem:[%s9268_s0] sm:$0xff]  ;;  %s9269_s0 = sld [smem:[#allocation36_spill]] }
  0xde   : > { %vm875_vm8 = vmand %vm873_vm14, %vm9258_vm15  ;;  %vm9263_vm14 = vcmp.le.f32.partialorder %v6469_v28, 15.0  ;;  %vm9264_vm15 = vcmp.le.f32.partialorder %v6488_v33, 15.0  ;;  %1495 = vperm.xlu0 %5641, %v1492_v3  }
  0xdf   : > { %v6769_v34 = vsel %vm875_vm8, 1.0, %v9093_v45  ;;  %vm881_vm13 = vmand %vm6730_vm12, %vm9262_vm6 }
  0xe0   : > { %1320 = vmatpush.bf16.msra.mxu1 %v1298_v4  ;;  %9260 = vst [vmem:[#allocation29_spill] sm:$0xff] %v6769_v34  ;;  %vm882_vm1 = vmand %vm880_vm10, %vm9263_vm14  ;;  %vm9267_vm10 = vcmp.ge.f32.partialorder %v6542_v41, 0.0 }
  0xe1   : > { %1307 = vmatpush.bf16.msra.mxu0 %v1295_v62  ;;  %vm883_vm8 = vmand %vm881_vm13, %vm9264_vm15  ;;  %v6793_v59 = vsel %vm882_vm1, 1.0, %v9093_v45 }
  0xe2   : > { %v1100_v47 = vpop.permute.xlu2 %1099  ;;  %9265 = vst [vmem:[#allocation30_spill] sm:$0xff] %v6793_v59  ;;  %v6796_v60 = vsel %vm883_vm8, 1.0, %v9093_v45  ;;  %vm888_vm6 = vmand %vm6725_vm5, %vm9267_vm10 }
  0xe3   : > { %9266 = vst [vmem:[#allocation31_spill] sm:$0xff] %v6796_v60  ;;  %vm889_vm13 = vmand %vm6730_vm12, %vm821_vm11 }
  0xe4   : > { %v1084_v15 = vpop.permute.xlu0 %1083  ;;  %v1290_v20 = vpop.permute.xlu1 %1289  ;;  %vm890_vm5 = vmand %vm888_vm6, %vm824_vm0  ;;  %vm9102_vm0 = vcmp.lt.s32.totalorder %v6449_v13, 111  ;;  %vm9270_vm6 = vcmp.lt.s32.totalorder %v6449_v13, 15 }
  0xe5   : > { %v1086_v16 = vsel %vm9100_vm4, %v1082_v9, %v1084_v15  ;;  %v1087_v1 = vsel %vm9100_vm4, %v1084_v15, %v1082_v9  ;;  %vm891_vm11 = vmand %vm889_vm13, %vm825_vm3  ;;  %v6827_v9 = vsel %vm890_vm5, 1.0, %v9093_v45 }
  0xe6   : > { %v1088_v18 = vmul.f32 %v6735_v10, %v1086_v16  ;;  %v1089_v19 = vmul.f32 %v6738_v12, %v1087_v1  ;;  %v6830_v32 = vsel %vm891_vm11, 1.0, %v9093_v45  ;;  %vm9271_vm5 = vmmov %vm9270_vm6 }
  0xe7   : > { %5029 = vmatmul.msk.bf16.vlgmr.msrb.gmra.mxu0 %vm1127_vm2, %v1203_v7  ;;  %5030 = vmatmul.msk.bf16.vlgmr.msrb.gmra.mxu1 %vm1127_vm2, %v1203_v7 }
  0xe8   : > { %5031 = vmatmul.msk.bf16.vlgmr.msrb.gmra.mxu2 %vm1127_vm2, %v1244_v8  ;;  %5032 = vmatmul.msk.bf16.vlgmr.msrb.gmra.mxu3 %vm1127_vm2, %v1244_v8  ;;  %v1328_v21 = vpack.c.bf16 %v1088_v18, %v1088_v18  ;;  %v1329_v23 = vpack.c.bf16 %v1089_v19, %v1089_v19 }
  0xea   : > { %v1336_v30 = vand.u32 %v1328_v21, %v6640_v6  ;;  %v1339_v31 = vand.u32 %v1329_v23, %v6640_v6  ;;  %v1109_v41 = vpop.permute.xlu2 %1108 }
  0xec   : > { %1348 = vmatpush.bf16.msra.mxu2 %v1336_v30  ;;  %1361 = vmatpush.bf16.msra.mxu3 %v1339_v31  ;;  %v1093_v39 = vpop.permute.xlu0 %1092  ;;  %v1331_v56 = vpop.permute.xlu1 %1330 }
  0xed   : > { %v1095_v38 = vsel %vm9099_vm7, %v1091_v24, %v1093_v39  ;;  %v1096_v42 = vsel %vm9099_vm7, %v1093_v39, %v1091_v24 }
  0xee   : > { %v1097_v43 = vmul.f32 %v6766_v37, %v1095_v38  ;;  %v1098_v50 = vmul.f32 %v6769_v34, %v1096_v42 }
  0xf0   : > { %v1369_v51 = vpack.c.bf16 %v1097_v43, %v1097_v43  ;;  %v1370_v55 = vpack.c.bf16 %v1098_v50, %v1098_v50 }
  0xf2   : > { %v1377_v57 = vand.u32 %v1369_v51, %v6640_v6  ;;  %v1380_v58 = vand.u32 %v1370_v55, %v6640_v6  ;;  %v1454_v24 = vpop.permute.xlu2 %1453 }
  0xf4   : > { %v1102_v61 = vpop.permute.xlu0 %1101  ;;  %1389 = vmatpush.bf16.msrb.mxu0 %v1377_v57  ;;  %1402 = vmatpush.bf16.msrb.mxu1 %v1380_v58  ;;  %v1372_v8 = vpop.permute.xlu1 %1371 }
  0xf5   : > { %v1104_v62 = vsel %vm9101_vm9, %v1100_v47, %v1102_v61  ;;  %v1105_v63 = vsel %vm9101_vm9, %v1102_v61, %v1100_v47 }
  0xf6   : > { %v1106_v0 = vmul.f32 %v6793_v59, %v1104_v62  ;;  %v1107_v35 = vmul.f32 %v6796_v60, %v1105_v63 }
  0xf7   : > { %5033 = vmatmul.msk.bf16.vlgmr.msra.gmra.mxu0 %vm1127_vm2, %v1290_v20  ;;  %5034 = vmatmul.msk.bf16.vlgmr.msra.gmra.mxu1 %vm1127_vm2, %v1290_v20 }
  0xf8   : > { %5035 = vmatmul.msk.bf16.vlgmr.msra.gmra.mxu2 %vm1127_vm2, %v1331_v56  ;;  %5036 = vmatmul.msk.bf16.vlgmr.msra.gmra.mxu3 %vm1127_vm2, %v1331_v56  ;;  %v1410_v4 = vpack.c.bf16 %v1106_v0, %v1106_v0  ;;  %v1411_v5 = vpack.c.bf16 %v1107_v35, %v1107_v35 }
  0xfa   : > { %v1418_v2 = vand.u32 %v1410_v4, %v6640_v6  ;;  %v1421_v7 = vand.u32 %v1411_v5, %v6640_v6 }
  0xfc   : > { %1430 = vmatpush.bf16.msrb.mxu2 %v1418_v2  ;;  %1443 = vmatpush.bf16.msrb.mxu3 %v1421_v7  ;;  %v1111_v40 = vpop.permute.xlu0 %1110  ;;  %v1413_v23 = vpop.permute.xlu1 %1412 }
  0xfd   : > { %v1113_v44 = vsel %vm9102_vm0, %v1109_v41, %v1111_v40  ;;  %v1114_v15 = vsel %vm9102_vm0, %v1111_v40, %v1109_v41 }
  0xfe   : > { %v1115_v16 = vmul.f32 %v6827_v9, %v1113_v44  ;;  %v1116_v1 = vmul.f32 %v6830_v32, %v1114_v15 }
 0x100   : > { %v1451_v18 = vpack.c.bf16 %v1115_v16, %v1115_v16  ;;  %v1452_v19 = vpack.c.bf16 %v1116_v1, %v1116_v1 }
 0x102   : > { %v1459_v20 = vand.u32 %v1451_v18, %v6640_v6  ;;  %v1462_v21 = vand.u32 %v1452_v19, %v6640_v6 }
 0x104   : > { %1471 = vmatpush.bf16.msra.mxu0 %v1459_v20  ;;  %1484 = vmatpush.bf16.msra.mxu1 %v1462_v21 }
 0x107   : > { %5037 = vmatmul.msk.bf16.vlgmr.msrb.gmra.mxu0 %vm1127_vm2, %v1372_v8  ;;  %5038 = vmatmul.msk.bf16.vlgmr.msrb.gmra.mxu1 %vm1127_vm2, %v1372_v8 }
 0x108   : > { %5039 = vmatmul.msk.bf16.vlgmr.msrb.gmra.mxu2 %vm1127_vm2, %v1413_v23  ;;  %5040 = vmatmul.msk.bf16.vlgmr.msrb.gmra.mxu3 %vm1127_vm2, %v1413_v23 }
 0x117   : > { %5041 = vmatmul.msk.bf16.vlgmr.msra.gmra.mxu0 %vm1127_vm2, %v1454_v24  ;;  %5042 = vmatmul.msk.bf16.vlgmr.msra.gmra.mxu1 %vm1127_vm2, %v1454_v24  ;;  %vm9141_vm2 = vcmask 1043456  }
 0x154   : > { %v1148_v30 = vpop.f32.mrf.mxu0  ;;  %v1161_v31 = vpop.f32.mrf.mxu1 }
 0x15b   : > { %v1183_v39 = vpop.f32.mrf.mxu2  ;;  %v1196_v6 = vpop.f32.mrf.mxu3 }
 0x15c   : > { %v1150_v38 = vpop.f32.mrf.mxu0  ;;  %v1163_v42 = vpop.f32.mrf.mxu1  ;;  %v1184_v40 = vadd.f32 %v1183_v39, %v1148_v30  ;;  %v1197_v44 = vadd.f32 %v1196_v6, %v1161_v31 }
 0x163   : > { %v1185_v43 = vpop.f32.mrf.mxu2  ;;  %v1198_v50 = vpop.f32.mrf.mxu3 }
 0x164   : > { %v1222_v51 = vpop.f32.mrf.mxu0  ;;  %v1235_v55 = vpop.f32.mrf.mxu1 }
 0x165   : > { %v1239_v15 = vadd.f32 %v1222_v51, %v1184_v40  ;;  %v1240_v16 = vadd.f32 %v1235_v55, %v1197_v44 }
 0x16b   : > { %v1263_v56 = vpop.f32.mrf.mxu2  ;;  %v1276_v57 = vpop.f32.mrf.mxu3 }
 0x16c   : > { %v1224_v58 = vpop.f32.mrf.mxu0  ;;  %v1237_v47 = vpop.f32.mrf.mxu1  ;;  %v1280_v1 = vadd.f32 %v1263_v56, %v1239_v15  ;;  %v1281_v18 = vadd.f32 %v1276_v57, %v1240_v16 }
 0x16d   : > { %v1496_v47 = vpop.permute.xlu0 %1495 }
 0x173   : > { %v1265_v61 = vpop.f32.mrf.mxu2  ;;  %v1278_v62 = vpop.f32.mrf.mxu3 }
 0x174   : > { %v1309_v63 = vpop.f32.mrf.mxu0  ;;  %v1322_v0 = vpop.f32.mrf.mxu1 }
 0x175   : > { %v1326_v24 = vadd.f32 %v1309_v63, %v1280_v1  ;;  %v1327_v38 = vadd.f32 %v1322_v0, %v1281_v18 }
 0x17b   : > { %v1350_v35 = vpop.f32.mrf.mxu2  ;;  %v1363_v3 = vpop.f32.mrf.mxu3 }
 0x17c   : > { %v1311_v4 = vpop.f32.mrf.mxu0  ;;  %v1324_v5 = vpop.f32.mrf.mxu1  ;;  %v1367_v42 = vadd.f32 %v1350_v35, %v1326_v24  ;;  %v1368_v43 = vadd.f32 %v1363_v3, %v1327_v38  ;;  %v1579_v35 = vld [vmem:[%s9269_s0] sm:$0xff]  ;;  %v6162_v3 = vmov 8.0   ;;  %s9152_s0 = smov 64  }
 0x17d   : > { %5966 = vrcp.f32 %v6162_v3 }
 0x183   : > { %v1352_v2 = vpop.f32.mrf.mxu2  ;;  %v1365_v7 = vpop.f32.mrf.mxu3 }
 0x184   : > { %v1391_v41 = vpop.f32.mrf.mxu0  ;;  %v1404_v8 = vpop.f32.mrf.mxu1 }
 0x185   : > { %v1408_v50 = vadd.f32 %v1391_v41, %v1367_v42  ;;  %v1409_v58 = vadd.f32 %v1404_v8, %v1368_v43  ;;  %v5967_v2 = vpop.eup %5966 }
 0x186   : > { %v897_v7 = vmul.f32 8.0, %v5967_v2  ;;  %vm901_vm3 = vweird.f32 %v5967_v2 }
 0x188   : > { %v898_v41 = vsub.f32 1.0, %v897_v7 }
 0x18a   : > { %v899_v8 = vmul.f32 %v5967_v2, %v898_v41 }
 0x18b   : > { %v1432_v19 = vpop.f32.mrf.mxu2  ;;  %v1445_v20 = vpop.f32.mrf.mxu3 }
 0x18c   : > { %v1393_v21 = vpop.f32.mrf.mxu0  ;;  %v1406_v23 = vpop.f32.mrf.mxu1  ;;  %v1449_v61 = vadd.f32 %v1432_v19, %v1408_v50  ;;  %v1450_v62 = vadd.f32 %v1445_v20, %v1409_v58  ;;  %v900_v40 = vadd.f32 %v5967_v2, %v899_v8 }
 0x18e   : > { %v902_v15 = vsel %vm901_vm3, %v5967_v2, %v900_v40 }
 0x18f   : > { %v903_v16 = vmul.f32 %v902_v15, %v6456_v17 }
 0x191   : > { %v6886_v18 = vfloor.f32 %v903_v16 }
 0x193   : > { %v1434_v4 = vpop.f32.mrf.mxu2  ;;  %v1447_v30 = vpop.f32.mrf.mxu3  ;;  %v905_v42 = vmul.f32 8.0, %v6886_v18 }
 0x194   : > { %v1473_v31 = vpop.f32.mrf.mxu0  ;;  %v1486_v39 = vpop.f32.mrf.mxu1 }
 0x195   : > { %v1490_v6 = vadd.f32 %v1473_v31, %v1449_v61  ;;  %v1491_v51 = vadd.f32 %v1486_v39, %v1450_v62  ;;  %v6898_v61 = vsub.f32 %v6452_v14, %v905_v42  ;;  %v1689_v62 = vmul.f32 2.0, %v6886_v18 }
 0x197   : > { %v1498_v55 = vadd.f32 %v1496_v47, %v1490_v6  ;;  %v1499_v56 = vadd.f32 %v1496_v47, %v1491_v51  ;;  %v1690_v39 = vmul.f32 16.0, %v1689_v62  ;;  %v1691_v6 = vmul.f32 2.0, %v6898_v61 }
 0x198   : > { %v6903_v51 = vshrl.u32 %v9092_v11, 7 }
 0x199   : > { %v6846_v57 = vmax.f32 %v1498_v55, 0.0  ;;  %v6848_v5 = vmax.f32 %v1499_v56, 0.0 }
 0x19a   : > { %v1640_v15 = vadd.s32 120, %v6903_v51 }
 0x19b   : > { %1562 = vrot.lane.b32.xlu2 %v6848_v5, %s9109_s5  ;;  %1552 = vrot.lane.b32.xlu0 %v6846_v57, %s9105_s27 }
 0x19c   : > { %1560 = vrot.lane.b32.xlu1 %v6846_v57, %s9109_s5  ;;  %v1475_v63 = vpop.f32.mrf.mxu0  ;;  %v1488_v0 = vpop.f32.mrf.mxu1  ;;  %s9137_s5 = smov 54  }
 0x1a3   : > { %1546 = vrot.lane.b32.xlu2 %v6848_v5, %s9107_s21  ;;  %1538 = vrot.lane.b32.xlu0 %v6848_v5, %s9123_s2 }
 0x1a4   : > { %1544 = vrot.lane.b32.xlu1 %v6846_v57, %s9107_s21  ;;  %s9148_s21 = smov 47  }
 0x1ab   : > { %1536 = vrot.lane.b32.xlu2 %v6846_v57, %s9123_s2  ;;  %1526 = vrot.lane.b32.xlu0 %v6846_v57, %s9117_s26 }
 0x1ac   : > { %1554 = vrot.lane.b32.xlu1 %v6848_v5, %s9105_s27  ;;  %s9144_s27 = smov 48  }
 0x1b3   : > { %1520 = vrot.lane.b32.xlu2 %v6848_v5, %s9119_s3  ;;  %1504 = vrot.lane.b32.xlu0 %v6848_v5, %s9103_s19 }
 0x1b4   : > { %1518 = vrot.lane.b32.xlu1 %v6846_v57, %s9119_s3  ;;  %s9286_s3 = sld [smem:[#allocation38_spill]] }
 0x1bb   : > { %1502 = vrot.lane.b32.xlu2 %v6846_v57, %s9103_s19  ;;  %1582 = vperm.xlu0 %5641, %v1579_v35   ;;  %v6913_v35 = vadd.f32 %v1691_v6, %v1690_v39  ;;  %v1637_v6 = vadd.s32 96, %v6903_v51  ;;  %s6170_s19 = smov 63  }
 0x1bc   : > { %1528 = vrot.lane.b32.xlu1 %v6848_v5, %s9117_s26 }
 0x1c3   : > { %1512 = vrot.lane.b32.xlu2 %v6848_v5, %s9121_s20 }
 0x1c4   : > { %1510 = vrot.lane.b32.xlu1 %v6846_v57, %s9121_s20  ;;  %s9288_s20 = smov 46  }
 0x1f5   : > { %v1563_v44 = vpop.permute.xlu2 %1562 }
 0x1fd   : > { %v1547_v1 = vpop.permute.xlu2 %1546 }
 0x205   : > { %v1537_v30 = vpop.permute.xlu2 %1536 }
 0x20d   : > { %v1553_v19 = vpop.permute.xlu0 %1552  ;;  %v1521_v42 = vpop.permute.xlu2 %1520 }
 0x20e   : > { %v1561_v20 = vpop.permute.xlu1 %1560 }
 0x20f   : > { %v1564_v21 = vsel %vm9102_vm0, %v1561_v20, %v1563_v44  ;;  %v1565_v23 = vsel %vm9102_vm0, %v1563_v44, %v1561_v20  ;;  %v1656_v20 = vadd.s32 248, %v6903_v51  ;;  %vm9142_vm0 = vcmask 1048064  }
 0x210   : > { %v1566_v24 = vmul.f32 %v6827_v9, %v1564_v21  ;;  %v1567_v38 = vmul.f32 %v6830_v32, %v1565_v23  ;;  %v6927_v21 = vcvt.s32.f32 %v1640_v15  ;;  %v1639_v23 = vadd.s32 112, %v6903_v51 }
 0x211   : > { %v1651_v15 = vadd.s32 208, %v6903_v51 }
 0x212   : > { %v1577_v43 = vpack.c.bf16 %v1566_v24, %v1566_v24  ;;  %v1578_v50 = vpack.c.bf16 %v1567_v38, %v1567_v38  ;;  %v1655_v24 = vadd.s32 240, %v6903_v51  ;;  %v1638_v38 = vadd.s32 104, %v6903_v51 }
 0x213   : > { %vm1709_vm12 = vcmp.eq.f32.partialorder %v6927_v21, %v6913_v35  ;;  %v6939_v62 = vcvt.s32.f32 %v1639_v23 }
 0x214   : > { %v1591_v58 = vsel %vm9141_vm2, %v1577_v43, 0  ;;  %v1594_v47 = vsel %vm9141_vm2, %v1578_v50, 0 }
 0x215   : > { %1599 = vmatpush.bf16.msra.mxu2 %v1591_v58  ;;  %1612 = vmatpush.bf16.msra.mxu3 %v1594_v47  ;;  %v1539_v31 = vpop.permute.xlu0 %1538  ;;  %v1654_v58 = vadd.s32 232, %v6903_v51  ;;  %v1534_v47 = vmul.f32 %v6576_v49, %v6846_v57  ;;  %v9097_v57 = vmov 1.0   ;;  %vm1708_vm1 = vcmp.eq.f32.partialorder %v6939_v62, %v6913_v35 }
 0x216   : > { %v1545_v4 = vpop.permute.xlu1 %1544  ;;  %v1540_v55 = vsel %vm9100_vm4, %v1537_v30, %v1539_v31  ;;  %v1541_v56 = vsel %vm9100_vm4, %v1539_v31, %v1537_v30  ;;  %v1535_v30 = vmul.f32 %v6558_v46, %v6848_v5  ;;  %v6947_v31 = vcvt.s32.f32 %v1638_v38  ;;  %5077 = vmatpush.msk.msrb.mxu0 %vm1709_vm12, %v9097_v57 }
 0x217   : > { %v1548_v63 = vsel %vm9099_vm7, %v1545_v4, %v1547_v1  ;;  %v1549_v0 = vsel %vm9099_vm7, %v1547_v1, %v1545_v4  ;;  %v1542_v3 = vmul.f32 %v6735_v10, %v1540_v55  ;;  %v1543_v2 = vmul.f32 %v6738_v12, %v1541_v56 }
 0x218   : > { %v1550_v7 = vmul.f32 %v6766_v37, %v1548_v63  ;;  %v1551_v8 = vmul.f32 %v6769_v34, %v1549_v0  ;;  %v6941_v4 = vcvt.s32.f32 %v1655_v24  ;;  %v6949_v39 = vcvt.s32.f32 %v1654_v58  ;;  %5078 = vmatpush.msk.msrb.mxu0 %vm1708_vm1, %v9097_v57 }
 0x219   : > { %v1573_v5 = vpack.c.bf16 %v1542_v3, %v1534_v47  ;;  %v1574_v63 = vpack.c.bf16 %v1543_v2, %v1535_v30  ;;  %vm1707_vm8 = vcmp.eq.f32.partialorder %v6947_v31, %v6913_v35  ;;  %v6963_v0 = vcvt.s32.f32 %v1637_v6 }
 0x21a   : > { %vm1724_vm15 = vcmp.eq.f32.partialorder %v6941_v4, %v6913_v35  ;;  %vm1723_vm10 = vcmp.eq.f32.partialorder %v6949_v39, %v6913_v35  ;;  %5079 = vmatpush.msk.msrb.mxu0 %vm1707_vm8, %v9097_v57  ;;  %v1653_v3 = vadd.s32 224, %v6903_v51  ;;  %v1636_v2 = vadd.s32 88, %v6903_v51 }
 0x21b   : > { %vm1706_vm13 = vcmp.eq.f32.partialorder %v6963_v0, %v6913_v35  ;;  %v1650_v38 = vadd.s32 200, %v6903_v51  ;;  %v7005_v47 = vcvt.s32.f32 %v1651_v15  ;;  %vm9272_vm1 = vcmp.lt.s32.totalorder %v6449_v13, 1 }
 0x21c   : > { %5080 = vmatpush.msk.msrb.mxu0 %vm1706_vm13, %v9097_v57  ;;  %v1649_v15 = vadd.s32 192, %v6903_v51  ;;  %vm9274_vm13 = vcmp.lt.s32.totalorder %v6449_v13, 17 }
 0x21d   : > { %v1527_v55 = vpop.permute.xlu0 %1526  ;;  %vm1720_vm8 = vcmp.eq.f32.partialorder %v7005_v47, %v6913_v35 }
 0x21e   : > { %v1555_v41 = vpop.permute.xlu1 %1554 }
 0x21f   : > { %v1556_v40 = vsel %vm9101_vm9, %v1553_v19, %v1555_v41  ;;  %v1557_v44 = vsel %vm9101_vm9, %v1555_v41, %v1553_v19  ;;  %v6932_v19 = vcvt.s32.f32 %v1656_v20  ;;  %v1652_v41 = vadd.s32 216, %v6903_v51 }
 0x220   : > { %v1558_v16 = vmul.f32 %v6793_v59, %v1556_v40  ;;  %v1559_v1 = vmul.f32 %v6796_v60, %v1557_v44  ;;  %v6977_v40 = vcvt.s32.f32 %v1653_v3  ;;  %v6979_v44 = vcvt.s32.f32 %v1636_v2 }
 0x221   : > { %vm1725_vm14 = vcmp.eq.f32.partialorder %v6932_v19, %v6913_v35  ;;  %v6985_v23 = vcvt.s32.f32 %v1652_v41 }
 0x222   : > { %v1575_v43 = vpack.c.bf16 %v1558_v16, %v1550_v7  ;;  %v1576_v50 = vpack.c.bf16 %v1559_v1, %v1551_v8  ;;  %5093 = vmatpush.msk.msrb.mxu1 %vm1725_vm14, %v9097_v57  ;;  %v1635_v8 = vadd.s32 80, %v6903_v51  ;;  %v1634_v16 = vadd.s32 72, %v6903_v51  ;;  %v1503_v1 = vpop.permute.xlu2 %1502 }
 0x223   : > { %vm1722_vm11 = vcmp.eq.f32.partialorder %v6977_v40, %v6913_v35  ;;  %vm1705_vm3 = vcmp.eq.f32.partialorder %v6979_v44, %v6913_v35  ;;  %vm1721_vm12 = vcmp.eq.f32.partialorder %v6985_v23, %v6913_v35 }
 0x224   : > { %1600 = vmatpush.bf16.msra.mxu2 %v1575_v43  ;;  %1613 = vmatpush.bf16.msra.mxu3 %v1576_v50  ;;  %v6987_v24 = vcvt.s32.f32 %v1635_v8  ;;  %v6991_v43 = vadd.f32 1.0, %v6913_v35  ;;  %v1633_v50 = vadd.s32 64, %v6903_v51 }
 0x225   : > { %5094 = vmatpush.msk.msrb.mxu1 %vm1724_vm15, %v9097_v57  ;;  %5081 = vmatpush.msk.msrb.mxu0 %vm1705_vm3, %v9097_v57  ;;  %vm9273_vm15 = vmmov %vm9272_vm1 }
 0x226   : > { %v1519_v56 = vpop.permute.xlu1 %1518  ;;  %vm1704_vm14 = vcmp.eq.f32.partialorder %v6987_v24, %v6913_v35  ;;  %vm9275_vm3 = vmmov %vm9274_vm13 }
 0x227   : > { %v1523_v7 = vsel %vm9270_vm6, %v1521_v42, %v1519_v56  ;;  %5095 = vmatpush.msk.msrb.mxu1 %vm1723_vm10, %v9097_v57  ;;  %v1522_v20 = vsel %vm9271_vm5, %v1519_v56, %v1521_v42  ;;  %5082 = vmatpush.msk.msrb.mxu0 %vm1704_vm14, %v9097_v57  ;;  %vm1846_vm5 = vcmp.eq.f32.partialorder %v6927_v21, %v6991_v43  ;;  %vm9276_vm14 = vcmp.lt.s32.totalorder %v6449_v13, 16 }
 0x228   : > { %1601 = vmatpush.bf16.msra.mxu2 %v1573_v5  ;;  %1614 = vmatpush.bf16.msra.mxu3 %v1574_v63  ;;  %v1524_v58 = vmul.f32 %v6681_v36, %v1523_v7  ;;  %v1525_v30 = vmul.f32 %v6668_v25, %v1522_v20  ;;  %v7012_v5 = vcvt.s32.f32 %v1634_v16  ;;  %v1505_v63 = vpop.permute.xlu0 %1504  ;;  %v7020_v7 = vcvt.s32.f32 %v1650_v38 }
 0x229   : > { %5096 = vmatpush.msk.msrb.mxu1 %vm1722_vm11, %v9097_v57  ;;  %v1506_v16 = vsel %vm9274_vm13, %v1503_v1, %v1505_v63  ;;  %v1632_v20 = vadd.s32 56, %v6903_v51  ;;  %v1507_v38 = vsel %vm9275_vm3, %v1505_v63, %v1503_v1  ;;  %v1646_v1 = vadd.s32 168, %v6903_v51 }
 0x22a   : > { %vm1703_vm10 = vcmp.eq.f32.partialorder %v7012_v5, %v6913_v35  ;;  %vm1719_vm6 = vcmp.eq.f32.partialorder %v7020_v7, %v6913_v35  ;;  %v1513_v63 = vpop.permute.xlu2 %1512  ;;  %vm9139_vm13 = vcmask 588800   ;;  %vm1840_vm7 = vcmp.eq.f32.partialorder %v7012_v5, %v6991_v43 }
 0x22b   : > { %5097 = vmatpush.msk.msrb.mxu1 %vm1721_vm12, %v9097_v57  ;;  %5083 = vmatpush.msk.msrb.mxu0 %vm1703_vm10, %v9097_v57  ;;  %vm1862_vm10 = vcmp.eq.f32.partialorder %v6932_v19, %v6991_v43 }
 0x22d   : > { %5098 = vmatpush.msk.msrb.mxu1 %vm1720_vm8, %v9097_v57 }
 0x22e   : > { %v1529_v42 = vpop.permute.xlu1 %1528 }
 0x22f   : > { %v1530_v6 = vsel %vm9272_vm1, %v1527_v55, %v1529_v42  ;;  %v1531_v56 = vsel %vm9273_vm15, %v1529_v42, %v1527_v55  ;;  %v7024_v55 = vcvt.s32.f32 %v1633_v50  ;;  %v7040_v50 = vcvt.s32.f32 %v1649_v15  ;;  %5099 = vmatpush.msk.msrb.mxu1 %vm1719_vm6, %v9097_v57  ;;  %vm9277_vm1 = vmmov %vm9276_vm14 }
 0x230   : > { %v1532_v3 = vmul.f32 %v6673_v26, %v1531_v56  ;;  %v1533_v2 = vmul.f32 %v6676_v29, %v1530_v6  ;;  %v1631_v42 = vadd.s32 48, %v6903_v51  ;;  %v1647_v6 = vadd.s32 176, %v6903_v51 }
 0x231   : > { %vm1702_vm11 = vcmp.eq.f32.partialorder %v7024_v55, %v6913_v35  ;;  %v1630_v56 = vadd.s32 40, %v6903_v51  ;;  %vm1718_vm12 = vcmp.eq.f32.partialorder %v7040_v50, %v6913_v35  ;;  %v1508_v15 = vmul.f32 %v6593_v53, %v1507_v38 }
 0x232   : > { %v1571_v41 = vpack.c.bf16 %v1532_v3, %v1524_v58  ;;  %v1572_v8 = vpack.c.bf16 %v1533_v2, %v1525_v30  ;;  %v1648_v58 = vadd.s32 184, %v6903_v51  ;;  %5084 = vmatpush.msk.msrb.mxu0 %vm1702_vm11, %v9097_v57  ;;  %v7046_v30 = vcvt.s32.f32 %v1632_v20  ;;  %5100 = vmatpush.msk.msrb.mxu1 %vm1718_vm12, %v9097_v57 }
 0x233   : > { %v7077_v38 = vcvt.s32.f32 %v1647_v6  ;;  %vm1845_vm11 = vcmp.eq.f32.partialorder %v6939_v62, %v6991_v43  ;;  %v1568_v6 = vld [vmem:[#allocation8] sm:$0xf]  ;;  %vm1855_vm4 = vcmp.eq.f32.partialorder %v7040_v50, %v6991_v43 }
 0x234   : > { %1602 = vmatpush.bf16.msra.mxu2 %v1571_v41  ;;  %1615 = vmatpush.bf16.msra.mxu3 %v1572_v8  ;;  %v7053_v2 = vcvt.s32.f32 %v1648_v58  ;;  %v7055_v41 = vcvt.s32.f32 %v1631_v42  ;;  %v1629_v8 = vadd.s32 32, %v6903_v51  ;;  %vm1701_vm15 = vcmp.eq.f32.partialorder %v7046_v30, %v6913_v35 }
 0x235   : > { %v1509_v58 = vmul.f32 %v6596_v54, %v1506_v16  ;;  %5085 = vmatpush.msk.msrb.mxu0 %vm1701_vm15, %v9097_v57  ;;  %v7079_v16 = vcvt.s32.f32 %v1630_v56  ;;  %vm1716_vm3 = vcmp.eq.f32.partialorder %v7077_v38, %v6913_v35  ;;  %v1628_v56 = vadd.s32 24, %v6903_v51 }
 0x236   : > { %v1511_v3 = vpop.permute.xlu1 %1510  ;;  %vm1717_vm8 = vcmp.eq.f32.partialorder %v7053_v2, %v6913_v35  ;;  %vm1700_vm6 = vcmp.eq.f32.partialorder %v7055_v41, %v6913_v35 }
 0x237   : > { %v1514_v20 = vsel %vm9276_vm14, %v1511_v3, %v1513_v63  ;;  %v1515_v11 = vsel %vm9277_vm1, %v1513_v63, %v1511_v3  ;;  %5101 = vmatpush.msk.msrb.mxu1 %vm1717_vm8, %v9097_v57  ;;  %5086 = vmatpush.msk.msrb.mxu0 %vm1700_vm6, %v9097_v57  ;;  %v7082_v3 = vcvt.s32.f32 %v1646_v1  ;;  %vm1699_vm12 = vcmp.eq.f32.partialorder %v7079_v16, %v6913_v35 }
 0x238   : > { %v1516_v42 = vmul.f32 %v6571_v48, %v1515_v11  ;;  %v1517_v45 = vmul.f32 %v6590_v52, %v1514_v20  ;;  %v7084_v20 = vcvt.s32.f32 %v1629_v8  ;;  %vm1861_vm14 = vcmp.eq.f32.partialorder %v6941_v4, %v6991_v43 }
 0x239   : > { %vm1844_vm1 = vcmp.eq.f32.partialorder %v6947_v31, %v6991_v43  ;;  %vm1715_vm15 = vcmp.eq.f32.partialorder %v7082_v3, %v6913_v35  ;;  %v1644_v1 = vadd.s32 152, %v6903_v51  ;;  %v1627_v8 = vadd.s32 16, %v6903_v51  ;;  %5102 = vmatpush.msk.msrb.mxu1 %vm1716_vm3, %v9097_v57  ;;  %5087 = vmatpush.msk.msrb.mxu0 %vm1699_vm12, %v9097_v57 }
 0x23a   : > { %v1569_v11 = vpack.c.bf16 %v1516_v42, %v1508_v15  ;;  %v1570_v63 = vpack.c.bf16 %v1517_v45, %v1509_v58  ;;  %v1645_v45 = vadd.s32 160, %v6903_v51  ;;  %vm1698_vm8 = vcmp.eq.f32.partialorder %v7084_v20, %v6913_v35 }
 0x23b   : > { %v1643_v58 = vadd.s32 144, %v6903_v51  ;;  %v1626_v42 = vadd.s32 8, %v6903_v51  ;;  %v7125_v34 = vcvt.s32.f32 %v1644_v1  ;;  %vm1843_vm6 = vcmp.eq.f32.partialorder %v6963_v0, %v6991_v43 }
 0x23c   : > { %1603 = vmatpush.bf16.msra.mxu2 %v1569_v11  ;;  %1616 = vmatpush.bf16.msra.mxu3 %v1570_v63  ;;  %v7114_v15 = vcvt.s32.f32 %v1645_v45  ;;  %v1642_v11 = vadd.s32 136, %v6903_v51  ;;  %v7123_v63 = vcvt.s32.f32 %v1628_v56  ;;  %v9278_v45 = vmov 1.0  }
 0x23d   : > { %v7141_v56 = vcvt.s32.f32 %v1626_v42  ;;  %vm1859_vm3 = vcmp.eq.f32.partialorder %v6977_v40, %v6991_v43  ;;  %5103 = vmatpush.msk.msrb.mxu1 %vm1715_vm15, %v9278_v45  ;;  %5088 = vmatpush.msk.msrb.mxu0 %vm1698_vm8, %v9278_v45  ;;  %v7158_v1 = vcvt.s32.f32 %v6903_v51  ;;  %vm1713_vm12 = vcmp.eq.f32.partialorder %v7125_v34, %v6913_v35 }
 0x23e   : > { %vm1842_vm15 = vcmp.eq.f32.partialorder %v6979_v44, %v6991_v43  ;;  %v7199_v42 = vadd.f32 16.0, %v6913_v35 }
 0x23f   : > { %5043 = vmatmul.msk.bf16.vlgmr.msra.gmra.mxu2 %vm9139_vm13, %v1568_v6  ;;  %5044 = vmatmul.msk.bf16.vlgmr.msra.gmra.mxu3 %vm9139_vm13, %v1568_v6  ;;  %v7139_v6 = vcvt.s32.f32 %v1643_v58  ;;  %v1641_v58 = vadd.s32 128, %v6903_v51 }
 0x240   : > { %5141 = vmatpush.msk.msrb.mxu2 %vm1846_vm5, %v9097_v57  ;;  %5157 = vmatpush.msk.msrb.mxu3 %vm1862_vm10, %v9097_v57  ;;  %vm1860_vm5 = vcmp.eq.f32.partialorder %v6949_v39, %v6991_v43  ;;  %v7127_v57 = vcvt.s32.f32 %v1627_v8  ;;  %vm1714_vm10 = vcmp.eq.f32.partialorder %v7114_v15, %v6913_v35  ;;  %v7172_v8 = vcvt.s32.f32 %v1642_v11 }
 0x241   : > { %5104 = vmatpush.msk.msrb.mxu1 %vm1714_vm10, %v9278_v45  ;;  %vm1712_vm8 = vcmp.eq.f32.partialorder %v7139_v6, %v6913_v35  ;;  %v7196_v51 = vcvt.s32.f32 %v1641_v58  ;;  %vm1841_vm10 = vcmp.eq.f32.partialorder %v6987_v24, %v6991_v43  ;;  %v7312_v11 = vadd.f32 17.0, %v6913_v35 }
 0x242   : > { %5142 = vmatpush.msk.msrb.mxu2 %vm1845_vm11, %v9278_v45  ;;  %5158 = vmatpush.msk.msrb.mxu3 %vm1861_vm14, %v9278_v45  ;;  %vm1697_vm11 = vcmp.eq.f32.partialorder %v7123_v63, %v6913_v35  ;;  %vm1696_vm14 = vcmp.eq.f32.partialorder %v7127_v57, %v6913_v35 }
 0x243   : > { %5089 = vmatpush.msk.msrb.mxu0 %vm1697_vm11, %v9278_v45  ;;  %5105 = vmatpush.msk.msrb.mxu1 %vm1713_vm12, %v9278_v45  ;;  %vm1694_vm11 = vcmp.eq.f32.partialorder %v7158_v1, %v6913_v35  ;;  %vm1856_vm12 = vcmp.eq.f32.partialorder %v7020_v7, %v6991_v43 }
 0x244   : > { %5143 = vmatpush.msk.msrb.mxu2 %vm1844_vm1, %v9278_v45  ;;  %5159 = vmatpush.msk.msrb.mxu3 %vm1860_vm5, %v9278_v45  ;;  %vm1858_vm1 = vcmp.eq.f32.partialorder %v6985_v23, %v6991_v43  ;;  %vm1695_vm5 = vcmp.eq.f32.partialorder %v7141_v56, %v6913_v35 }
 0x245   : > { %5090 = vmatpush.msk.msrb.mxu0 %vm1696_vm14, %v9278_v45  ;;  %5106 = vmatpush.msk.msrb.mxu1 %vm1712_vm8, %v9278_v45  ;;  %vm1710_vm14 = vcmp.eq.f32.partialorder %v7196_v51, %v6913_v35  ;;  %vm2000_vm8 = vcmp.eq.f32.partialorder %v6932_v19, %v7199_v42 }
 0x246   : > { %5144 = vmatpush.msk.msrb.mxu2 %vm1843_vm6, %v9278_v45  ;;  %5160 = vmatpush.msk.msrb.mxu3 %vm1859_vm3, %v9278_v45  ;;  %vm1857_vm6 = vcmp.eq.f32.partialorder %v7005_v47, %v6991_v43  ;;  %vm1711_vm3 = vcmp.eq.f32.partialorder %v7172_v8, %v6913_v35 }
 0x247   : > { %5091 = vmatpush.msk.msrb.mxu0 %vm1695_vm5, %v9278_v45  ;;  %5107 = vmatpush.msk.msrb.mxu1 %vm1711_vm3, %v9278_v45  ;;  %vm1983_vm5 = vcmp.eq.f32.partialorder %v6939_v62, %v7199_v42  ;;  %vm1982_vm3 = vcmp.eq.f32.partialorder %v6947_v31, %v7199_v42 }
 0x248   : > { %5145 = vmatpush.msk.msrb.mxu2 %vm1842_vm15, %v9278_v45  ;;  %5161 = vmatpush.msk.msrb.mxu3 %vm1858_vm1, %v9278_v45  ;;  %vm1984_vm15 = vcmp.eq.f32.partialorder %v6927_v21, %v7199_v42  ;;  %vm1839_vm1 = vcmp.eq.f32.partialorder %v7024_v55, %v6991_v43 }
 0x249   : > { %5092 = vmatpush.msk.msrb.mxu0 %vm1694_vm11, %v9278_v45  ;;  %5108 = vmatpush.msk.msrb.mxu1 %vm1710_vm14, %v9278_v45  ;;  %vm1837_vm11 = vcmp.eq.f32.partialorder %v7055_v41, %v6991_v43  ;;  %vm1981_vm14 = vcmp.eq.f32.partialorder %v6963_v0, %v7199_v42 }
 0x24a   : > { %5146 = vmatpush.msk.msrb.mxu2 %vm1841_vm10, %v9278_v45  ;;  %5162 = vmatpush.msk.msrb.mxu3 %vm1857_vm6, %v9278_v45  ;;  %vm1838_vm10 = vcmp.eq.f32.partialorder %v7046_v30, %v6991_v43  ;;  %vm1854_vm6 = vcmp.eq.f32.partialorder %v7053_v2, %v6991_v43 }
 0x24b   : > { %5205 = vmatpush.msk.msra.mxu0 %vm1984_vm15, %v9278_v45  ;;  %5221 = vmatpush.msk.msra.mxu1 %vm2000_vm8, %v9278_v45  ;;  %vm1836_vm15 = vcmp.eq.f32.partialorder %v7079_v16, %v6991_v43  ;;  %vm1997_vm8 = vcmp.eq.f32.partialorder %v6977_v40, %v7199_v42 }
 0x24c   : > { %5147 = vmatpush.msk.msrb.mxu2 %vm1840_vm7, %v9278_v45  ;;  %5163 = vmatpush.msk.msrb.mxu3 %vm1856_vm12, %v9278_v45  ;;  %vm1999_vm7 = vcmp.eq.f32.partialorder %v6941_v4, %v7199_v42  ;;  %vm1853_vm12 = vcmp.eq.f32.partialorder %v7077_v38, %v6991_v43 }
 0x24d   : > { %5206 = vmatpush.msk.msra.mxu0 %vm1983_vm5, %v9278_v45  ;;  %5222 = vmatpush.msk.msra.mxu1 %vm1999_vm7, %v9278_v45  ;;  %vm1980_vm5 = vcmp.eq.f32.partialorder %v6979_v44, %v7199_v42  ;;  %vm1996_vm7 = vcmp.eq.f32.partialorder %v6985_v23, %v7199_v42 }
 0x24e   : > { %5148 = vmatpush.msk.msrb.mxu2 %vm1839_vm1, %v9278_v45  ;;  %5164 = vmatpush.msk.msrb.mxu3 %vm1855_vm4, %v9278_v45  ;;  %vm1998_vm4 = vcmp.eq.f32.partialorder %v6949_v39, %v7199_v42  ;;  %vm1852_vm1 = vcmp.eq.f32.partialorder %v7082_v3, %v6991_v43 }
 0x24f   : > { %5207 = vmatpush.msk.msra.mxu0 %vm1982_vm3, %v9278_v45  ;;  %5223 = vmatpush.msk.msra.mxu1 %vm1998_vm4, %v9278_v45  ;;  %vm1979_vm3 = vcmp.eq.f32.partialorder %v6987_v24, %v7199_v42  ;;  %vm1995_vm4 = vcmp.eq.f32.partialorder %v7005_v47, %v7199_v42 }
 0x250   : > { %5149 = vmatpush.msk.msrb.mxu2 %vm1838_vm10, %v9278_v45  ;;  %5165 = vmatpush.msk.msrb.mxu3 %vm1854_vm6, %v9278_v45  ;;  %vm1835_vm10 = vcmp.eq.f32.partialorder %v7084_v20, %v6991_v43  ;;  %vm1851_vm6 = vcmp.eq.f32.partialorder %v7114_v15, %v6991_v43 }
 0x251   : > { %5208 = vmatpush.msk.msra.mxu0 %vm1981_vm14, %v9278_v45  ;;  %5224 = vmatpush.msk.msra.mxu1 %vm1997_vm8, %v9278_v45  ;;  %vm1978_vm14 = vcmp.eq.f32.partialorder %v7012_v5, %v7199_v42  ;;  %vm1994_vm8 = vcmp.eq.f32.partialorder %v7020_v7, %v7199_v42 }
 0x252   : > { %5150 = vmatpush.msk.msrb.mxu2 %vm1837_vm11, %v9278_v45  ;;  %5166 = vmatpush.msk.msrb.mxu3 %vm1853_vm12, %v9278_v45  ;;  %vm1834_vm11 = vcmp.eq.f32.partialorder %v7123_v63, %v6991_v43  ;;  %vm1850_vm12 = vcmp.eq.f32.partialorder %v7125_v34, %v6991_v43 }
 0x253   : > { %5209 = vmatpush.msk.msra.mxu0 %vm1980_vm5, %v9278_v45  ;;  %5225 = vmatpush.msk.msra.mxu1 %vm1996_vm7, %v9278_v45  ;;  %vm1977_vm5 = vcmp.eq.f32.partialorder %v7024_v55, %v7199_v42  ;;  %vm1993_vm7 = vcmp.eq.f32.partialorder %v7040_v50, %v7199_v42 }
 0x254   : > { %5151 = vmatpush.msk.msrb.mxu2 %vm1836_vm15, %v9278_v45  ;;  %5167 = vmatpush.msk.msrb.mxu3 %vm1852_vm1, %v9278_v45  ;;  %vm1833_vm15 = vcmp.eq.f32.partialorder %v7127_v57, %v6991_v43  ;;  %vm1849_vm1 = vcmp.eq.f32.partialorder %v7139_v6, %v6991_v43 }
 0x255   : > { %5210 = vmatpush.msk.msra.mxu0 %vm1979_vm3, %v9278_v45  ;;  %5226 = vmatpush.msk.msra.mxu1 %vm1995_vm4, %v9278_v45  ;;  %vm1976_vm3 = vcmp.eq.f32.partialorder %v7046_v30, %v7199_v42  ;;  %vm2122_vm4 = vcmp.eq.f32.partialorder %v6927_v21, %v7312_v11 }
 0x256   : > { %5152 = vmatpush.msk.msrb.mxu2 %vm1835_vm10, %v9278_v45  ;;  %5168 = vmatpush.msk.msrb.mxu3 %vm1851_vm6, %v9278_v45  ;;  %vm1832_vm10 = vcmp.eq.f32.partialorder %v7141_v56, %v6991_v43  ;;  %vm1848_vm6 = vcmp.eq.f32.partialorder %v7172_v8, %v6991_v43 }
 0x257   : > { %5211 = vmatpush.msk.msra.mxu0 %vm1978_vm14, %v9278_v45  ;;  %5227 = vmatpush.msk.msra.mxu1 %vm1994_vm8, %v9278_v45  ;;  %vm2138_vm14 = vcmp.eq.f32.partialorder %v6932_v19, %v7312_v11  ;;  %vm2137_vm8 = vcmp.eq.f32.partialorder %v6941_v4, %v7312_v11 }
 0x258   : > { %5153 = vmatpush.msk.msrb.mxu2 %vm1834_vm11, %v9278_v45  ;;  %5169 = vmatpush.msk.msrb.mxu3 %vm1850_vm12, %v9278_v45  ;;  %vm1831_vm11 = vcmp.eq.f32.partialorder %v7158_v1, %v6991_v43  ;;  %vm1847_vm12 = vcmp.eq.f32.partialorder %v7196_v51, %v6991_v43  ;;  %v9283_v43 = vmov 0.0  }
 0x259   : > { %5212 = vmatpush.msk.msra.mxu0 %vm1977_vm5, %v9278_v45  ;;  %5228 = vmatpush.msk.msra.mxu1 %vm1993_vm7, %v9278_v45  ;;  %vm2120_vm5 = vcmp.eq.f32.partialorder %v6947_v31, %v7312_v11  ;;  %vm2135_vm7 = vcmp.eq.f32.partialorder %v6977_v40, %v7312_v11  ;;  %v925_v40 = vadd.f32 1.0, %v6898_v61 }
 0x25a   : > { %5154 = vmatpush.msk.msrb.mxu2 %vm1833_vm15, %v9278_v45  ;;  %5170 = vmatpush.msk.msrb.mxu3 %vm1849_vm1, %v9278_v45  ;;  %vm1992_vm15 = vcmp.eq.f32.partialorder %v7053_v2, %v7199_v42  ;;  %vm2121_vm1 = vcmp.eq.f32.partialorder %v6939_v62, %v7312_v11 }
 0x25b   : > { %5213 = vmatpush.msk.msra.mxu0 %vm1976_vm3, %v9278_v45  ;;  %5229 = vmatpush.msk.msra.mxu1 %vm1992_vm15, %v9278_v45  ;;  %vm2118_vm3 = vcmp.eq.f32.partialorder %v6979_v44, %v7312_v11  ;;  %vm2132_vm15 = vcmp.eq.f32.partialorder %v7020_v7, %v7312_v11  ;;  %v948_v44 = vadd.f32 1.0, %v6886_v18 }
 0x25c   : > { %5155 = vmatpush.msk.msrb.mxu2 %vm1832_vm10, %v9278_v45  ;;  %5171 = vmatpush.msk.msrb.mxu3 %vm1848_vm6, %v9278_v45  ;;  %vm2136_vm10 = vcmp.eq.f32.partialorder %v6949_v39, %v7312_v11  ;;  %vm2119_vm6 = vcmp.eq.f32.partialorder %v6963_v0, %v7312_v11 }
 0x25e   : > { %5156 = vmatpush.msk.msrb.mxu2 %vm1831_vm11, %v9278_v45  ;;  %5172 = vmatpush.msk.msrb.mxu3 %vm1847_vm12, %v9278_v45  ;;  %vm2134_vm11 = vcmp.eq.f32.partialorder %v6985_v23, %v7312_v11  ;;  %vm2117_vm12 = vcmp.eq.f32.partialorder %v6987_v24, %v7312_v11 }
 0x260   : > { %5269 = vmatpush.msk.msra.mxu2 %vm2122_vm4, %v9278_v45  ;;  %5285 = vmatpush.msk.msra.mxu3 %vm2138_vm14, %v9278_v45  ;;  %vm2133_vm4 = vcmp.eq.f32.partialorder %v7005_v47, %v7312_v11  ;;  %vm2116_vm14 = vcmp.eq.f32.partialorder %v7012_v5, %v7312_v11  ;;  %v907_v5 = vadd.f32 -1.0, %v6886_v18 }
 0x262   : > { %5270 = vmatpush.msk.msra.mxu2 %vm2121_vm1, %v9278_v45  ;;  %5286 = vmatpush.msk.msra.mxu3 %vm2137_vm8, %v9278_v45  ;;  %vm2115_vm1 = vcmp.eq.f32.partialorder %v7024_v55, %v7312_v11  ;;  %vm2131_vm8 = vcmp.eq.f32.partialorder %v7040_v50, %v7312_v11 }
 0x264   : > { %5271 = vmatpush.msk.msra.mxu2 %vm2120_vm5, %v9278_v45  ;;  %5287 = vmatpush.msk.msra.mxu3 %vm2136_vm10, %v9278_v45  ;;  %vm2114_vm5 = vcmp.eq.f32.partialorder %v7046_v30, %v7312_v11  ;;  %vm2130_vm10 = vcmp.eq.f32.partialorder %v7053_v2, %v7312_v11 }
 0x266   : > { %5272 = vmatpush.msk.msra.mxu2 %vm2119_vm6, %v9278_v45  ;;  %5288 = vmatpush.msk.msra.mxu3 %vm2135_vm7, %v9278_v45  ;;  %vm1975_vm6 = vcmp.eq.f32.partialorder %v7055_v41, %v7199_v42  ;;  %vm1991_vm7 = vcmp.eq.f32.partialorder %v7077_v38, %v7199_v42 }
 0x267   : > { %5214 = vmatpush.msk.msra.mxu0 %vm1975_vm6, %v9278_v45  ;;  %5230 = vmatpush.msk.msra.mxu1 %vm1991_vm7, %v9278_v45  ;;  %vm1972_vm6 = vcmp.eq.f32.partialorder %v7123_v63, %v7199_v42  ;;  %vm1988_vm7 = vcmp.eq.f32.partialorder %v7125_v34, %v7199_v42 }
 0x268   : > { %5273 = vmatpush.msk.msra.mxu2 %vm2118_vm3, %v9278_v45  ;;  %5289 = vmatpush.msk.msra.mxu3 %vm2134_vm11, %v9278_v45  ;;  %vm2113_vm3 = vcmp.eq.f32.partialorder %v7055_v41, %v7312_v11  ;;  %vm2129_vm11 = vcmp.eq.f32.partialorder %v7077_v38, %v7312_v11 }
 0x26a   : > { %5274 = vmatpush.msk.msra.mxu2 %vm2117_vm12, %v9278_v45  ;;  %5290 = vmatpush.msk.msra.mxu3 %vm2133_vm4, %v9278_v45  ;;  %vm1974_vm12 = vcmp.eq.f32.partialorder %v7079_v16, %v7199_v42  ;;  %vm1990_vm4 = vcmp.eq.f32.partialorder %v7082_v3, %v7199_v42 }
 0x26b   : > { %5215 = vmatpush.msk.msra.mxu0 %vm1974_vm12, %v9278_v45  ;;  %5231 = vmatpush.msk.msra.mxu1 %vm1990_vm4, %v9278_v45  ;;  %vm1971_vm12 = vcmp.eq.f32.partialorder %v7127_v57, %v7199_v42  ;;  %vm1987_vm4 = vcmp.eq.f32.partialorder %v7139_v6, %v7199_v42 }
 0x26c   : > { %5275 = vmatpush.msk.msra.mxu2 %vm2116_vm14, %v9278_v45  ;;  %5291 = vmatpush.msk.msra.mxu3 %vm2132_vm15, %v9278_v45  ;;  %vm2112_vm14 = vcmp.eq.f32.partialorder %v7079_v16, %v7312_v11  ;;  %vm2128_vm15 = vcmp.eq.f32.partialorder %v7082_v3, %v7312_v11 }
 0x26e   : > { %5276 = vmatpush.msk.msra.mxu2 %vm2115_vm1, %v9278_v45  ;;  %5292 = vmatpush.msk.msra.mxu3 %vm2131_vm8, %v9278_v45  ;;  %vm1973_vm1 = vcmp.eq.f32.partialorder %v7084_v20, %v7199_v42  ;;  %vm1989_vm8 = vcmp.eq.f32.partialorder %v7114_v15, %v7199_v42 }
 0x26f   : > { %5216 = vmatpush.msk.msra.mxu0 %vm1973_vm1, %v9278_v45  ;;  %5232 = vmatpush.msk.msra.mxu1 %vm1989_vm8, %v9278_v45  ;;  %vm1970_vm1 = vcmp.eq.f32.partialorder %v7141_v56, %v7199_v42  ;;  %vm1986_vm8 = vcmp.eq.f32.partialorder %v7172_v8, %v7199_v42 }
 0x270   : > { %5277 = vmatpush.msk.msra.mxu2 %vm2114_vm5, %v9278_v45  ;;  %5293 = vmatpush.msk.msra.mxu3 %vm2130_vm10, %v9278_v45  ;;  %vm2111_vm5 = vcmp.eq.f32.partialorder %v7084_v20, %v7312_v11  ;;  %vm2127_vm10 = vcmp.eq.f32.partialorder %v7114_v15, %v7312_v11 }
 0x271   : > { %5217 = vmatpush.msk.msra.mxu0 %vm1972_vm6, %v9278_v45  ;;  %5233 = vmatpush.msk.msra.mxu1 %vm1988_vm7, %v9278_v45  ;;  %vm1969_vm6 = vcmp.eq.f32.partialorder %v7158_v1, %v7199_v42  ;;  %vm1985_vm7 = vcmp.eq.f32.partialorder %v7196_v51, %v7199_v42 }
 0x272   : > { %5278 = vmatpush.msk.msra.mxu2 %vm2113_vm3, %v9278_v45  ;;  %5294 = vmatpush.msk.msra.mxu3 %vm2129_vm11, %v9278_v45  ;;  %vm2110_vm3 = vcmp.eq.f32.partialorder %v7123_v63, %v7312_v11  ;;  %vm2126_vm11 = vcmp.eq.f32.partialorder %v7125_v34, %v7312_v11  ;;  %v1583_v34 = vpop.permute.xlu0 %1582 }
 0x273   : > { %5218 = vmatpush.msk.msra.mxu0 %vm1971_vm12, %v9278_v45  ;;  %5234 = vmatpush.msk.msra.mxu1 %vm1987_vm4, %v9278_v45  ;;  %vm933_vm12 = vcmp.ge.f32.partialorder %v6886_v18, 0.0  ;;  %vm934_vm4 = vcmp.le.f32.partialorder %v6886_v18, 7.0 }
 0x274   : > { %5279 = vmatpush.msk.msra.mxu2 %vm2112_vm14, %v9278_v45  ;;  %5295 = vmatpush.msk.msra.mxu3 %vm2128_vm15, %v9278_v45  ;;  %vm2109_vm14 = vcmp.eq.f32.partialorder %v7127_v57, %v7312_v11  ;;  %vm2125_vm15 = vcmp.eq.f32.partialorder %v7139_v6, %v7312_v11 }
 0x275   : > { %5219 = vmatpush.msk.msra.mxu0 %vm1970_vm1, %v9278_v45  ;;  %5235 = vmatpush.msk.msra.mxu1 %vm1986_vm8, %v9278_v45  ;;  %vm949_vm1 = vcmp.ge.f32.partialorder %v948_v44, 0.0  ;;  %vm950_vm8 = vcmp.le.f32.partialorder %v948_v44, 7.0 }
 0x276   : > { %5280 = vmatpush.msk.msra.mxu2 %vm2111_vm5, %v9278_v45  ;;  %5296 = vmatpush.msk.msra.mxu3 %vm2127_vm10, %v9278_v45  ;;  %vm2108_vm5 = vcmp.eq.f32.partialorder %v7141_v56, %v7312_v11  ;;  %vm2124_vm10 = vcmp.eq.f32.partialorder %v7172_v8, %v7312_v11 }
 0x277   : > { %5220 = vmatpush.msk.msra.mxu0 %vm1969_vm6, %v9278_v45  ;;  %5236 = vmatpush.msk.msra.mxu1 %vm1985_vm7, %v9278_v45 }
 0x278   : > { %5281 = vmatpush.msk.msra.mxu2 %vm2110_vm3, %v9278_v45  ;;  %5297 = vmatpush.msk.msra.mxu3 %vm2126_vm11, %v9278_v45  ;;  %vm2107_vm3 = vcmp.eq.f32.partialorder %v7158_v1, %v7312_v11  ;;  %vm2123_vm11 = vcmp.eq.f32.partialorder %v7196_v51, %v7312_v11 }
 0x27a   : > { %5282 = vmatpush.msk.msra.mxu2 %vm2109_vm14, %v9278_v45  ;;  %5298 = vmatpush.msk.msra.mxu3 %vm2125_vm15, %v9278_v45  ;;  %vm926_vm14 = vcmp.ge.f32.partialorder %v925_v40, 0.0  ;;  %vm928_vm15 = vcmp.le.f32.partialorder %v925_v40, 7.0 }
 0x27c   : > { %5283 = vmatpush.msk.msra.mxu2 %vm2108_vm5, %v9278_v45  ;;  %5299 = vmatpush.msk.msra.mxu3 %vm2124_vm10, %v9278_v45  ;;  %vm7499_vm5 = vmand %vm933_vm12, %vm934_vm4  ;;  %vm909_vm12 = vcmp.ge.f32.partialorder %v907_v5, 0.0  ;;  %vm910_vm4 = vcmp.le.f32.partialorder %v907_v5, 7.0 }
 0x27d   : > { %vm7503_vm10 = vmand %vm949_vm1, %vm950_vm8  ;;  %vm919_vm8 = vcmp.ge.f32.partialorder %v6898_v61, 0.0 }
 0x27e   : > { %5284 = vmatpush.msk.msra.mxu2 %vm2107_vm3, %v9278_v45  ;;  %5300 = vmatpush.msk.msra.mxu3 %vm2123_vm11, %v9278_v45  ;;  %vm960_vm6 = vmand %vm7503_vm10, %vm926_vm14 }
 0x27f   : > { %vm961_vm7 = vmand %vm960_vm6, %vm928_vm15 }
 0x280   : > { %v5015_v47 = vsel %vm961_vm7, 1.0, %v9283_v43  ;;  %vm944_vm3 = vmand %vm7499_vm5, %vm926_vm14  ;;  %vm921_vm7 = vcmp.le.f32.partialorder %v6898_v61, 7.0 }
 0x281   : > { %2288 = vrot.lane.b32.xlu0 %v5015_v47, %s6164_s24  ;;  %vm945_vm11 = vmand %vm944_vm3, %vm928_vm15  ;;  %s9115_s24 = smov 7  }
 0x282   : > { %vm7517_vm1 = vmand %vm909_vm12, %vm910_vm4  ;;  %v5012_v2 = vsel %vm945_vm11, 1.0, %v9283_v43 }
 0x283   : > { %vm920_vm6 = vmand %vm7517_vm1, %vm919_vm8 }
 0x284   : > { %vm922_vm3 = vmand %vm920_vm6, %vm921_vm7 }
 0x285   : > { %v5008_v6 = vsel %vm922_vm3, 1.0, %v9283_v43  ;;  %vm927_vm3 = vmand %vm7517_vm1, %vm926_vm14 }
 0x286   : > { %vm929_vm9 = vmand %vm927_vm3, %vm928_vm15 }
 0x287   : > { %v5009_v44 = vsel %vm929_vm9, 1.0, %v9283_v43 }
 0x289   : > { %2273 = vrot.lane.b32.xlu0 %v5012_v2, %s9117_s26  ;;  %s9297_s26 = smov 15  }
 0x291   : > { %2257 = vrot.lane.b32.xlu0 %v5008_v6, %s6165_s6  ;;  %s6168_s6 = smov 57  }
 0x2c2   : > { %v1605_v35 = vpop.f32.mrf.mxu2  ;;  %v1618_v21 = vpop.f32.mrf.mxu3 }
 0x2c3   : > { %v1606_v19 = vadd.f32 %v1605_v35, %v1583_v34  ;;  %v1619_v62 = vadd.f32 %v1618_v21, %v1583_v34  ;;  %v908_v34 = vadd.f32 -1.0, %v6898_v61 }
 0x2c5   : > { %v7483_v4 = vmax.f32 %v1606_v19, 0.0  ;;  %v7485_v31 = vmax.f32 %v1619_v62, 0.0  ;;  %vm912_vm11 = vcmp.ge.f32.partialorder %v908_v34, 0.0  ;;  %vm914_vm12 = vcmp.le.f32.partialorder %v908_v34, 7.0 }
 0x2c6   : > { %vm952_vm4 = vmand %vm7503_vm10, %vm912_vm11 }
 0x2c7   : > { %1806 = vmatmul.f32.vlgmr.msrb.gmra.mxu0 %v7483_v4  ;;  %1826 = vmatmul.f32.vlgmr.msrb.gmra.mxu1 %v7485_v31  ;;  %vm953_vm6 = vmand %vm952_vm4, %vm914_vm12 }
 0x2c8   : > { %1943 = vmatmul.f32.vlgmr.msrb.gmra.mxu2 %v7483_v4  ;;  %1963 = vmatmul.f32.vlgmr.msrb.gmra.mxu3 %v7485_v31  ;;  %vm956_vm4 = vmand %vm7503_vm10, %vm919_vm8 }
 0x2c9   : > { %vm957_vm14 = vmand %vm956_vm4, %vm921_vm7 }
 0x2ca   : > { %v1607_v39 = vpop.f32.mrf.mxu2  ;;  %v1620_v0 = vpop.f32.mrf.mxu3  ;;  %v5014_v40 = vsel %vm957_vm14, 1.0, %v9283_v43  ;;  %vm936_vm9 = vmand %vm7499_vm5, %vm912_vm11 }
 0x2cb   : > { %v5013_v0 = vsel %vm953_vm6, 1.0, %v9283_v43  ;;  %vm937_vm15 = vmand %vm936_vm9, %vm914_vm12 }
 0x2cc   : > { %vm940_vm10 = vmand %vm7499_vm5, %vm919_vm8 }
 0x2cd   : > { %vm941_vm6 = vmand %vm940_vm10, %vm921_vm7 }
 0x2ce   : > { %v7576_v23 = vsel %vm941_vm6, 1.0, %v9283_v43  ;;  %vm913_vm5 = vmand %vm7517_vm1, %vm912_vm11 }
 0x2cf   : > { %2081 = vmatmul.f32.vlgmr.msra.gmra.mxu0 %v7483_v4  ;;  %2101 = vmatmul.f32.vlgmr.msra.gmra.mxu1 %v7485_v31  ;;  %vm915_vm8 = vmand %vm913_vm5, %vm914_vm12 }
 0x2d0   : > { %2219 = vmatmul.f32.vlgmr.msra.gmra.mxu2 %v7483_v4  ;;  %2239 = vmatmul.f32.vlgmr.msra.gmra.mxu3 %v7485_v31 }
 0x2f3   : > { %v7560_v24 = vpop.permute.xlu0 %2288 }
 0x344   : > { %v1807_v55 = vpop.f32.mrf.mxu0  ;;  %v1827_v50 = vpop.f32.mrf.mxu1 }
 0x345   : > { %v1828_v51 = vadd.f32 %v1827_v50, %v1807_v55  ;;  %v5010_v55 = vsel %vm937_vm15, 1.0, %v9283_v43  ;;  %vm9143_vm15 = vcmask 130048  }
 0x34b   : > { %v1944_v38 = vpop.f32.mrf.mxu2  ;;  %v1964_v3 = vpop.f32.mrf.mxu3 }
 0x34c   : > { %v1965_v15 = vadd.f32 %v1964_v3, %v1944_v38  ;;  %v2082_v8 = vpop.f32.mrf.mxu0  ;;  %v2102_v58 = vpop.f32.mrf.mxu1 }
 0x34d   : > { %v2103_v11 = vadd.f32 %v2102_v58, %v2082_v8  ;;  %v7580_v8 = vpop.permute.xlu0 %2273 }
 0x34e   : > { %v1967_v42 = vmax.f32 %v1828_v51, %v1965_v15 }
 0x350   : > { %v2105_v19 = vmax.f32 %v1967_v42, %v2103_v11 }
 0x353   : > { %v2220_v35 = vpop.f32.mrf.mxu2  ;;  %v2240_v21 = vpop.f32.mrf.mxu3 }
 0x354   : > { %v2241_v62 = vadd.f32 %v2240_v21, %v2220_v35 }
 0x355   : > { %v7602_v7 = vpop.permute.xlu0 %2257 }
 0x356   : > { %v2243_v39 = vmax.f32 %v2105_v19, %v2241_v62  ;;  %v5007_v19 = vsel %vm915_vm8, 1.0, %v9283_v43 }
 0x358   : > { %2245 = vrot.lane.b32.xlu1 %v2243_v39, %s9152_s0  ;;  %v2271_v42 = vmul.f32 %v7576_v23, %v2243_v39 }
 0x360   : > { %2278 = vrot.lane.b32.xlu1 %v5013_v0, %s9115_s24  ;;  %s6179_s24 = smov 5  }
 0x368   : > { %2262 = vrot.lane.b32.xlu1 %v5009_v44, %s6168_s6  ;;  %s9113_s6 = smov 8  }
 0x3ca   : > { %v2246_v47 = vpop.permute.xlu1 %2245 }
 0x3cb   : > { %v2247_v5 = vsel %vm9142_vm0, %v2246_v47, %v2243_v39 }
 0x3cc   : > { %2248 = vrot.lane.b32.xlu2 %v2247_v5, %s9152_s0 }
 0x3d2   : > { %v7566_v2 = vpop.permute.xlu1 %2278 }
 0x3d4   : > { %2283 = vrot.lane.b32.xlu2 %v5014_v40, %s9113_s6  ;;  %s9135_s6 = smov 73  }
 0x3da   : > { %v7591_v11 = vpop.permute.xlu1 %2262 }
 0x3dc   : > { %2267 = vrot.lane.b32.xlu2 %v5010_v55, %s6170_s19  ;;  %s9125_s19 = smov 46  }
 0x426   : > { %v2249_v50 = vpop.permute.xlu2 %2248 }
 0x427   : > { %v2250_v38 = vsel %vm9142_vm0, %v2249_v50, %v2243_v39 }
 0x428   : > { %v2291_v3 = vmul.f32 %v7560_v24, %v2250_v38  ;;  %v2281_v15 = vmul.f32 %v7566_v2, %v2250_v38  ;;  %v2276_v51 = vmul.f32 %v7580_v8, %v2250_v38  ;;  %v2265_v21 = vmul.f32 %v7591_v11, %v2250_v38 }
 0x429   : > { %v2260_v39 = vmul.f32 %v7602_v7, %v2250_v38 }
 0x42a   : > { %2323 = vrot.lane.b32.xlu1 %v2291_v3, %s9125_s19  ;;  %2315 = vrot.lane.b32.xlu2 %v2281_v15, %s9144_s27  ;;  %s9287_s19 = sld [smem:[#allocation37_spill]] }
 0x42e   : > { %v7578_v6 = vpop.permute.xlu2 %2283 }
 0x42f   : > { %v2286_v58 = vmul.f32 %v7578_v6, %v2250_v38 }
 0x431   : > { %2319 = vrot.lane.b32.xlu0 %v2286_v58, %s9148_s21  ;;  %v2331_v58 = vld [vmem:[%s9286_s3] sm:$0xff] }
 0x432   : > { %2311 = vrot.lane.b32.xlu2 %v2276_v51, %s9137_s5  ;;  %2307 = vrot.lane.b32.xlu1 %v2271_v42, %s9150_s4 }
 0x436   : > { %v7594_v35 = vpop.permute.xlu2 %2267 }
 0x437   : > { %v2270_v62 = vmul.f32 %v7594_v35, %v2250_v38 }
 0x439   : > { %2299 = vrot.lane.b32.xlu0 %v2265_v21, %s9168_s23 }
 0x43a   : > { %2252 = vrot.lane.b32.xlu2 %v5007_v19, %s9150_s4  ;;  %2303 = vrot.lane.b32.xlu1 %v2270_v62, %s9146_s7 }
 0x441   : > { %2295 = vrot.lane.b32.xlu0 %v2260_v39, %s9123_s2  ;;  %v2332_v39 = vld [vmem:[%s9286_s3 + $0x8] sm:$0xff]  ;;  %s9289_s2 = smov 127   ;;  %s9323_s3 = smov 55  }
 0x484   : > { %v2316_v34 = vpop.permute.xlu2 %2315 }
 0x48c   : > { %v2312_v5 = vpop.permute.xlu2 %2311 }
 0x494   : > { %v7612_v42 = vpop.permute.xlu2 %2252 }
 0x495   : > { %v2255_v21 = vmul.f32 %v7612_v42, %v2250_v38 }
 0x49c   : > { %v2324_v0 = vpop.permute.xlu1 %2323 }
 0x49d   : > { %v2330_v44 = vpack.c.bf16 %v2324_v0, %v2324_v0 }
 0x49f   : > { %2361 = vrot.lane.b32.xlu1 %v2330_v44, %s9135_s6 }
 0x4a3   : > { %v2320_v47 = vpop.permute.xlu0 %2319 }
 0x4a4   : > { %v2329_v40 = vpack.c.bf16 %v2320_v47, %v2316_v34  ;;  %v2308_v55 = vpop.permute.xlu1 %2307 }
 0x4a5   : > { %v2328_v50 = vpack.c.bf16 %v2312_v5, %v2308_v55 }
 0x4a6   : > { %2359 = vrot.lane.b32.xlu2 %v2329_v40, %s9135_s6  ;;  %v5511_v40 = vld [vmem:[%s9287_s19] sm:$0xff]  ;;  %s9291_s19 = sld [smem:[#allocation39_spill]] }
 0x4a7   : > { %2357 = vrot.lane.b32.xlu0 %v2328_v50, %s9135_s6 }
 0x4ab   : > { %v2300_v3 = vpop.permute.xlu0 %2299 }
 0x4ac   : > { %v2304_v15 = vpop.permute.xlu1 %2303 }
 0x4ad   : > { %v2327_v51 = vpack.c.bf16 %v2304_v15, %v2300_v3 }
 0x4af   : > { %2335 = vperm.xlu0 %5641, %v2331_v58   ;;  %2355 = vrot.lane.b32.xlu1 %v2327_v51, %s9135_s6 }
 0x4b3   : > { %v2296_v19 = vpop.permute.xlu0 %2295 }
 0x4b4   : > { %v2326_v62 = vpack.c.bf16 %v2296_v19, %v2255_v21 }
 0x4b6   : > { %2353 = vrot.lane.b32.xlu2 %v2326_v62, %s9135_s6 }
 0x4b7   : > { %2340 = vperm.xlu1 %5642, %v2332_v39  }
 0x500   : > { %v2360_v44 = vpop.permute.xlu2 %2359 }
 0x510   : > { %v2354_v38 = vpop.permute.xlu2 %2353 }
 0x511   : > { %v2362_v34 = vpop.permute.xlu1 %2361 }
 0x512   : > { %v2371_v0 = vsel %vm9141_vm2, %v2362_v34, 0 }
 0x513   : > { %2376 = vmatpush.bf16.msrb.mxu0 %v2371_v0 }
 0x517   : > { %2377 = vmatpush.bf16.msrb.mxu0 %v2360_v44 }
 0x519   : > { %v2358_v47 = vpop.permute.xlu0 %2357 }
 0x51b   : > { %2378 = vmatpush.bf16.msrb.mxu0 %v2358_v47 }
 0x521   : > { %v2356_v5 = vpop.permute.xlu1 %2355  ;;  %v2336_v55 = vpop.permute.xlu0 %2335 }
 0x522   : > { %2379 = vmatpush.bf16.msrb.mxu0 %v2356_v5 }
 0x526   : > { %2380 = vmatpush.bf16.msrb.mxu0 %v2354_v38 }
 0x529   : > { %5305 = vmatmul.msk.bf16.vlgmr.msrb.gmra.mxu0 %vm9139_vm13, %v5511_v40  ;;  %v2341_v58 = vpop.permute.xlu1 %2340 }
 0x5a6   : > { %v2382_v50 = vpop.f32.mrf.mxu0 }
 0x5a7   : > { %v2383_v3 = vadd.f32 %v2382_v50, %v2336_v55 }
 0x5a9   : > { %v2387_v15 = vmax.f32 %v2383_v3, 0.0 }
 0x5ab   : > { %2389 = vrot.lane.b32.xlu2 %v2387_v15, %s9152_s0  ;;  %v2409_v53 = vmul.f32 %v7576_v23, %v2387_v15 }
 0x5ae   : > { %v2384_v51 = vpop.f32.mrf.mxu0 }
 0x5af   : > { %v2385_v21 = vadd.f32 %v2384_v51, %v2341_v58 }
 0x5b1   : > { %v2388_v19 = vmax.f32 %v2385_v21, 0.0 }
 0x5b3   : > { %2392 = vrot.lane.b32.xlu0 %v2388_v19, %s9152_s0 }
 0x605   : > { %v2390_v62 = vpop.permute.xlu2 %2389 }
 0x606   : > { %v2391_v39 = vsel %vm9142_vm0, %v2390_v62, %v2387_v15 }
 0x607   : > { %2395 = vrot.lane.b32.xlu1 %v2391_v39, %s9152_s0 }
 0x625   : > { %v2393_v34 = vpop.permute.xlu0 %2392 }
 0x626   : > { %v2394_v0 = vsel %vm9142_vm0, %v2393_v34, %v2388_v19 }
 0x627   : > { %2397 = vrot.lane.b32.xlu2 %v2394_v0, %s9152_s0  ;;  %s9166_s0 = smov 6  }
 0x679   : > { %v2396_v44 = vpop.permute.xlu1 %2395 }
 0x67a   : > { %v2399_v47 = vsel %vm9142_vm0, %v2396_v44, %v2387_v15 }
 0x67b   : > { %v2415_v40 = vmul.f32 %v2399_v47, %v7578_v6  ;;  %v2413_v55 = vmul.f32 %v2399_v47, %v7566_v2  ;;  %v2411_v58 = vmul.f32 %v2399_v47, %v7580_v8  ;;  %v2401_v21 = vmul.f32 %v2399_v47, %v7612_v42 }
 0x67c   : > { %v2407_v60 = vmul.f32 %v2399_v47, %v7594_v35  ;;  %v2403_v15 = vmul.f32 %v2399_v47, %v7602_v7 }
 0x681   : > { %v2398_v5 = vpop.permute.xlu2 %2397 }
 0x682   : > { %v2400_v38 = vsel %vm9142_vm0, %v2398_v5, %v2388_v19  ;;  %v2410_v5 = vmul.f32 %v7576_v23, %v2388_v19 }
 0x683   : > { %v2416_v50 = vmul.f32 %v2400_v38, %v7578_v6  ;;  %v2414_v3 = vmul.f32 %v2400_v38, %v7566_v2  ;;  %v2412_v51 = vmul.f32 %v2400_v38, %v7580_v8  ;;  %v2402_v62 = vmul.f32 %v2400_v38, %v7612_v42 }
 0x684   : > { %v2408_v37 = vmul.f32 %v2400_v38, %v7594_v35  ;;  %v2406_v54 = vmul.f32 %v2400_v38, %v7591_v11  ;;  %v2418_v19 = vmul.f32 %v2400_v38, %v7560_v24 }
 0x685   : > { %v5643_v39 = vpack.i.bf16 %v2416_v50, %v2415_v40  ;;  %v5648_v34 = vpack.i.bf16 %v2414_v3, %v2413_v55  ;;  %v5653_v0 = vpack.i.bf16 %v2412_v51, %v2411_v58  ;;  %v2485_v44 = vpack.c.bf16 %v2402_v62, %v2401_v21 }
 0x686   : > { %v2405_v40 = vmul.f32 %v2399_v47, %v7591_v11  ;;  %v5658_v55 = vpack.i.bf16 %v2410_v5, %v2409_v53  ;;  %v5663_v50 = vpack.i.bf16 %v2408_v37, %v2407_v60  ;;  %v2404_v58 = vmul.f32 %v2400_v38, %v7602_v7 }
 0x687   : > { %5644 = vrot.lane.b32.xlu0 %v5643_v39, %s9148_s21  ;;  %5649 = vrot.lane.b32.xlu1 %v5648_v34, %s9144_s27  ;;  %v2417_v51 = vmul.f32 %v2399_v47, %v7560_v24  ;;  %s6181_s27 = smov 3   ;;  %s9164_s21 = smov 11  }
 0x688   : > { %5654 = vrot.lane.b32.xlu2 %v5653_v0, %s9137_s5  ;;  %v5668_v3 = vpack.i.bf16 %v2406_v54, %v2405_v40  ;;  %v5673_v62 = vpack.i.bf16 %v2404_v58, %v2403_v15  ;;  %s9292_s5 = smov 16  }
 0x689   : > { %v5678_v21 = vpack.i.bf16 %v2418_v19, %v2417_v51 }
 0x68f   : > { %5659 = vrot.lane.b32.xlu0 %v5658_v55, %s9150_s4  ;;  %5664 = vrot.lane.b32.xlu1 %v5663_v50, %s9146_s7  ;;  %s6182_s7 = smov 13   ;;  %s9303_s4 = smov 124  }
 0x690   : > { %5669 = vrot.lane.b32.xlu2 %v5668_v3, %s9168_s23 }
 0x697   : > { %5679 = vrot.lane.b32.xlu1 %v5678_v21, %s9288_s20  ;;  %5674 = vrot.lane.b32.xlu0 %v5673_v62, %s9289_s2 }
 0x6e2   : > { %v5655_v53 = vpop.permute.xlu2 %5654 }
 0x6e3   : > { %v5657_v54 = vunpack.i.h.bf16 %v5655_v53  ;;  %v5656_v37 = vunpack.i.l.bf16 %v5655_v53 }
 0x6e5   : > { %v2490_v60 = vpack.c.bf16 %v5657_v54, %v5656_v37 }
 0x6e7   : > { %2534 = vrot.lane.b32.xlu1 %v2490_v60, %s9135_s6 }
 0x6ea   : > { %v5670_v39 = vpop.permute.xlu2 %5669 }
 0x6eb   : > { %v5672_v34 = vunpack.i.h.bf16 %v5670_v39  ;;  %v5671_v0 = vunpack.i.l.bf16 %v5670_v39 }
 0x6ed   : > { %v2487_v38 = vpack.c.bf16 %v5672_v34, %v5671_v0 }
 0x6ef   : > { %2528 = vrot.lane.b32.xlu1 %v2487_v38, %s9135_s6 }
 0x6f7   : > { %2524 = vrot.lane.b32.xlu1 %v2485_v44, %s9135_s6 }
 0x6f9   : > { %v5645_v47 = vpop.permute.xlu0 %5644  ;;  %v5650_v5 = vpop.permute.xlu1 %5649 }
 0x6fa   : > { %v5647_v40 = vunpack.i.h.bf16 %v5645_v47  ;;  %v5646_v55 = vunpack.i.l.bf16 %v5645_v47  ;;  %v5652_v50 = vunpack.i.h.bf16 %v5650_v5  ;;  %v5651_v3 = vunpack.i.l.bf16 %v5650_v5 }
 0x6fc   : > { %v2492_v19 = vpack.c.bf16 %v5647_v40, %v5646_v55  ;;  %v2491_v58 = vpack.c.bf16 %v5652_v50, %v5651_v3  ;;  %v2495_v55 = vld [vmem:[%s9290_s8 + $0x8] sm:$0xff]  ;;  %v6177_v50 = vmov 4.0  }
 0x6fd   : > { %5968 = vrcp.f32 %v6177_v50  ;;  %v5512_v50 = vld [vmem:[%s9291_s19 + $0x4] sm:$0xf] }
 0x6fe   : > { %2538 = vrot.lane.b32.xlu2 %v2492_v19, %s9135_s6  ;;  %2536 = vrot.lane.b32.xlu0 %v2491_v58, %s9135_s6 }
 0x701   : > { %v5660_v51 = vpop.permute.xlu0 %5659  ;;  %v5665_v15 = vpop.permute.xlu1 %5664 }
 0x702   : > { %v5662_v21 = vunpack.i.h.bf16 %v5660_v51  ;;  %v5661_v62 = vunpack.i.l.bf16 %v5660_v51  ;;  %v5667_v53 = vunpack.i.h.bf16 %v5665_v15  ;;  %v5666_v54 = vunpack.i.l.bf16 %v5665_v15 }
 0x703   : > { %v5969_v3 = vpop.eup %5968 }
 0x704   : > { %v2489_v37 = vpack.c.bf16 %v5662_v21, %v5661_v62  ;;  %v2488_v44 = vpack.c.bf16 %v5667_v53, %v5666_v54  ;;  %v965_v19 = vmul.f32 4.0, %v5969_v3  ;;  %vm969_vm1 = vweird.f32 %v5969_v3 }
 0x706   : > { %2532 = vrot.lane.b32.xlu2 %v2489_v37, %s9135_s6  ;;  %2530 = vrot.lane.b32.xlu0 %v2488_v44, %s9135_s6  ;;  %v966_v58 = vsub.f32 1.0, %v965_v19 }
 0x708   : > { %v967_v51 = vmul.f32 %v5969_v3, %v966_v58 }
 0x709   : > { %v5680_v60 = vpop.permute.xlu1 %5679  ;;  %v5675_v39 = vpop.permute.xlu0 %5674 }
 0x70a   : > { %v5682_v34 = vunpack.i.h.bf16 %v5680_v60  ;;  %v5681_v0 = vunpack.i.l.bf16 %v5680_v60  ;;  %v5677_v38 = vunpack.i.h.bf16 %v5675_v39  ;;  %v5676_v47 = vunpack.i.l.bf16 %v5675_v39 }
 0x70b   : > { %v968_v15 = vadd.f32 %v5969_v3, %v967_v51 }
 0x70c   : > { %v2493_v5 = vpack.c.bf16 %v5682_v34, %v5681_v0  ;;  %v2486_v40 = vpack.c.bf16 %v5677_v38, %v5676_v47 }
 0x70d   : > { %v970_v21 = vsel %vm969_vm1, %v5969_v3, %v968_v15  ;;  %v5310_v3 = vld [vmem:[%s9291_s19 + $0x8] sm:$0xf0] }
 0x70e   : > { %2540 = vrot.lane.b32.xlu0 %v2493_v5, %s9135_s6  ;;  %2526 = vrot.lane.b32.xlu2 %v2486_v40, %s9135_s6  ;;  %v971_v62 = vmul.f32 %v970_v21, %v6456_v17  ;;  %v2494_v17 = vld [vmem:[%s9290_s8] sm:$0xff]  ;;  %v5313_v51 = vor.u32 %v5512_v50, %v5310_v3  ;;  %s6178_s6 = smov 4   ;;  %s9319_s8 = smov 64  }
 0x70f   : > { %v5308_v21 = vld [vmem:[%s9291_s19] sm:$0xf] }
 0x710   : > { %v7672_v53 = vfloor.f32 %v971_v62  ;;  %v5513_v62 = vld [vmem:[%s9291_s19 + $0x4] sm:$0xf0]  ;;  %s9328_s19 = smov 120  }
 0x712   : > { %v973_v37 = vmul.f32 4.0, %v7672_v53  ;;  %v2585_v60 = vmul.f32 2.0, %v7672_v53 }
 0x714   : > { %v7676_v44 = vsub.f32 %v6452_v14, %v973_v37  ;;  %v2586_v39 = vmul.f32 8.0, %v2585_v60  ;;  %v5309_v37 = vor.u32 %v5513_v62, %v5308_v21 }
 0x716   : > { %2503 = vperm.xlu0 %5641, %v2495_v55   ;;  %v2587_v34 = vmul.f32 2.0, %v7676_v44  ;;  %2498 = vperm.xlu2 %5683, %v2494_v17  }
 0x718   : > { %v7680_v0 = vadd.f32 %v2587_v34, %v2586_v39 }
 0x71a   : > { %vm2597_vm7 = vcmp.eq.f32.partialorder %v7046_v30, %v7680_v0  ;;  %v7688_v38 = vadd.f32 8.0, %v7680_v0  ;;  %vm2596_vm11 = vcmp.eq.f32.partialorder %v7055_v41, %v7680_v0  ;;  %vm2595_vm4 = vcmp.eq.f32.partialorder %v7079_v16, %v7680_v0 }
 0x71b   : > { %5323 = vmatpush.msk.msrb.mxu3 %vm2597_vm7, %v9278_v45  ;;  %v2644_v55 = vadd.f32 1.0, %v7680_v0  ;;  %vm2594_vm5 = vcmp.eq.f32.partialorder %v7084_v20, %v7680_v0  ;;  %vm2593_vm7 = vcmp.eq.f32.partialorder %v7123_v63, %v7680_v0  ;;  %v2744_v60 = vadd.f32 9.0, %v7680_v0 }
 0x71c   : > { %vm2702_vm12 = vcmp.eq.f32.partialorder %v7046_v30, %v7688_v38  ;;  %vm2701_vm3 = vcmp.eq.f32.partialorder %v7055_v41, %v7688_v38  ;;  %vm2700_vm14 = vcmp.eq.f32.partialorder %v7079_v16, %v7688_v38  ;;  %vm2699_vm1 = vcmp.eq.f32.partialorder %v7084_v20, %v7688_v38 }
 0x71d   : > { %5359 = vmatpush.msk.msra.mxu0 %vm2702_vm12, %v9278_v45  ;;  %5324 = vmatpush.msk.msrb.mxu3 %vm2596_vm11, %v9278_v45  ;;  %vm2652_vm9 = vcmp.eq.f32.partialorder %v7046_v30, %v2644_v55  ;;  %vm2651_vm10 = vcmp.eq.f32.partialorder %v7055_v41, %v2644_v55  ;;  %vm2650_vm6 = vcmp.eq.f32.partialorder %v7079_v16, %v2644_v55 }
 0x71e   : > { %vm2649_vm8 = vcmp.eq.f32.partialorder %v7084_v20, %v2644_v55  ;;  %vm2648_vm11 = vcmp.eq.f32.partialorder %v7123_v63, %v2644_v55  ;;  %vm2698_vm12 = vcmp.eq.f32.partialorder %v7123_v63, %v7688_v38 }
 0x71f   : > { %5360 = vmatpush.msk.msra.mxu0 %vm2701_vm3, %v9278_v45  ;;  %5325 = vmatpush.msk.msrb.mxu3 %vm2595_vm4, %v9278_v45  ;;  %vm2592_vm3 = vcmp.eq.f32.partialorder %v7127_v57, %v7680_v0  ;;  %vm2647_vm4 = vcmp.eq.f32.partialorder %v7127_v57, %v2644_v55 }
 0x721   : > { %5361 = vmatpush.msk.msra.mxu0 %vm2700_vm14, %v9278_v45  ;;  %5326 = vmatpush.msk.msrb.mxu3 %vm2594_vm5, %v9278_v45  ;;  %vm2697_vm14 = vcmp.eq.f32.partialorder %v7127_v57, %v7688_v38  ;;  %vm2590_vm5 = vcmp.eq.f32.partialorder %v7158_v1, %v7680_v0 }
 0x723   : > { %5362 = vmatpush.msk.msra.mxu0 %vm2699_vm1, %v9278_v45  ;;  %5327 = vmatpush.msk.msrb.mxu3 %vm2593_vm7, %v9278_v45  ;;  %vm2695_vm1 = vcmp.eq.f32.partialorder %v7158_v1, %v7688_v38  ;;  %vm2752_vm7 = vcmp.eq.f32.partialorder %v7046_v30, %v2744_v60 }
 0x725   : > { %5363 = vmatpush.msk.msra.mxu0 %vm2698_vm12, %v9278_v45  ;;  %5328 = vmatpush.msk.msrb.mxu3 %vm2592_vm3, %v9278_v45  ;;  %vm2750_vm12 = vcmp.eq.f32.partialorder %v7079_v16, %v2744_v60  ;;  %vm2749_vm3 = vcmp.eq.f32.partialorder %v7084_v20, %v2744_v60 }
 0x727   : > { %5364 = vmatpush.msk.msra.mxu0 %vm2697_vm14, %v9278_v45  ;;  %vm2747_vm14 = vcmp.eq.f32.partialorder %v7127_v57, %v2744_v60 }
 0x758   : > { %v2539_v54 = vpop.permute.xlu2 %2538 }
 0x759   : > { %2555 = vmatpush.bf16.msrb.mxu1 %v2539_v54  ;;  %v2535_v47 = vpop.permute.xlu1 %2534 }
 0x760   : > { %v2533_v5 = vpop.permute.xlu2 %2532 }
 0x761   : > { %v2529_v19 = vpop.permute.xlu1 %2528 }
 0x768   : > { %v2527_v15 = vpop.permute.xlu2 %2526 }
 0x769   : > { %v2525_v54 = vpop.permute.xlu1 %2524 }
 0x770   : > { %v2537_v14 = vpop.permute.xlu0 %2536  ;;  %v2499_v39 = vpop.permute.xlu2 %2498 }
 0x771   : > { %2556 = vmatpush.bf16.msrb.mxu1 %v2537_v14 }
 0x775   : > { %2557 = vmatpush.bf16.msrb.mxu1 %v2535_v47 }
 0x778   : > { %v2531_v40 = vpop.permute.xlu0 %2530 }
 0x779   : > { %2558 = vmatpush.bf16.msrb.mxu1 %v2533_v5 }
 0x77d   : > { %2559 = vmatpush.bf16.msrb.mxu1 %v2531_v40 }
 0x780   : > { %v2541_v58 = vpop.permute.xlu0 %2540 }
 0x781   : > { %2560 = vmatpush.bf16.msrb.mxu1 %v2529_v19  ;;  %2576 = vmatpush.bf16.msrb.mxu2 %v2541_v58 }
 0x784   : > { %5314 = vmatmul.msk.bf16.vlgmr.msrb.gmra.mxu2 %vm9143_vm15, %v5313_v51 }
 0x785   : > { %5341 = vmatpush.msk.msra.mxu2 %vm2652_vm9, %v9278_v45  ;;  %2561 = vmatpush.bf16.msrb.mxu1 %v2527_v15  ;;  %vm2591_vm9 = vcmp.eq.f32.partialorder %v7141_v56, %v7680_v0 }
 0x786   : > { %5329 = vmatpush.msk.msrb.mxu3 %vm2591_vm9, %v9278_v45  ;;  %vm2746_vm9 = vcmp.eq.f32.partialorder %v7141_v56, %v2744_v60 }
 0x787   : > { %5342 = vmatpush.msk.msra.mxu2 %vm2651_vm10, %v9278_v45  ;;  %vm2646_vm10 = vcmp.eq.f32.partialorder %v7141_v56, %v2644_v55 }
 0x788   : > { %5330 = vmatpush.msk.msrb.mxu3 %vm2590_vm5, %v9278_v45  ;;  %v2504_v47 = vpop.permute.xlu0 %2503 }
 0x789   : > { %5343 = vmatpush.msk.msra.mxu2 %vm2650_vm6, %v9278_v45  ;;  %2562 = vmatpush.bf16.msrb.mxu1 %v2525_v54  ;;  %vm2696_vm6 = vcmp.eq.f32.partialorder %v7141_v56, %v7688_v38 }
 0x78a   : > { %5365 = vmatpush.msk.msra.mxu0 %vm2696_vm6, %v9278_v45  ;;  %5377 = vmatpush.msk.msra.mxu3 %vm2752_vm7, %v9278_v45  ;;  %vm9140_vm6 = vcmask 523264  }
 0x78b   : > { %5344 = vmatpush.msk.msra.mxu2 %vm2649_vm8, %v9278_v45  ;;  %vm2645_vm8 = vcmp.eq.f32.partialorder %v7158_v1, %v2644_v55 }
 0x78c   : > { %2563 = vmatmul.bf16.vlgmr.msrb.gmra.mxu1 %v5309_v37  ;;  %5366 = vmatpush.msk.msra.mxu0 %vm2695_vm1, %v9278_v45  ;;  %vm987_vm1 = vcmp.ge.f32.partialorder %v7676_v44, 0.0 }
 0x78d   : > { %5345 = vmatpush.msk.msra.mxu2 %vm2648_vm11, %v9278_v45  ;;  %vm2751_vm11 = vcmp.eq.f32.partialorder %v7055_v41, %v2744_v60 }
 0x78e   : > { %5378 = vmatpush.msk.msra.mxu3 %vm2751_vm11, %v9278_v45  ;;  %vm989_vm11 = vcmp.le.f32.partialorder %v7676_v44, 3.0 }
 0x78f   : > { %5346 = vmatpush.msk.msra.mxu2 %vm2647_vm4, %v9278_v45  ;;  %vm2748_vm4 = vcmp.eq.f32.partialorder %v7123_v63, %v2744_v60 }
 0x790   : > { %5379 = vmatpush.msk.msra.mxu3 %vm2750_vm12, %v9278_v45 }
 0x791   : > { %5347 = vmatpush.msk.msra.mxu2 %vm2646_vm10, %v9278_v45  ;;  %vm2745_vm10 = vcmp.eq.f32.partialorder %v7158_v1, %v2744_v60 }
 0x792   : > { %5380 = vmatpush.msk.msra.mxu3 %vm2749_vm3, %v9278_v45 }
 0x793   : > { %5348 = vmatpush.msk.msra.mxu2 %vm2645_vm8, %v9278_v45 }
 0x794   : > { %5381 = vmatpush.msk.msra.mxu3 %vm2748_vm4, %v9278_v45  ;;  %vm1001_vm4 = vcmp.ge.f32.partialorder %v7672_v53, 0.0 }
 0x796   : > { %5382 = vmatpush.msk.msra.mxu3 %vm2747_vm14, %v9278_v45  ;;  %vm1002_vm14 = vcmp.le.f32.partialorder %v7672_v53, 3.0 }
 0x798   : > { %5383 = vmatpush.msk.msra.mxu3 %vm2746_vm9, %v9278_v45 }
 0x79a   : > { %5384 = vmatpush.msk.msra.mxu3 %vm2745_vm10, %v9278_v45  ;;  %vm7831_vm10 = vmand %vm1001_vm4, %vm1002_vm14 }
 0x807   : > { %v2578_v34 = vpop.f32.mrf.mxu2 }
 0x809   : > { %v2564_v0 = vpop.f32.mrf.mxu1 }
 0x80a   : > { %v2565_v17 = vadd.f32 %v2564_v0, %v2499_v39 }
 0x80c   : > { %v2579_v38 = vadd.f32 %v2578_v34, %v2565_v17 }
 0x80e   : > { %v7783_v14 = vmax.f32 %v2579_v38, 0.0 }
 0x80f   : > { %v2580_v55 = vpop.f32.mrf.mxu2 }
 0x810   : > { %5331 = vmatmul.msk.f32.vlgmr.msrb.gmra.mxu3 %vm9140_vm6, %v7783_v14  ;;  %5349 = vmatmul.msk.f32.vlgmr.msra.gmra.mxu2 %vm9140_vm6, %v7783_v14 }
 0x811   : > { %5367 = vmatmul.msk.f32.vlgmr.msra.gmra.mxu0 %vm9140_vm6, %v7783_v14  ;;  %v2566_v5 = vpop.f32.mrf.mxu1 }
 0x812   : > { %v2567_v40 = vadd.f32 %v2566_v5, %v2504_v47  ;;  %v1016_v47 = vadd.f32 1.0, %v7672_v53 }
 0x814   : > { %v2581_v50 = vadd.f32 %v2580_v55, %v2567_v40  ;;  %vm1017_vm5 = vcmp.ge.f32.partialorder %v1016_v47, 0.0  ;;  %vm1018_vm8 = vcmp.le.f32.partialorder %v1016_v47, 3.0  ;;  %v7828_v55 = vadd.f32 -1.0, %v7676_v44 }
 0x815   : > { %vm7813_vm7 = vmand %vm1017_vm5, %vm1018_vm8 }
 0x816   : > { %v7791_v3 = vmax.f32 %v2581_v50, 0.0  ;;  %vm1024_vm12 = vmand %vm7813_vm7, %vm987_vm1  ;;  %vm980_vm9 = vcmp.ge.f32.partialorder %v7828_v55, 0.0  ;;  %vm982_vm5 = vcmp.le.f32.partialorder %v7828_v55, 3.0 }
 0x817   : > { %vm1025_vm3 = vmand %vm1024_vm12, %vm989_vm11 }
 0x818   : > { %5332 = vmatmul.msk.f32.gmra.mxu3 %vm9140_vm6, %v7791_v3  ;;  %5350 = vmatmul.msk.f32.gmra.mxu2 %vm9140_vm6, %v7791_v3  ;;  %v5023_v40 = vsel %vm1025_vm3, 1.0, %v9283_v43  ;;  %vm1004_vm8 = vmand %vm7831_vm10, %vm980_vm9 }
 0x819   : > { %5368 = vmatmul.msk.f32.gmra.mxu0 %vm9140_vm6, %v7791_v3  ;;  %vm1005_vm12 = vmand %vm1004_vm8, %vm982_vm5 }
 0x820   : > { %5385 = vmatmul.msk.f32.vlgmr.msra.gmra.mxu3 %vm9140_vm6, %v7783_v14 }
 0x828   : > { %5386 = vmatmul.msk.f32.gmra.mxu3 %vm9140_vm6, %v7791_v3  ;;  %vm2794_vm6 = vcmask 1047680  }
 0x88e   : > { %v2736_v21 = vpop.f32.mrf.mxu0 }
 0x893   : > { %v2638_v19 = vpop.f32.mrf.mxu3  ;;  %v2686_v58 = vpop.f32.mrf.mxu2 }
 0x894   : > { %v2692_v15 = vmax.f32 %v2638_v19, %v2686_v58  ;;  %v993_v19 = vadd.f32 1.0, %v7676_v44  ;;  %v5019_v58 = vsel %vm1005_vm12, 1.0, %v9283_v43 }
 0x896   : > { %v2742_v62 = vmax.f32 %v2692_v15, %v2736_v21  ;;  %v2739_v34 = vpop.f32.mrf.mxu0  ;;  %vm994_vm3 = vcmp.ge.f32.partialorder %v993_v19, 0.0  ;;  %vm996_vm4 = vcmp.le.f32.partialorder %v993_v19, 3.0  ;;  %v975_v15 = vadd.f32 -1.0, %v7672_v53 }
 0x897   : > { %vm1028_vm14 = vmand %vm7813_vm7, %vm994_vm3 }
 0x898   : > { %vm1029_vm13 = vmand %vm1028_vm14, %vm996_vm4  ;;  %vm977_vm12 = vcmp.ge.f32.partialorder %v975_v15, 0.0  ;;  %vm978_vm2 = vcmp.le.f32.partialorder %v975_v15, 3.0 }
 0x899   : > { %vm1012_vm8 = vmand %vm7831_vm10, %vm994_vm3 }
 0x89a   : > { %vm1013_vm14 = vmand %vm1012_vm8, %vm996_vm4 }
 0x89b   : > { %v2641_v51 = vpop.f32.mrf.mxu3  ;;  %v2689_v54 = vpop.f32.mrf.mxu2  ;;  %v5021_v53 = vsel %vm1013_vm14, 1.0, %v9283_v43 }
 0x89c   : > { %v2693_v39 = vmax.f32 %v2641_v51, %v2689_v54  ;;  %v5024_v51 = vsel %vm1029_vm13, 1.0, %v9283_v43  ;;  %vm7858_vm13 = vmand %vm977_vm12, %vm978_vm2 }
 0x89d   : > { %vm988_vm0 = vmand %vm7858_vm13, %vm987_vm1 }
 0x89e   : > { %v2743_v0 = vmax.f32 %v2693_v39, %v2739_v34  ;;  %vm990_vm15 = vmand %vm988_vm0, %vm989_vm11 }
 0x89f   : > { %vm1020_vm2 = vmand %vm7813_vm7, %vm980_vm9 }
 0x8a0   : > { %vm1021_vm8 = vmand %vm1020_vm2, %vm982_vm5 }
 0x8a1   : > { %vm995_vm0 = vmand %vm7858_vm13, %vm994_vm3 }
 0x8a2   : > { %vm1008_vm7 = vmand %vm7831_vm10, %vm987_vm1 }
 0x8a3   : > { %v2786_v37 = vpop.f32.mrf.mxu3  ;;  %vm1009_vm1 = vmand %vm1008_vm7, %vm989_vm11 }
 0x8a4   : > { %v7803_v60 = vmax.f32 %v2742_v62, %v2786_v37  ;;  %v5017_v37 = vsel %vm990_vm15, 1.0, %v9283_v43  ;;  %vm997_vm15 = vmand %vm995_vm0, %vm996_vm4  ;;  %vm9320_vm0 = vcmask 1048064  }
 0x8a5   : > { %vm981_vm11 = vmand %vm7858_vm13, %vm980_vm9  ;;  %vm9306_vm9 = vcmask 130048  }
 0x8a6   : > { %2795 = vrot.lane.b32.xlu1 %v7803_v60, %s9292_s5  ;;  %vm983_vm10 = vmand %vm981_vm11, %vm982_vm5 }
 0x8a7   : > { %v5016_v54 = vsel %vm983_vm10, 1.0, %v9283_v43  ;;  %vm9307_vm5 = vmmov %vm9306_vm9 }
 0x8a8   : > { %vm9315_vm14 = vmmov %vm9307_vm5 }
 0x8a9   : > { %vm9316_vm13 = vmmov %vm9307_vm5 }
 0x8aa   : > { %vm9317_vm2 = vmmov %vm9307_vm5 }
 0x8ab   : > { %v2789_v17 = vpop.f32.mrf.mxu3  ;;  %vm9322_vm7 = vmmov %vm9320_vm0 }
 0x8ac   : > { %v7807_v38 = vmax.f32 %v2743_v0, %v2789_v17  ;;  %v5022_v0 = vsel %vm1021_vm8, 1.0, %v9283_v43  ;;  %v5018_v17 = vsel %vm997_vm15, 1.0, %v9283_v43  ;;  %vm9318_vm8 = vmmov %vm9317_vm2 }
 0x8ad   : > { %vm9321_vm15 = vmmov %vm9320_vm0 }
 0x8ae   : > { %2798 = vrot.lane.b32.xlu2 %v7807_v38, %s9292_s5  ;;  %vm9325_vm11 = vmmov %vm9320_vm0 }
 0x8af   : > { %vm9326_vm10 = vmmov %vm9320_vm0 }
 0x8b6   : > { %2846 = vrot.lane.b32.xlu2 %v5023_v40, %s6178_s6  ;;  %s9300_s6 = smov 1  }
 0x8be   : > { %2826 = vrot.lane.b32.xlu2 %v5019_v58, %s9297_s26 }
 0x8c6   : > { %2852 = vrot.lane.b32.xlu2 %v5024_v51, %s6179_s24  ;;  %s6180_s24 = smov 12  }
 0x908   : > { %v2799_v21 = vpop.permute.xlu2 %2798 }
 0x909   : > { %v2800_v62 = vsel %vm2794_vm6, %v2799_v21, %v7807_v38 }
 0x90a   : > { %2803 = vrot.lane.b32.xlu1 %v2800_v62, %s9292_s5 }
 0x910   : > { %v7896_v51 = vpop.permute.xlu2 %2846 }
 0x912   : > { %2834 = vrot.lane.b32.xlu1 %v5021_v53, %s9300_s6 }
 0x918   : > { %v2796_v39 = vpop.permute.xlu1 %2795 }
 0x919   : > { %v2797_v34 = vsel %vm2794_vm6, %v2796_v39, %v7803_v60  ;;  %v7915_v39 = vsel %vm1009_vm1, 1.0, %v9283_v43  ;;  %vm9324_vm1 = vmmov %vm9320_vm0 }
 0x91a   : > { %2801 = vrot.lane.b32.xlu0 %v2797_v34, %s9292_s5  ;;  %2814 = vrot.lane.b32.xlu1 %v5017_v37, %s6180_s24  ;;  %s9302_s24 = smov 8  }
 0x922   : > { %2840 = vrot.lane.b32.xlu0 %v5022_v0, %s6181_s27  ;;  %s9301_s27 = smov 7   ;;  %v2832_v0 = vmul.f32 %v7915_v39, %v7807_v38 }
 0x92a   : > { %2820 = vrot.lane.b32.xlu0 %v5018_v17, %s6182_s7  ;;  %s9154_s7 = smov 10  }
 0x97c   : > { %v2804_v47 = vpop.permute.xlu1 %2803 }
 0x97d   : > { %v7888_v5 = vsel %vm2794_vm6, %v2804_v47, %v7807_v38  ;;  %v2831_v47 = vmul.f32 %v7915_v39, %v7803_v60 }
 0x97e   : > { %v2850_v53 = vmul.f32 %v7896_v51, %v7888_v5 }
 0x984   : > { %v7890_v40 = vpop.permute.xlu1 %2834 }
 0x985   : > { %v2838_v21 = vmul.f32 %v7890_v40, %v7888_v5 }
 0x98c   : > { %v2802_v58 = vpop.permute.xlu0 %2801 }
 0x98d   : > { %v7900_v19 = vsel %vm2794_vm6, %v2802_v58, %v7803_v60 }
 0x98e   : > { %v2837_v15 = vmul.f32 %v7890_v40, %v7900_v19  ;;  %v2849_v62 = vmul.f32 %v7896_v51, %v7900_v19 }
 0x990   : > { %v5694_v50 = vpack.i.bf16 %v2838_v21, %v2837_v15  ;;  %v5684_v37 = vpack.i.bf16 %v2850_v53, %v2849_v62  ;;  %v7927_v15 = vpop.permute.xlu2 %2826  ;;  %v5699_v21 = vpack.i.bf16 %v2832_v0, %v2831_v47  ;;  %v7929_v62 = vpop.permute.xlu1 %2814 }
 0x991   : > { %v2829_v38 = vmul.f32 %v7927_v15, %v7900_v19  ;;  %v2818_v60 = vmul.f32 %v7929_v62, %v7888_v5 }
 0x992   : > { %5695 = vrot.lane.b32.xlu2 %v5694_v50, %s9154_s7  ;;  %5685 = vrot.lane.b32.xlu0 %v5684_v37, %s9301_s27  ;;  %v2817_v50 = vmul.f32 %v7929_v62, %v7900_v19  ;;  %s9172_s7 = smov 117  }
 0x994   : > { %v7917_v34 = vpop.permute.xlu0 %2840 }
 0x995   : > { %v2843_v17 = vmul.f32 %v7917_v34, %v7900_v19  ;;  %v2844_v44 = vmul.f32 %v7917_v34, %v7888_v5 }
 0x997   : > { %v5689_v58 = vpack.i.bf16 %v2844_v44, %v2843_v17  ;;  %v2830_v17 = vmul.f32 %v7927_v15, %v7888_v5 }
 0x999   : > { %5690 = vrot.lane.b32.xlu1 %v5689_v58, %s9302_s24  ;;  %v5704_v47 = vpack.i.bf16 %v2830_v17, %v2829_v38  ;;  %v5714_v58 = vpack.i.bf16 %v2818_v60, %v2817_v50 }
 0x99a   : > { %5700 = vrot.lane.b32.xlu0 %v5699_v21, %s9164_s21  ;;  %v7953_v21 = vpop.permute.xlu2 %2852 }
 0x99b   : > { %v2855_v38 = vmul.f32 %v7953_v21, %v7900_v19  ;;  %v2856_v50 = vmul.f32 %v7953_v21, %v7888_v5 }
 0x99c   : > { %v7935_v53 = vpop.permute.xlu0 %2820 }
 0x99d   : > { %v2823_v37 = vmul.f32 %v7935_v53, %v7900_v19  ;;  %v2824_v0 = vmul.f32 %v7935_v53, %v7888_v5  ;;  %v5719_v60 = vpack.i.bf16 %v2856_v50, %v2855_v38 }
 0x99f   : > { %v5709_v44 = vpack.i.bf16 %v2824_v0, %v2823_v37 }
 0x9a1   : > { %5710 = vrot.lane.b32.xlu2 %v5709_v44, %s9168_s23  ;;  %5705 = vrot.lane.b32.xlu1 %v5704_v47, %s9303_s4  ;;  %s9327_s23 = smov 47  }
 0x9a2   : > { %5715 = vrot.lane.b32.xlu0 %v5714_v58, %s9289_s2 }
 0x9a9   : > { %2808 = vrot.lane.b32.xlu1 %v5016_v54, %s9164_s21  ;;  %5720 = vrot.lane.b32.xlu2 %v5719_v60, %s9166_s0  ;;  %s4873_s0 = scalar_lea.sflag [#allocation5], %s6407_s29 }
 0x9ec   : > { %v5696_v37 = vpop.permute.xlu2 %5695 }
 0x9ed   : > { %v5698_v0 = vunpack.i.h.bf16 %v5696_v37  ;;  %v5697_v17 = vunpack.i.l.bf16 %v5696_v37 }
 0x9ef   : > { %v2930_v44 = vpack.c.bf16 %v5698_v0, %v5697_v17 }
 0x9f1   : > { %2995 = vrot.lane.b32.xlu2 %v2930_v44, %s9172_s7 }
 0x9fb   : > { %v5711_v55 = vpop.permute.xlu2 %5710 }
 0x9fc   : > { %v5713_v47 = vunpack.i.h.bf16 %v5711_v55  ;;  %v5712_v58 = vunpack.i.l.bf16 %v5711_v55 }
 0x9fe   : > { %v2927_v59 = vpack.c.bf16 %v5713_v47, %v5712_v58 }
 0xa00   : > { %2989 = vrot.lane.b32.xlu2 %v2927_v59, %s9172_s7  ;;  %v2934_v59 = vld [vmem:[%s9304_s10] sm:$0xff] }
 0xa03   : > { %v5721_v43 = vpop.permute.xlu2 %5720 }
 0xa04   : > { %v5723_v38 = vunpack.i.h.bf16 %v5721_v43  ;;  %v5722_v50 = vunpack.i.l.bf16 %v5721_v43  ;;  %v5686_v54 = vpop.permute.xlu0 %5685 }
 0xa05   : > { %v5688_v52 = vunpack.i.h.bf16 %v5686_v54  ;;  %v5687_v48 = vunpack.i.l.bf16 %v5686_v54 }
 0xa06   : > { %v2933_v60 = vpack.c.bf16 %v5723_v38, %v5722_v50 }
 0xa07   : > { %v2932_v25 = vpack.c.bf16 %v5688_v52, %v5687_v48 }
 0xa08   : > { %3001 = vrot.lane.b32.xlu2 %v2933_v60, %s9172_s7 }
 0xa09   : > { %2999 = vrot.lane.b32.xlu0 %v2932_v25, %s9172_s7 }
 0xa0b   : > { %v5691_v37 = vpop.permute.xlu1 %5690 }
 0xa0c   : > { %v5693_v0 = vunpack.i.h.bf16 %v5691_v37  ;;  %v5692_v17 = vunpack.i.l.bf16 %v5691_v37  ;;  %v5701_v44 = vpop.permute.xlu0 %5700 }
 0xa0d   : > { %v5703_v55 = vunpack.i.h.bf16 %v5701_v44  ;;  %v5702_v47 = vunpack.i.l.bf16 %v5701_v44 }
 0xa0e   : > { %v2931_v58 = vpack.c.bf16 %v5693_v0, %v5692_v17 }
 0xa0f   : > { %v2929_v43 = vpack.c.bf16 %v5703_v55, %v5702_v47  ;;  %v2936_v47 = vld [vmem:[%s9304_s10 + $0x10] sm:$0xff] }
 0xa10   : > { %2997 = vrot.lane.b32.xlu1 %v2931_v58, %s9172_s7  ;;  %2940 = vperm.xlu2 %5683, %v2934_v59   ;;  %v2937_v59 = vld [vmem:[%s9304_s10 + $0x18] sm:$0xff]  ;;  %v2935_v58 = vld [vmem:[%s9304_s10 + $0x8] sm:$0xff] }
 0xa11   : > { %2993 = vrot.lane.b32.xlu0 %v2929_v43, %s9172_s7 }
 0xa13   : > { %v5706_v48 = vpop.permute.xlu1 %5705 }
 0xa14   : > { %v5708_v52 = vunpack.i.h.bf16 %v5706_v48  ;;  %v5707_v25 = vunpack.i.l.bf16 %v5706_v48  ;;  %v5716_v38 = vpop.permute.xlu0 %5715 }
 0xa15   : > { %v5718_v50 = vunpack.i.h.bf16 %v5716_v38  ;;  %v5717_v54 = vunpack.i.l.bf16 %v5716_v38 }
 0xa16   : > { %v2928_v60 = vpack.c.bf16 %v5708_v52, %v5707_v25  ;;  %v5514_v52 = vld [vmem:[%s9305_s9 + $0x4] sm:$0xf]  ;;  %v5391_v25 = vld [vmem:[%s9305_s9 + $0x8] sm:$0xf0] }
 0xa17   : > { %v2926_v37 = vpack.c.bf16 %v5718_v50, %v5717_v54  ;;  %v5394_v38 = vor.u32 %v5514_v52, %v5391_v25 }
 0xa18   : > { %2991 = vrot.lane.b32.xlu1 %v2928_v60, %s9172_s7  ;;  %v5516_v60 = vld [vmem:[%s9305_s9 + $0x14] sm:$0xf] }
 0xa19   : > { %2987 = vrot.lane.b32.xlu0 %v2926_v37, %s9172_s7  ;;  %v5399_v37 = vld [vmem:[%s9305_s9 + $0x18] sm:$0xf0] }
 0xa1b   : > { %v7976_v44 = vpop.permute.xlu1 %2808 }
 0xa1c   : > { %v2811_v0 = vmul.f32 %v7976_v44, %v7900_v19  ;;  %v2812_v17 = vmul.f32 %v7976_v44, %v7888_v5 }
 0xa1e   : > { %v2925_v55 = vpack.c.bf16 %v2812_v17, %v2811_v0  ;;  %v5402_v0 = vor.u32 %v5516_v60, %v5399_v37 }
 0xa20   : > { %2985 = vrot.lane.b32.xlu1 %v2925_v55, %s9172_s7  ;;  %s9312_s7 = smov 117  }
 0xa21   : > { %2950 = vperm.xlu0 %5641, %v2936_v47   ;;  %v5389_v47 = vld [vmem:[%s9305_s9] sm:$0xf] }
 0xa28   : > { %2955 = vperm.xlu1 %5642, %v2937_v59   ;;  %v5515_v59 = vld [vmem:[%s9305_s9 + $0x4] sm:$0xf0] }
 0xa29   : > { %2945 = vperm.xlu0 %5641, %v2935_v58  }
 0xa4b   : > { %v2996_v19 = vpop.permute.xlu2 %2995 }
 0xa5a   : > { %v2990_v5 = vpop.permute.xlu2 %2989 }
 0xa62   : > { %v3002_v43 = vpop.permute.xlu2 %3001 }
 0xa63   : > { %3044 = vmatpush.bf16.msra.mxu1 %v3002_v43  ;;  %v5397_v43 = vld [vmem:[%s9305_s9 + $0x10] sm:$0xf] }
 0xa66   : > { %5403 = vmatmul.msk.bf16.vlgmr.msra.gmra.mxu1 %vm9306_vm9, %v5394_v38  ;;  %vm9329_vm9 = vmmov %vm9320_vm0 }
 0xa6a   : > { %v2941_v25 = vpop.permute.xlu2 %2940 }
 0xa76   : > { %5404 = vmatmul.msk.bf16.gmra.mxu1 %vm9307_vm5, %v5402_v0  ;;  %vm9331_vm5 = vmmov %vm9320_vm0 }
 0xa7b   : > { %v3000_v48 = vpop.permute.xlu0 %2999 }
 0xa7c   : > { %3018 = vmatpush.bf16.msrb.mxu2 %v3000_v48 }
 0xa82   : > { %v2998_v50 = vpop.permute.xlu1 %2997 }
 0xa83   : > { %3019 = vmatpush.bf16.msrb.mxu2 %v2998_v50  ;;  %v2994_v54 = vpop.permute.xlu0 %2993 }
 0xa87   : > { %3020 = vmatpush.bf16.msrb.mxu2 %v2996_v19  ;;  %v5390_v19 = vor.u32 %v5515_v59, %v5389_v47 }
 0xa8a   : > { %v2992_v17 = vpop.permute.xlu1 %2991 }
 0xa8b   : > { %3021 = vmatpush.bf16.msrb.mxu2 %v2994_v54  ;;  %v2988_v55 = vpop.permute.xlu0 %2987 }
 0xa8f   : > { %3022 = vmatpush.bf16.msrb.mxu2 %v2992_v17 }
 0xa92   : > { %v2986_v58 = vpop.permute.xlu1 %2985 }
 0xa93   : > { %3023 = vmatpush.bf16.msrb.mxu2 %v2990_v5  ;;  %v5517_v5 = vld [vmem:[%s9305_s9 + $0x14] sm:$0xf0]  ;;  %v2951_v17 = vpop.permute.xlu0 %2950 }
 0xa94   : > { %v5398_v48 = vor.u32 %v5517_v5, %v5397_v43 }
 0xa97   : > { %3024 = vmatpush.bf16.msrb.mxu2 %v2988_v55 }
 0xa9b   : > { %3025 = vmatpush.bf16.msrb.mxu2 %v2986_v58 }
 0xa9e   : > { %3026 = vmatmul.bf16.vlgmr.msrb.gmra.mxu2 %v5390_v19  ;;  %v2946_v19 = vpop.permute.xlu0 %2945 }
 0xaae   : > { %3031 = vmatmul.bf16.gmra.mxu2 %v5398_v48  ;;  %v2956_v48 = vpop.permute.xlu1 %2955 }
 0xae3   : > { %v3046_v52 = vpop.f32.mrf.mxu1 }
 0xaeb   : > { %v3048_v37 = vpop.f32.mrf.mxu1 }
 0xaf3   : > { %v3051_v55 = vpop.f32.mrf.mxu1 }
 0xb21   : > { %v3027_v38 = vpop.f32.mrf.mxu2 }
 0xb22   : > { %v3028_v50 = vadd.f32 %v3027_v38, %v2941_v25 }
 0xb24   : > { %v3047_v54 = vadd.f32 %v3046_v52, %v3028_v50  ;;  %v3053_v50 = vpop.f32.mrf.mxu1 }
 0xb26   : > { %v8018_v60 = vmax.f32 %v3047_v54, 0.0 }
 0xb28   : > { %3060 = vrot.lane.b32.xlu0 %v8018_v60, %s9292_s5 }
 0xb29   : > { %v3029_v0 = vpop.f32.mrf.mxu2 }
 0xb2a   : > { %v3030_v43 = vadd.f32 %v3029_v0, %v2946_v19 }
 0xb2c   : > { %v3049_v25 = vadd.f32 %v3048_v37, %v3030_v43 }
 0xb2e   : > { %v8026_v36 = vmax.f32 %v3049_v25, 0.0 }
 0xb31   : > { %v3032_v47 = vpop.f32.mrf.mxu2 }
 0xb32   : > { %v3033_v59 = vadd.f32 %v3032_v47, %v2951_v17 }
 0xb34   : > { %v3052_v58 = vadd.f32 %v3051_v55, %v3033_v59 }
 0xb36   : > { %v8022_v5 = vmax.f32 %v3052_v58, 0.0 }
 0xb38   : > { %3066 = vrot.lane.b32.xlu1 %v8022_v5, %s9292_s5 }
 0xb39   : > { %v3034_v52 = vpop.f32.mrf.mxu2 }
 0xb3a   : > { %v3035_v38 = vadd.f32 %v3034_v52, %v2956_v48 }
 0xb3c   : > { %v3054_v54 = vadd.f32 %v3053_v50, %v3035_v38 }
 0xb3e   : > { %v8028_v29 = vmax.f32 %v3054_v54, 0.0 }
 0xb40   : > { %3069 = vrot.lane.b32.xlu2 %v8028_v29, %s9292_s5  ;;  %3063 = vrot.lane.b32.xlu1 %v8026_v36, %s9292_s5 }
 0xb9a   : > { %v3070_v0 = vpop.permute.xlu2 %3069  ;;  %v3061_v17 = vpop.permute.xlu0 %3060 }
 0xb9b   : > { %v3071_v55 = vsel %vm2794_vm6, %v3070_v0, %v8028_v29  ;;  %v3062_v37 = vsel %vm2794_vm6, %v3061_v17, %v8018_v60 }
 0xb9c   : > { %3078 = vrot.lane.b32.xlu0 %v3071_v55, %s9292_s5  ;;  %3072 = vrot.lane.b32.xlu1 %v3062_v37, %s9292_s5 }
 0xbaa   : > { %v3067_v47 = vpop.permute.xlu1 %3066 }
 0xbab   : > { %v3068_v59 = vsel %vm2794_vm6, %v3067_v47, %v8022_v5 }
 0xbac   : > { %3076 = vrot.lane.b32.xlu2 %v3068_v59, %s9292_s5 }
 0xbb2   : > { %v3064_v58 = vpop.permute.xlu1 %3063 }
 0xbb3   : > { %v3065_v19 = vsel %vm2794_vm6, %v3064_v58, %v8026_v36 }
 0xbb4   : > { %3074 = vrot.lane.b32.xlu2 %v3065_v19, %s9292_s5 }
 0xc06   : > { %v3077_v43 = vpop.permute.xlu2 %3076 }
 0xc07   : > { %v8048_v48 = vsel %vm2794_vm6, %v3077_v43, %v8022_v5 }
 0xc08   : > { %v3098_v59 = vmul.f32 %v8048_v48, %v7927_v15  ;;  %v3114_v12 = vmul.f32 %v8048_v48, %v7896_v51 }
 0xc0e   : > { %v3075_v52 = vpop.permute.xlu2 %3074  ;;  %v3073_v25 = vpop.permute.xlu1 %3072 }
 0xc0f   : > { %v8052_v38 = vsel %vm2794_vm6, %v3075_v52, %v8026_v36  ;;  %v8056_v50 = vsel %vm2794_vm6, %v3073_v25, %v8018_v60  ;;  %v3079_v54 = vpop.permute.xlu0 %3078 }
 0xc10   : > { %v3083_v0 = vsel %vm2794_vm6, %v3079_v54, %v8028_v29  ;;  %v3112_v17 = vmul.f32 %v8056_v50, %v7896_v51  ;;  %v3113_v55 = vmul.f32 %v8052_v38, %v7896_v51  ;;  %v3096_v37 = vmul.f32 %v8056_v50, %v7927_v15 }
 0xc11   : > { %v3097_v47 = vmul.f32 %v8052_v38, %v7927_v15  ;;  %v3099_v58 = vmul.f32 %v3083_v0, %v7927_v15  ;;  %v3095_v25 = vmul.f32 %v3083_v0, %v7935_v53  ;;  %v3115_v54 = vmul.f32 %v3083_v0, %v7896_v51 }
 0xc12   : > { %v5724_v19 = vpack.i.bf16 %v3113_v55, %v3112_v17  ;;  %v3111_v26 = vmul.f32 %v3083_v0, %v7917_v34  ;;  %v3094_v15 = vmul.f32 %v8048_v48, %v7935_v53  ;;  %v8083_v17 = vmul.f32 %v8056_v50, %v7976_v44 }
 0xc13   : > { %v5729_v43 = vpack.i.bf16 %v3097_v47, %v3096_v37  ;;  %v5744_v52 = vpack.i.bf16 %v3099_v58, %v3098_v59  ;;  %v3110_v55 = vmul.f32 %v8048_v48, %v7917_v34  ;;  %v8089_v37 = vmul.f32 %v8052_v38, %v7976_v44 }
 0xc14   : > { %5725 = vrot.lane.b32.xlu2 %v5724_v19, %s9301_s27  ;;  %v8093_v47 = vmul.f32 %v8048_v48, %v7976_v44  ;;  %v8096_v51 = vmul.f32 %v3083_v0, %v7976_v44  ;;  %v5764_v59 = vpack.i.bf16 %v3095_v25, %v3094_v15  ;;  %v5734_v58 = vpack.i.bf16 %v3115_v54, %v3114_v12 }
 0xc15   : > { %5730 = vrot.lane.b32.xlu0 %v5729_v43, %s9303_s4  ;;  %5745 = vrot.lane.b32.xlu1 %v5744_v52, %s9303_s4  ;;  %v5749_v19 = vpack.i.bf16 %v3111_v26, %v3110_v55  ;;  %v3256_v43 = vpack.c.bf16 %v8089_v37, %v8083_v17  ;;  %s9308_s4 = smov 126   ;;  %v3107_v10 = vmul.f32 %v3083_v0, %v7890_v40  ;;  %v3277_v37 = vld [vmem:[%s9313_s12 + $0x18] sm:$0xff]  ;;  %vm3400_vm6 = vcmask 261120  }
 0xc16   : > { %v3257_v52 = vpack.c.bf16 %v8096_v51, %v8093_v47  ;;  %v3108_v44 = vmul.f32 %v8056_v50, %v7917_v34  ;;  %v3109_v26 = vmul.f32 %v8052_v38, %v7917_v34  ;;  %v3092_v12 = vmul.f32 %v8056_v50, %v7935_v53 }
 0xc17   : > { %v3093_v25 = vmul.f32 %v8052_v38, %v7935_v53  ;;  %v3106_v54 = vmul.f32 %v8048_v48, %v7890_v40  ;;  %v3088_v34 = vmul.f32 %v8056_v50, %v7929_v62  ;;  %v3104_v53 = vmul.f32 %v8056_v50, %v7890_v40 }
 0xc18   : > { %v5739_v55 = vpack.i.bf16 %v3109_v26, %v3108_v44  ;;  %v3090_v44 = vmul.f32 %v8048_v48, %v7929_v62 }
 0xc19   : > { %v5769_v15 = vpack.i.bf16 %v3107_v10, %v3106_v54  ;;  %v3105_v10 = vmul.f32 %v8052_v38, %v7890_v40  ;;  %v3119_v54 = vmul.f32 %v3083_v0, %v7953_v21  ;;  %v3103_v40 = vmul.f32 %v7915_v39, %v8028_v29 }
 0xc1a   : > { %v3116_v29 = vmul.f32 %v8056_v50, %v7953_v21 }
 0xc1c   : > { %5765 = vrot.lane.b32.xlu2 %v5764_v59, %s9308_s4  ;;  %v5754_v59 = vpack.i.bf16 %v3093_v25, %v3092_v12  ;;  %v5759_v12 = vpack.i.bf16 %v3105_v10, %v3104_v53 }
 0xc1d   : > { %5735 = vrot.lane.b32.xlu0 %v5734_v58, %s9301_s27  ;;  %5750 = vrot.lane.b32.xlu1 %v5749_v19, %s9302_s24  ;;  %s9309_s27 = smov 10   ;;  %v3089_v58 = vmul.f32 %v8052_v38, %v7929_v62  ;;  %v3091_v19 = vmul.f32 %v3083_v0, %v7929_v62  ;;  %v3118_v62 = vmul.f32 %v8048_v48, %v7953_v21 }
 0xc1f   : > { %v5774_v26 = vpack.i.bf16 %v3089_v58, %v3088_v34  ;;  %v5779_v25 = vpack.i.bf16 %v3091_v19, %v3090_v44  ;;  %v5799_v34 = vpack.i.bf16 %v3119_v54, %v3118_v62 }
 0xc24   : > { %5770 = vrot.lane.b32.xlu2 %v5769_v15, %s9309_s27  ;;  %v3101_v15 = vmul.f32 %v7915_v39, %v8026_v36  ;;  %v3117_v36 = vmul.f32 %v8052_v38, %v7953_v21 }
 0xc25   : > { %5740 = vrot.lane.b32.xlu0 %v5739_v55, %s9302_s24  ;;  %5755 = vrot.lane.b32.xlu1 %v5754_v59, %s9308_s4  ;;  %v3100_v55 = vmul.f32 %v7915_v39, %v8018_v60  ;;  %v3102_v59 = vmul.f32 %v7915_v39, %v8022_v5  ;;  %s9310_s24 = smov 6  }
 0xc26   : > { %v5794_v48 = vpack.i.bf16 %v3117_v36, %v3116_v29 }
 0xc27   : > { %v5789_v58 = vpack.i.bf16 %v3101_v15, %v3100_v55  ;;  %v5784_v53 = vpack.i.bf16 %v3103_v40, %v3102_v59 }
 0xc2c   : > { %5775 = vrot.lane.b32.xlu2 %v5774_v26, %s9289_s2 }
 0xc2d   : > { %5760 = vrot.lane.b32.xlu1 %v5759_v12, %s9309_s27  ;;  %5780 = vrot.lane.b32.xlu0 %v5779_v25, %s9289_s2  ;;  %s9330_s27 = smov 48  }
 0xc34   : > { %5800 = vrot.lane.b32.xlu2 %v5799_v34, %s9310_s24 }
 0xc35   : > { %5790 = vrot.lane.b32.xlu1 %v5789_v58, %s9311_s28  ;;  %5785 = vrot.lane.b32.xlu0 %v5784_v53, %s9311_s28  ;;  %s9337_s28 = smov 73  }
 0xc3d   : > { %5795 = vrot.lane.b32.xlu0 %v5794_v48, %s9310_s24  ;;  %s9334_s24 = smov 54  }
 0xc6e   : > { %v5726_v60 = vpop.permute.xlu2 %5725 }
 0xc6f   : > { %v5728_v39 = vunpack.i.h.bf16 %v5726_v60  ;;  %v5727_v5 = vunpack.i.l.bf16 %v5726_v60 }
 0xc71   : > { %v3270_v0 = vpack.c.bf16 %v5728_v39, %v5727_v5 }
 0xc73   : > { %3374 = vrot.lane.b32.xlu0 %v3270_v0, %s9312_s7 }
 0xc76   : > { %v5766_v10 = vpop.permute.xlu2 %5765 }
 0xc77   : > { %v5768_v19 = vunpack.i.h.bf16 %v5766_v10  ;;  %v5767_v44 = vunpack.i.l.bf16 %v5766_v10 }
 0xc79   : > { %v3261_v26 = vpack.c.bf16 %v5768_v19, %v5767_v44 }
 0xc7b   : > { %3356 = vrot.lane.b32.xlu0 %v3261_v26, %s9312_s7 }
 0xc7e   : > { %v5771_v12 = vpop.permute.xlu2 %5770 }
 0xc7f   : > { %v5773_v50 = vunpack.i.h.bf16 %v5771_v12  ;;  %v5772_v25 = vunpack.i.l.bf16 %v5771_v12 }
 0xc81   : > { %v3267_v54 = vpack.c.bf16 %v5773_v50, %v5772_v25 }
 0xc83   : > { %3368 = vrot.lane.b32.xlu0 %v3267_v54, %s9312_s7 }
 0xc86   : > { %v5776_v21 = vpop.permute.xlu2 %5775 }
 0xc87   : > { %v5746_v38 = vpop.permute.xlu1 %5745  ;;  %v5778_v15 = vunpack.i.h.bf16 %v5776_v21  ;;  %v5777_v40 = vunpack.i.l.bf16 %v5776_v21  ;;  %v5731_v62 = vpop.permute.xlu0 %5730 }
 0xc88   : > { %v5733_v55 = vunpack.i.h.bf16 %v5731_v62  ;;  %v5732_v59 = vunpack.i.l.bf16 %v5731_v62  ;;  %v5748_v50 = vunpack.i.h.bf16 %v5746_v38  ;;  %v5747_v25 = vunpack.i.l.bf16 %v5746_v38 }
 0xc89   : > { %v3258_v34 = vpack.c.bf16 %v5778_v15, %v5777_v40 }
 0xc8a   : > { %v3262_v58 = vpack.c.bf16 %v5733_v55, %v5732_v59  ;;  %v3263_v62 = vpack.c.bf16 %v5748_v50, %v5747_v25  ;;  %v3276_v25 = vld [vmem:[%s9313_s12 + $0x10] sm:$0xff] }
 0xc8b   : > { %3350 = vrot.lane.b32.xlu0 %v3258_v34, %s9312_s7 }
 0xc8c   : > { %3358 = vrot.lane.b32.xlu1 %v3262_v58, %s9312_s7 }
 0xc8f   : > { %v5751_v53 = vpop.permute.xlu1 %5750  ;;  %v5736_v29 = vpop.permute.xlu0 %5735 }
 0xc90   : > { %v5738_v36 = vunpack.i.h.bf16 %v5736_v29  ;;  %v5737_v48 = vunpack.i.l.bf16 %v5736_v29  ;;  %v5753_v59 = vunpack.i.h.bf16 %v5751_v53  ;;  %v5752_v34 = vunpack.i.l.bf16 %v5751_v53 }
 0xc92   : > { %v3271_v60 = vpack.c.bf16 %v5738_v36, %v5737_v48 }
 0xc94   : > { %3376 = vrot.lane.b32.xlu1 %v3271_v60, %s9312_s7 }
 0xc97   : > { %v5756_v39 = vpop.permute.xlu1 %5755  ;;  %v5741_v5 = vpop.permute.xlu0 %5740 }
 0xc98   : > { %v5758_v0 = vunpack.i.h.bf16 %v5756_v39  ;;  %v5757_v10 = vunpack.i.l.bf16 %v5756_v39  ;;  %v5743_v19 = vunpack.i.h.bf16 %v5741_v5  ;;  %v5742_v44 = vunpack.i.l.bf16 %v5741_v5 }
 0xc99   : > { %v3269_v5 = vpack.c.bf16 %v5753_v59, %v5752_v34 }
 0xc9a   : > { %v3260_v26 = vpack.c.bf16 %v5758_v0, %v5757_v10  ;;  %v3268_v12 = vpack.c.bf16 %v5743_v19, %v5742_v44 }
 0xc9c   : > { %3354 = vrot.lane.b32.xlu2 %v3260_v26, %s9312_s7  ;;  %3370 = vrot.lane.b32.xlu1 %v3268_v12, %s9312_s7 }
 0xc9f   : > { %v5761_v54 = vpop.permute.xlu1 %5760  ;;  %v5781_v21 = vpop.permute.xlu0 %5780 }
 0xca0   : > { %v5783_v15 = vunpack.i.h.bf16 %v5781_v21  ;;  %v5782_v40 = vunpack.i.l.bf16 %v5781_v21  ;;  %v5763_v10 = vunpack.i.h.bf16 %v5761_v54  ;;  %v5762_v19 = vunpack.i.l.bf16 %v5761_v54  ;;  %v3274_v54 = vld [vmem:[%s9313_s12] sm:$0xff]  ;;  %v5801_v21 = vpop.permute.xlu2 %5800 }
 0xca2   : > { %v3259_v55 = vpack.c.bf16 %v5783_v15, %v5782_v40  ;;  %v3266_v12 = vpack.c.bf16 %v5763_v10, %v5762_v19  ;;  %v5803_v15 = vunpack.i.h.bf16 %v5801_v21  ;;  %v5802_v40 = vunpack.i.l.bf16 %v5801_v21  ;;  %v5518_v19 = vld [vmem:[%s9314_s11 + $0x4] sm:$0xf]  ;;  %v5519_v21 = vld [vmem:[%s9314_s11 + $0x8] sm:$0xf0] }
 0xca4   : > { %3360 = vrot.lane.b32.xlu2 %v3263_v62, %s9312_s7  ;;  %3352 = vrot.lane.b32.xlu1 %v3259_v55, %s9312_s7  ;;  %v3273_v17 = vpack.c.bf16 %v5803_v15, %v5802_v40 }
 0xca7   : > { %v5791_v58 = vpop.permute.xlu1 %5790  ;;  %v5786_v29 = vpop.permute.xlu0 %5785 }
 0xca8   : > { %v5793_v36 = vunpack.i.h.bf16 %v5791_v58  ;;  %v5792_v48 = vunpack.i.l.bf16 %v5791_v58  ;;  %v5788_v60 = vunpack.i.h.bf16 %v5786_v29  ;;  %v5787_v39 = vunpack.i.l.bf16 %v5786_v29 }
 0xcaa   : > { %v3264_v38 = vpack.c.bf16 %v5793_v36, %v5792_v48  ;;  %v3265_v0 = vpack.c.bf16 %v5788_v60, %v5787_v39 }
 0xcac   : > { %3372 = vrot.lane.b32.xlu2 %v3269_v5, %s9312_s7  ;;  %3362 = vrot.lane.b32.xlu0 %v3264_v38, %s9312_s7  ;;  %v6187_v5 = vmov 2.0  }
 0xcad   : > { %3364 = vrot.lane.b32.xlu1 %v3265_v0, %s9312_s7  ;;  %5970 = vrcp.f32 %v6187_v5  ;;  %v5523_v5 = vld [vmem:[%s9314_s11 + $0x28] sm:$0xf0] }
 0xcaf   : > { %v5796_v44 = vpop.permute.xlu0 %5795 }
 0xcb0   : > { %v5798_v26 = vunpack.i.h.bf16 %v5796_v44  ;;  %v5797_v53 = vunpack.i.l.bf16 %v5796_v44  ;;  %v5409_v44 = vld [vmem:[%s9314_s11 + $0xc] sm:$0xf0] }
 0xcb2   : > { %v3272_v50 = vpack.c.bf16 %v5798_v26, %v5797_v53  ;;  %v5412_v53 = vor.u32 %v5518_v19, %v5409_v44 }
 0xcb3   : > { %v5971_v26 = vpop.eup %5970 }
 0xcb4   : > { %3366 = vrot.lane.b32.xlu2 %v3266_v12, %s9312_s7  ;;  %3378 = vrot.lane.b32.xlu0 %v3272_v50, %s9312_s7  ;;  %v5415_v12 = vld [vmem:[%s9314_s11 + $0x8] sm:$0xf]  ;;  %v5520_v50 = vld [vmem:[%s9314_s11 + $0x10] sm:$0xf0]  ;;  %vm3474_vm3 = vweird.f32 %v5971_v26 }
 0xcb5   : > { %3346 = vrot.lane.b32.xlu1 %v3256_v43, %s9312_s7  ;;  %v3275_v43 = vld [vmem:[%s9313_s12 + $0x8] sm:$0xff]  ;;  %s9440_s12 = sld [smem:[#allocation49_spill]] }
 0xcbc   : > { %3348 = vrot.lane.b32.xlu2 %v3257_v52, %s9312_s7  ;;  %3290 = vperm.xlu0 %5641, %v3276_v25   ;;  %v3470_v25 = vmul.f32 2.0, %v5971_v26 }
 0xcbd   : > { %3280 = vperm.xlu1 %5642, %v3274_v54   ;;  %v5407_v54 = vld [vmem:[%s9314_s11] sm:$0xf] }
 0xcbe   : > { %v3471_v15 = vsub.f32 1.0, %v3470_v25 }
 0xcc4   : > { %3380 = vrot.lane.b32.xlu2 %v3273_v17, %s9312_s7  ;;  %v5416_v17 = vor.u32 %v5520_v50, %v5415_v12 }
 0xcc5   : > { %3295 = vperm.xlu1 %5642, %v3277_v37  }
 0xccc   : > { %3285 = vperm.xlu2 %5683, %v3275_v43   ;;  %v5408_v43 = vor.u32 %v5519_v21, %v5407_v54 }
 0xce5   : > { %v3375_v47 = vpop.permute.xlu0 %3374 }
 0xced   : > { %v3357_v55 = vpop.permute.xlu0 %3356 }
 0xcf5   : > { %v3369_v58 = vpop.permute.xlu0 %3368 }
 0xcf6   : > { %v3355_v62 = vpop.permute.xlu2 %3354 }
 0xcfd   : > { %v3351_v48 = vpop.permute.xlu0 %3350 }
 0xcfe   : > { %v3361_v51 = vpop.permute.xlu2 %3360  ;;  %v3359_v52 = vpop.permute.xlu1 %3358 }
 0xcff   : > { %3407 = vmatpush.bf16.msrb.mxu0 %v3361_v51  ;;  %v3479_v51 = vadd.f32 0.5, %v6898_v61 }
 0xd03   : > { %3408 = vmatpush.bf16.msrb.mxu0 %v3359_v52 }
 0xd06   : > { %v3373_v59 = vpop.permute.xlu2 %3372  ;;  %v3377_v34 = vpop.permute.xlu1 %3376 }
 0xd07   : > { %3409 = vmatpush.bf16.msrb.mxu0 %v3357_v55  ;;  %3426 = vmatpush.bf16.msrb.mxu3 %v3377_v34 }
 0xd0b   : > { %3410 = vmatpush.bf16.msrb.mxu0 %v3355_v62  ;;  %3427 = vmatpush.bf16.msrb.mxu3 %v3375_v47  ;;  %v3472_v62 = vmul.f32 %v5971_v26, %v3471_v15  ;;  %v3468_v47 = vadd.f32 0.5, %v6886_v18  ;;  %v5421_v18 = vld [vmem:[%s9314_s11 + $0x24] sm:$0xf0] }
 0xd0d   : > { %v3473_v52 = vadd.f32 %v5971_v26, %v3472_v62 }
 0xd0e   : > { %v3367_v29 = vpop.permute.xlu2 %3366  ;;  %v3371_v36 = vpop.permute.xlu1 %3370 }
 0xd0f   : > { %3428 = vmatpush.bf16.msrb.mxu3 %v3373_v59  ;;  %v8209_v55 = vsel %vm3474_vm3, %v5971_v26, %v3473_v52  ;;  %vm9333_vm3 = vmmov %vm9320_vm0 }
 0xd10   : > { %v3476_v59 = vmul.f32 %v8209_v55, %v3468_v47  ;;  %v3480_v34 = vmul.f32 %v3479_v51, %v8209_v55 }
 0xd13   : > { %3429 = vmatpush.bf16.msrb.mxu3 %v3371_v36  ;;  %v5521_v36 = vld [vmem:[%s9314_s11 + $0x1c] sm:$0xf] }
 0xd16   : > { %v3349_v60 = vpop.permute.xlu2 %3348  ;;  %v3353_v39 = vpop.permute.xlu1 %3352 }
 0xd17   : > { %3411 = vmatpush.bf16.msrb.mxu0 %v3353_v39  ;;  %3430 = vmatpush.bf16.msrb.mxu3 %v3369_v58  ;;  %v3477_v58 = vfloor.f32 %v3476_v59  ;;  %v5427_v39 = vld [vmem:[%s9314_s11 + $0x20] sm:$0xf] }
 0xd19   : > { %v3478_v61 = vmul.f32 4.0, %v3477_v58 }
 0xd1b   : > { %3412 = vmatpush.bf16.msrb.mxu0 %v3351_v48  ;;  %3431 = vmatpush.bf16.msrb.mxu3 %v3367_v29  ;;  %v3481_v29 = vfloor.f32 %v3480_v34 }
 0xd1d   : > { %v3482_v48 = vadd.f32 %v3481_v29, %v3478_v61 }
 0xd1e   : > { %v3381_v38 = vpop.permute.xlu2 %3380  ;;  %v3363_v0 = vpop.permute.xlu0 %3362 }
 0xd1f   : > { %v3365_v10 = vpop.permute.xlu1 %3364  ;;  %3413 = vmatpush.bf16.msrb.mxu0 %v3349_v60  ;;  %3451 = vmatpush.bf16.msrb.mxu1 %v3381_v38  ;;  %v5424_v60 = vor.u32 %v5521_v36, %v5421_v18  ;;  %v5419_v38 = vld [vmem:[%s9314_s11 + $0x18] sm:$0xf]  ;;  %vm3484_vm4 = vcmp.eq.f32.partialorder %v7141_v56, %v3482_v48  ;;  %vm3483_vm12 = vcmp.eq.f32.partialorder %v7158_v1, %v3482_v48 }
 0xd20   : > { %3432 = vmatpush.bf16.msrb.mxu3 %v3365_v10  ;;  %5433 = vmatpush.msk.msra.mxu2 %vm3484_vm4, %v9278_v45  ;;  %v5428_v10 = vor.u32 %v5523_v5, %v5427_v39  ;;  %vm9335_vm4 = vmmov %vm9320_vm0 }
 0xd22   : > { %5434 = vmatpush.msk.msra.mxu2 %vm3483_vm12, %v9278_v45  ;;  %vm9336_vm12 = vmmov %vm9320_vm0 }
 0xd24   : > { %3433 = vmatpush.bf16.msrb.mxu3 %v3363_v0  ;;  %v5522_v0 = vld [vmem:[%s9314_s11 + $0x20] sm:$0xf0] }
 0xd25   : > { %v5420_v19 = vor.u32 %v5522_v0, %v5419_v38 }
 0xd26   : > { %v3379_v40 = vpop.permute.xlu0 %3378  ;;  %v3286_v21 = vpop.permute.xlu2 %3285 }
 0xd27   : > { %3434 = vmatmul.bf16.vlgmr.msrb.gmra.mxu3 %v5412_v53  ;;  %v3347_v37 = vpop.permute.xlu1 %3346  ;;  %3452 = vmatpush.bf16.msrb.mxu1 %v3379_v40 }
 0xd28   : > { %3414 = vmatpush.bf16.msrb.mxu0 %v3347_v37 }
 0xd2a   : > { %5429 = vmatmul.msk.bf16.vlgmr.msrb.gmra.mxu1 %vm3400_vm6, %v5416_v17 }
 0xd2b   : > { %3415 = vmatmul.bf16.vlgmr.msrb.gmra.mxu0 %v5408_v43 }
 0xd2e   : > { %v3291_v52 = vpop.permute.xlu0 %3290 }
 0xd2f   : > { %v3281_v26 = vpop.permute.xlu1 %3280 }
 0xd37   : > { %3439 = vmatmul.bf16.gmra.mxu3 %v5424_v60  ;;  %v3296_v48 = vpop.permute.xlu1 %3295 }
 0xd3a   : > { %5430 = vmatmul.msk.bf16.gmra.mxu1 %vm3400_vm6, %v5428_v10  ;;  %vm9332_vm6 = vmmov %vm9320_vm0 }
 0xd3b   : > { %3420 = vmatmul.bf16.gmra.mxu0 %v5420_v19 }
 0xda7   : > { %v3454_v44 = vpop.f32.mrf.mxu1 }
 0xda8   : > { %v3416_v53 = vpop.f32.mrf.mxu0 }
 0xda9   : > { %v3417_v12 = vadd.f32 %v3416_v53, %v3281_v26 }
 0xdaa   : > { %v3435_v50 = vpop.f32.mrf.mxu3 }
 0xdab   : > { %v3436_v25 = vadd.f32 %v3435_v50, %v3417_v12 }
 0xdad   : > { %v3455_v54 = vadd.f32 %v3454_v44, %v3436_v25 }
 0xdaf   : > { %v3464_v15 = vmax.f32 %v3455_v54, 0.0  ;;  %v3456_v17 = vpop.f32.mrf.mxu1 }
 0xdb0   : > { %v3418_v40 = vpop.f32.mrf.mxu0 }
 0xdb1   : > { %v3419_v37 = vadd.f32 %v3418_v40, %v3286_v21  ;;  %5435 = vmatmul.msk.f32.vlgmr.msra.gmra.mxu2 %vm9315_vm14, %v3464_v15  ;;  %vm3982_vm14 = vcmask 392192  }
 0xdb2   : > { %v3437_v43 = vpop.f32.mrf.mxu3 }
 0xdb3   : > { %v3438_v62 = vadd.f32 %v3437_v43, %v3419_v37  ;;  %v3595_v37 = vmul.f32 %v7576_v23, %v7791_v3  ;;  %v3594_v43 = vmul.f32 %v7576_v23, %v7783_v14 }
 0xdb5   : > { %v3457_v47 = vadd.f32 %v3456_v17, %v3438_v62  ;;  %v5809_v62 = vpack.i.bf16 %v3595_v37, %v3594_v43 }
 0xdb7   : > { %v3465_v51 = vmax.f32 %v3457_v47, 0.0  ;;  %v3459_v58 = vpop.f32.mrf.mxu1 }
 0xdb8   : > { %v3421_v59 = vpop.f32.mrf.mxu0 }
 0xdb9   : > { %v3422_v34 = vadd.f32 %v3421_v59, %v3291_v52  ;;  %5436 = vmatmul.msk.f32.gmra.mxu2 %vm9316_vm13, %v3465_v51  ;;  %vm9339_vm13 = vmmov %vm9320_vm0 }
 0xdba   : > { %v3440_v29 = vpop.f32.mrf.mxu3 }
 0xdbb   : > { %v3441_v36 = vadd.f32 %v3440_v29, %v3422_v34 }
 0xdbd   : > { %v3460_v18 = vadd.f32 %v3459_v58, %v3441_v36 }
 0xdbf   : > { %v3466_v61 = vmax.f32 %v3460_v18, 0.0  ;;  %v3461_v0 = vpop.f32.mrf.mxu1 }
 0xdc0   : > { %v3423_v60 = vpop.f32.mrf.mxu0 }
 0xdc1   : > { %v3424_v39 = vadd.f32 %v3423_v60, %v3296_v48  ;;  %5437 = vmatmul.msk.f32.gmra.mxu2 %vm9317_vm2, %v3466_v61  ;;  %vm9340_vm2 = vmmov %vm9320_vm0 }
 0xdc2   : > { %v3442_v5 = vpop.f32.mrf.mxu3 }
 0xdc3   : > { %v3443_v38 = vadd.f32 %v3442_v5, %v3424_v39 }
 0xdc5   : > { %v3462_v10 = vadd.f32 %v3461_v0, %v3443_v38 }
 0xdc7   : > { %v3467_v19 = vmax.f32 %v3462_v10, 0.0 }
 0xdc9   : > { %5438 = vmatmul.msk.f32.gmra.mxu2 %vm9318_vm8, %v3467_v19  ;;  %vm9341_vm8 = vmmov %vm9320_vm0 }
 0xe34   : > { %v8240_v44 = vpop.f32.mrf.mxu2 }
 0xe35   : > { %3530 = vrot.lane.b32.xlu1 %v8240_v44, %s9319_s8 }
 0xe3c   : > { %v8244_v26 = vpop.f32.mrf.mxu2 }
 0xe3d   : > { %3545 = vrot.lane.b32.xlu1 %v7791_v3, %s9319_s8 }
 0xe44   : > { %v8248_v53 = vpop.f32.mrf.mxu2 }
 0xe45   : > { %3536 = vrot.lane.b32.xlu2 %v8248_v53, %s9319_s8 }
 0xe4c   : > { %v8252_v12 = vpop.f32.mrf.mxu2 }
 0xe4d   : > { %3533 = vrot.lane.b32.xlu2 %v8244_v26, %s9319_s8  ;;  %3539 = vrot.lane.b32.xlu0 %v8252_v12, %s9319_s8 }
 0xe55   : > { %3542 = vrot.lane.b32.xlu0 %v7783_v14, %s9319_s8 }
 0xe9f   : > { %v3537_v58 = vpop.permute.xlu2 %3536 }
 0xea7   : > { %v3531_v50 = vpop.permute.xlu1 %3530 }
 0xea8   : > { %v3532_v21 = vsel %vm9321_vm15, %v3531_v50, %v8240_v44 }
 0xeaf   : > { %v3546_v25 = vpop.permute.xlu1 %3545 }
 0xeb0   : > { %v3547_v54 = vsel %vm9320_vm0, %v3546_v25, %v7791_v3 }
 0xeb1   : > { %3558 = vrot.lane.b32.xlu1 %v3547_v54, %s9319_s8 }
 0xeb9   : > { %3548 = vrot.lane.b32.xlu1 %v3532_v21, %s9319_s8 }
 0xebf   : > { %v3540_v15 = vpop.permute.xlu0 %3539 }
 0xec0   : > { %v3541_v47 = vsel %vm9324_vm1, %v3540_v15, %v8252_v12 }
 0xec7   : > { %v3543_v40 = vpop.permute.xlu0 %3542 }
 0xec8   : > { %v3544_v17 = vsel %vm9322_vm7, %v3543_v40, %v7783_v14 }
 0xec9   : > { %3556 = vrot.lane.b32.xlu0 %v3544_v17, %s9319_s8  ;;  %v3534_v17 = vpop.permute.xlu2 %3533 }
 0xeca   : > { %v3535_v43 = vsel %vm9329_vm9, %v3534_v17, %v8244_v26 }
 0xed1   : > { %5810 = vrot.lane.b32.xlu0 %v5809_v62, %s9323_s3 }
 0xed9   : > { %3554 = vrot.lane.b32.xlu0 %v3541_v47, %s9319_s8 }
 0xf23   : > { %v3559_v51 = vpop.permute.xlu1 %3558 }
 0xf24   : > { %v3565_v52 = vsel %vm9325_vm11, %v3559_v51, %v7791_v3 }
 0xf25   : > { %v3613_v34 = vmul.f32 %v3565_v52, %v7578_v6  ;;  %v3589_v36 = vmul.f32 %v3565_v52, %v7594_v35  ;;  %v3577_v18 = vmul.f32 %v3565_v52, %v7602_v7  ;;  %v8285_v61 = vmul.f32 %v3565_v52, %v7560_v24 }
 0xf26   : > { %v8291_v39 = vmul.f32 %v3565_v52, %v7580_v8  ;;  %v8303_v0 = vmul.f32 %v3565_v52, %v7612_v42  ;;  %v3607_v40 = vmul.f32 %v3565_v52, %v7566_v2  ;;  %v3583_v47 = vmul.f32 %v3565_v52, %v7591_v11 }
 0xf27   : > { %v3591_v52 = vmul.f32 %v7576_v23, %v8244_v26 }
 0xf3b   : > { %v3557_v59 = vpop.permute.xlu0 %3556 }
 0xf3c   : > { %v3564_v29 = vsel %vm9326_vm10, %v3557_v59, %v7783_v14  ;;  %v3538_v59 = vsel %vm9331_vm5, %v3537_v58, %v8248_v53 }
 0xf3d   : > { %v3612_v48 = vmul.f32 %v3564_v29, %v7578_v6  ;;  %v3588_v60 = vmul.f32 %v3564_v29, %v7594_v35  ;;  %v3576_v3 = vmul.f32 %v3564_v29, %v7602_v7  ;;  %v8294_v5 = vmul.f32 %v3564_v29, %v7560_v24 }
 0xf3e   : > { %v8297_v14 = vmul.f32 %v3564_v29, %v7580_v8  ;;  %v8300_v38 = vmul.f32 %v3564_v29, %v7612_v42  ;;  %v3606_v15 = vmul.f32 %v3564_v29, %v7566_v2  ;;  %v3582_v62 = vmul.f32 %v3564_v29, %v7591_v11 }
 0xf3f   : > { %v5819_v10 = vpack.i.bf16 %v3613_v34, %v3612_v48  ;;  %v5829_v19 = vpack.i.bf16 %v3589_v36, %v3588_v60  ;;  %v5804_v50 = vpack.i.bf16 %v3577_v18, %v3576_v3  ;;  %v5879_v25 = vpack.i.bf16 %v8285_v61, %v8294_v5  ;;  %v3549_v48 = vpop.permute.xlu1 %3548 }
 0xf40   : > { %v5884_v54 = vpack.i.bf16 %v8291_v39, %v8297_v14  ;;  %v3818_v21 = vpack.c.bf16 %v8303_v0, %v8300_v38  ;;  %v5834_v37 = vpack.i.bf16 %v3607_v40, %v3606_v15  ;;  %v5839_v51 = vpack.i.bf16 %v3583_v47, %v3582_v62 }
 0xf41   : > { %5820 = vrot.lane.b32.xlu0 %v5819_v10, %s9327_s23  ;;  %5830 = vrot.lane.b32.xlu1 %v5829_v19, %s9328_s19  ;;  %v3593_v34 = vmul.f32 %v7576_v23, %v8252_v12  ;;  %v3592_v36 = vmul.f32 %v7576_v23, %v8248_v53  ;;  %v3590_v29 = vmul.f32 %v7576_v23, %v8240_v44 }
 0xf42   : > { %5805 = vrot.lane.b32.xlu2 %v5804_v50, %s9289_s2  ;;  %v3560_v3 = vsel %vm9332_vm6, %v3549_v48, %v8240_v44 }
 0xf43   : > { %v5814_v18 = vpack.i.bf16 %v3593_v34, %v3592_v36  ;;  %v5824_v58 = vpack.i.bf16 %v3591_v52, %v3590_v29  ;;  %v5811_v60 = vpop.permute.xlu0 %5810  ;;  %v3608_v19 = vmul.f32 %v3560_v3, %v7578_v6  ;;  %v3596_v50 = vmul.f32 %v3560_v3, %v7580_v8 }
 0xf44   : > { %v3578_v17 = vmul.f32 %v3560_v3, %v7591_v11  ;;  %v3572_v48 = vmul.f32 %v3560_v3, %v7602_v7 }
 0xf49   : > { %5835 = vrot.lane.b32.xlu1 %v5834_v37, %s9330_s27 }
 0xf4a   : > { %3550 = vrot.lane.b32.xlu2 %v3535_v43, %s9319_s8  ;;  %v8349_v43 = vmul.f32 %v3560_v3, %v7612_v42 }
 0xf51   : > { %5840 = vrot.lane.b32.xlu1 %v5839_v51, %s9308_s4  ;;  %v3555_v51 = vpop.permute.xlu0 %3554 }
 0xf52   : > { %3552 = vrot.lane.b32.xlu2 %v3538_v59, %s9319_s8  ;;  %v8361_v34 = vsel %vm9335_vm4, %v3555_v51, %v8252_v12  ;;  %vm9347_vm4 = vcmp.lt.s32.totalorder %v6449_v13, 1 }
 0xf53   : > { %v8377_v12 = vmul.f32 %v8361_v34, %v7612_v42 }
 0xf5a   : > { %5815 = vrot.lane.b32.xlu2 %v5814_v18, %s9323_s3 }
 0xf62   : > { %5825 = vrot.lane.b32.xlu2 %v5824_v58, %s9323_s3  ;;  %v3584_v58 = vmul.f32 %v3560_v3, %v7594_v35 }
 0xf9c   : > { %v8336_v61 = vpop.permute.xlu2 %5805 }
 0xfa4   : > { %v3551_v5 = vpop.permute.xlu2 %3550 }
 0xfa5   : > { %v3561_v10 = vsel %vm9333_vm3, %v3551_v5, %v8244_v26  ;;  %vm9346_vm3 = vcmask 130048  }
 0xfa6   : > { %v3609_v15 = vmul.f32 %v3561_v10, %v7578_v6  ;;  %v3597_v40 = vmul.f32 %v3561_v10, %v7580_v8  ;;  %v3579_v37 = vmul.f32 %v3561_v10, %v7591_v11  ;;  %v8352_v44 = vmul.f32 %v3561_v10, %v7612_v42 }
 0xfa7   : > { %v3585_v18 = vmul.f32 %v3561_v10, %v7594_v35  ;;  %v3573_v52 = vmul.f32 %v3561_v10, %v7602_v7  ;;  %v3615_v39 = vmul.f32 %v3561_v10, %v7560_v24 }
 0xfa8   : > { %v5859_v62 = vpack.i.bf16 %v3609_v15, %v3608_v19  ;;  %v5849_v26 = vpack.i.bf16 %v3597_v40, %v3596_v50  ;;  %v5844_v47 = vpack.i.bf16 %v3579_v37, %v3578_v17  ;;  %v3816_v59 = vpack.c.bf16 %v8352_v44, %v8349_v43 }
 0xfa9   : > { %v5864_v19 = vpack.i.bf16 %v3585_v18, %v3584_v58  ;;  %v5854_v50 = vpack.i.bf16 %v3573_v52, %v3572_v48  ;;  %v5813_v40 = vunpack.i.h.bf16 %v5811_v60  ;;  %v5812_v17 = vunpack.i.l.bf16 %v5811_v60 }
 0xfaa   : > { %5860 = vrot.lane.b32.xlu2 %v5859_v62, %s9327_s23  ;;  %5850 = vrot.lane.b32.xlu1 %v5849_v26, %s9334_s24  ;;  %v3581_v37 = vmul.f32 %v8361_v34, %v7591_v11  ;;  %v3602_v18 = vmul.f32 %v3560_v3, %v7566_v2  ;;  %v3575_v52 = vmul.f32 %v8361_v34, %v7602_v7 }
 0xfab   : > { %5845 = vrot.lane.b32.xlu0 %v5844_v47, %s9308_s4  ;;  %v3830_v26 = vpack.c.bf16 %v5813_v40, %v5812_v17  ;;  %v5807_v17 = vunpack.i.l.bf16 %v8336_v61 }
 0xfac   : > { %v3553_v36 = vpop.permute.xlu2 %3552 }
 0xfad   : > { %v8367_v29 = vsel %vm9336_vm12, %v3553_v36, %v8248_v53  ;;  %vm9348_vm12 = vmmov %vm9347_vm4 }
 0xfae   : > { %v8373_v5 = vmul.f32 %v8367_v29, %v7612_v42  ;;  %v3580_v53 = vmul.f32 %v8367_v29, %v7591_v11  ;;  %v3574_v60 = vmul.f32 %v8367_v29, %v7602_v7  ;;  %v3610_v14 = vmul.f32 %v8367_v29, %v7578_v6 }
 0xfb0   : > { %v3817_v15 = vpack.c.bf16 %v8377_v12, %v8373_v5  ;;  %v5869_v62 = vpack.i.bf16 %v3581_v37, %v3580_v53  ;;  %v5894_v48 = vpack.i.bf16 %v3575_v52, %v3574_v60  ;;  %v3586_v37 = vmul.f32 %v8367_v29, %v7594_v35 }
 0xfb1   : > { %v3604_v60 = vmul.f32 %v8367_v29, %v7566_v2  ;;  %v3616_v52 = vmul.f32 %v8367_v29, %v7560_v24 }
 0xfb2   : > { %5865 = vrot.lane.b32.xlu2 %v5864_v19, %s9328_s19  ;;  %5855 = vrot.lane.b32.xlu1 %v5854_v50, %s9289_s2  ;;  %v3611_v50 = vmul.f32 %v8361_v34, %v7578_v6 }
 0xfb3   : > { %5880 = vrot.lane.b32.xlu0 %v5879_v25, %s9288_s20  ;;  %v5821_v47 = vpop.permute.xlu0 %5820  ;;  %v3603_v25 = vmul.f32 %v3561_v10, %v7566_v2  ;;  %v5808_v10 = vunpack.i.h.bf16 %v8336_v61 }
 0xfb4   : > { %v5823_v51 = vunpack.i.h.bf16 %v5821_v47  ;;  %v5822_v36 = vunpack.i.l.bf16 %v5821_v47  ;;  %v5899_v40 = vpack.i.bf16 %v3611_v50, %v3610_v14  ;;  %v5831_v50 = vpop.permute.xlu1 %5830 }
 0xfb5   : > { %v5874_v58 = vpack.i.bf16 %v3603_v25, %v3602_v18  ;;  %v3821_v38 = vpack.c.bf16 %v5808_v10, %v5807_v17 }
 0xfb6   : > { %v3839_v19 = vpack.c.bf16 %v5823_v51, %v5822_v36  ;;  %v3605_v51 = vmul.f32 %v8361_v34, %v7566_v2 }
 0xfb8   : > { %v5909_v18 = vpack.i.bf16 %v3605_v51, %v3604_v60 }
 0xfba   : > { %5870 = vrot.lane.b32.xlu2 %v5869_v62, %s9308_s4  ;;  %5885 = vrot.lane.b32.xlu1 %v5884_v54, %s9334_s24  ;;  %v3614_v54 = vmul.f32 %v3560_v3, %v7560_v24  ;;  %v3598_v3 = vmul.f32 %v8367_v29, %v7580_v8  ;;  %v3599_v62 = vmul.f32 %v8361_v34, %v7580_v8 }
 0xfbb   : > { %3929 = vrot.lane.b32.xlu0 %v3830_v26, %s9337_s28  ;;  %v3587_v26 = vmul.f32 %v8361_v34, %v7594_v35 }
 0xfbc   : > { %v5889_v53 = vpack.i.bf16 %v3615_v39, %v3614_v54  ;;  %v5919_v0 = vpack.i.bf16 %v3599_v62, %v3598_v3  ;;  %v5836_v29 = vpop.permute.xlu1 %5835 }
 0xfbd   : > { %v5904_v47 = vpack.i.bf16 %v3587_v26, %v3586_v37 }
 0xfc2   : > { %5875 = vrot.lane.b32.xlu2 %v5874_v58, %s9330_s27  ;;  %5895 = vrot.lane.b32.xlu1 %v5894_v48, %s9289_s2  ;;  %v3617_v58 = vmul.f32 %v8361_v34, %v7560_v24 }
 0xfc3   : > { %3947 = vrot.lane.b32.xlu0 %v3839_v19, %s9337_s28 }
 0xfc4   : > { %v5914_v48 = vpack.i.bf16 %v3617_v58, %v3616_v52  ;;  %v5841_v26 = vpop.permute.xlu1 %5840 }
 0xfca   : > { %5890 = vrot.lane.b32.xlu2 %v5889_v53, %s9288_s20  ;;  %3905 = vrot.lane.b32.xlu1 %v3818_v21, %s9337_s28  ;;  %v5816_v21 = vpop.permute.xlu2 %5815  ;;  %v5833_v53 = vunpack.i.h.bf16 %v5831_v50 }
 0xfcb   : > { %5900 = vrot.lane.b32.xlu0 %v5899_v40, %s9327_s23  ;;  %v5818_v61 = vunpack.i.h.bf16 %v5816_v21  ;;  %v5817_v25 = vunpack.i.l.bf16 %v5816_v21  ;;  %v5832_v40 = vunpack.i.l.bf16 %v5831_v50 }
 0xfcd   : > { %v3829_v36 = vpack.c.bf16 %v5818_v61, %v5817_v25  ;;  %v3827_v10 = vpack.c.bf16 %v5833_v53, %v5832_v40 }
 0xfd2   : > { %3911 = vrot.lane.b32.xlu2 %v3821_v38, %s9337_s28  ;;  %5920 = vrot.lane.b32.xlu1 %v5919_v0, %s9334_s24  ;;  %v5826_v19 = vpop.permute.xlu2 %5825 }
 0xfd3   : > { %5905 = vrot.lane.b32.xlu0 %v5904_v47, %s9328_s19  ;;  %v5828_v39 = vunpack.i.h.bf16 %v5826_v19  ;;  %v5827_v14 = vunpack.i.l.bf16 %v5826_v19 }
 0xfd5   : > { %v3828_v54 = vpack.c.bf16 %v5828_v39, %v5827_v14 }
 0xfda   : > { %3927 = vrot.lane.b32.xlu2 %v3829_v36, %s9337_s28 }
 0xfdb   : > { %5910 = vrot.lane.b32.xlu0 %v5909_v18, %s9330_s27 }
 0xfe2   : > { %5915 = vrot.lane.b32.xlu2 %v5914_v48, %s9288_s20 }
 0xfea   : > { %3925 = vrot.lane.b32.xlu2 %v3828_v54, %s9337_s28 }
 0xff2   : > { %3923 = vrot.lane.b32.xlu2 %v3827_v10, %s9337_s28 }
0x1004   : > { %v5861_v17 = vpop.permute.xlu2 %5860 }
0x1005   : > { %v5863_v53 = vunpack.i.h.bf16 %v5861_v17  ;;  %v5862_v40 = vunpack.i.l.bf16 %v5861_v17 }
0x100c   : > { %v5866_v3 = vpop.permute.xlu2 %5865 }
0x100d   : > { %v5868_v37 = vunpack.i.h.bf16 %v5866_v3  ;;  %v5867_v34 = vunpack.i.l.bf16 %v5866_v3 }
0x100f   : > { %v3825_v62 = vpack.c.bf16 %v5868_v37, %v5867_v34  ;;  %v3837_v37 = vpack.c.bf16 %v5863_v53, %v5862_v40 }
0x1011   : > { %3919 = vrot.lane.b32.xlu2 %v3825_v62, %s9337_s28  ;;  %v5838_v62 = vunpack.i.h.bf16 %v5836_v29 }
0x1014   : > { %v5871_v60 = vpop.permute.xlu2 %5870 }
0x1015   : > { %v5873_v18 = vunpack.i.h.bf16 %v5871_v60  ;;  %v5872_v52 = vunpack.i.l.bf16 %v5871_v60 }
0x1017   : > { %v3823_v54 = vpack.c.bf16 %v5873_v18, %v5872_v52 }
0x101c   : > { %v5851_v38 = vpop.permute.xlu1 %5850  ;;  %v5876_v50 = vpop.permute.xlu2 %5875 }
0x101d   : > { %v5846_v0 = vpop.permute.xlu0 %5845  ;;  %v5853_v21 = vunpack.i.h.bf16 %v5851_v38  ;;  %v5852_v47 = vunpack.i.l.bf16 %v5851_v38  ;;  %v5837_v38 = vunpack.i.l.bf16 %v5836_v29  ;;  %v5843_v29 = vunpack.i.h.bf16 %v5841_v26 }
0x101e   : > { %v5848_v61 = vunpack.i.h.bf16 %v5846_v0  ;;  %v5847_v25 = vunpack.i.l.bf16 %v5846_v0  ;;  %v5878_v40 = vunpack.i.h.bf16 %v5876_v50 }
0x101f   : > { %v3831_v51 = vpack.c.bf16 %v5853_v21, %v5852_v47 }
0x1020   : > { %v3822_v36 = vpack.c.bf16 %v5848_v61, %v5847_v25  ;;  %v3836_v25 = vpack.c.bf16 %v5838_v62, %v5837_v38 }
0x1021   : > { %3931 = vrot.lane.b32.xlu1 %v3831_v51, %s9337_s28 }
0x1022   : > { %3913 = vrot.lane.b32.xlu0 %v3822_v36, %s9337_s28  ;;  %v5842_v36 = vunpack.i.l.bf16 %v5841_v26 }
0x1024   : > { %v5856_v58 = vpop.permute.xlu1 %5855  ;;  %v5891_v34 = vpop.permute.xlu2 %5890 }
0x1025   : > { %v8444_v48 = vpop.permute.xlu0 %5880  ;;  %v5858_v19 = vunpack.i.h.bf16 %v5856_v58  ;;  %v5857_v39 = vunpack.i.l.bf16 %v5856_v58 }
0x1027   : > { %v3819_v14 = vpack.c.bf16 %v5858_v19, %v5857_v39  ;;  %v3824_v19 = vpack.c.bf16 %v5843_v29, %v5842_v36 }
0x1029   : > { %3907 = vrot.lane.b32.xlu1 %v3819_v14, %s9337_s28 }
0x102a   : > { %3915 = vrot.lane.b32.xlu0 %v3823_v54, %s9337_s28 }
0x102c   : > { %v5886_v10 = vpop.permute.xlu1 %5885  ;;  %v8457_v60 = vpop.permute.xlu2 %3911 }
0x102d   : > { %v8448_v3 = vpop.permute.xlu0 %3929  ;;  %v5888_v54 = vunpack.i.h.bf16 %v5886_v10  ;;  %v5887_v53 = vunpack.i.l.bf16 %v5886_v10  ;;  %v5883_v10 = vunpack.i.h.bf16 %v8444_v48 }
0x102f   : > { %v3833_v62 = vpack.c.bf16 %v5888_v54, %v5887_v53 }
0x1031   : > { %3903 = vrot.lane.b32.xlu1 %v3817_v15, %s9337_s28 }
0x1032   : > { %3943 = vrot.lane.b32.xlu0 %v3837_v37, %s9337_s28  ;;  %v5877_v37 = vunpack.i.l.bf16 %v5876_v50  ;;  %v5882_v50 = vunpack.i.l.bf16 %v8444_v48  ;;  %v3844_v48 = vld [vmem:[%s9338_s14 + $0x8] sm:$0xff] }
0x1034   : > { %v5896_v0 = vpop.permute.xlu1 %5895  ;;  %v3928_v39 = vpop.permute.xlu2 %3927  ;;  %v3834_v26 = vpack.c.bf16 %v5878_v40, %v5877_v37 }
0x1035   : > { %v3948_v21 = vpop.permute.xlu0 %3947  ;;  %v5898_v47 = vunpack.i.h.bf16 %v5896_v0  ;;  %v5897_v61 = vunpack.i.l.bf16 %v5896_v0 }
0x1036   : > { %4014 = vmatpush.bf16.msra.mxu1 %v3948_v21 }
0x1037   : > { %v3820_v17 = vpack.c.bf16 %v5898_v47, %v5897_v61  ;;  %v5893_v47 = vunpack.i.h.bf16 %v5891_v34  ;;  %v5892_v61 = vunpack.i.l.bf16 %v5891_v34  ;;  %v3843_v34 = vld [vmem:[%s9338_s14] sm:$0xff] }
0x1039   : > { %3909 = vrot.lane.b32.xlu1 %v3820_v17, %s9337_s28 }
0x103a   : > { %3941 = vrot.lane.b32.xlu0 %v3836_v25, %s9337_s28 }
0x103c   : > { %v3906_v38 = vpop.permute.xlu1 %3905  ;;  %v5916_v21 = vpop.permute.xlu2 %5915 }
0x103d   : > { %v5901_v5 = vpop.permute.xlu0 %5900  ;;  %v5918_v17 = vunpack.i.h.bf16 %v5916_v21  ;;  %v5917_v25 = vunpack.i.l.bf16 %v5916_v21  ;;  %v5443_v21 = vld [vmem:[%s9054_s13 + $0x10] sm:$0xf0] }
0x103e   : > { %v5903_v12 = vunpack.i.h.bf16 %v5901_v5  ;;  %v5902_v15 = vunpack.i.l.bf16 %v5901_v5  ;;  %v3840_v5 = vpack.c.bf16 %v5893_v47, %v5892_v61 }
0x1040   : > { %v3838_v51 = vpack.c.bf16 %v5903_v12, %v5902_v15  ;;  %v3842_v12 = vpack.c.bf16 %v5883_v10, %v5882_v50  ;;  %v3841_v15 = vpack.c.bf16 %v5918_v17, %v5917_v25 }
0x1041   : > { %3901 = vrot.lane.b32.xlu1 %v3816_v59, %s9337_s28 }
0x1042   : > { %3945 = vrot.lane.b32.xlu0 %v3838_v51, %s9337_s28 }
0x1044   : > { %v5921_v51 = vpop.permute.xlu1 %5920 }
0x1045   : > { %v5906_v18 = vpop.permute.xlu0 %5905  ;;  %v5923_v29 = vunpack.i.h.bf16 %v5921_v51  ;;  %v5922_v36 = vunpack.i.l.bf16 %v5921_v51  ;;  %v5525_v51 = vld [vmem:[%s9054_s13 + $0xc] sm:$0xf] }
0x1046   : > { %v5908_v52 = vunpack.i.h.bf16 %v5906_v18  ;;  %v5907_v58 = vunpack.i.l.bf16 %v5906_v18 }
0x1047   : > { %v3832_v18 = vpack.c.bf16 %v5923_v29, %v5922_v36  ;;  %v5451_v29 = vld [vmem:[%s9054_s13 + $0x18] sm:$0xf0] }
0x1048   : > { %v3826_v14 = vpack.c.bf16 %v5908_v52, %v5907_v58  ;;  %v3926_v52 = vpop.permute.xlu2 %3925 }
0x1049   : > { %3917 = vrot.lane.b32.xlu1 %v3824_v19, %s9337_s28 }
0x104a   : > { %3921 = vrot.lane.b32.xlu2 %v3826_v14, %s9337_s28 }
0x104d   : > { %v5911_v43 = vpop.permute.xlu0 %5910 }
0x104e   : > { %v5913_v44 = vunpack.i.h.bf16 %v5911_v43  ;;  %v5912_v59 = vunpack.i.l.bf16 %v5911_v43 }
0x1050   : > { %v3835_v0 = vpack.c.bf16 %v5913_v44, %v5912_v59  ;;  %v3924_v14 = vpop.permute.xlu2 %3923 }
0x1051   : > { %3935 = vrot.lane.b32.xlu1 %v3833_v62, %s9337_s28 }
0x1052   : > { %3939 = vrot.lane.b32.xlu0 %v3835_v0, %s9337_s28  ;;  %3937 = vrot.lane.b32.xlu2 %v3834_v26, %s9337_s28  ;;  %v5524_v0 = vld [vmem:[%s9054_s13 + $0x4] sm:$0xf] }
0x1053   : > { %v5446_v61 = vor.u32 %v5524_v0, %v5443_v21 }
0x1059   : > { %3949 = vrot.lane.b32.xlu1 %v3840_v5, %s9337_s28 }
0x105a   : > { %3953 = vrot.lane.b32.xlu0 %v3842_v12, %s9337_s28  ;;  %3951 = vrot.lane.b32.xlu2 %v3841_v15, %s9337_s28  ;;  %v5449_v12 = vld [vmem:[%s9054_s13 + $0x8] sm:$0xf]  ;;  %v5527_v15 = vld [vmem:[%s9054_s13 + $0x14] sm:$0xf0] }
0x1062   : > { %3933 = vrot.lane.b32.xlu0 %v3832_v18, %s9337_s28  ;;  %3847 = vperm.xlu2 %5683, %v3843_v34   ;;  %v5450_v18 = vor.u32 %v5527_v15, %v5449_v12 }
0x106a   : > { %3852 = vperm.xlu0 %5641, %v3844_v48   ;;  %v5454_v48 = vor.u32 %v5525_v51, %v5451_v29 }
0x106b   : > { %v3920_v40 = vpop.permute.xlu2 %3919 }
0x1093   : > { %v3932_v58 = vpop.permute.xlu1 %3931 }
0x1094   : > { %v3914_v19 = vpop.permute.xlu0 %3913  ;;  %4000 = vmatpush.bf16.msra.mxu3 %v3932_v58 }
0x1098   : > { %4001 = vmatpush.bf16.msra.mxu3 %v8448_v3 }
0x109b   : > { %v3908_v54 = vpop.permute.xlu1 %3907 }
0x109c   : > { %v3916_v53 = vpop.permute.xlu0 %3915  ;;  %4002 = vmatpush.bf16.msra.mxu3 %v3928_v39  ;;  %v5441_v39 = vld [vmem:[%s9054_s13] sm:$0xf] }
0x109d   : > { %3986 = vmatpush.bf16.msra.mxu0 %v3916_v53 }
0x10a0   : > { %4003 = vmatpush.bf16.msra.mxu3 %v3926_v52 }
0x10a1   : > { %3987 = vmatpush.bf16.msra.mxu0 %v3914_v19 }
0x10a3   : > { %v3904_v37 = vpop.permute.xlu1 %3903 }
0x10a4   : > { %v3944_v43 = vpop.permute.xlu0 %3943  ;;  %4004 = vmatpush.bf16.msra.mxu3 %v3924_v14  ;;  %v3922_v44 = vpop.permute.xlu2 %3921 }
0x10a5   : > { %3988 = vmatpush.bf16.msra.mxu0 %v8457_v60  ;;  %v5526_v60 = vld [vmem:[%s9054_s13 + $0xc] sm:$0xf0] }
0x10a6   : > { %v5442_v47 = vor.u32 %v5526_v60, %v5441_v39 }
0x10a8   : > { %4005 = vmatpush.bf16.msra.mxu3 %v3922_v44 }
0x10ab   : > { %v3910_v59 = vpop.permute.xlu1 %3909 }
0x10ac   : > { %v3942_v62 = vpop.permute.xlu0 %3941  ;;  %3989 = vmatpush.bf16.msra.mxu0 %v3910_v59  ;;  %4006 = vmatpush.bf16.msra.mxu3 %v3920_v40  ;;  %v3938_v50 = vpop.permute.xlu2 %3937 }
0x10b0   : > { %3990 = vmatpush.bf16.msra.mxu0 %v3908_v54 }
0x10b3   : > { %v3902_v3 = vpop.permute.xlu1 %3901 }
0x10b4   : > { %v3946_v26 = vpop.permute.xlu0 %3945  ;;  %3991 = vmatpush.bf16.msra.mxu0 %v3906_v38  ;;  %v3952_v5 = vpop.permute.xlu2 %3951 }
0x10b5   : > { %4015 = vmatpush.bf16.msra.mxu1 %v3946_v26 }
0x10b8   : > { %3992 = vmatpush.bf16.msra.mxu0 %v3904_v37 }
0x10b9   : > { %4016 = vmatpush.bf16.msra.mxu1 %v3944_v43 }
0x10bb   : > { %v3918_v38 = vpop.permute.xlu1 %3917 }
0x10bc   : > { %3993 = vmatpush.bf16.msra.mxu0 %v3902_v3  ;;  %4007 = vmatpush.bf16.msra.mxu3 %v3918_v38  ;;  %v3848_v14 = vpop.permute.xlu2 %3847 }
0x10bd   : > { %4017 = vmatpush.bf16.msra.mxu1 %v3942_v62 }
0x10bf   : > { %3994 = vmatmul.bf16.vlgmr.msra.gmra.mxu0 %v5442_v47  ;;  %4008 = vmatmul.bf16.vlgmr.msra.gmra.mxu3 %v5446_v61 }
0x10c3   : > { %v3936_v17 = vpop.permute.xlu1 %3935 }
0x10c4   : > { %v3940_v10 = vpop.permute.xlu0 %3939 }
0x10c5   : > { %4018 = vmatpush.bf16.msra.mxu1 %v3940_v10 }
0x10c9   : > { %4019 = vmatpush.bf16.msra.mxu1 %v3938_v50 }
0x10cb   : > { %v3950_v36 = vpop.permute.xlu1 %3949 }
0x10cc   : > { %v3954_v25 = vpop.permute.xlu0 %3953 }
0x10cd   : > { %4020 = vmatpush.bf16.msra.mxu1 %v3936_v17  ;;  %4033 = vmatpush.bf16.msrb.mxu0 %v3954_v25 }
0x10d1   : > { %4034 = vmatpush.bf16.msrb.mxu0 %v3952_v5 }
0x10d4   : > { %v3934_v34 = vpop.permute.xlu0 %3933 }
0x10d5   : > { %4021 = vmatpush.bf16.msra.mxu1 %v3934_v34  ;;  %4035 = vmatpush.bf16.msrb.mxu0 %v3950_v36 }
0x10d8   : > { %4022 = vmatmul.bf16.vlgmr.msra.gmra.mxu1 %v5450_v18  ;;  %5455 = vmatmul.msk.bf16.vlgmr.msrb.gmra.mxu0 %vm3982_vm14, %v5454_v48  ;;  %vm9349_vm14 = vcmp.lt.s32.totalorder %v6449_v13, 111 }
0x10dc   : > { %v3853_v59 = vpop.permute.xlu0 %3852 }
0x113c   : > { %v3995_v52 = vpop.f32.mrf.mxu0 }
0x113d   : > { %v3996_v54 = vadd.f32 %v3995_v52, %v3848_v14 }
0x1142   : > { %v4009_v19 = vpop.f32.mrf.mxu3 }
0x1143   : > { %v4010_v53 = vadd.f32 %v4009_v19, %v3996_v54 }
0x1144   : > { %v3997_v58 = vpop.f32.mrf.mxu0 }
0x1145   : > { %v3998_v3 = vadd.f32 %v3997_v58, %v3853_v59 }
0x114a   : > { %v4011_v62 = vpop.f32.mrf.mxu3 }
0x114b   : > { %v4012_v39 = vadd.f32 %v4011_v62, %v3998_v3 }
0x1155   : > { %v4023_v40 = vpop.f32.mrf.mxu1  ;;  %v4037_v37 = vpop.f32.mrf.mxu0 }
0x1156   : > { %v4024_v43 = vadd.f32 %v4023_v40, %v4010_v53 }
0x1158   : > { %v4038_v44 = vadd.f32 %v4037_v37, %v4024_v43 }
0x115a   : > { %v4042_v26 = vmax.f32 %v4038_v44, 0.0 }
0x115c   : > { %4044 = vrot.lane.b32.xlu1 %v4042_v26, %s9319_s8 }
0x115d   : > { %v4025_v60 = vpop.f32.mrf.mxu1  ;;  %v4039_v21 = vpop.f32.mrf.mxu0 }
0x115e   : > { %v4026_v0 = vadd.f32 %v4025_v60, %v4012_v39 }
0x1160   : > { %v4040_v38 = vadd.f32 %v4039_v21, %v4026_v0 }
0x1162   : > { %v4043_v47 = vmax.f32 %v4040_v38, 0.0 }
0x1164   : > { %4047 = vrot.lane.b32.xlu2 %v4043_v47, %s9319_s8 }
0x11be   : > { %v4048_v61 = vpop.permute.xlu2 %4047 }
0x11bf   : > { %v4049_v10 = vsel %vm9339_vm13, %v4048_v61, %v4043_v47  ;;  %vm9350_vm13 = vmmov %vm9349_vm14 }
0x11c0   : > { %4052 = vrot.lane.b32.xlu1 %v4049_v10, %s9319_s8 }
0x11ce   : > { %v4045_v50 = vpop.permute.xlu1 %4044 }
0x11cf   : > { %v4046_v17 = vsel %vm9340_vm2, %v4045_v50, %v4042_v26 }
0x11d0   : > { %4050 = vrot.lane.b32.xlu0 %v4046_v17, %s9319_s8  ;;  %s9342_s8 = smov 111  }
0x1232   : > { %v4053_v25 = vpop.permute.xlu1 %4052 }
0x1233   : > { %v4055_v5 = vsel %vm9341_vm8, %v4053_v25, %v4043_v47 }
0x1234   : > { %v4071_v51 = vmul.f32 %v4055_v5, %v7578_v6  ;;  %v4069_v29 = vmul.f32 %v4055_v5, %v7566_v2  ;;  %v4067_v48 = vmul.f32 %v4055_v5, %v7580_v8  ;;  %v8525_v58 = vmul.f32 %v4055_v5, %v7612_v42 }
0x1235   : > { %v4063_v40 = vmul.f32 %v4055_v5, %v7594_v35  ;;  %v4061_v37 = vmul.f32 %v4055_v5, %v7591_v11  ;;  %v4073_v39 = vmul.f32 %v4055_v5, %v7560_v24 }
0x1242   : > { %v4051_v12 = vpop.permute.xlu0 %4050 }
0x1243   : > { %v4054_v15 = vsel %vm9320_vm0, %v4051_v12, %v4042_v26 }
0x1244   : > { %v4070_v36 = vmul.f32 %v4054_v15, %v7578_v6  ;;  %v4068_v34 = vmul.f32 %v4054_v15, %v7566_v2  ;;  %v4066_v18 = vmul.f32 %v4054_v15, %v7580_v8  ;;  %v8522_v52 = vmul.f32 %v4054_v15, %v7612_v42 }
0x1245   : > { %v4065_v2 = vmul.f32 %v7576_v23, %v4043_v47  ;;  %v4062_v6 = vmul.f32 %v4054_v15, %v7594_v35  ;;  %v4060_v8 = vmul.f32 %v4054_v15, %v7591_v11  ;;  %v4064_v42 = vmul.f32 %v7576_v23, %v4042_v26 }
0x1246   : > { %v5924_v19 = vpack.i.bf16 %v4071_v51, %v4070_v36  ;;  %v5929_v14 = vpack.i.bf16 %v4069_v29, %v4068_v34  ;;  %v5934_v54 = vpack.i.bf16 %v4067_v48, %v4066_v18  ;;  %v4140_v53 = vpack.c.bf16 %v8525_v58, %v8522_v52  ;;  %v4149_v36 = vld [vmem:[%s9057_s16] sm:$0xff] }
0x1247   : > { %v5939_v43 = vpack.i.bf16 %v4065_v2, %v4064_v42  ;;  %v5944_v44 = vpack.i.bf16 %v4063_v40, %v4062_v6  ;;  %v5949_v59 = vpack.i.bf16 %v4061_v37, %v4060_v8  ;;  %v4072_v62 = vmul.f32 %v4054_v15, %v7560_v24 }
0x1248   : > { %5925 = vrot.lane.b32.xlu2 %v5924_v19, %s9327_s23  ;;  %5930 = vrot.lane.b32.xlu0 %v5929_v14, %s9330_s27  ;;  %v4058_v3 = vmul.f32 %v4054_v15, %v7602_v7  ;;  %v4059_v23 = vmul.f32 %v4055_v5, %v7602_v7  ;;  %s9344_s27 = smov 112   ;;  %v4240_v52 = vadd.f32 0.5, %v6465_v27 }
0x1249   : > { %5935 = vrot.lane.b32.xlu1 %v5934_v54, %s9334_s24  ;;  %v5959_v35 = vpack.i.bf16 %v4073_v39, %v4072_v62  ;;  %s9345_s24 = smov 17  }
0x124a   : > { %v5954_v26 = vpack.i.bf16 %v4059_v23, %v4058_v3  ;;  %v4242_v58 = vmul.f32 %v4240_v52, %v8209_v55 }
0x124c   : > { %v4244_v3 = vfloor.f32 %v4242_v58 }
0x1250   : > { %5940 = vrot.lane.b32.xlu2 %v5939_v43, %s9323_s3  ;;  %5945 = vrot.lane.b32.xlu0 %v5944_v44, %s9328_s19  ;;  %s9343_s19 = smov 113  }
0x1251   : > { %5950 = vrot.lane.b32.xlu1 %v5949_v59, %s9308_s4  ;;  %v4150_v59 = vld [vmem:[%s9057_s16 + $0x8] sm:$0xff] }
0x1258   : > { %5960 = vrot.lane.b32.xlu0 %v5959_v35, %s9288_s20  ;;  %5955 = vrot.lane.b32.xlu2 %v5954_v26, %s9289_s2  ;;  %v4246_v35 = vmul.f32 8.0, %v4244_v3 }
0x12a2   : > { %v5926_v11 = vpop.permute.xlu2 %5925 }
0x12a3   : > { %v5928_v60 = vunpack.i.h.bf16 %v5926_v11  ;;  %v5927_v0 = vunpack.i.l.bf16 %v5926_v11 }
0x12a5   : > { %v4147_v21 = vpack.c.bf16 %v5928_v60, %v5927_v0 }
0x12a7   : > { %4193 = vrot.lane.b32.xlu1 %v4147_v21, %s9337_s28 }
0x12aa   : > { %v5941_v38 = vpop.permute.xlu2 %5940 }
0x12ab   : > { %v5943_v47 = vunpack.i.h.bf16 %v5941_v38  ;;  %v5942_v61 = vunpack.i.l.bf16 %v5941_v38 }
0x12ad   : > { %v4144_v10 = vpack.c.bf16 %v5943_v47, %v5942_v61  ;;  %v5528_v47 = vld [vmem:[%s9056_s15 + $0x4] sm:$0xf]  ;;  %v5460_v61 = vld [vmem:[%s9056_s15 + $0x8] sm:$0xf0] }
0x12af   : > { %4187 = vrot.lane.b32.xlu1 %v4144_v10, %s9337_s28  ;;  %v4239_v10 = vadd.f32 0.5, %v6459_v22 }
0x12b2   : > { %v5956_v24 = vpop.permute.xlu2 %5955 }
0x12b3   : > { %v5958_v7 = vunpack.i.h.bf16 %v5956_v24  ;;  %v5957_v50 = vunpack.i.l.bf16 %v5956_v24 }
0x12b5   : > { %v4141_v17 = vpack.c.bf16 %v5958_v7, %v5957_v50  ;;  %v5463_v50 = vor.u32 %v5528_v47, %v5460_v61  ;;  %v4582_v47 = vld [vmem:[%s9059_s18] sm:$0xff] }
0x12b7   : > { %4181 = vrot.lane.b32.xlu1 %v4141_v17, %s9337_s28  ;;  %v5458_v17 = vld [vmem:[%s9056_s15] sm:$0xf] }
0x12ba   : > { %v5931_v25 = vpop.permute.xlu0 %5930 }
0x12bb   : > { %v5933_v5 = vunpack.i.h.bf16 %v5931_v25  ;;  %v5932_v12 = vunpack.i.l.bf16 %v5931_v25  ;;  %v5936_v15 = vpop.permute.xlu1 %5935  ;;  %v5529_v25 = vld [vmem:[%s9056_s15 + $0x4] sm:$0xf0] }
0x12bc   : > { %v5938_v51 = vunpack.i.h.bf16 %v5936_v15  ;;  %v5937_v29 = vunpack.i.l.bf16 %v5936_v15  ;;  %v5459_v22 = vor.u32 %v5529_v25, %v5458_v17 }
0x12bd   : > { %v4146_v34 = vpack.c.bf16 %v5933_v5, %v5932_v12  ;;  %v4241_v5 = vmul.f32 %v4239_v10, %v8209_v55  ;;  %v4247_v12 = vadd.f32 0.5, %v6469_v28 }
0x12be   : > { %v4145_v18 = vpack.c.bf16 %v5938_v51, %v5937_v29 }
0x12bf   : > { %4191 = vrot.lane.b32.xlu2 %v4146_v34, %s9337_s28  ;;  %4153 = vperm.xlu1 %5642, %v4149_v36   ;;  %v4243_v15 = vfloor.f32 %v4241_v5  ;;  %v4249_v51 = vmul.f32 %v4247_v12, %v8209_v55 }
0x12c0   : > { %4189 = vrot.lane.b32.xlu0 %v4145_v18, %s9337_s28 }
0x12c1   : > { %v4245_v28 = vmul.f32 8.0, %v4243_v15  ;;  %v4456_v15 = vmul.f32 %v6558_v46, %v7485_v31 }
0x12c2   : > { %v5946_v48 = vpop.permute.xlu0 %5945 }
0x12c3   : > { %v5948_v19 = vunpack.i.h.bf16 %v5946_v48  ;;  %v5947_v14 = vunpack.i.l.bf16 %v5946_v48  ;;  %v5951_v54 = vpop.permute.xlu1 %5950 }
0x12c4   : > { %v5953_v2 = vunpack.i.h.bf16 %v5951_v54  ;;  %v5952_v6 = vunpack.i.l.bf16 %v5951_v54 }
0x12c5   : > { %v4143_v8 = vpack.c.bf16 %v5948_v19, %v5947_v14  ;;  %v4251_v19 = vfloor.f32 %v4249_v51  ;;  %v9365_v51 = vld [vmem:[#allocation26_spill] sm:$0xff] }
0x12c6   : > { %v4142_v42 = vpack.c.bf16 %v5953_v2, %v5952_v6 }
0x12c7   : > { %4185 = vrot.lane.b32.xlu2 %v4143_v8, %s9337_s28  ;;  %4539 = vrot.lane.b32.xlu1 %v7485_v31, %s9342_s8  ;;  %v4253_v14 = vadd.f32 %v4251_v19, %v4245_v28 }
0x12c8   : > { %4183 = vrot.lane.b32.xlu0 %v4142_v42, %s9337_s28 }
0x12c9   : > { %vm4269_vm2 = vcmp.eq.f32.partialorder %v7046_v30, %v4253_v14  ;;  %vm4267_vm8 = vcmp.eq.f32.partialorder %v7055_v41, %v4253_v14  ;;  %vm4265_vm0 = vcmp.eq.f32.partialorder %v7079_v16, %v4253_v14 }
0x12ca   : > { %v5961_v40 = vpop.permute.xlu0 %5960  ;;  %5481 = vmatpush.msk.msrb.mxu1 %vm4269_vm2, %v9278_v45  ;;  %vm9359_vm2 = vcmask 523264  }
0x12cb   : > { %v5963_v37 = vunpack.i.h.bf16 %v5961_v40  ;;  %v5962_v43 = vunpack.i.l.bf16 %v5961_v40 }
0x12cc   : > { %5482 = vmatpush.msk.msrb.mxu1 %vm4267_vm8, %v9278_v45  ;;  %vm9360_vm8 = vmmov %vm9359_vm2 }
0x12cd   : > { %v4148_v44 = vpack.c.bf16 %v5963_v37, %v5962_v43 }
0x12ce   : > { %5483 = vmatpush.msk.msrb.mxu1 %vm4265_vm0, %v9278_v45  ;;  %vm9361_vm0 = vmmov %vm9359_vm2 }
0x12cf   : > { %4383 = vrot.lane.b32.xlu1 %v7483_v4, %s9292_s5  ;;  %4179 = vrot.lane.b32.xlu2 %v4140_v53, %s9337_s28  ;;  %v4248_v53 = vadd.f32 0.5, %v6488_v33 }
0x12d0   : > { %4195 = vrot.lane.b32.xlu0 %v4148_v44, %s9337_s28  ;;  %s6090_s28 = scalar_lea.hbm %s9440_s12, 4 }
0x12d1   : > { %v4250_v39 = vmul.f32 %v4248_v53, %v8209_v55 }
0x12d3   : > { %v4252_v26 = vfloor.f32 %v4250_v39 }
0x12d5   : > { %v4254_v11 = vadd.f32 %v4252_v26, %v4246_v35 }
0x12d7   : > { %4485 = vrot.lane.b32.xlu1 %v7483_v4, %s9343_s19  ;;  %4158 = vperm.xlu2 %5683, %v4150_v59   ;;  %vm4270_vm15 = vcmp.eq.f32.partialorder %v7046_v30, %v4254_v11  ;;  %vm4268_vm7 = vcmp.eq.f32.partialorder %v7055_v41, %v4254_v11  ;;  %vm4266_vm1 = vcmp.eq.f32.partialorder %v7079_v16, %v4254_v11 }
0x12d8   : > { %4431 = vrot.lane.b32.xlu0 %v7483_v4, %s9300_s6  ;;  %5491 = vmatpush.msk.msra.mxu0 %vm4270_vm15, %v9278_v45  ;;  %vm4264_vm11 = vcmp.eq.f32.partialorder %v7084_v20, %v4254_v11  ;;  %vm4262_vm10 = vcmp.eq.f32.partialorder %v7123_v63, %v4254_v11  ;;  %vm4260_vm9 = vcmp.eq.f32.partialorder %v7127_v57, %v4254_v11  ;;  %vm9351_vm15 = vcmask 1043456  }
0x12d9   : > { %vm4258_vm5 = vcmp.eq.f32.partialorder %v7141_v56, %v4254_v11  ;;  %vm4256_vm6 = vcmp.eq.f32.partialorder %v7158_v1, %v4254_v11 }
0x12da   : > { %5492 = vmatpush.msk.msra.mxu0 %vm4268_vm7, %v9278_v45  ;;  %vm9352_vm7 = vmmov %vm9351_vm15 }
0x12dc   : > { %5493 = vmatpush.msk.msra.mxu0 %vm4266_vm1, %v9278_v45  ;;  %vm9353_vm1 = vcmp.lt.s32.totalorder %v6449_v13, 15 }
0x12de   : > { %5494 = vmatpush.msk.msra.mxu0 %vm4264_vm11, %v9278_v45  ;;  %vm9354_vm11 = vmmov %vm9353_vm1 }
0x12df   : > { %4437 = vrot.lane.b32.xlu2 %v7485_v31, %s9300_s6 }
0x12e0   : > { %4533 = vrot.lane.b32.xlu0 %v7483_v4, %s9342_s8  ;;  %5495 = vmatpush.msk.msra.mxu0 %vm4262_vm10, %v9278_v45  ;;  %vm9355_vm10 = vcmp.lt.s32.totalorder %v6449_v13, 112 }
0x12e2   : > { %5496 = vmatpush.msk.msra.mxu0 %vm4260_vm9, %v9278_v45  ;;  %vm9356_vm9 = vmmov %vm9355_vm10 }
0x12e4   : > { %5497 = vmatpush.msk.msra.mxu0 %vm4258_vm5, %v9278_v45  ;;  %vm9357_vm5 = vcmp.lt.s32.totalorder %v6449_v13, 16 }
0x12e6   : > { %5498 = vmatpush.msk.msra.mxu0 %vm4256_vm6, %v9278_v45  ;;  %vm9358_vm6 = vmmov %vm9357_vm5 }
0x12e7   : > { %4407 = vrot.lane.b32.xlu2 %v7483_v4, %s9297_s26 }
0x12e8   : > { %4413 = vrot.lane.b32.xlu0 %v7485_v31, %s9297_s26 }
0x12ef   : > { %4515 = vrot.lane.b32.xlu2 %v7485_v31, %s9344_s27 }
0x12f0   : > { %4509 = vrot.lane.b32.xlu0 %v7483_v4, %s9344_s27 }
0x12f7   : > { %4491 = vrot.lane.b32.xlu2 %v7485_v31, %s9343_s19 }
0x12f8   : > { %4389 = vrot.lane.b32.xlu0 %v7485_v31, %s9292_s5 }
0x12ff   : > { %4359 = vrot.lane.b32.xlu2 %v7483_v4, %s9345_s24 }
0x1300   : > { %4365 = vrot.lane.b32.xlu0 %v7485_v31, %s9345_s24 }
0x1319   : > { %v4194_v62 = vpop.permute.xlu1 %4193  ;;  %v4192_v23 = vpop.permute.xlu2 %4191 }
0x131a   : > { %4209 = vmatpush.bf16.msrb.mxu2 %v4194_v62 }
0x131e   : > { %4210 = vmatpush.bf16.msrb.mxu2 %v4192_v23 }
0x1321   : > { %v4186_v60 = vpop.permute.xlu2 %4185  ;;  %v4188_v33 = vpop.permute.xlu1 %4187 }
0x1329   : > { %v4180_v0 = vpop.permute.xlu2 %4179  ;;  %v4182_v38 = vpop.permute.xlu1 %4181 }
0x1331   : > { %v8620_v24 = vpop.permute.xlu2 %4158  ;;  %v4154_v29 = vpop.permute.xlu1 %4153 }
0x1332   : > { %v4190_v27 = vpop.permute.xlu0 %4189 }
0x1333   : > { %4211 = vmatpush.bf16.msrb.mxu2 %v4190_v27 }
0x1337   : > { %4212 = vmatpush.bf16.msrb.mxu2 %v4188_v33 }
0x1339   : > { %v4438_v36 = vpop.permute.xlu2 %4437  ;;  %v4540_v54 = vpop.permute.xlu1 %4539 }
0x133a   : > { %v4184_v21 = vpop.permute.xlu0 %4183 }
0x133b   : > { %4213 = vmatpush.bf16.msrb.mxu2 %v4186_v60 }
0x133f   : > { %4214 = vmatpush.bf16.msrb.mxu2 %v4184_v21 }
0x1341   : > { %v4408_v43 = vpop.permute.xlu2 %4407  ;;  %v4384_v3 = vpop.permute.xlu1 %4383 }
0x1342   : > { %v4196_v7 = vpop.permute.xlu0 %4195 }
0x1343   : > { %4215 = vmatpush.bf16.msrb.mxu2 %v4182_v38  ;;  %4230 = vmatpush.bf16.msrb.mxu3 %v4196_v7 }
0x1346   : > { %5464 = vmatmul.msk.bf16.vlgmr.msrb.gmra.mxu3 %vm9346_vm3, %v5463_v50  ;;  %vm4263_vm3 = vcmp.eq.f32.partialorder %v7084_v20, %v4253_v14 }
0x1347   : > { %4216 = vmatpush.bf16.msrb.mxu2 %v4180_v0  ;;  %5484 = vmatpush.msk.msrb.mxu1 %vm4263_vm3, %v9278_v45 }
0x1349   : > { %v4516_v58 = vpop.permute.xlu2 %4515 }
0x134a   : > { %v4432_v34 = vpop.permute.xlu0 %4431  ;;  %4217 = vmatmul.bf16.vlgmr.msrb.gmra.mxu2 %v5459_v22  ;;  %v4455_v22 = vmul.f32 %v6576_v49, %v7483_v4 }
0x134b   : > { %v8634_v18 = vsel %vm9347_vm4, %v4432_v34, %v4438_v36  ;;  %v8638_v48 = vsel %vm9348_vm12, %v4438_v36, %v4432_v34  ;;  %vm4261_vm4 = vcmp.eq.f32.partialorder %v7123_v63, %v4253_v14  ;;  %vm4259_vm12 = vcmp.eq.f32.partialorder %v7127_v57, %v4253_v14  ;;  %v9366_v36 = vld [vmem:[#allocation27_spill] sm:$0xff] }
0x134c   : > { %5485 = vmatpush.msk.msrb.mxu1 %vm4261_vm4, %v9278_v45 }
0x134e   : > { %5486 = vmatpush.msk.msrb.mxu1 %vm4259_vm12, %v9278_v45 }
0x1351   : > { %v8731_v61 = vpop.permute.xlu2 %4491 }
0x1352   : > { %v4534_v2 = vpop.permute.xlu0 %4533 }
0x1353   : > { %v4543_v55 = vsel %vm9349_vm14, %v4534_v2, %v4540_v54  ;;  %v4546_v6 = vsel %vm9350_vm13, %v4540_v54, %v4534_v2  ;;  %vm4257_vm14 = vcmp.eq.f32.partialorder %v7141_v56, %v4253_v14  ;;  %vm4255_vm13 = vcmp.eq.f32.partialorder %v7158_v1, %v4253_v14 }
0x1354   : > { %v4551_v8 = vmul.f32 %v6827_v9, %v4543_v55  ;;  %v4552_v42 = vmul.f32 %v6830_v32, %v4546_v6  ;;  %5487 = vmatpush.msk.msrb.mxu1 %vm4257_vm14, %v9278_v45  ;;  %vm9379_vm14 = vcmp.lt.s32.totalorder %v6449_v13, 15 }
0x1356   : > { %v4580_v40 = vpack.c.bf16 %v4551_v8, %v4551_v8  ;;  %v4581_v37 = vpack.c.bf16 %v4552_v42, %v4552_v42  ;;  %5488 = vmatpush.msk.msrb.mxu1 %vm4255_vm13, %v9278_v45  ;;  %vm9380_vm13 = vmmov %vm9379_vm14 }
0x1358   : > { %v4599_v44 = vsel %vm9351_vm15, %v4580_v40, 0  ;;  %v4602_v59 = vsel %vm9352_vm7, %v4581_v37, 0  ;;  %vm9362_vm15 = vmmov %vm9361_vm0  ;;  %vm9363_vm7 = vcmp.lt.s32.totalorder %v6449_v13, 127 }
0x1359   : > { %4619 = vmatpush.bf16.msra.mxu2 %v4599_v44  ;;  %4645 = vmatpush.bf16.msrb.mxu0 %v4602_v59  ;;  %v8734_v10 = vpop.permute.xlu2 %4359 }
0x135a   : > { %v4414_v52 = vpop.permute.xlu0 %4413 }
0x135b   : > { %v8656_v30 = vsel %vm9353_vm1, %v4408_v43, %v4414_v52  ;;  %v8660_v41 = vsel %vm9354_vm11, %v4414_v52, %v4408_v43  ;;  %vm9364_vm1 = vmmov %vm9363_vm7  ;;  %vm9368_vm11 = vcmp.lt.s32.totalorder %v6449_v13, 1 }
0x1362   : > { %v4510_v16 = vpop.permute.xlu0 %4509 }
0x1363   : > { %v8664_v53 = vsel %vm9355_vm10, %v4510_v16, %v4516_v58  ;;  %v8668_v62 = vsel %vm9356_vm9, %v4516_v58, %v4510_v16  ;;  %vm9369_vm10 = vmmov %vm9368_vm11 }
0x1364   : > { %vm9370_vm9 = vmmov %vm9369_vm10 }
0x136a   : > { %v4390_v39 = vpop.permute.xlu0 %4389 }
0x136b   : > { %v8672_v23 = vsel %vm9357_vm5, %v4384_v3, %v4390_v39  ;;  %v8676_v35 = vsel %vm9358_vm6, %v4390_v39, %v4384_v3  ;;  %vm9372_vm5 = vmmov %vm9370_vm9  ;;  %vm9375_vm6 = vcmp.lt.s32.totalorder %v6449_v13, 111 }
0x136c   : > { %vm9376_vm3 = vmmov %vm9375_vm6 }
0x136d   : > { %vm9377_vm4 = vmmov %vm9376_vm3 }
0x136e   : > { %vm9378_vm12 = vmmov %vm9376_vm3 }
0x1372   : > { %v8738_v7 = vpop.permute.xlu0 %4365 }
0x13c9   : > { %v4232_v26 = vpop.f32.mrf.mxu3 }
0x13cd   : > { %v4218_v20 = vpop.f32.mrf.mxu2 }
0x13ce   : > { %v4219_v11 = vadd.f32 %v4218_v20, %v4154_v29 }
0x13d0   : > { %v4233_v60 = vadd.f32 %v4232_v26, %v4219_v11 }
0x13d1   : > { %v4234_v56 = vpop.f32.mrf.mxu3 }
0x13d2   : > { %v4237_v27 = vmax.f32 %v4233_v60, 0.0  ;;  %v9367_v60 = vld [vmem:[#allocation23_spill] sm:$0xff] }
0x13d4   : > { %5489 = vmatmul.msk.f32.vlgmr.msrb.gmra.mxu1 %vm9359_vm2, %v4237_v27  ;;  %5499 = vmatmul.msk.f32.vlgmr.msra.gmra.mxu0 %vm9360_vm8, %v4237_v27  ;;  %v4449_v27 = vmul.f32 %v9367_v60, %v8638_v48  ;;  %vm9381_vm2 = vcmp.lt.s32.totalorder %v6449_v13, 16  ;;  %vm9382_vm8 = vmmov %vm9380_vm13 }
0x13d5   : > { %v4220_v57 = vpop.f32.mrf.mxu2 }
0x13d6   : > { %v4221_v63 = vadd.f32 %v4220_v57, %v8620_v24  ;;  %v8736_v24 = vpop.permute.xlu1 %4485 }
0x13d8   : > { %v4235_v33 = vadd.f32 %v4234_v56, %v4221_v63 }
0x13da   : > { %v4238_v0 = vmax.f32 %v4235_v33, 0.0  ;;  %v9371_v33 = vld [vmem:[#allocation24_spill] sm:$0xff] }
0x13dc   : > { %5490 = vmatmul.msk.f32.gmra.mxu1 %vm9361_vm0, %v4238_v0  ;;  %5500 = vmatmul.msk.f32.gmra.mxu0 %vm9362_vm15, %v4238_v0  ;;  %v4450_v0 = vmul.f32 %v9371_v33, %v8634_v18  ;;  %v9374_v18 = vld [vmem:[#allocation22_spill] sm:$0xff]  ;;  %vm9383_vm0 = vmmov %vm9382_vm8 }
0x13dd   : > { %vm9384_vm15 = vmmov %vm9381_vm2 }
0x1451   : > { %v4326_v45 = vpop.f32.mrf.mxu1  ;;  %v4349_v1 = vpop.f32.mrf.mxu0 }
0x1452   : > { %4433 = vrot.lane.b32.xlu2 %v4349_v1, %s9300_s6  ;;  %4463 = vrot.lane.b32.xlu1 %v4349_v1, %s9289_s2  ;;  %v4451_v55 = vmul.f32 %v6576_v49, %v4326_v45 }
0x1453   : > { %4457 = vrot.lane.b32.xlu0 %v4326_v45, %s9289_s2 }
0x1459   : > { %v4329_v21 = vpop.f32.mrf.mxu1  ;;  %v4352_v38 = vpop.f32.mrf.mxu0 }
0x145a   : > { %4535 = vrot.lane.b32.xlu2 %v4349_v1, %s9342_s8  ;;  %4427 = vrot.lane.b32.xlu1 %v4326_v45, %s9300_s6  ;;  %v4453_v54 = vmul.f32 %v6576_v49, %v4329_v21  ;;  %v4454_v2 = vmul.f32 %v6558_v46, %v4352_v38 }
0x145b   : > { %4529 = vrot.lane.b32.xlu0 %v4326_v45, %s9342_s8 }
0x1462   : > { %4385 = vrot.lane.b32.xlu2 %v4349_v1, %s9292_s5  ;;  %4403 = vrot.lane.b32.xlu1 %v4326_v45, %s9297_s26 }
0x1463   : > { %4409 = vrot.lane.b32.xlu0 %v4349_v1, %s9297_s26 }
0x146a   : > { %4487 = vrot.lane.b32.xlu2 %v4349_v1, %s9343_s19  ;;  %4511 = vrot.lane.b32.xlu1 %v4349_v1, %s9344_s27 }
0x146b   : > { %4505 = vrot.lane.b32.xlu0 %v4326_v45, %s9344_s27 }
0x1472   : > { %4379 = vrot.lane.b32.xlu1 %v4326_v45, %s9292_s5  ;;  %4429 = vrot.lane.b32.xlu2 %v4329_v21, %s9300_s6 }
0x1473   : > { %4481 = vrot.lane.b32.xlu0 %v4326_v45, %s9343_s19 }
0x147a   : > { %4355 = vrot.lane.b32.xlu1 %v4326_v45, %s9345_s24  ;;  %4405 = vrot.lane.b32.xlu2 %v4329_v21, %s9297_s26 }
0x147b   : > { %4361 = vrot.lane.b32.xlu0 %v4349_v1, %s9345_s24 }
0x1482   : > { %4435 = vrot.lane.b32.xlu1 %v4352_v38, %s9300_s6  ;;  %4507 = vrot.lane.b32.xlu2 %v4329_v21, %s9344_s27 }
0x1483   : > { %4537 = vrot.lane.b32.xlu0 %v4352_v38, %s9342_s8 }
0x148a   : > { %4531 = vrot.lane.b32.xlu1 %v4329_v21, %s9342_s8  ;;  %4387 = vrot.lane.b32.xlu2 %v4352_v38, %s9292_s5 }
0x148b   : > { %4381 = vrot.lane.b32.xlu0 %v4329_v21, %s9292_s5 }
0x1492   : > { %4411 = vrot.lane.b32.xlu1 %v4352_v38, %s9297_s26  ;;  %4357 = vrot.lane.b32.xlu2 %v4329_v21, %s9345_s24 }
0x1493   : > { %4489 = vrot.lane.b32.xlu0 %v4352_v38, %s9343_s19 }
0x149a   : > { %4513 = vrot.lane.b32.xlu1 %v4352_v38, %s9344_s27  ;;  %4459 = vrot.lane.b32.xlu2 %v4329_v21, %s9289_s2 }
0x149b   : > { %4461 = vrot.lane.b32.xlu0 %v7483_v4, %s9289_s2  ;;  %v4452_v4 = vmul.f32 %v6558_v46, %v4349_v1 }
0x149d   : > { %v4567_v42 = vpack.c.bf16 %v4454_v2, %v4452_v4 }
0x14a2   : > { %4483 = vrot.lane.b32.xlu1 %v4329_v21, %s9343_s19  ;;  %4467 = vrot.lane.b32.xlu2 %v7485_v31, %s9289_s2  ;;  %v4566_v31 = vpack.c.bf16 %v4453_v54, %v4451_v55 }
0x14a3   : > { %4585 = vperm.xlu0 %5641, %v4582_v47  }
0x14aa   : > { %4363 = vrot.lane.b32.xlu1 %v4352_v38, %s9345_s24 }
0x14ac   : > { %v4434_v50 = vpop.permute.xlu2 %4433 }
0x14b2   : > { %4465 = vrot.lane.b32.xlu1 %v4352_v38, %s9289_s2 }
0x14b4   : > { %v4536_v28 = vpop.permute.xlu2 %4535 }
0x14bc   : > { %v8754_v40 = vpop.permute.xlu2 %4385 }
0x14c4   : > { %v4464_v17 = vpop.permute.xlu1 %4463  ;;  %v8756_v44 = vpop.permute.xlu2 %4487 }
0x14c5   : > { %v4458_v25 = vpop.permute.xlu0 %4457 }
0x14c6   : > { %v4469_v5 = vsel %vm9363_vm7, %v4458_v25, %v4464_v17  ;;  %v4472_v12 = vsel %vm9364_vm1, %v4464_v17, %v4458_v25  ;;  %vm9386_vm7 = vmmov %vm9381_vm2 }
0x14c7   : > { %v4475_v29 = vmul.f32 %v9365_v51, %v4469_v5  ;;  %v4476_v34 = vmul.f32 %v9366_v36, %v4472_v12  ;;  %v9373_v5 = vld [vmem:[#allocation25_spill] sm:$0xff]  ;;  %vm9388_vm1 = vmmov %vm9381_vm2 }
0x14c8   : > { %v4425_v12 = vmul.f32 %v9373_v5, %v8660_v41 }
0x14c9   : > { %v4568_v19 = vpack.c.bf16 %v4475_v29, %v4455_v22  ;;  %v4569_v14 = vpack.c.bf16 %v4476_v34, %v4456_v15 }
0x14cb   : > { %4604 = vmatpush.bf16.msra.mxu3 %v4568_v19  ;;  %4630 = vmatpush.bf16.msra.mxu1 %v4569_v14 }
0x14cc   : > { %v4428_v6 = vpop.permute.xlu1 %4427  ;;  %v4430_v3 = vpop.permute.xlu2 %4429 }
0x14cd   : > { %v4530_v8 = vpop.permute.xlu0 %4529  ;;  %v4442_v57 = vsel %vm9368_vm11, %v4434_v50, %v4428_v6  ;;  %v4439_v45 = vsel %vm9372_vm5, %v4428_v6, %v4434_v50  ;;  %v4426_v50 = vmul.f32 %v9374_v18, %v8656_v30  ;;  %vm9391_vm11 = vcmp.lt.s32.totalorder %v6449_v13, 17 }
0x14ce   : > { %v4445_v48 = vmul.f32 %v9367_v60, %v4442_v57  ;;  %v4446_v25 = vmul.f32 %v9371_v33, %v4439_v45  ;;  %v4541_v15 = vsel %vm9375_vm6, %v4530_v8, %v4536_v28  ;;  %v4544_v29 = vsel %vm9376_vm3, %v4536_v28, %v4530_v8 }
0x14cf   : > { %4605 = vmatpush.bf16.msra.mxu3 %v4566_v31  ;;  %4631 = vmatpush.bf16.msra.mxu1 %v4567_v42  ;;  %v4547_v2 = vmul.f32 %v6827_v9, %v4541_v15  ;;  %v4548_v55 = vmul.f32 %v6830_v32, %v4544_v29  ;;  %v9390_v29 = vld [vmem:[#allocation31_spill] sm:$0xff] }
0x14d0   : > { %v4562_v19 = vpack.c.bf16 %v4445_v48, %v4425_v12  ;;  %v4563_v54 = vpack.c.bf16 %v4446_v25, %v4426_v50  ;;  %v9389_v50 = vld [vmem:[#allocation30_spill] sm:$0xff] }
0x14d1   : > { %v4527_v15 = vmul.f32 %v9389_v50, %v8664_v53 }
0x14d4   : > { %v4404_v37 = vpop.permute.xlu1 %4403  ;;  %v4406_v20 = vpop.permute.xlu2 %4405 }
0x14d5   : > { %v4410_v43 = vpop.permute.xlu0 %4409 }
0x14d6   : > { %v4418_v8 = vsel %vm9379_vm14, %v4410_v43, %v4404_v37  ;;  %v4415_v42 = vsel %vm9380_vm13, %v4404_v37, %v4410_v43 }
0x14dc   : > { %v8758_v59 = vpop.permute.xlu1 %4511  ;;  %v4508_v22 = vpop.permute.xlu2 %4507 }
0x14dd   : > { %v8760_v52 = vpop.permute.xlu0 %4505 }
0x14e4   : > { %v4380_v58 = vpop.permute.xlu1 %4379 }
0x14e5   : > { %v8762_v16 = vpop.permute.xlu0 %4481  ;;  %v4391_v12 = vsel %vm9388_vm1, %v4380_v58, %v8754_v40 }
0x14ec   : > { %v8764_v39 = vpop.permute.xlu1 %4355 }
0x14ed   : > { %v8766_v26 = vpop.permute.xlu0 %4361 }
0x14f4   : > { %v4436_v11 = vpop.permute.xlu1 %4435 }
0x14f5   : > { %v4440_v63 = vsel %vm9369_vm10, %v4430_v3, %v4436_v11  ;;  %v4443_v56 = vsel %vm9370_vm9, %v4436_v11, %v4430_v3  ;;  %v4538_v38 = vpop.permute.xlu0 %4537  ;;  %v4388_v3 = vpop.permute.xlu2 %4387  ;;  %vm9392_vm10 = vmmov %vm9391_vm11  ;;  %vm9393_vm9 = vcmp.lt.s32.totalorder %v6449_v13, 112 }
0x14f6   : > { %v4447_v1 = vmul.f32 %v9367_v60, %v4443_v56  ;;  %v4448_v21 = vmul.f32 %v9371_v33, %v4440_v63  ;;  %v4517_v53 = vsel %vm9393_vm9, %v8760_v52, %v8758_v59  ;;  %vm9394_vm5 = vmmov %vm9393_vm9 }
0x14f7   : > { %vm9395_vm6 = vmmov %vm9394_vm5 }
0x14f8   : > { %v4564_v47 = vpack.c.bf16 %v4449_v27, %v4447_v1  ;;  %v4565_v17 = vpack.c.bf16 %v4450_v0, %v4448_v21  ;;  %v4421_v27 = vmul.f32 %v9373_v5, %v4418_v8  ;;  %v4422_v0 = vmul.f32 %v9374_v18, %v4415_v42  ;;  %v9385_v1 = vld [vmem:[#allocation18_spill] sm:$0xff]  ;;  %vm9397_vm3 = vmmov %vm9394_vm5  ;;  %v9400_v8 = vld [vmem:[#allocation21_spill] sm:$0xff] }
0x14fa   : > { %4606 = vmatpush.bf16.msra.mxu3 %v4564_v47  ;;  %4632 = vmatpush.bf16.msra.mxu1 %v4565_v17  ;;  %v4394_v47 = vsel %vm9386_vm7, %v8754_v40, %v4380_v58  ;;  %v9387_v17 = vld [vmem:[#allocation19_spill] sm:$0xff]  ;;  %v4369_v40 = vsel %vm9392_vm10, %v8734_v10, %v8738_v7 }
0x14fc   : > { %v4532_v34 = vpop.permute.xlu1 %4531 }
0x14fd   : > { %v4542_v14 = vsel %vm9377_vm4, %v4532_v34, %v4538_v38  ;;  %v4545_v41 = vsel %vm9378_vm12, %v4538_v38, %v4532_v34  ;;  %v4382_v31 = vpop.permute.xlu0 %4381  ;;  %v4528_v34 = vmul.f32 %v9390_v29, %v8668_v62  ;;  %v4397_v62 = vmul.f32 %v9385_v1, %v4394_v47 }
0x14fe   : > { %v4549_v30 = vmul.f32 %v6827_v9, %v4542_v14  ;;  %v4550_v4 = vmul.f32 %v6830_v32, %v4545_v41  ;;  %4607 = vmatpush.bf16.msra.mxu3 %v4562_v19  ;;  %4633 = vmatpush.bf16.msra.mxu1 %v4563_v54  ;;  %v4395_v57 = vsel %vm9381_vm2, %v4388_v3, %v4382_v31  ;;  %vm9398_vm4 = vcmp.lt.s32.totalorder %v6449_v13, 113 }
0x14ff   : > { %v4392_v45 = vsel %vm9384_vm15, %v4382_v31, %v4388_v3  ;;  %v4399_v21 = vmul.f32 %v9385_v1, %v4395_v57  ;;  %v4402_v19 = vmul.f32 %v9387_v17, %v8672_v23  ;;  %v4398_v23 = vmul.f32 %v9387_v17, %v4391_v12  ;;  %vm9399_vm12 = vmmov %vm9398_vm4  ;;  %v9401_v57 = vld [vmem:[#allocation28_spill] sm:$0xff] }
0x1500   : > { %v4578_v28 = vpack.c.bf16 %v4549_v30, %v4547_v2  ;;  %v4579_v6 = vpack.c.bf16 %v4550_v4, %v4548_v55  ;;  %v4400_v25 = vmul.f32 %v9387_v17, %v4392_v45  ;;  %v9396_v55 = vld [vmem:[#allocation20_spill] sm:$0xff]  ;;  %v4358_v30 = vpop.permute.xlu2 %4357  ;;  %v4378_v31 = vmul.f32 %v9400_v8, %v4369_v40  ;;  %vm9403_vm14 = vmmov %vm9398_vm4 }
0x1501   : > { %vm9404_vm13 = vmmov %vm9398_vm4 }
0x1502   : > { %4620 = vmatpush.bf16.msra.mxu2 %v4578_v28  ;;  %4646 = vmatpush.bf16.msrb.mxu0 %v4579_v6  ;;  %v4559_v2 = vpack.c.bf16 %v4402_v19, %v4400_v25  ;;  %v4495_v6 = vsel %vm9398_vm4, %v8736_v24, %v8731_v61  ;;  %vm9405_vm2 = vmmov %vm9398_vm4 }
0x1504   : > { %v4412_v11 = vpop.permute.xlu1 %4411 }
0x1505   : > { %v4416_v63 = vsel %vm9382_vm8, %v4406_v20, %v4412_v11  ;;  %v4419_v56 = vsel %vm9383_vm0, %v4412_v11, %v4406_v20  ;;  %v4401_v20 = vmul.f32 %v9385_v1, %v8676_v35  ;;  %v4372_v35 = vsel %vm9391_vm11, %v8738_v7, %v8734_v10  ;;  %v4490_v45 = vpop.permute.xlu0 %4489  ;;  %vm9406_vm8 = vmmov %vm9405_vm2 }
0x1506   : > { %v4423_v37 = vmul.f32 %v9373_v5, %v4419_v56  ;;  %v4424_v43 = vmul.f32 %v9374_v18, %v4416_v63  ;;  %v4377_v10 = vmul.f32 %v9396_v55, %v4372_v35  ;;  %v4520_v7 = vsel %vm9397_vm3, %v8758_v59, %v8760_v52  ;;  %v9402_v56 = vld [vmem:[#allocation29_spill] sm:$0xff]  ;;  %vm9407_vm0 = vmmov %vm9392_vm10 }
0x1507   : > { %v4558_v14 = vpack.c.bf16 %v4401_v20, %v4399_v21  ;;  %v4523_v59 = vmul.f32 %v9389_v50, %v4517_v53  ;;  %v4524_v11 = vmul.f32 %v9390_v29, %v4520_v7  ;;  %v4503_v63 = vmul.f32 %v9401_v57, %v4495_v6  ;;  %vm9408_vm15 = vmmov %vm9407_vm0 }
0x1508   : > { %v4560_v48 = vpack.c.bf16 %v4423_v37, %v4421_v27  ;;  %v4561_v38 = vpack.c.bf16 %v4424_v43, %v4422_v0  ;;  %v4556_v52 = vpack.c.bf16 %v4397_v62, %v4377_v10  ;;  %v4557_v27 = vpack.c.bf16 %v4398_v23, %v4378_v31  ;;  %vm9409_vm7 = vmmov %vm9407_vm0 }
0x1509   : > { %v4574_v43 = vpack.c.bf16 %v4523_v59, %v4503_v63  ;;  %v4367_v19 = vsel %vm9407_vm0, %v8764_v39, %v8766_v26  ;;  %v4370_v35 = vsel %vm9408_vm15, %v8766_v26, %v8764_v39  ;;  %vm9410_vm1 = vmmov %vm9407_vm0  ;;  %vm9411_vm11 = vcmp.lt.s32.totalorder %v6449_v13, 127 }
0x150a   : > { %4608 = vmatpush.bf16.msra.mxu3 %v4560_v48  ;;  %4634 = vmatpush.bf16.msra.mxu1 %v4561_v38  ;;  %v4374_v23 = vmul.f32 %v9400_v8, %v4367_v19  ;;  %vm9412_vm10 = vmmov %vm9411_vm11  ;;  %vm9416_vm3 = vcmp.lt.s32.totalorder %v6449_v13, 111 }
0x150b   : > { %vm9413_vm9 = vmmov %vm9412_vm10 }
0x150c   : > { %v4514_v58 = vpop.permute.xlu1 %4513  ;;  %vm9417_vm4 = vmmov %vm9416_vm3 }
0x150d   : > { %v4518_v41 = vsel %vm9394_vm5, %v4508_v22, %v4514_v58  ;;  %v4521_v54 = vsel %vm9395_vm6, %v4514_v58, %v4508_v22  ;;  %v4498_v22 = vsel %vm9399_vm12, %v8731_v61, %v8736_v24  ;;  %v4493_v61 = vsel %vm9403_vm14, %v8762_v16, %v8756_v44  ;;  %vm9414_vm5 = vmmov %vm9413_vm9 }
0x150e   : > { %v4525_v4 = vmul.f32 %v9389_v50, %v4518_v41  ;;  %v4526_v28 = vmul.f32 %v9390_v29, %v4521_v54  ;;  %4609 = vmatpush.bf16.msra.mxu3 %v4558_v14  ;;  %4635 = vmatpush.bf16.msra.mxu1 %v4559_v2  ;;  %v4504_v0 = vmul.f32 %v9402_v56, %v4498_v22  ;;  %v4462_v2 = vpop.permute.xlu0 %4461  ;;  %vm4594_vm6 = vcmask 719872   ;;  %vm9418_vm12 = vmmov %vm9405_vm2 }
0x150f   : > { %v4496_v24 = vsel %vm9404_vm13, %v8756_v44, %v8762_v16  ;;  %v4499_v47 = vmul.f32 %v9401_v57, %v4493_v61  ;;  %v4460_v16 = vpop.permute.xlu2 %4459  ;;  %v4373_v14 = vmul.f32 %v9396_v55, %v4370_v35  ;;  %vm9419_vm14 = vmmov %vm9405_vm2  ;;  %vm9420_vm13 = vcmp.lt.s32.totalorder %v6449_v13, 112 }
0x1510   : > { %v4576_v42 = vpack.c.bf16 %v4527_v15, %v4525_v4  ;;  %v4577_v3 = vpack.c.bf16 %v4528_v34, %v4526_v28  ;;  %v4575_v38 = vpack.c.bf16 %v4524_v11, %v4504_v0  ;;  %v4500_v25 = vmul.f32 %v9402_v56, %v4496_v24  ;;  %v4553_v34 = vld [vmem:[%s9058_s17] sm:$0xff]  ;;  %vm9424_vm15 = vmmov %vm9414_vm5 }
0x1511   : > { %v4589_v58 = vunpack.c.l.b16 %v4553_v34  ;;  %v4590_v31 = vunpack.c.h.b16 %v4553_v34 }
0x1512   : > { %4610 = vmatpush.bf16.msra.mxu3 %v4556_v52  ;;  %4621 = vmatpush.bf16.msra.mxu2 %v4576_v42 }
0x1513   : > { %4636 = vmatpush.bf16.msra.mxu1 %v4557_v27  ;;  %4647 = vmatpush.bf16.msrb.mxu0 %v4577_v3  ;;  %v4591_v26 = vpack.c.b16 %v4589_v58, %v4589_v58  ;;  %v4592_v63 = vpack.c.b16 %v4590_v31, %v4590_v31 }
0x1514   : > { %v4484_v37 = vpop.permute.xlu1 %4483 }
0x1515   : > { %v4494_v21 = vsel %vm9405_vm2, %v4484_v37, %v4490_v45  ;;  %v4497_v48 = vsel %vm9406_vm8, %v4490_v45, %v4484_v37  ;;  %vm9421_vm2 = vmmov %vm9420_vm13  ;;  %vm9422_vm8 = vcmask 1043456  }
0x1516   : > { %v4501_v20 = vmul.f32 %v9401_v57, %v4494_v21  ;;  %v4502_v44 = vmul.f32 %v9402_v56, %v4497_v48  ;;  %4622 = vmatpush.bf16.msra.mxu2 %v4574_v43  ;;  %v4586_v61 = vpop.permute.xlu0 %4585  ;;  %vm9423_vm0 = vmmov %vm9422_vm8 }
0x1517   : > { %4648 = vmatpush.bf16.msrb.mxu0 %v4575_v38  ;;  %v4468_v7 = vpop.permute.xlu2 %4467 }
0x1518   : > { %v4572_v12 = vpack.c.bf16 %v4501_v20, %v4499_v47  ;;  %v4573_v15 = vpack.c.bf16 %v4502_v44, %v4500_v25  ;;  %v4471_v4 = vsel %vm9411_vm11, %v4462_v2, %v4468_v7 }
0x1519   : > { %v4479_v59 = vmul.f32 %v9365_v51, %v4471_v4 }
0x151a   : > { %4623 = vmatpush.bf16.msra.mxu2 %v4572_v12 }
0x151b   : > { %4649 = vmatpush.bf16.msrb.mxu0 %v4573_v15  ;;  %v4781_v15 = vld [vmem:[#allocation2] sm:$0x1] }
0x151c   : > { %v4364_v40 = vpop.permute.xlu1 %4363 }
0x151d   : > { %v4368_v53 = vsel %vm9409_vm7, %v4358_v30, %v4364_v40  ;;  %v4371_v62 = vsel %vm9410_vm1, %v4364_v40, %v4358_v30  ;;  %v4474_v30 = vsel %vm9412_vm10, %v4468_v7, %v4462_v2  ;;  %vm9425_vm7 = vmmov %vm9414_vm5  ;;  %vm9426_vm1 = vcmp.lt.s32.totalorder %v6449_v13, 15 }
0x151e   : > { %v4375_v41 = vmul.f32 %v9396_v55, %v4371_v62  ;;  %v4376_v54 = vmul.f32 %v9400_v8, %v4368_v53  ;;  %v4480_v52 = vmul.f32 %v9366_v36, %v4474_v30  ;;  %vm9427_vm11 = vmmov %vm9426_vm1  ;;  %vm9428_vm10 = vcmp.lt.s32.totalorder %v6449_v13, 1 }
0x1520   : > { %v4554_v10 = vpack.c.bf16 %v4375_v41, %v4373_v14  ;;  %v4555_v39 = vpack.c.bf16 %v4376_v54, %v4374_v23 }
0x1522   : > { %4611 = vmatpush.bf16.msra.mxu3 %v4554_v10  ;;  %4637 = vmatpush.bf16.msra.mxu1 %v4555_v39 }
0x1524   : > { %v4466_v28 = vpop.permute.xlu1 %4465 }
0x1525   : > { %v4470_v6 = vsel %vm9413_vm9, %v4460_v16, %v4466_v28  ;;  %v4473_v22 = vsel %vm9414_vm5, %v4466_v28, %v4460_v16  ;;  %4612 = vmatmul.bf16.vlgmr.msra.gmra.mxu3 %v4591_v26  ;;  %4638 = vmatmul.bf16.vlgmr.msra.gmra.mxu1 %v4591_v26  ;;  %vm9429_vm9 = vmmov %vm9428_vm10  ;;  %vm9430_vm5 = vcmp.lt.s32.totalorder %v6449_v13, 17 }
0x1526   : > { %v4477_v42 = vmul.f32 %v9365_v51, %v4470_v6  ;;  %v4478_v3 = vmul.f32 %v9366_v36, %v4473_v22 }
0x1528   : > { %v4570_v11 = vpack.c.bf16 %v4479_v59, %v4477_v42  ;;  %v4571_v27 = vpack.c.bf16 %v4480_v52, %v4478_v3 }
0x152a   : > { %4624 = vmatpush.bf16.msra.mxu2 %v4570_v11  ;;  %4650 = vmatpush.bf16.msrb.mxu0 %v4571_v27 }
0x152d   : > { %5501 = vmatmul.msk.bf16.vlgmr.msra.gmra.mxu2 %vm4594_vm6, %v4592_v63  ;;  %5502 = vmatmul.msk.bf16.vlgmr.msrb.gmra.mxu0 %vm4594_vm6, %v4592_v63  ;;  %vm9431_vm6 = vmmov %vm9430_vm5 }
0x15a2   : > { %v4639_v0 = vpop.f32.mrf.mxu1 }
0x15a3   : > { %v4640_v45 = vadd.f32 %v4639_v0, %v4586_v61 }
0x15a8   : > { %v4613_v24 = vpop.f32.mrf.mxu3 }
0x15a9   : > { %v4614_v20 = vadd.f32 %v4613_v24, %v4586_v61 }
0x15aa   : > { %v4652_v37 = vpop.f32.mrf.mxu0  ;;  %v4641_v43 = vpop.f32.mrf.mxu1 }
0x15ab   : > { %v4653_v21 = vadd.f32 %v4652_v37, %v4640_v45 }
0x15ad   : > { %v4657_v48 = vmax.f32 %v4653_v21, 0.0 }
0x15af   : > { %4710 = vrot.lane.b32.xlu0 %v4657_v48, %s9344_s27  ;;  %4702 = vrot.lane.b32.xlu1 %v4657_v48, %s9343_s19  ;;  %v4691_v27 = vmul.f32 %v6558_v46, %v4657_v48 }
0x15b0   : > { %4718 = vrot.lane.b32.xlu2 %v4657_v48, %s9342_s8  ;;  %v4626_v38 = vpop.f32.mrf.mxu2  ;;  %v4615_v47 = vpop.f32.mrf.mxu3 }
0x15b1   : > { %v4627_v16 = vadd.f32 %v4626_v38, %v4614_v20 }
0x15b2   : > { %v4654_v25 = vpop.f32.mrf.mxu0 }
0x15b3   : > { %v4656_v12 = vmax.f32 %v4627_v16, 0.0 }
0x15b5   : > { %v4690_v11 = vmul.f32 %v6576_v49, %v4656_v12 }
0x15b7   : > { %4684 = vrot.lane.b32.xlu0 %v4657_v48, %s9300_s6  ;;  %4676 = vrot.lane.b32.xlu1 %v4657_v48, %s9297_s26 }
0x15b8   : > { %4694 = vrot.lane.b32.xlu2 %v4657_v48, %s9289_s2  ;;  %v4628_v44 = vpop.f32.mrf.mxu2 }
0x15bf   : > { %4700 = vrot.lane.b32.xlu0 %v4656_v12, %s9343_s19  ;;  %4716 = vrot.lane.b32.xlu1 %v4656_v12, %s9342_s8  ;;  %s9415_s19 = sld [smem:[#allocation47_spill]] }
0x15c0   : > { %4708 = vrot.lane.b32.xlu2 %v4656_v12, %s9344_s27  ;;  %s9439_s27 = sld [smem:[#allocation48_spill]] }
0x15c5   : > { %v4735_v34 = vld [vmem:[%s9415_s19] sm:$0xff] }
0x15c7   : > { %4674 = vrot.lane.b32.xlu0 %v4656_v12, %s9297_s26  ;;  %4692 = vrot.lane.b32.xlu1 %v4656_v12, %s9289_s2  ;;  %s9434_s26 = sld [smem:[#allocation46_spill]] }
0x15c8   : > { %4682 = vrot.lane.b32.xlu2 %v4656_v12, %s9300_s6 }
0x15cf   : > { %4666 = vrot.lane.b32.xlu0 %v4656_v12, %s9292_s5  ;;  %4658 = vrot.lane.b32.xlu1 %v4656_v12, %s9345_s24 }
0x15d0   : > { %4660 = vrot.lane.b32.xlu2 %v4657_v48, %s9345_s24  ;;  %s5508_s24 = sshll.u32 %s6332_s22, 1  ;;  %s9443_s22 = sshll.u32 %s6407_s29, 1 }
0x15d1   : > { %s4883_s14 = scalar_lea.hbm %s9440_s12, %s5508_s24  ;;  %s758_s9 = scalar_lea.vmem [#allocation9], %s9443_s22 }
0x15d2   : > { %s4885_s7 = sshll.u32 %s758_s9, 4  ;;  %s4887_s21 = sshll.u32 %s4883_s14, 4  ;;  %s4886_s7 = int_to_ptr.vmem [resolvable:$true] %s4885_s7  ;;  %s4888_s21 = int_to_ptr.hbm [resolvable:$true] %s4887_s21 }
0x15d3   : > { %s6084_s20 = sshra.s32 %s4888_s21, 4  ;;  %s6085_s20 = int_to_ptr.hbm [resolvable:$true] %s6084_s20 }
0x15d4   : > { %s6086_s4 = scalar_lea.hbm %s6085_s20, 2  ;;  %p6091_p9 = scmp.lt.s32.totalorder %s6085_s20, %s9440_s12 }
0x15d5   : > { %p6087_p1 = scmp.ne.s32.totalorder %s6085_s20, %s6086_s4  ;;  %p6092_p2 = scmp.lt.s32.totalorder %s6090_s28, %s6086_s4 }
0x15d7   : > { %4784 = vperm.xlu0 %5641, %v4781_v15   ;;  %4668 = vrot.lane.b32.xlu1 %v4657_v48, %s9292_s5  ;;  %p6088_p4 = pnand %p6087_p1, %p6377_p3  ;;  %p6093_p10 = por %p6092_p2, %p6091_p9 }
0x15d8   : > { %4738 = vperm.xlu2 %5683, %v4735_v34  }
0x15d9   : > { %p6089_p8 = pneg %p6088_p4 }
0x15db   : > { %p6094_p11 = pnand %p6093_p10, %p6089_p8 }
0x160a   : > { %v4719_v19 = vpop.permute.xlu2 %4718 }
0x1612   : > { %v4695_v53 = vpop.permute.xlu2 %4694 }
0x161a   : > { %v4709_v41 = vpop.permute.xlu2 %4708 }
0x1621   : > { %v4711_v35 = vpop.permute.xlu0 %4710  ;;  %v4703_v40 = vpop.permute.xlu1 %4702 }
0x1622   : > { %v4712_v4 = vsel %vm9420_vm13, %v4709_v41, %v4711_v35  ;;  %v4713_v30 = vsel %vm9421_vm2, %v4711_v35, %v4709_v41  ;;  %v4683_v24 = vpop.permute.xlu2 %4682  ;;  %vm9437_vm13 = vmmov %vm9423_vm0 }
0x1623   : > { %vm9438_vm2 = vmmov %vm9423_vm0 }
0x1629   : > { %v4685_v62 = vpop.permute.xlu0 %4684  ;;  %v4677_v58 = vpop.permute.xlu1 %4676 }
0x162a   : > { %v4686_v46 = vsel %vm9428_vm10, %v4683_v24, %v4685_v62  ;;  %v4687_v45 = vsel %vm9429_vm9, %v4685_v62, %v4683_v24  ;;  %v4661_v20 = vpop.permute.xlu2 %4660 }
0x162b   : > { %v4688_v38 = vmul.f32 %v9367_v60, %v4687_v45 }
0x1631   : > { %v4701_v14 = vpop.permute.xlu0 %4700  ;;  %v4717_v23 = vpop.permute.xlu1 %4716 }
0x1632   : > { %v4720_v54 = vsel %vm9416_vm3, %v4717_v23, %v4719_v19  ;;  %v4721_v2 = vsel %vm9417_vm4, %v4719_v19, %v4717_v23  ;;  %v4704_v10 = vsel %vm9418_vm12, %v4701_v14, %v4703_v40  ;;  %v4705_v39 = vsel %vm9419_vm14, %v4703_v40, %v4701_v14 }
0x1633   : > { %v4722_v26 = vmul.f32 %v6827_v9, %v4720_v54  ;;  %v4723_v7 = vmul.f32 %v6830_v32, %v4721_v2  ;;  %v4706_v22 = vmul.f32 %v9401_v57, %v4704_v10  ;;  %v4707_v31 = vmul.f32 %v9402_v56, %v4705_v39  ;;  %v4778_v39 = vld [vmem:[%s9439_s27] sm:$0x1] }
0x1634   : > { %v4714_v9 = vmul.f32 %v9389_v50, %v4712_v4  ;;  %v4715_v32 = vmul.f32 %v9390_v29, %v4713_v30  ;;  %vm9432_vm3 = vcmp.lt.s32.totalorder %v6449_v13, 16  ;;  %vm9435_vm12 = vcmask 588800   ;;  %v4739_v13 = vpop.permute.xlu2 %4738 }
0x1635   : > { %v4733_v28 = vpack.c.bf16 %v4722_v26, %v4722_v26  ;;  %v4734_v6 = vpack.c.bf16 %v4723_v7, %v4723_v7  ;;  %vm9433_vm4 = vmmov %vm9432_vm3 }
0x1636   : > { %v4731_v63 = vpack.c.bf16 %v4714_v9, %v4706_v22  ;;  %v4732_v0 = vpack.c.bf16 %v4715_v32, %v4707_v31  ;;  %vm9436_vm14 = vmmov %vm9435_vm12 }
0x1637   : > { %v4745_v59 = vsel %vm9422_vm8, %v4733_v28, 0  ;;  %v4748_v52 = vsel %vm9423_vm0, %v4734_v6, 0  ;;  %vm4788_vm8 = vcmask 64512  }
0x1638   : > { %4753 = vmatpush.bf16.msrb.mxu2 %v4745_v59  ;;  %4766 = vmatpush.bf16.msrb.mxu3 %v4748_v52 }
0x1639   : > { %v4675_v42 = vpop.permute.xlu0 %4674  ;;  %v4693_v3 = vpop.permute.xlu1 %4692 }
0x163a   : > { %v4696_v57 = vsel %vm9424_vm15, %v4693_v3, %v4695_v53  ;;  %v4697_v56 = vsel %vm9425_vm7, %v4695_v53, %v4693_v3  ;;  %v4678_v50 = vsel %vm9426_vm1, %v4675_v42, %v4677_v58  ;;  %v4679_v29 = vsel %vm9427_vm11, %v4677_v58, %v4675_v42  ;;  %v4724_v53 = vld [vmem:[%s9434_s26] sm:$0xf] }
0x163b   : > { %v4698_v61 = vmul.f32 %v9365_v51, %v4696_v57  ;;  %v4699_v49 = vmul.f32 %v9366_v36, %v4697_v56  ;;  %v4680_v21 = vmul.f32 %v9373_v5, %v4679_v29  ;;  %v4681_v48 = vmul.f32 %v9374_v18, %v4678_v50 }
0x163c   : > { %4754 = vmatpush.bf16.msrb.mxu2 %v4731_v63  ;;  %4767 = vmatpush.bf16.msrb.mxu3 %v4732_v0  ;;  %v4689_v51 = vmul.f32 %v9371_v33, %v4686_v46 }
0x163d   : > { %v4729_v37 = vpack.c.bf16 %v4698_v61, %v4690_v11  ;;  %v4730_v43 = vpack.c.bf16 %v4699_v49, %v4691_v27  ;;  %v4727_v47 = vpack.c.bf16 %v4688_v38, %v4680_v21 }
0x163e   : > { %v4728_v25 = vpack.c.bf16 %v4689_v51, %v4681_v48 }
0x1640   : > { %4755 = vmatpush.bf16.msrb.mxu2 %v4729_v37  ;;  %4768 = vmatpush.bf16.msrb.mxu3 %v4730_v43 }
0x1641   : > { %v4659_v36 = vpop.permute.xlu1 %4658  ;;  %v4667_v16 = vpop.permute.xlu0 %4666 }
0x1642   : > { %v4662_v44 = vsel %vm9430_vm5, %v4659_v36, %v4661_v20  ;;  %v4663_v5 = vsel %vm9431_vm6, %v4661_v20, %v4659_v36 }
0x1643   : > { %v4664_v12 = vmul.f32 %v9396_v55, %v4663_v5  ;;  %v4665_v15 = vmul.f32 %v9400_v8, %v4662_v44  ;;  %v9444_v44 = vlaneseq }
0x1644   : > { %4756 = vmatpush.bf16.msrb.mxu2 %v4727_v47  ;;  %4769 = vmatpush.bf16.msrb.mxu3 %v4728_v25 }
0x1645   : > { %vm4869_vm6 = vcmp.lt.s32.totalorder %v9444_v44, 256 }
0x1649   : > { %v4669_v18 = vpop.permute.xlu1 %4668  ;;  %v4785_v26 = vpop.permute.xlu0 %4784 }
0x164a   : > { %v4670_v60 = vsel %vm9432_vm3, %v4667_v16, %v4669_v18  ;;  %v4671_v33 = vsel %vm9433_vm4, %v4669_v18, %v4667_v16  ;;  %v4787_v7 = vperm.slane %v4785_v26, 0  ;;  %vm9445_vm3 = vcmask 1040384  }
0x164b   : > { %v4672_v34 = vmul.f32 %v9385_v1, %v4671_v33  ;;  %v4673_v19 = vmul.f32 %v9387_v17, %v4670_v60 }
0x164d   : > { %v4725_v35 = vpack.c.bf16 %v4672_v34, %v4664_v12  ;;  %v4726_v40 = vpack.c.bf16 %v4673_v19, %v4665_v15 }
0x164f   : > { %4757 = vmatpush.bf16.msrb.mxu2 %v4725_v35  ;;  %4770 = vmatpush.bf16.msrb.mxu3 %v4726_v40 }
0x1652   : > { %5503 = vmatmul.msk.bf16.vlgmr.msrb.gmra.mxu2 %vm9435_vm12, %v4724_v53  ;;  %5504 = vmatmul.msk.bf16.vlgmr.msrb.gmra.mxu3 %vm9436_vm14, %v4724_v53 }
0x16d5   : > { %v4759_v55 = vpop.f32.mrf.mxu2  ;;  %v4772_v62 = vpop.f32.mrf.mxu3 }
0x16d6   : > { %v4760_v8 = vadd.f32 %v4759_v55, %v4739_v13  ;;  %v4773_v58 = vadd.f32 %v4772_v62, %v4739_v13 }
0x16d8   : > { %v4776_v1 = vmax.f32 %v4760_v8, 0.0  ;;  %v4777_v14 = vmax.f32 %v4773_v58, 0.0 }
0x16da   : > { %v4779_v17 = vpack.c.bf16 %v4776_v1, %v4776_v1  ;;  %v4780_v23 = vpack.c.bf16 %v4777_v14, %v4777_v14 }
0x16dc   : > { %v4793_v41 = vsel %vm9437_vm13, %v4779_v17, 0  ;;  %v4796_v54 = vsel %vm9438_vm2, %v4780_v23, 0 }
0x16dd   : > { %v4761_v2 = vpop.f32.mrf.mxu2  ;;  %v4774_v10 = vpop.f32.mrf.mxu3  ;;  %4805 = vmatpush.bf16.msra.mxu0 %v4793_v41  ;;  %4818 = vmatpush.bf16.msrb.mxu1 %v4796_v54 }
0x16e0   : > { %5505 = vmatmul.msk.bf16.vlgmr.msra.gmra.mxu0 %vm4788_vm8, %v4778_v39  ;;  %5506 = vmatmul.msk.bf16.vlgmr.msrb.gmra.mxu1 %vm4788_vm8, %v4778_v39 }
0x175d   : > { %v4807_v4 = vpop.f32.mrf.mxu0  ;;  %v4820_v30 = vpop.f32.mrf.mxu1 }
0x175e   : > { %v4808_v28 = vadd.f32 %v4807_v4, %v4787_v7  ;;  %v4821_v6 = vadd.f32 %v4820_v30, %v4787_v7 }
0x1760   : > { %v4824_v22 = vsub.f32 0.0, %v4808_v28  ;;  %v4825_v31 = vsub.f32 0.0, %v4821_v6 }
0x1762   : > { %v4826_v59 = vmul.f32 1.442695, %v4824_v22  ;;  %v4828_v52 = vmul.f32 1.442695, %v4825_v31 }
0x1764   : > { %5972 = vpow2.f32 %v4826_v59 }
0x1765   : > { %5974 = vpow2.f32 %v4828_v52  ;;  %v4822_v9 = vpop.f32.mrf.mxu1  ;;  %v4809_v32 = vpop.f32.mrf.mxu0 }
0x176a   : > { %v5973_v42 = vpop.eup %5972 }
0x176b   : > { %v5975_v3 = vpop.eup %5974  ;;  %v4830_v11 = vadd.f32 1.0, %v5973_v42 }
0x176c   : > { %v4831_v27 = vadd.f32 1.0, %v5975_v3 }
0x176d   : > { %5976 = vrcp.f32 %v4830_v11  ;;  %vm4837_vm7 = vweird.f32 %v4830_v11  ;;  %v4843_v45 = vand.u32 2147483648, %v4830_v11  ;;  %v4841_v48 = vand.u32 2147483647, %v4830_v11 }
0x176e   : > { %5978 = vrcp.f32 %v4831_v27  ;;  %v4858_v49 = vand.u32 2147483648, %v4831_v27  ;;  %v4856_v46 = vand.u32 2147483647, %v4831_v27  ;;  %vm4852_vm1 = vweird.f32 %v4831_v27 }
0x176f   : > { %v4844_v47 = vor.u32 1.1754944e-38, %v4843_v45  ;;  %vm4842_vm5 = vcmp.eq.f32.partialorder %v4841_v48, 8.507059e+37 }
0x1770   : > { %v4859_v38 = vor.u32 1.1754944e-38, %v4858_v49  ;;  %vm4857_vm9 = vcmp.eq.f32.partialorder %v4856_v46, 8.507059e+37 }
0x1773   : > { %v5977_v57 = vpop.eup %5976 }
0x1774   : > { %v5979_v56 = vpop.eup %5978  ;;  %v4833_v63 = vmul.f32 %v5977_v57, %v4830_v11  ;;  %vm4838_vm0 = vweird.f32 %v5977_v57 }
0x1775   : > { %v4848_v0 = vmul.f32 %v5979_v56, %v4831_v27  ;;  %vm4853_vm15 = vweird.f32 %v5979_v56  ;;  %vm9002_vm11 = vmor %vm4837_vm7, %vm4838_vm0 }
0x1776   : > { %v4834_v50 = vsub.f32 1.0, %v4833_v63  ;;  %vm4854_vm10 = vmor %vm4852_vm1, %vm4853_vm15 }
0x1777   : > { %v4849_v29 = vsub.f32 1.0, %v4848_v0 }
0x1778   : > { %v4835_v61 = vmul.f32 %v5977_v57, %v4834_v50 }
0x1779   : > { %v4850_v24 = vmul.f32 %v5979_v56, %v4849_v29 }
0x177a   : > { %v4836_v37 = vadd.f32 %v5977_v57, %v4835_v61 }
0x177b   : > { %v4851_v43 = vadd.f32 %v5979_v56, %v4850_v24 }
0x177c   : > { %v4840_v51 = vsel %vm9002_vm11, %v5977_v57, %v4836_v37 }
0x177d   : > { %v4855_v36 = vsel %vm4854_vm10, %v5979_v56, %v4851_v43  ;;  %v4845_v5 = vsel %vm4842_vm5, %v4844_v47, %v4840_v51 }
0x177e   : > { %v4860_v25 = vsel %vm4857_vm9, %v4859_v38, %v4855_v36 }
0x177f   : > { %v4864_v20 = vrot.slane %v4860_v25, 7 }
0x1781   : > { %v4865_v16 = vsel %vm9445_vm3, %v4845_v5, %v4864_v20 }
0x1782   : > { %4871 = vst.msk [vmem:[%s758_s9] sm:$0x3] %vm4869_vm6, %v4865_v16 }
0x1783   : > { %6097 = shalt.err (!%p6094_p11)
}
0x1784   : > { %5540 = dma.vmem_to_hbm [thread:$0]  (%p6377_p3), %s4886_s7, 32, %s4888_s21, %s4873_s0  }
0x1785 PF: > { %s9446_s29 = sld [smem:[#allocation13_spill]]  ;;  %p9448_p12 = scmp.ge.s32.totalorder %s6140_s1, 2 }
0x1787   : > { %p5554_p13 = pnand %p9448_p12, %p6346_p6 }
0x1789   : > { %p5555_p0 = pneg %p5554_p13 }
0x178b   : > { %s4899_s26 = sand.u32 1, %s9446_s29  }
0x178c   : > { %s4900_s6 = scalar_lea.sflag [#allocation5], %s4899_s26 }
0x178d   : > { %6123 = dma.done.wait (%p5555_p0), %s4900_s6, 32  }
0x178e   : > { %6125 = vsyncadd (%p5555_p0), %s4900_s6, 4294967264  ;;  %s9449_s1 = sld [smem:[#allocation16_spill]]  ;;  %s9452_s24 = smov %s6132_s25 }
0x178f   : > { %s9450_s8 = sld [smem:[#allocation14_spill]] }
0x1790   : > { %s9451_s5 = sld [smem:[#allocation17_spill]] }
0x1794   : > { %p39_p5 = scmp.ge.s32.totalorder %s9449_s1, 4  }
0x1795   : > { %s9453_s25 = smov %s9450_s8 }
0x1796   :  { %41 = sbr.rel (!%p39_p5) target bundleno = 25 (0x19), region = 165 }
0x179b   :  { %4906 = vsyncpa [#allocation4], 1 }
0x179c   :  { %4908 = vsyncpa [#allocation4 + $0x1], 1 }
0x179d   :  { %4909 = vsyncpa [#allocation7], 1 }
0x179e   :  { %4910 = vsyncpa [#allocation5], 1 }
0x179f   :  { %4912 = vsyncpa [#allocation5 + $0x1], 1 }

</bundles_post_ra>
